<compile_context>
chip_gen: v6e
topology: v6e:2x2x1
jax: 0.10.0
libtpu: 0.0.40
codegen_flags: <defaults>
</compile_context>

<pallas_src>
import math

import jax
import jax.numpy as jnp
from jax.experimental import pallas as pl
from jax.experimental.pallas import tpu as pltpu

# ----------------------------- model dims ------------------------------------
META_DIM = 8          # meta_v_dim
Z_DIM = 32            # z_dim  (z//4 = 8, z//2 = 16)
BASE_IN = 4           # base_v_input_dim
BASE_OUT = 3          # base_v_output_dim
DYN = 16              # dynamic_layer_dim
BATCH = 2

N_TRUNK = 15          # l0 + (rb1,rb2)*2 + l1 + (rb3,rb4)*2 + l2 + (rb5,rb6)*2

# ----------------------------- packed-slab layout -----------------------------
SLAB_ROWS = 40        # rows 0..31: weight (in x out, zero padded); row 32: bias
BIAS_ROW = 32
IN_PAD = 64           # fused activation input: meta_v lanes 0..7, base_v lanes 32..35
BASE_OFF = 32
OUT_PAD = 128         # fused output: z lanes 0..31, dyn-MLP output lanes 32..34
N_ACC = 4             # independent FMA accumulators (ILP)

# Head slab column layout (all per-sample weights generated from one slab).
HEAD_W1 = DYN * BASE_IN            # 64  (i-major: col = i*DYN + d, via perm1)
HEAD_B1 = DYN                      # 16
HEAD_W2 = BASE_OUT * DYN           # 48  (k-major: col = k*DYN + j == original order)
HEAD_B2 = BASE_OUT                 # 3
OFF_W1 = 0
OFF_B1 = OFF_W1 + HEAD_W1          # 64
OFF_W2 = OFF_B1 + HEAD_B1          # 80
OFF_B2 = OFF_W2 + HEAD_W2          # 128
HEAD_COLS = OFF_B2 + HEAD_B2       # 131
HEAD_PAD = 256                     # lane-padded slab width


# ----------------------------- fused Pallas kernel ----------------------------
def fused_hypernet_kernel(xin_ref, tw_ref, hw_ref, out_ref):
    """xin: (B, 64)   tw: (15, 40, 32)   hw: (40, 256)   out: (B, 128)."""
    xin = xin_ref[...]

    def fma_linear(x, wslab, in_dim):
        """y = x[:, :in_dim] @ wslab[:in_dim, :] + wslab[BIAS_ROW, :].

        Unrolled VPU broadcast-FMAs (no MXU weight push / result drain):
        x[:, k:k+1] is a lane-slice broadcast over the output lanes,
        wslab[k:k+1, :] is a sublane-slice broadcast over the batch sublanes.
        Multiple independent accumulators keep the dependent chain short.
        """
        n_acc = min(N_ACC, in_dim)
        accs = [None] * n_acc
        for k in range(in_dim):
            term = x[:, k:k + 1] * wslab[k:k + 1, :]
            a = k % n_acc
            accs[a] = term if accs[a] is None else accs[a] + term
        while len(accs) > 1:                      # balanced combine tree
            accs = [accs[i] + accs[i + 1] if i + 1 < len(accs) else accs[i]
                    for i in range(0, len(accs), 2)]
        return accs[0] + wslab[BIAS_ROW:BIAS_ROW + 1, :]

    def lin(x, idx, in_dim):
        return fma_linear(x, tw_ref[idx], in_dim)

    def resblock(x, i1, i2, dim):
        h = jnp.maximum(x, 0.0)
        h = lin(h, i1, dim)
        h = jnp.maximum(h, 0.0)
        h = lin(h, i2, dim)
        return x + h

    z4, z2 = Z_DIM // 4, Z_DIM // 2

    # ---- Meta_Embadding trunk (feature widths zero-padded to Z_DIM lanes) ----
    x = lin(xin, 0, META_DIM)                        # Linear(meta_dim, z/4)
    x = resblock(x, 1, 2, z4)                        # ResBlock(z/4)
    x = resblock(x, 3, 4, z4)                        # ResBlock(z/4)
    x = lin(x, 5, z4)                                # Linear(z/4, z/2)
    x = resblock(x, 6, 7, z2)                        # ResBlock(z/2)
    x = resblock(x, 8, 9, z2)                        # ResBlock(z/2)
    x = lin(x, 10, z2)                               # Linear(z/2, z)
    x = resblock(x, 11, 12, Z_DIM)                   # ResBlock(z)
    x = resblock(x, 13, 14, Z_DIM)                   # ResBlock(z)
    # x == Meta_Embadding.forward(meta_v)             (B, 32)

    # ---- Heads: one fused slab generates all per-sample weights --------------
    heads = fma_linear(x, hw_ref[...], Z_DIM)        # (B, 256)

    # ---- dynamic per-sample MLP: relu(W1 v + b1) -> W2 h + b2 ----------------
    v = xin[:, BASE_OFF:BASE_OFF + BASE_IN]          # (B, 4)
    vb = [v[:, i:i + 1] for i in range(BASE_IN)]     # hoisted broadcasts
    a0 = heads[:, OFF_B1:OFF_B1 + DYN] + heads[:, OFF_W1:OFF_W1 + DYN] * vb[0]
    a1 = heads[:, OFF_W1 + DYN:OFF_W1 + 2 * DYN] * vb[1]
    a0 = a0 + heads[:, OFF_W1 + 2 * DYN:OFF_W1 + 3 * DYN] * vb[2]
    a1 = a1 + heads[:, OFF_W1 + 3 * DYN:OFF_W1 + 4 * DYN] * vb[3]
    h = jnp.maximum(a0 + a1, 0.0)                    # (B, 16)

    # second contraction: 3 aligned 16-lane products + 3 last-axis reductions
    out_ref[...] = jnp.zeros(out_ref.shape, out_ref.dtype)
    out_ref[:, 0:Z_DIM] = x.astype(out_ref.dtype)
    for kk in range(BASE_OUT):
        prod = heads[:, OFF_W2 + kk * DYN:OFF_W2 + (kk + 1) * DYN] * h
        okk = (jnp.sum(prod, axis=-1, keepdims=True)
               + heads[:, OFF_B2 + kk:OFF_B2 + kk + 1])
        out_ref[:, Z_DIM + kk:Z_DIM + kk + 1] = okk.astype(out_ref.dtype)


# ----------------------------- wrapper ----------------------------------------
def _fused_forward(packed, meta_v, base_v):
    B = meta_v.shape[0]
    xin = jnp.zeros((B, IN_PAD), jnp.float32)
    xin = xin.at[:, :META_DIM].set(meta_v.astype(jnp.float32))
    xin = xin.at[:, BASE_OFF:BASE_OFF + BASE_IN].set(base_v.astype(jnp.float32))

    vmem = pl.BlockSpec(memory_space=pltpu.MemorySpace.VMEM)
    out = pl.pallas_call(
        fused_hypernet_kernel,
        out_shape=jax.ShapeDtypeStruct((B, OUT_PAD), jnp.float32),
        in_specs=[vmem, vmem, vmem],
        out_specs=vmem,
    )(xin, packed["tw"], packed["hw"])
    # Note: for large batches, add a leading "parallel" batch grid axis
    # (block rows a multiple of 8) to engage v7x's second TensorCore.
    return out[:, :Z_DIM], out[:, Z_DIM:Z_DIM + BASE_OUT]


hypernetwork_forward = jax.jit(_fused_forward)


# ----------------------------- deterministic parameter init ------------------
def init_linear(key, din, dout, w_bound=None, bias_zero=False):
    """Weights stored as (din, dout) = PyTorch weight.T; same math."""
    kw, kb = jax.random.split(key)
    if w_bound is None:
        # Meta_Embadding.init_layers: uniform(-1/(2*sqrt(fan_in)), ...)
        w_bound = 1.0 / (2.0 * math.sqrt(din))
    w = jax.random.uniform(kw, (din, dout), jnp.float32, -w_bound, w_bound)
    if bias_zero:
        b = jnp.zeros((1, dout), jnp.float32)
    else:
        bb = 1.0 / math.sqrt(din)
        b = jax.random.uniform(kb, (1, dout), jnp.float32, -bb, bb)
    return w, b


def init_params(key):
    z4, z2 = Z_DIM // 4, Z_DIM // 2
    keys = jax.random.split(key, 32)
    k = iter(keys)
    p = {}
    # Meta_Embadding trunk
    p["l0"] = init_linear(next(k), META_DIM, z4)
    p["rb1"] = (*init_linear(next(k), z4, z4), *init_linear(next(k), z4, z4))
    p["rb2"] = (*init_linear(next(k), z4, z4), *init_linear(next(k), z4, z4))
    p["l1"] = init_linear(next(k), z4, z2)
    p["rb3"] = (*init_linear(next(k), z2, z2), *init_linear(next(k), z2, z2))
    p["rb4"] = (*init_linear(next(k), z2, z2), *init_linear(next(k), z2, z2))
    p["l2"] = init_linear(next(k), z2, Z_DIM)
    p["rb5"] = (*init_linear(next(k), Z_DIM, Z_DIM), *init_linear(next(k), Z_DIM, Z_DIM))
    p["rb6"] = (*init_linear(next(k), Z_DIM, Z_DIM), *init_linear(next(k), Z_DIM, Z_DIM))
    # Heads (uniform(-stddev, stddev) weights, zero biases)
    p["head1_W"] = init_linear(next(k), Z_DIM, BASE_IN * DYN, w_bound=0.05, bias_zero=True)
    p["head1_b"] = init_linear(next(k), Z_DIM, DYN, w_bound=0.05, bias_zero=True)
    p["head2_W"] = init_linear(next(k), Z_DIM, DYN * BASE_OUT, w_bound=0.008, bias_zero=True)
    p["head2_b"] = init_linear(next(k), Z_DIM, BASE_OUT, w_bound=0.008, bias_zero=True)
    return p


def pack_params(p):
    """One-time packing (plain JAX):
    - trunk: (15, 40, 32) slabs, weight in rows 0..in_dim-1, bias in row 32.
    - heads: (40, 256) slab; w1 columns permuted i-major (perm1) so the dynamic
      first contraction is 4 aligned 16-lane FMAs; w2 kept k-major (NO perm2) so
      the second contraction is 3 aligned 16-lane products + reductions; the
      head-slab bias row (row 32) carries the generator biases."""

    def slab(w, b, cols):
        s = jnp.zeros((SLAB_ROWS, cols), jnp.float32)
        s = s.at[:w.shape[0], :w.shape[1]].set(w)
        s = s.at[BIAS_ROW, :b.shape[1]].set(b[0])
        return s

    layers = [p["l0"]]
    for name in ("rb1", "rb2"):
        w1, b1, w2, b2 = p[name]
        layers += [(w1, b1), (w2, b2)]
    layers.append(p["l1"])
    for name in ("rb3", "rb4"):
        w1, b1, w2, b2 = p[name]
        layers += [(w1, b1), (w2, b2)]
    layers.append(p["l2"])
    for name in ("rb5", "rb6"):
        w1, b1, w2, b2 = p[name]
        layers += [(w1, b1), (w2, b2)]
    assert len(layers) == N_TRUNK

    tw = jnp.stack([slab(w, b, Z_DIM) for (w, b) in layers])   # (15, 40, 32)

    def perm1(a):   # col d*BASE_IN+i  ->  i*DYN+d  (w1[b,d,i] contiguous over d)
        r = a.shape[0]
        return a.reshape(r, DYN, BASE_IN).transpose(0, 2, 1).reshape(r, DYN * BASE_IN)

    h1W, h1Wb = p["head1_W"]   # (Z, 64), (1, 64)
    h1b, h1bb = p["head1_b"]   # (Z, 16), (1, 16)
    h2W, h2Wb = p["head2_W"]   # (Z, 48), (1, 48)
    h2b, h2bb = p["head2_b"]   # (Z, 3),  (1, 3)

    hw = jnp.zeros((SLAB_ROWS, HEAD_PAD), jnp.float32)
    hw = hw.at[:Z_DIM, OFF_W1:OFF_W1 + HEAD_W1].set(perm1(h1W))
    hw = hw.at[BIAS_ROW, OFF_W1:OFF_W1 + HEAD_W1].set(perm1(h1Wb)[0])
    hw = hw.at[:Z_DIM, OFF_B1:OFF_B1 + HEAD_B1].set(h1b)
    hw = hw.at[BIAS_ROW, OFF_B1:OFF_B1 + HEAD_B1].set(h1bb[0])
    hw = hw.at[:Z_DIM, OFF_W2:OFF_W2 + HEAD_W2].set(h2W)          # k-major, no perm
    hw = hw.at[BIAS_ROW, OFF_W2:OFF_W2 + HEAD_W2].set(h2Wb[0])
    hw = hw.at[:Z_DIM, OFF_B2:OFF_B2 + HEAD_B2].set(h2b)
    hw = hw.at[BIAS_ROW, OFF_B2:OFF_B2 + HEAD_B2].set(h2bb[0])

    return {"tw": tw, "hw": hw}


# ----------------------------- pure-JAX reference (sanity check) -------------
def reference_forward(params, meta_v, base_v):
    def lin(x, wb):
        w, b = wb
        return x @ w + b

    def rb(x, wb):
        w1, b1, w2, b2 = wb
        h = jnp.maximum(x, 0.0) @ w1 + b1
        h = jnp.maximum(h, 0.0) @ w2 + b2
        return x + h

    z = lin(meta_v, params["l0"])
    z = rb(z, params["rb1"]); z = rb(z, params["rb2"])
    z = lin(z, params["l1"])
    z = rb(z, params["rb3"]); z = rb(z, params["rb4"])
    z = lin(z, params["l2"])
    z = rb(z, params["rb5"]); z = rb(z, params["rb6"])
    B = z.shape[0]
    w1 = lin(z, params["head1_W"]).reshape(B, DYN, BASE_IN)
    b1 = lin(z, params["head1_b"])
    w2 = lin(z, params["head2_W"]).reshape(B, BASE_OUT, DYN)
    b2 = lin(z, params["head2_b"])
    h = jnp.maximum(jnp.einsum("bji,bi->bj", w1, base_v) + b1, 0.0)
    out = jnp.einsum("bkj,bj->bk", w2, h) + b2
    return z, out


# ----------------------------- main -------------------------------------------
if __name__ == "__main__":
    key = jax.random.PRNGKey(0)
    kp, km, kb = jax.random.split(key, 3)

    params = init_params(kp)
    packed = pack_params(params)      # one-time: weights packed for the fused kernel
    meta_v = jax.random.normal(km, (BATCH, META_DIM), jnp.float32)
    base_v = jax.random.normal(kb, (BATCH, BASE_IN), jnp.float32)

    z, out = hypernetwork_forward(packed, meta_v, base_v)
    jax.block_until_ready((z, out))

    z_ref, out_ref = reference_forward(params, meta_v, base_v)
    assert z.shape == (BATCH, Z_DIM) and out.shape == (BATCH, BASE_OUT)
    assert jnp.allclose(z, z_ref, atol=1e-4, rtol=1e-4)
    assert jnp.allclose(out, out_ref, atol=1e-4, rtol=1e-4)

    print("KERNEL_OK")
</pallas_src>

<mosaic_0001>
module attributes {stable_mosaic.version = 11 : i64} {
  func.func @fused_hypernet_kernel(%arg0: memref<2x64xf32, #tpu.memory_space<vmem>>, %arg1: memref<15x40x32xf32, #tpu.memory_space<vmem>>, %arg2: memref<40x256xf32, #tpu.memory_space<vmem>>, %arg3: memref<2x128xf32, #tpu.memory_space<vmem>>) attributes {dimension_semantics = [], scalar_prefetch = 0 : i64, scratch_operands = 0 : i64, tpu.core_type = #tpu.core_type<tc>} {
    %c0 = arith.constant 0 : index
    %c0_0 = arith.constant 0 : index
    %0 = vector.load %arg0[%c0, %c0_0] : memref<2x64xf32, #tpu.memory_space<vmem>>, vector<2x64xf32>
    %c0_1 = arith.constant 0 : index
    %c0_2 = arith.constant 0 : index
    %c0_3 = arith.constant 0 : index
    %1 = vector.load %arg1[%c0_1, %c0_2, %c0_3] : memref<15x40x32xf32, #tpu.memory_space<vmem>>, vector<1x40x32xf32>
    %2 = vector.shape_cast %1 : vector<1x40x32xf32> to vector<40x32xf32>
    %3 = vector.extract_strided_slice %0 {offsets = [0, 0], sizes = [2, 1], strides = [1, 1]} : vector<2x64xf32> to vector<2x1xf32>
    %4 = vector.extract_strided_slice %2 {offsets = [0, 0], sizes = [1, 32], strides = [1, 1]} : vector<40x32xf32> to vector<1x32xf32>
    %5 = vector.broadcast %3 : vector<2x1xf32> to vector<2x32xf32>
    %6 = vector.broadcast %4 : vector<1x32xf32> to vector<2x32xf32>
    %7 = arith.mulf %5, %6 : vector<2x32xf32>
    %8 = vector.extract_strided_slice %0 {offsets = [0, 1], sizes = [2, 1], strides = [1, 1]} : vector<2x64xf32> to vector<2x1xf32>
    %9 = vector.extract_strided_slice %2 {offsets = [1, 0], sizes = [1, 32], strides = [1, 1]} : vector<40x32xf32> to vector<1x32xf32>
    %10 = vector.broadcast %8 : vector<2x1xf32> to vector<2x32xf32>
    %11 = vector.broadcast %9 : vector<1x32xf32> to vector<2x32xf32>
    %12 = arith.mulf %10, %11 : vector<2x32xf32>
    %13 = vector.extract_strided_slice %0 {offsets = [0, 2], sizes = [2, 1], strides = [1, 1]} : vector<2x64xf32> to vector<2x1xf32>
    %14 = vector.extract_strided_slice %2 {offsets = [2, 0], sizes = [1, 32], strides = [1, 1]} : vector<40x32xf32> to vector<1x32xf32>
    %15 = vector.broadcast %13 : vector<2x1xf32> to vector<2x32xf32>
    %16 = vector.broadcast %14 : vector<1x32xf32> to vector<2x32xf32>
    %17 = arith.mulf %15, %16 : vector<2x32xf32>
    %18 = vector.extract_strided_slice %0 {offsets = [0, 3], sizes = [2, 1], strides = [1, 1]} : vector<2x64xf32> to vector<2x1xf32>
    %19 = vector.extract_strided_slice %2 {offsets = [3, 0], sizes = [1, 32], strides = [1, 1]} : vector<40x32xf32> to vector<1x32xf32>
    %20 = vector.broadcast %18 : vector<2x1xf32> to vector<2x32xf32>
    %21 = vector.broadcast %19 : vector<1x32xf32> to vector<2x32xf32>
    %22 = arith.mulf %20, %21 : vector<2x32xf32>
    %23 = vector.extract_strided_slice %0 {offsets = [0, 4], sizes = [2, 1], strides = [1, 1]} : vector<2x64xf32> to vector<2x1xf32>
    %24 = vector.extract_strided_slice %2 {offsets = [4, 0], sizes = [1, 32], strides = [1, 1]} : vector<40x32xf32> to vector<1x32xf32>
    %25 = vector.broadcast %23 : vector<2x1xf32> to vector<2x32xf32>
    %26 = vector.broadcast %24 : vector<1x32xf32> to vector<2x32xf32>
    %27 = arith.mulf %25, %26 : vector<2x32xf32>
    %28 = arith.addf %7, %27 : vector<2x32xf32>
    %29 = vector.extract_strided_slice %0 {offsets = [0, 5], sizes = [2, 1], strides = [1, 1]} : vector<2x64xf32> to vector<2x1xf32>
    %30 = vector.extract_strided_slice %2 {offsets = [5, 0], sizes = [1, 32], strides = [1, 1]} : vector<40x32xf32> to vector<1x32xf32>
    %31 = vector.broadcast %29 : vector<2x1xf32> to vector<2x32xf32>
    %32 = vector.broadcast %30 : vector<1x32xf32> to vector<2x32xf32>
    %33 = arith.mulf %31, %32 : vector<2x32xf32>
    %34 = arith.addf %12, %33 : vector<2x32xf32>
    %35 = vector.extract_strided_slice %0 {offsets = [0, 6], sizes = [2, 1], strides = [1, 1]} : vector<2x64xf32> to vector<2x1xf32>
    %36 = vector.extract_strided_slice %2 {offsets = [6, 0], sizes = [1, 32], strides = [1, 1]} : vector<40x32xf32> to vector<1x32xf32>
    %37 = vector.broadcast %35 : vector<2x1xf32> to vector<2x32xf32>
    %38 = vector.broadcast %36 : vector<1x32xf32> to vector<2x32xf32>
    %39 = arith.mulf %37, %38 : vector<2x32xf32>
    %40 = arith.addf %17, %39 : vector<2x32xf32>
    %41 = vector.extract_strided_slice %0 {offsets = [0, 7], sizes = [2, 1], strides = [1, 1]} : vector<2x64xf32> to vector<2x1xf32>
    %42 = vector.extract_strided_slice %2 {offsets = [7, 0], sizes = [1, 32], strides = [1, 1]} : vector<40x32xf32> to vector<1x32xf32>
    %43 = vector.broadcast %41 : vector<2x1xf32> to vector<2x32xf32>
    %44 = vector.broadcast %42 : vector<1x32xf32> to vector<2x32xf32>
    %45 = arith.mulf %43, %44 : vector<2x32xf32>
    %46 = arith.addf %22, %45 : vector<2x32xf32>
    %47 = arith.addf %28, %34 : vector<2x32xf32>
    %48 = arith.addf %40, %46 : vector<2x32xf32>
    %49 = arith.addf %47, %48 : vector<2x32xf32>
    %50 = vector.extract_strided_slice %2 {offsets = [32, 0], sizes = [1, 32], strides = [1, 1]} : vector<40x32xf32> to vector<1x32xf32>
    %51 = vector.broadcast %50 : vector<1x32xf32> to vector<2x32xf32>
    %52 = arith.addf %49, %51 : vector<2x32xf32>
    %cst = arith.constant 0.000000e+00 : f32
    %53 = vector.broadcast %cst : f32 to vector<2x32xf32>
    %54 = arith.maximumf %52, %53 : vector<2x32xf32>
    %c1 = arith.constant 1 : index
    %c0_4 = arith.constant 0 : index
    %c0_5 = arith.constant 0 : index
    %55 = vector.load %arg1[%c1, %c0_4, %c0_5] : memref<15x40x32xf32, #tpu.memory_space<vmem>>, vector<1x40x32xf32>
    %56 = vector.shape_cast %55 : vector<1x40x32xf32> to vector<40x32xf32>
    %57 = vector.extract_strided_slice %54 {offsets = [0, 0], sizes = [2, 1], strides = [1, 1]} : vector<2x32xf32> to vector<2x1xf32>
    %58 = vector.extract_strided_slice %56 {offsets = [0, 0], sizes = [1, 32], strides = [1, 1]} : vector<40x32xf32> to vector<1x32xf32>
    %59 = vector.broadcast %57 : vector<2x1xf32> to vector<2x32xf32>
    %60 = vector.broadcast %58 : vector<1x32xf32> to vector<2x32xf32>
    %61 = arith.mulf %59, %60 : vector<2x32xf32>
    %62 = vector.extract_strided_slice %54 {offsets = [0, 1], sizes = [2, 1], strides = [1, 1]} : vector<2x32xf32> to vector<2x1xf32>
    %63 = vector.extract_strided_slice %56 {offsets = [1, 0], sizes = [1, 32], strides = [1, 1]} : vector<40x32xf32> to vector<1x32xf32>
    %64 = vector.broadcast %62 : vector<2x1xf32> to vector<2x32xf32>
    %65 = vector.broadcast %63 : vector<1x32xf32> to vector<2x32xf32>
    %66 = arith.mulf %64, %65 : vector<2x32xf32>
    %67 = vector.extract_strided_slice %54 {offsets = [0, 2], sizes = [2, 1], strides = [1, 1]} : vector<2x32xf32> to vector<2x1xf32>
    %68 = vector.extract_strided_slice %56 {offsets = [2, 0], sizes = [1, 32], strides = [1, 1]} : vector<40x32xf32> to vector<1x32xf32>
    %69 = vector.broadcast %67 : vector<2x1xf32> to vector<2x32xf32>
    %70 = vector.broadcast %68 : vector<1x32xf32> to vector<2x32xf32>
    %71 = arith.mulf %69, %70 : vector<2x32xf32>
    %72 = vector.extract_strided_slice %54 {offsets = [0, 3], sizes = [2, 1], strides = [1, 1]} : vector<2x32xf32> to vector<2x1xf32>
    %73 = vector.extract_strided_slice %56 {offsets = [3, 0], sizes = [1, 32], strides = [1, 1]} : vector<40x32xf32> to vector<1x32xf32>
    %74 = vector.broadcast %72 : vector<2x1xf32> to vector<2x32xf32>
    %75 = vector.broadcast %73 : vector<1x32xf32> to vector<2x32xf32>
    %76 = arith.mulf %74, %75 : vector<2x32xf32>
    %77 = vector.extract_strided_slice %54 {offsets = [0, 4], sizes = [2, 1], strides = [1, 1]} : vector<2x32xf32> to vector<2x1xf32>
    %78 = vector.extract_strided_slice %56 {offsets = [4, 0], sizes = [1, 32], strides = [1, 1]} : vector<40x32xf32> to vector<1x32xf32>
    %79 = vector.broadcast %77 : vector<2x1xf32> to vector<2x32xf32>
    %80 = vector.broadcast %78 : vector<1x32xf32> to vector<2x32xf32>
    %81 = arith.mulf %79, %80 : vector<2x32xf32>
    %82 = arith.addf %61, %81 : vector<2x32xf32>
    %83 = vector.extract_strided_slice %54 {offsets = [0, 5], sizes = [2, 1], strides = [1, 1]} : vector<2x32xf32> to vector<2x1xf32>
    %84 = vector.extract_strided_slice %56 {offsets = [5, 0], sizes = [1, 32], strides = [1, 1]} : vector<40x32xf32> to vector<1x32xf32>
    %85 = vector.broadcast %83 : vector<2x1xf32> to vector<2x32xf32>
    %86 = vector.broadcast %84 : vector<1x32xf32> to vector<2x32xf32>
    %87 = arith.mulf %85, %86 : vector<2x32xf32>
    %88 = arith.addf %66, %87 : vector<2x32xf32>
    %89 = vector.extract_strided_slice %54 {offsets = [0, 6], sizes = [2, 1], strides = [1, 1]} : vector<2x32xf32> to vector<2x1xf32>
    %90 = vector.extract_strided_slice %56 {offsets = [6, 0], sizes = [1, 32], strides = [1, 1]} : vector<40x32xf32> to vector<1x32xf32>
    %91 = vector.broadcast %89 : vector<2x1xf32> to vector<2x32xf32>
    %92 = vector.broadcast %90 : vector<1x32xf32> to vector<2x32xf32>
    %93 = arith.mulf %91, %92 : vector<2x32xf32>
    %94 = arith.addf %71, %93 : vector<2x32xf32>
    %95 = vector.extract_strided_slice %54 {offsets = [0, 7], sizes = [2, 1], strides = [1, 1]} : vector<2x32xf32> to vector<2x1xf32>
    %96 = vector.extract_strided_slice %56 {offsets = [7, 0], sizes = [1, 32], strides = [1, 1]} : vector<40x32xf32> to vector<1x32xf32>
    %97 = vector.broadcast %95 : vector<2x1xf32> to vector<2x32xf32>
    %98 = vector.broadcast %96 : vector<1x32xf32> to vector<2x32xf32>
    %99 = arith.mulf %97, %98 : vector<2x32xf32>
    %100 = arith.addf %76, %99 : vector<2x32xf32>
    %101 = arith.addf %82, %88 : vector<2x32xf32>
    %102 = arith.addf %94, %100 : vector<2x32xf32>
    %103 = arith.addf %101, %102 : vector<2x32xf32>
    %104 = vector.extract_strided_slice %56 {offsets = [32, 0], sizes = [1, 32], strides = [1, 1]} : vector<40x32xf32> to vector<1x32xf32>
    %105 = vector.broadcast %104 : vector<1x32xf32> to vector<2x32xf32>
    %106 = arith.addf %103, %105 : vector<2x32xf32>
    %cst_6 = arith.constant 0.000000e+00 : f32
    %107 = vector.broadcast %cst_6 : f32 to vector<2x32xf32>
    %108 = arith.maximumf %106, %107 : vector<2x32xf32>
    %c2 = arith.constant 2 : index
    %c0_7 = arith.constant 0 : index
    %c0_8 = arith.constant 0 : index
    %109 = vector.load %arg1[%c2, %c0_7, %c0_8] : memref<15x40x32xf32, #tpu.memory_space<vmem>>, vector<1x40x32xf32>
    %110 = vector.shape_cast %109 : vector<1x40x32xf32> to vector<40x32xf32>
    %111 = vector.extract_strided_slice %108 {offsets = [0, 0], sizes = [2, 1], strides = [1, 1]} : vector<2x32xf32> to vector<2x1xf32>
    %112 = vector.extract_strided_slice %110 {offsets = [0, 0], sizes = [1, 32], strides = [1, 1]} : vector<40x32xf32> to vector<1x32xf32>
    %113 = vector.broadcast %111 : vector<2x1xf32> to vector<2x32xf32>
    %114 = vector.broadcast %112 : vector<1x32xf32> to vector<2x32xf32>
    %115 = arith.mulf %113, %114 : vector<2x32xf32>
    %116 = vector.extract_strided_slice %108 {offsets = [0, 1], sizes = [2, 1], strides = [1, 1]} : vector<2x32xf32> to vector<2x1xf32>
    %117 = vector.extract_strided_slice %110 {offsets = [1, 0], sizes = [1, 32], strides = [1, 1]} : vector<40x32xf32> to vector<1x32xf32>
    %118 = vector.broadcast %116 : vector<2x1xf32> to vector<2x32xf32>
    %119 = vector.broadcast %117 : vector<1x32xf32> to vector<2x32xf32>
    %120 = arith.mulf %118, %119 : vector<2x32xf32>
    %121 = vector.extract_strided_slice %108 {offsets = [0, 2], sizes = [2, 1], strides = [1, 1]} : vector<2x32xf32> to vector<2x1xf32>
    %122 = vector.extract_strided_slice %110 {offsets = [2, 0], sizes = [1, 32], strides = [1, 1]} : vector<40x32xf32> to vector<1x32xf32>
    %123 = vector.broadcast %121 : vector<2x1xf32> to vector<2x32xf32>
    %124 = vector.broadcast %122 : vector<1x32xf32> to vector<2x32xf32>
    %125 = arith.mulf %123, %124 : vector<2x32xf32>
    %126 = vector.extract_strided_slice %108 {offsets = [0, 3], sizes = [2, 1], strides = [1, 1]} : vector<2x32xf32> to vector<2x1xf32>
    %127 = vector.extract_strided_slice %110 {offsets = [3, 0], sizes = [1, 32], strides = [1, 1]} : vector<40x32xf32> to vector<1x32xf32>
    %128 = vector.broadcast %126 : vector<2x1xf32> to vector<2x32xf32>
    %129 = vector.broadcast %127 : vector<1x32xf32> to vector<2x32xf32>
    %130 = arith.mulf %128, %129 : vector<2x32xf32>
    %131 = vector.extract_strided_slice %108 {offsets = [0, 4], sizes = [2, 1], strides = [1, 1]} : vector<2x32xf32> to vector<2x1xf32>
    %132 = vector.extract_strided_slice %110 {offsets = [4, 0], sizes = [1, 32], strides = [1, 1]} : vector<40x32xf32> to vector<1x32xf32>
    %133 = vector.broadcast %131 : vector<2x1xf32> to vector<2x32xf32>
    %134 = vector.broadcast %132 : vector<1x32xf32> to vector<2x32xf32>
    %135 = arith.mulf %133, %134 : vector<2x32xf32>
    %136 = arith.addf %115, %135 : vector<2x32xf32>
    %137 = vector.extract_strided_slice %108 {offsets = [0, 5], sizes = [2, 1], strides = [1, 1]} : vector<2x32xf32> to vector<2x1xf32>
    %138 = vector.extract_strided_slice %110 {offsets = [5, 0], sizes = [1, 32], strides = [1, 1]} : vector<40x32xf32> to vector<1x32xf32>
    %139 = vector.broadcast %137 : vector<2x1xf32> to vector<2x32xf32>
    %140 = vector.broadcast %138 : vector<1x32xf32> to vector<2x32xf32>
    %141 = arith.mulf %139, %140 : vector<2x32xf32>
    %142 = arith.addf %120, %141 : vector<2x32xf32>
    %143 = vector.extract_strided_slice %108 {offsets = [0, 6], sizes = [2, 1], strides = [1, 1]} : vector<2x32xf32> to vector<2x1xf32>
    %144 = vector.extract_strided_slice %110 {offsets = [6, 0], sizes = [1, 32], strides = [1, 1]} : vector<40x32xf32> to vector<1x32xf32>
    %145 = vector.broadcast %143 : vector<2x1xf32> to vector<2x32xf32>
    %146 = vector.broadcast %144 : vector<1x32xf32> to vector<2x32xf32>
    %147 = arith.mulf %145, %146 : vector<2x32xf32>
    %148 = arith.addf %125, %147 : vector<2x32xf32>
    %149 = vector.extract_strided_slice %108 {offsets = [0, 7], sizes = [2, 1], strides = [1, 1]} : vector<2x32xf32> to vector<2x1xf32>
    %150 = vector.extract_strided_slice %110 {offsets = [7, 0], sizes = [1, 32], strides = [1, 1]} : vector<40x32xf32> to vector<1x32xf32>
    %151 = vector.broadcast %149 : vector<2x1xf32> to vector<2x32xf32>
    %152 = vector.broadcast %150 : vector<1x32xf32> to vector<2x32xf32>
    %153 = arith.mulf %151, %152 : vector<2x32xf32>
    %154 = arith.addf %130, %153 : vector<2x32xf32>
    %155 = arith.addf %136, %142 : vector<2x32xf32>
    %156 = arith.addf %148, %154 : vector<2x32xf32>
    %157 = arith.addf %155, %156 : vector<2x32xf32>
    %158 = vector.extract_strided_slice %110 {offsets = [32, 0], sizes = [1, 32], strides = [1, 1]} : vector<40x32xf32> to vector<1x32xf32>
    %159 = vector.broadcast %158 : vector<1x32xf32> to vector<2x32xf32>
    %160 = arith.addf %157, %159 : vector<2x32xf32>
    %161 = arith.addf %52, %160 : vector<2x32xf32>
    %cst_9 = arith.constant 0.000000e+00 : f32
    %162 = vector.broadcast %cst_9 : f32 to vector<2x32xf32>
    %163 = arith.maximumf %161, %162 : vector<2x32xf32>
    %c3 = arith.constant 3 : index
    %c0_10 = arith.constant 0 : index
    %c0_11 = arith.constant 0 : index
    %164 = vector.load %arg1[%c3, %c0_10, %c0_11] : memref<15x40x32xf32, #tpu.memory_space<vmem>>, vector<1x40x32xf32>
    %165 = vector.shape_cast %164 : vector<1x40x32xf32> to vector<40x32xf32>
    %166 = vector.extract_strided_slice %163 {offsets = [0, 0], sizes = [2, 1], strides = [1, 1]} : vector<2x32xf32> to vector<2x1xf32>
    %167 = vector.extract_strided_slice %165 {offsets = [0, 0], sizes = [1, 32], strides = [1, 1]} : vector<40x32xf32> to vector<1x32xf32>
    %168 = vector.broadcast %166 : vector<2x1xf32> to vector<2x32xf32>
    %169 = vector.broadcast %167 : vector<1x32xf32> to vector<2x32xf32>
    %170 = arith.mulf %168, %169 : vector<2x32xf32>
    %171 = vector.extract_strided_slice %163 {offsets = [0, 1], sizes = [2, 1], strides = [1, 1]} : vector<2x32xf32> to vector<2x1xf32>
    %172 = vector.extract_strided_slice %165 {offsets = [1, 0], sizes = [1, 32], strides = [1, 1]} : vector<40x32xf32> to vector<1x32xf32>
    %173 = vector.broadcast %171 : vector<2x1xf32> to vector<2x32xf32>
    %174 = vector.broadcast %172 : vector<1x32xf32> to vector<2x32xf32>
    %175 = arith.mulf %173, %174 : vector<2x32xf32>
    %176 = vector.extract_strided_slice %163 {offsets = [0, 2], sizes = [2, 1], strides = [1, 1]} : vector<2x32xf32> to vector<2x1xf32>
    %177 = vector.extract_strided_slice %165 {offsets = [2, 0], sizes = [1, 32], strides = [1, 1]} : vector<40x32xf32> to vector<1x32xf32>
    %178 = vector.broadcast %176 : vector<2x1xf32> to vector<2x32xf32>
    %179 = vector.broadcast %177 : vector<1x32xf32> to vector<2x32xf32>
    %180 = arith.mulf %178, %179 : vector<2x32xf32>
    %181 = vector.extract_strided_slice %163 {offsets = [0, 3], sizes = [2, 1], strides = [1, 1]} : vector<2x32xf32> to vector<2x1xf32>
    %182 = vector.extract_strided_slice %165 {offsets = [3, 0], sizes = [1, 32], strides = [1, 1]} : vector<40x32xf32> to vector<1x32xf32>
    %183 = vector.broadcast %181 : vector<2x1xf32> to vector<2x32xf32>
    %184 = vector.broadcast %182 : vector<1x32xf32> to vector<2x32xf32>
    %185 = arith.mulf %183, %184 : vector<2x32xf32>
    %186 = vector.extract_strided_slice %163 {offsets = [0, 4], sizes = [2, 1], strides = [1, 1]} : vector<2x32xf32> to vector<2x1xf32>
    %187 = vector.extract_strided_slice %165 {offsets = [4, 0], sizes = [1, 32], strides = [1, 1]} : vector<40x32xf32> to vector<1x32xf32>
    %188 = vector.broadcast %186 : vector<2x1xf32> to vector<2x32xf32>
    %189 = vector.broadcast %187 : vector<1x32xf32> to vector<2x32xf32>
    %190 = arith.mulf %188, %189 : vector<2x32xf32>
    %191 = arith.addf %170, %190 : vector<2x32xf32>
    %192 = vector.extract_strided_slice %163 {offsets = [0, 5], sizes = [2, 1], strides = [1, 1]} : vector<2x32xf32> to vector<2x1xf32>
    %193 = vector.extract_strided_slice %165 {offsets = [5, 0], sizes = [1, 32], strides = [1, 1]} : vector<40x32xf32> to vector<1x32xf32>
    %194 = vector.broadcast %192 : vector<2x1xf32> to vector<2x32xf32>
    %195 = vector.broadcast %193 : vector<1x32xf32> to vector<2x32xf32>
    %196 = arith.mulf %194, %195 : vector<2x32xf32>
    %197 = arith.addf %175, %196 : vector<2x32xf32>
    %198 = vector.extract_strided_slice %163 {offsets = [0, 6], sizes = [2, 1], strides = [1, 1]} : vector<2x32xf32> to vector<2x1xf32>
    %199 = vector.extract_strided_slice %165 {offsets = [6, 0], sizes = [1, 32], strides = [1, 1]} : vector<40x32xf32> to vector<1x32xf32>
    %200 = vector.broadcast %198 : vector<2x1xf32> to vector<2x32xf32>
    %201 = vector.broadcast %199 : vector<1x32xf32> to vector<2x32xf32>
    %202 = arith.mulf %200, %201 : vector<2x32xf32>
    %203 = arith.addf %180, %202 : vector<2x32xf32>
    %204 = vector.extract_strided_slice %163 {offsets = [0, 7], sizes = [2, 1], strides = [1, 1]} : vector<2x32xf32> to vector<2x1xf32>
    %205 = vector.extract_strided_slice %165 {offsets = [7, 0], sizes = [1, 32], strides = [1, 1]} : vector<40x32xf32> to vector<1x32xf32>
    %206 = vector.broadcast %204 : vector<2x1xf32> to vector<2x32xf32>
    %207 = vector.broadcast %205 : vector<1x32xf32> to vector<2x32xf32>
    %208 = arith.mulf %206, %207 : vector<2x32xf32>
    %209 = arith.addf %185, %208 : vector<2x32xf32>
    %210 = arith.addf %191, %197 : vector<2x32xf32>
    %211 = arith.addf %203, %209 : vector<2x32xf32>
    %212 = arith.addf %210, %211 : vector<2x32xf32>
    %213 = vector.extract_strided_slice %165 {offsets = [32, 0], sizes = [1, 32], strides = [1, 1]} : vector<40x32xf32> to vector<1x32xf32>
    %214 = vector.broadcast %213 : vector<1x32xf32> to vector<2x32xf32>
    %215 = arith.addf %212, %214 : vector<2x32xf32>
    %cst_12 = arith.constant 0.000000e+00 : f32
    %216 = vector.broadcast %cst_12 : f32 to vector<2x32xf32>
    %217 = arith.maximumf %215, %216 : vector<2x32xf32>
    %c4 = arith.constant 4 : index
    %c0_13 = arith.constant 0 : index
    %c0_14 = arith.constant 0 : index
    %218 = vector.load %arg1[%c4, %c0_13, %c0_14] : memref<15x40x32xf32, #tpu.memory_space<vmem>>, vector<1x40x32xf32>
    %219 = vector.shape_cast %218 : vector<1x40x32xf32> to vector<40x32xf32>
    %220 = vector.extract_strided_slice %217 {offsets = [0, 0], sizes = [2, 1], strides = [1, 1]} : vector<2x32xf32> to vector<2x1xf32>
    %221 = vector.extract_strided_slice %219 {offsets = [0, 0], sizes = [1, 32], strides = [1, 1]} : vector<40x32xf32> to vector<1x32xf32>
    %222 = vector.broadcast %220 : vector<2x1xf32> to vector<2x32xf32>
    %223 = vector.broadcast %221 : vector<1x32xf32> to vector<2x32xf32>
    %224 = arith.mulf %222, %223 : vector<2x32xf32>
    %225 = vector.extract_strided_slice %217 {offsets = [0, 1], sizes = [2, 1], strides = [1, 1]} : vector<2x32xf32> to vector<2x1xf32>
    %226 = vector.extract_strided_slice %219 {offsets = [1, 0], sizes = [1, 32], strides = [1, 1]} : vector<40x32xf32> to vector<1x32xf32>
    %227 = vector.broadcast %225 : vector<2x1xf32> to vector<2x32xf32>
    %228 = vector.broadcast %226 : vector<1x32xf32> to vector<2x32xf32>
    %229 = arith.mulf %227, %228 : vector<2x32xf32>
    %230 = vector.extract_strided_slice %217 {offsets = [0, 2], sizes = [2, 1], strides = [1, 1]} : vector<2x32xf32> to vector<2x1xf32>
    %231 = vector.extract_strided_slice %219 {offsets = [2, 0], sizes = [1, 32], strides = [1, 1]} : vector<40x32xf32> to vector<1x32xf32>
    %232 = vector.broadcast %230 : vector<2x1xf32> to vector<2x32xf32>
    %233 = vector.broadcast %231 : vector<1x32xf32> to vector<2x32xf32>
    %234 = arith.mulf %232, %233 : vector<2x32xf32>
    %235 = vector.extract_strided_slice %217 {offsets = [0, 3], sizes = [2, 1], strides = [1, 1]} : vector<2x32xf32> to vector<2x1xf32>
    %236 = vector.extract_strided_slice %219 {offsets = [3, 0], sizes = [1, 32], strides = [1, 1]} : vector<40x32xf32> to vector<1x32xf32>
    %237 = vector.broadcast %235 : vector<2x1xf32> to vector<2x32xf32>
    %238 = vector.broadcast %236 : vector<1x32xf32> to vector<2x32xf32>
    %239 = arith.mulf %237, %238 : vector<2x32xf32>
    %240 = vector.extract_strided_slice %217 {offsets = [0, 4], sizes = [2, 1], strides = [1, 1]} : vector<2x32xf32> to vector<2x1xf32>
    %241 = vector.extract_strided_slice %219 {offsets = [4, 0], sizes = [1, 32], strides = [1, 1]} : vector<40x32xf32> to vector<1x32xf32>
    %242 = vector.broadcast %240 : vector<2x1xf32> to vector<2x32xf32>
    %243 = vector.broadcast %241 : vector<1x32xf32> to vector<2x32xf32>
    %244 = arith.mulf %242, %243 : vector<2x32xf32>
    %245 = arith.addf %224, %244 : vector<2x32xf32>
    %246 = vector.extract_strided_slice %217 {offsets = [0, 5], sizes = [2, 1], strides = [1, 1]} : vector<2x32xf32> to vector<2x1xf32>
    %247 = vector.extract_strided_slice %219 {offsets = [5, 0], sizes = [1, 32], strides = [1, 1]} : vector<40x32xf32> to vector<1x32xf32>
    %248 = vector.broadcast %246 : vector<2x1xf32> to vector<2x32xf32>
    %249 = vector.broadcast %247 : vector<1x32xf32> to vector<2x32xf32>
    %250 = arith.mulf %248, %249 : vector<2x32xf32>
    %251 = arith.addf %229, %250 : vector<2x32xf32>
    %252 = vector.extract_strided_slice %217 {offsets = [0, 6], sizes = [2, 1], strides = [1, 1]} : vector<2x32xf32> to vector<2x1xf32>
    %253 = vector.extract_strided_slice %219 {offsets = [6, 0], sizes = [1, 32], strides = [1, 1]} : vector<40x32xf32> to vector<1x32xf32>
    %254 = vector.broadcast %252 : vector<2x1xf32> to vector<2x32xf32>
    %255 = vector.broadcast %253 : vector<1x32xf32> to vector<2x32xf32>
    %256 = arith.mulf %254, %255 : vector<2x32xf32>
    %257 = arith.addf %234, %256 : vector<2x32xf32>
    %258 = vector.extract_strided_slice %217 {offsets = [0, 7], sizes = [2, 1], strides = [1, 1]} : vector<2x32xf32> to vector<2x1xf32>
    %259 = vector.extract_strided_slice %219 {offsets = [7, 0], sizes = [1, 32], strides = [1, 1]} : vector<40x32xf32> to vector<1x32xf32>
    %260 = vector.broadcast %258 : vector<2x1xf32> to vector<2x32xf32>
    %261 = vector.broadcast %259 : vector<1x32xf32> to vector<2x32xf32>
    %262 = arith.mulf %260, %261 : vector<2x32xf32>
    %263 = arith.addf %239, %262 : vector<2x32xf32>
    %264 = arith.addf %245, %251 : vector<2x32xf32>
    %265 = arith.addf %257, %263 : vector<2x32xf32>
    %266 = arith.addf %264, %265 : vector<2x32xf32>
    %267 = vector.extract_strided_slice %219 {offsets = [32, 0], sizes = [1, 32], strides = [1, 1]} : vector<40x32xf32> to vector<1x32xf32>
    %268 = vector.broadcast %267 : vector<1x32xf32> to vector<2x32xf32>
    %269 = arith.addf %266, %268 : vector<2x32xf32>
    %270 = arith.addf %161, %269 : vector<2x32xf32>
    %c5 = arith.constant 5 : index
    %c0_15 = arith.constant 0 : index
    %c0_16 = arith.constant 0 : index
    %271 = vector.load %arg1[%c5, %c0_15, %c0_16] : memref<15x40x32xf32, #tpu.memory_space<vmem>>, vector<1x40x32xf32>
    %272 = vector.shape_cast %271 : vector<1x40x32xf32> to vector<40x32xf32>
    %273 = vector.extract_strided_slice %270 {offsets = [0, 0], sizes = [2, 1], strides = [1, 1]} : vector<2x32xf32> to vector<2x1xf32>
    %274 = vector.extract_strided_slice %272 {offsets = [0, 0], sizes = [1, 32], strides = [1, 1]} : vector<40x32xf32> to vector<1x32xf32>
    %275 = vector.broadcast %273 : vector<2x1xf32> to vector<2x32xf32>
    %276 = vector.broadcast %274 : vector<1x32xf32> to vector<2x32xf32>
    %277 = arith.mulf %275, %276 : vector<2x32xf32>
    %278 = vector.extract_strided_slice %270 {offsets = [0, 1], sizes = [2, 1], strides = [1, 1]} : vector<2x32xf32> to vector<2x1xf32>
    %279 = vector.extract_strided_slice %272 {offsets = [1, 0], sizes = [1, 32], strides = [1, 1]} : vector<40x32xf32> to vector<1x32xf32>
    %280 = vector.broadcast %278 : vector<2x1xf32> to vector<2x32xf32>
    %281 = vector.broadcast %279 : vector<1x32xf32> to vector<2x32xf32>
    %282 = arith.mulf %280, %281 : vector<2x32xf32>
    %283 = vector.extract_strided_slice %270 {offsets = [0, 2], sizes = [2, 1], strides = [1, 1]} : vector<2x32xf32> to vector<2x1xf32>
    %284 = vector.extract_strided_slice %272 {offsets = [2, 0], sizes = [1, 32], strides = [1, 1]} : vector<40x32xf32> to vector<1x32xf32>
    %285 = vector.broadcast %283 : vector<2x1xf32> to vector<2x32xf32>
    %286 = vector.broadcast %284 : vector<1x32xf32> to vector<2x32xf32>
    %287 = arith.mulf %285, %286 : vector<2x32xf32>
    %288 = vector.extract_strided_slice %270 {offsets = [0, 3], sizes = [2, 1], strides = [1, 1]} : vector<2x32xf32> to vector<2x1xf32>
    %289 = vector.extract_strided_slice %272 {offsets = [3, 0], sizes = [1, 32], strides = [1, 1]} : vector<40x32xf32> to vector<1x32xf32>
    %290 = vector.broadcast %288 : vector<2x1xf32> to vector<2x32xf32>
    %291 = vector.broadcast %289 : vector<1x32xf32> to vector<2x32xf32>
    %292 = arith.mulf %290, %291 : vector<2x32xf32>
    %293 = vector.extract_strided_slice %270 {offsets = [0, 4], sizes = [2, 1], strides = [1, 1]} : vector<2x32xf32> to vector<2x1xf32>
    %294 = vector.extract_strided_slice %272 {offsets = [4, 0], sizes = [1, 32], strides = [1, 1]} : vector<40x32xf32> to vector<1x32xf32>
    %295 = vector.broadcast %293 : vector<2x1xf32> to vector<2x32xf32>
    %296 = vector.broadcast %294 : vector<1x32xf32> to vector<2x32xf32>
    %297 = arith.mulf %295, %296 : vector<2x32xf32>
    %298 = arith.addf %277, %297 : vector<2x32xf32>
    %299 = vector.extract_strided_slice %270 {offsets = [0, 5], sizes = [2, 1], strides = [1, 1]} : vector<2x32xf32> to vector<2x1xf32>
    %300 = vector.extract_strided_slice %272 {offsets = [5, 0], sizes = [1, 32], strides = [1, 1]} : vector<40x32xf32> to vector<1x32xf32>
    %301 = vector.broadcast %299 : vector<2x1xf32> to vector<2x32xf32>
    %302 = vector.broadcast %300 : vector<1x32xf32> to vector<2x32xf32>
    %303 = arith.mulf %301, %302 : vector<2x32xf32>
    %304 = arith.addf %282, %303 : vector<2x32xf32>
    %305 = vector.extract_strided_slice %270 {offsets = [0, 6], sizes = [2, 1], strides = [1, 1]} : vector<2x32xf32> to vector<2x1xf32>
    %306 = vector.extract_strided_slice %272 {offsets = [6, 0], sizes = [1, 32], strides = [1, 1]} : vector<40x32xf32> to vector<1x32xf32>
    %307 = vector.broadcast %305 : vector<2x1xf32> to vector<2x32xf32>
    %308 = vector.broadcast %306 : vector<1x32xf32> to vector<2x32xf32>
    %309 = arith.mulf %307, %308 : vector<2x32xf32>
    %310 = arith.addf %287, %309 : vector<2x32xf32>
    %311 = vector.extract_strided_slice %270 {offsets = [0, 7], sizes = [2, 1], strides = [1, 1]} : vector<2x32xf32> to vector<2x1xf32>
    %312 = vector.extract_strided_slice %272 {offsets = [7, 0], sizes = [1, 32], strides = [1, 1]} : vector<40x32xf32> to vector<1x32xf32>
    %313 = vector.broadcast %311 : vector<2x1xf32> to vector<2x32xf32>
    %314 = vector.broadcast %312 : vector<1x32xf32> to vector<2x32xf32>
    %315 = arith.mulf %313, %314 : vector<2x32xf32>
    %316 = arith.addf %292, %315 : vector<2x32xf32>
    %317 = arith.addf %298, %304 : vector<2x32xf32>
    %318 = arith.addf %310, %316 : vector<2x32xf32>
    %319 = arith.addf %317, %318 : vector<2x32xf32>
    %320 = vector.extract_strided_slice %272 {offsets = [32, 0], sizes = [1, 32], strides = [1, 1]} : vector<40x32xf32> to vector<1x32xf32>
    %321 = vector.broadcast %320 : vector<1x32xf32> to vector<2x32xf32>
    %322 = arith.addf %319, %321 : vector<2x32xf32>
    %cst_17 = arith.constant 0.000000e+00 : f32
    %323 = vector.broadcast %cst_17 : f32 to vector<2x32xf32>
    %324 = arith.maximumf %322, %323 : vector<2x32xf32>
    %c6 = arith.constant 6 : index
    %c0_18 = arith.constant 0 : index
    %c0_19 = arith.constant 0 : index
    %325 = vector.load %arg1[%c6, %c0_18, %c0_19] : memref<15x40x32xf32, #tpu.memory_space<vmem>>, vector<1x40x32xf32>
    %326 = vector.shape_cast %325 : vector<1x40x32xf32> to vector<40x32xf32>
    %327 = vector.extract_strided_slice %324 {offsets = [0, 0], sizes = [2, 1], strides = [1, 1]} : vector<2x32xf32> to vector<2x1xf32>
    %328 = vector.extract_strided_slice %326 {offsets = [0, 0], sizes = [1, 32], strides = [1, 1]} : vector<40x32xf32> to vector<1x32xf32>
    %329 = vector.broadcast %327 : vector<2x1xf32> to vector<2x32xf32>
    %330 = vector.broadcast %328 : vector<1x32xf32> to vector<2x32xf32>
    %331 = arith.mulf %329, %330 : vector<2x32xf32>
    %332 = vector.extract_strided_slice %324 {offsets = [0, 1], sizes = [2, 1], strides = [1, 1]} : vector<2x32xf32> to vector<2x1xf32>
    %333 = vector.extract_strided_slice %326 {offsets = [1, 0], sizes = [1, 32], strides = [1, 1]} : vector<40x32xf32> to vector<1x32xf32>
    %334 = vector.broadcast %332 : vector<2x1xf32> to vector<2x32xf32>
    %335 = vector.broadcast %333 : vector<1x32xf32> to vector<2x32xf32>
    %336 = arith.mulf %334, %335 : vector<2x32xf32>
    %337 = vector.extract_strided_slice %324 {offsets = [0, 2], sizes = [2, 1], strides = [1, 1]} : vector<2x32xf32> to vector<2x1xf32>
    %338 = vector.extract_strided_slice %326 {offsets = [2, 0], sizes = [1, 32], strides = [1, 1]} : vector<40x32xf32> to vector<1x32xf32>
    %339 = vector.broadcast %337 : vector<2x1xf32> to vector<2x32xf32>
    %340 = vector.broadcast %338 : vector<1x32xf32> to vector<2x32xf32>
    %341 = arith.mulf %339, %340 : vector<2x32xf32>
    %342 = vector.extract_strided_slice %324 {offsets = [0, 3], sizes = [2, 1], strides = [1, 1]} : vector<2x32xf32> to vector<2x1xf32>
    %343 = vector.extract_strided_slice %326 {offsets = [3, 0], sizes = [1, 32], strides = [1, 1]} : vector<40x32xf32> to vector<1x32xf32>
    %344 = vector.broadcast %342 : vector<2x1xf32> to vector<2x32xf32>
    %345 = vector.broadcast %343 : vector<1x32xf32> to vector<2x32xf32>
    %346 = arith.mulf %344, %345 : vector<2x32xf32>
    %347 = vector.extract_strided_slice %324 {offsets = [0, 4], sizes = [2, 1], strides = [1, 1]} : vector<2x32xf32> to vector<2x1xf32>
    %348 = vector.extract_strided_slice %326 {offsets = [4, 0], sizes = [1, 32], strides = [1, 1]} : vector<40x32xf32> to vector<1x32xf32>
    %349 = vector.broadcast %347 : vector<2x1xf32> to vector<2x32xf32>
    %350 = vector.broadcast %348 : vector<1x32xf32> to vector<2x32xf32>
    %351 = arith.mulf %349, %350 : vector<2x32xf32>
    %352 = arith.addf %331, %351 : vector<2x32xf32>
    %353 = vector.extract_strided_slice %324 {offsets = [0, 5], sizes = [2, 1], strides = [1, 1]} : vector<2x32xf32> to vector<2x1xf32>
    %354 = vector.extract_strided_slice %326 {offsets = [5, 0], sizes = [1, 32], strides = [1, 1]} : vector<40x32xf32> to vector<1x32xf32>
    %355 = vector.broadcast %353 : vector<2x1xf32> to vector<2x32xf32>
    %356 = vector.broadcast %354 : vector<1x32xf32> to vector<2x32xf32>
    %357 = arith.mulf %355, %356 : vector<2x32xf32>
    %358 = arith.addf %336, %357 : vector<2x32xf32>
    %359 = vector.extract_strided_slice %324 {offsets = [0, 6], sizes = [2, 1], strides = [1, 1]} : vector<2x32xf32> to vector<2x1xf32>
    %360 = vector.extract_strided_slice %326 {offsets = [6, 0], sizes = [1, 32], strides = [1, 1]} : vector<40x32xf32> to vector<1x32xf32>
    %361 = vector.broadcast %359 : vector<2x1xf32> to vector<2x32xf32>
    %362 = vector.broadcast %360 : vector<1x32xf32> to vector<2x32xf32>
    %363 = arith.mulf %361, %362 : vector<2x32xf32>
    %364 = arith.addf %341, %363 : vector<2x32xf32>
    %365 = vector.extract_strided_slice %324 {offsets = [0, 7], sizes = [2, 1], strides = [1, 1]} : vector<2x32xf32> to vector<2x1xf32>
    %366 = vector.extract_strided_slice %326 {offsets = [7, 0], sizes = [1, 32], strides = [1, 1]} : vector<40x32xf32> to vector<1x32xf32>
    %367 = vector.broadcast %365 : vector<2x1xf32> to vector<2x32xf32>
    %368 = vector.broadcast %366 : vector<1x32xf32> to vector<2x32xf32>
    %369 = arith.mulf %367, %368 : vector<2x32xf32>
    %370 = arith.addf %346, %369 : vector<2x32xf32>
    %371 = vector.extract_strided_slice %324 {offsets = [0, 8], sizes = [2, 1], strides = [1, 1]} : vector<2x32xf32> to vector<2x1xf32>
    %372 = vector.extract_strided_slice %326 {offsets = [8, 0], sizes = [1, 32], strides = [1, 1]} : vector<40x32xf32> to vector<1x32xf32>
    %373 = vector.broadcast %371 : vector<2x1xf32> to vector<2x32xf32>
    %374 = vector.broadcast %372 : vector<1x32xf32> to vector<2x32xf32>
    %375 = arith.mulf %373, %374 : vector<2x32xf32>
    %376 = arith.addf %352, %375 : vector<2x32xf32>
    %377 = vector.extract_strided_slice %324 {offsets = [0, 9], sizes = [2, 1], strides = [1, 1]} : vector<2x32xf32> to vector<2x1xf32>
    %378 = vector.extract_strided_slice %326 {offsets = [9, 0], sizes = [1, 32], strides = [1, 1]} : vector<40x32xf32> to vector<1x32xf32>
    %379 = vector.broadcast %377 : vector<2x1xf32> to vector<2x32xf32>
    %380 = vector.broadcast %378 : vector<1x32xf32> to vector<2x32xf32>
    %381 = arith.mulf %379, %380 : vector<2x32xf32>
    %382 = arith.addf %358, %381 : vector<2x32xf32>
    %383 = vector.extract_strided_slice %324 {offsets = [0, 10], sizes = [2, 1], strides = [1, 1]} : vector<2x32xf32> to vector<2x1xf32>
    %384 = vector.extract_strided_slice %326 {offsets = [10, 0], sizes = [1, 32], strides = [1, 1]} : vector<40x32xf32> to vector<1x32xf32>
    %385 = vector.broadcast %383 : vector<2x1xf32> to vector<2x32xf32>
    %386 = vector.broadcast %384 : vector<1x32xf32> to vector<2x32xf32>
    %387 = arith.mulf %385, %386 : vector<2x32xf32>
    %388 = arith.addf %364, %387 : vector<2x32xf32>
    %389 = vector.extract_strided_slice %324 {offsets = [0, 11], sizes = [2, 1], strides = [1, 1]} : vector<2x32xf32> to vector<2x1xf32>
    %390 = vector.extract_strided_slice %326 {offsets = [11, 0], sizes = [1, 32], strides = [1, 1]} : vector<40x32xf32> to vector<1x32xf32>
    %391 = vector.broadcast %389 : vector<2x1xf32> to vector<2x32xf32>
    %392 = vector.broadcast %390 : vector<1x32xf32> to vector<2x32xf32>
    %393 = arith.mulf %391, %392 : vector<2x32xf32>
    %394 = arith.addf %370, %393 : vector<2x32xf32>
    %395 = vector.extract_strided_slice %324 {offsets = [0, 12], sizes = [2, 1], strides = [1, 1]} : vector<2x32xf32> to vector<2x1xf32>
    %396 = vector.extract_strided_slice %326 {offsets = [12, 0], sizes = [1, 32], strides = [1, 1]} : vector<40x32xf32> to vector<1x32xf32>
    %397 = vector.broadcast %395 : vector<2x1xf32> to vector<2x32xf32>
    %398 = vector.broadcast %396 : vector<1x32xf32> to vector<2x32xf32>
    %399 = arith.mulf %397, %398 : vector<2x32xf32>
    %400 = arith.addf %376, %399 : vector<2x32xf32>
    %401 = vector.extract_strided_slice %324 {offsets = [0, 13], sizes = [2, 1], strides = [1, 1]} : vector<2x32xf32> to vector<2x1xf32>
    %402 = vector.extract_strided_slice %326 {offsets = [13, 0], sizes = [1, 32], strides = [1, 1]} : vector<40x32xf32> to vector<1x32xf32>
    %403 = vector.broadcast %401 : vector<2x1xf32> to vector<2x32xf32>
    %404 = vector.broadcast %402 : vector<1x32xf32> to vector<2x32xf32>
    %405 = arith.mulf %403, %404 : vector<2x32xf32>
    %406 = arith.addf %382, %405 : vector<2x32xf32>
    %407 = vector.extract_strided_slice %324 {offsets = [0, 14], sizes = [2, 1], strides = [1, 1]} : vector<2x32xf32> to vector<2x1xf32>
    %408 = vector.extract_strided_slice %326 {offsets = [14, 0], sizes = [1, 32], strides = [1, 1]} : vector<40x32xf32> to vector<1x32xf32>
    %409 = vector.broadcast %407 : vector<2x1xf32> to vector<2x32xf32>
    %410 = vector.broadcast %408 : vector<1x32xf32> to vector<2x32xf32>
    %411 = arith.mulf %409, %410 : vector<2x32xf32>
    %412 = arith.addf %388, %411 : vector<2x32xf32>
    %413 = vector.extract_strided_slice %324 {offsets = [0, 15], sizes = [2, 1], strides = [1, 1]} : vector<2x32xf32> to vector<2x1xf32>
    %414 = vector.extract_strided_slice %326 {offsets = [15, 0], sizes = [1, 32], strides = [1, 1]} : vector<40x32xf32> to vector<1x32xf32>
    %415 = vector.broadcast %413 : vector<2x1xf32> to vector<2x32xf32>
    %416 = vector.broadcast %414 : vector<1x32xf32> to vector<2x32xf32>
    %417 = arith.mulf %415, %416 : vector<2x32xf32>
    %418 = arith.addf %394, %417 : vector<2x32xf32>
    %419 = arith.addf %400, %406 : vector<2x32xf32>
    %420 = arith.addf %412, %418 : vector<2x32xf32>
    %421 = arith.addf %419, %420 : vector<2x32xf32>
    %422 = vector.extract_strided_slice %326 {offsets = [32, 0], sizes = [1, 32], strides = [1, 1]} : vector<40x32xf32> to vector<1x32xf32>
    %423 = vector.broadcast %422 : vector<1x32xf32> to vector<2x32xf32>
    %424 = arith.addf %421, %423 : vector<2x32xf32>
    %cst_20 = arith.constant 0.000000e+00 : f32
    %425 = vector.broadcast %cst_20 : f32 to vector<2x32xf32>
    %426 = arith.maximumf %424, %425 : vector<2x32xf32>
    %c7 = arith.constant 7 : index
    %c0_21 = arith.constant 0 : index
    %c0_22 = arith.constant 0 : index
    %427 = vector.load %arg1[%c7, %c0_21, %c0_22] : memref<15x40x32xf32, #tpu.memory_space<vmem>>, vector<1x40x32xf32>
    %428 = vector.shape_cast %427 : vector<1x40x32xf32> to vector<40x32xf32>
    %429 = vector.extract_strided_slice %426 {offsets = [0, 0], sizes = [2, 1], strides = [1, 1]} : vector<2x32xf32> to vector<2x1xf32>
    %430 = vector.extract_strided_slice %428 {offsets = [0, 0], sizes = [1, 32], strides = [1, 1]} : vector<40x32xf32> to vector<1x32xf32>
    %431 = vector.broadcast %429 : vector<2x1xf32> to vector<2x32xf32>
    %432 = vector.broadcast %430 : vector<1x32xf32> to vector<2x32xf32>
    %433 = arith.mulf %431, %432 : vector<2x32xf32>
    %434 = vector.extract_strided_slice %426 {offsets = [0, 1], sizes = [2, 1], strides = [1, 1]} : vector<2x32xf32> to vector<2x1xf32>
    %435 = vector.extract_strided_slice %428 {offsets = [1, 0], sizes = [1, 32], strides = [1, 1]} : vector<40x32xf32> to vector<1x32xf32>
    %436 = vector.broadcast %434 : vector<2x1xf32> to vector<2x32xf32>
    %437 = vector.broadcast %435 : vector<1x32xf32> to vector<2x32xf32>
    %438 = arith.mulf %436, %437 : vector<2x32xf32>
    %439 = vector.extract_strided_slice %426 {offsets = [0, 2], sizes = [2, 1], strides = [1, 1]} : vector<2x32xf32> to vector<2x1xf32>
    %440 = vector.extract_strided_slice %428 {offsets = [2, 0], sizes = [1, 32], strides = [1, 1]} : vector<40x32xf32> to vector<1x32xf32>
    %441 = vector.broadcast %439 : vector<2x1xf32> to vector<2x32xf32>
    %442 = vector.broadcast %440 : vector<1x32xf32> to vector<2x32xf32>
    %443 = arith.mulf %441, %442 : vector<2x32xf32>
    %444 = vector.extract_strided_slice %426 {offsets = [0, 3], sizes = [2, 1], strides = [1, 1]} : vector<2x32xf32> to vector<2x1xf32>
    %445 = vector.extract_strided_slice %428 {offsets = [3, 0], sizes = [1, 32], strides = [1, 1]} : vector<40x32xf32> to vector<1x32xf32>
    %446 = vector.broadcast %444 : vector<2x1xf32> to vector<2x32xf32>
    %447 = vector.broadcast %445 : vector<1x32xf32> to vector<2x32xf32>
    %448 = arith.mulf %446, %447 : vector<2x32xf32>
    %449 = vector.extract_strided_slice %426 {offsets = [0, 4], sizes = [2, 1], strides = [1, 1]} : vector<2x32xf32> to vector<2x1xf32>
    %450 = vector.extract_strided_slice %428 {offsets = [4, 0], sizes = [1, 32], strides = [1, 1]} : vector<40x32xf32> to vector<1x32xf32>
    %451 = vector.broadcast %449 : vector<2x1xf32> to vector<2x32xf32>
    %452 = vector.broadcast %450 : vector<1x32xf32> to vector<2x32xf32>
    %453 = arith.mulf %451, %452 : vector<2x32xf32>
    %454 = arith.addf %433, %453 : vector<2x32xf32>
    %455 = vector.extract_strided_slice %426 {offsets = [0, 5], sizes = [2, 1], strides = [1, 1]} : vector<2x32xf32> to vector<2x1xf32>
    %456 = vector.extract_strided_slice %428 {offsets = [5, 0], sizes = [1, 32], strides = [1, 1]} : vector<40x32xf32> to vector<1x32xf32>
    %457 = vector.broadcast %455 : vector<2x1xf32> to vector<2x32xf32>
    %458 = vector.broadcast %456 : vector<1x32xf32> to vector<2x32xf32>
    %459 = arith.mulf %457, %458 : vector<2x32xf32>
    %460 = arith.addf %438, %459 : vector<2x32xf32>
    %461 = vector.extract_strided_slice %426 {offsets = [0, 6], sizes = [2, 1], strides = [1, 1]} : vector<2x32xf32> to vector<2x1xf32>
    %462 = vector.extract_strided_slice %428 {offsets = [6, 0], sizes = [1, 32], strides = [1, 1]} : vector<40x32xf32> to vector<1x32xf32>
    %463 = vector.broadcast %461 : vector<2x1xf32> to vector<2x32xf32>
    %464 = vector.broadcast %462 : vector<1x32xf32> to vector<2x32xf32>
    %465 = arith.mulf %463, %464 : vector<2x32xf32>
    %466 = arith.addf %443, %465 : vector<2x32xf32>
    %467 = vector.extract_strided_slice %426 {offsets = [0, 7], sizes = [2, 1], strides = [1, 1]} : vector<2x32xf32> to vector<2x1xf32>
    %468 = vector.extract_strided_slice %428 {offsets = [7, 0], sizes = [1, 32], strides = [1, 1]} : vector<40x32xf32> to vector<1x32xf32>
    %469 = vector.broadcast %467 : vector<2x1xf32> to vector<2x32xf32>
    %470 = vector.broadcast %468 : vector<1x32xf32> to vector<2x32xf32>
    %471 = arith.mulf %469, %470 : vector<2x32xf32>
    %472 = arith.addf %448, %471 : vector<2x32xf32>
    %473 = vector.extract_strided_slice %426 {offsets = [0, 8], sizes = [2, 1], strides = [1, 1]} : vector<2x32xf32> to vector<2x1xf32>
    %474 = vector.extract_strided_slice %428 {offsets = [8, 0], sizes = [1, 32], strides = [1, 1]} : vector<40x32xf32> to vector<1x32xf32>
    %475 = vector.broadcast %473 : vector<2x1xf32> to vector<2x32xf32>
    %476 = vector.broadcast %474 : vector<1x32xf32> to vector<2x32xf32>
    %477 = arith.mulf %475, %476 : vector<2x32xf32>
    %478 = arith.addf %454, %477 : vector<2x32xf32>
    %479 = vector.extract_strided_slice %426 {offsets = [0, 9], sizes = [2, 1], strides = [1, 1]} : vector<2x32xf32> to vector<2x1xf32>
    %480 = vector.extract_strided_slice %428 {offsets = [9, 0], sizes = [1, 32], strides = [1, 1]} : vector<40x32xf32> to vector<1x32xf32>
    %481 = vector.broadcast %479 : vector<2x1xf32> to vector<2x32xf32>
    %482 = vector.broadcast %480 : vector<1x32xf32> to vector<2x32xf32>
    %483 = arith.mulf %481, %482 : vector<2x32xf32>
    %484 = arith.addf %460, %483 : vector<2x32xf32>
    %485 = vector.extract_strided_slice %426 {offsets = [0, 10], sizes = [2, 1], strides = [1, 1]} : vector<2x32xf32> to vector<2x1xf32>
    %486 = vector.extract_strided_slice %428 {offsets = [10, 0], sizes = [1, 32], strides = [1, 1]} : vector<40x32xf32> to vector<1x32xf32>
    %487 = vector.broadcast %485 : vector<2x1xf32> to vector<2x32xf32>
    %488 = vector.broadcast %486 : vector<1x32xf32> to vector<2x32xf32>
    %489 = arith.mulf %487, %488 : vector<2x32xf32>
    %490 = arith.addf %466, %489 : vector<2x32xf32>
    %491 = vector.extract_strided_slice %426 {offsets = [0, 11], sizes = [2, 1], strides = [1, 1]} : vector<2x32xf32> to vector<2x1xf32>
    %492 = vector.extract_strided_slice %428 {offsets = [11, 0], sizes = [1, 32], strides = [1, 1]} : vector<40x32xf32> to vector<1x32xf32>
    %493 = vector.broadcast %491 : vector<2x1xf32> to vector<2x32xf32>
    %494 = vector.broadcast %492 : vector<1x32xf32> to vector<2x32xf32>
    %495 = arith.mulf %493, %494 : vector<2x32xf32>
    %496 = arith.addf %472, %495 : vector<2x32xf32>
    %497 = vector.extract_strided_slice %426 {offsets = [0, 12], sizes = [2, 1], strides = [1, 1]} : vector<2x32xf32> to vector<2x1xf32>
    %498 = vector.extract_strided_slice %428 {offsets = [12, 0], sizes = [1, 32], strides = [1, 1]} : vector<40x32xf32> to vector<1x32xf32>
    %499 = vector.broadcast %497 : vector<2x1xf32> to vector<2x32xf32>
    %500 = vector.broadcast %498 : vector<1x32xf32> to vector<2x32xf32>
    %501 = arith.mulf %499, %500 : vector<2x32xf32>
    %502 = arith.addf %478, %501 : vector<2x32xf32>
    %503 = vector.extract_strided_slice %426 {offsets = [0, 13], sizes = [2, 1], strides = [1, 1]} : vector<2x32xf32> to vector<2x1xf32>
    %504 = vector.extract_strided_slice %428 {offsets = [13, 0], sizes = [1, 32], strides = [1, 1]} : vector<40x32xf32> to vector<1x32xf32>
    %505 = vector.broadcast %503 : vector<2x1xf32> to vector<2x32xf32>
    %506 = vector.broadcast %504 : vector<1x32xf32> to vector<2x32xf32>
    %507 = arith.mulf %505, %506 : vector<2x32xf32>
    %508 = arith.addf %484, %507 : vector<2x32xf32>
    %509 = vector.extract_strided_slice %426 {offsets = [0, 14], sizes = [2, 1], strides = [1, 1]} : vector<2x32xf32> to vector<2x1xf32>
    %510 = vector.extract_strided_slice %428 {offsets = [14, 0], sizes = [1, 32], strides = [1, 1]} : vector<40x32xf32> to vector<1x32xf32>
    %511 = vector.broadcast %509 : vector<2x1xf32> to vector<2x32xf32>
    %512 = vector.broadcast %510 : vector<1x32xf32> to vector<2x32xf32>
    %513 = arith.mulf %511, %512 : vector<2x32xf32>
    %514 = arith.addf %490, %513 : vector<2x32xf32>
    %515 = vector.extract_strided_slice %426 {offsets = [0, 15], sizes = [2, 1], strides = [1, 1]} : vector<2x32xf32> to vector<2x1xf32>
    %516 = vector.extract_strided_slice %428 {offsets = [15, 0], sizes = [1, 32], strides = [1, 1]} : vector<40x32xf32> to vector<1x32xf32>
    %517 = vector.broadcast %515 : vector<2x1xf32> to vector<2x32xf32>
    %518 = vector.broadcast %516 : vector<1x32xf32> to vector<2x32xf32>
    %519 = arith.mulf %517, %518 : vector<2x32xf32>
    %520 = arith.addf %496, %519 : vector<2x32xf32>
    %521 = arith.addf %502, %508 : vector<2x32xf32>
    %522 = arith.addf %514, %520 : vector<2x32xf32>
    %523 = arith.addf %521, %522 : vector<2x32xf32>
    %524 = vector.extract_strided_slice %428 {offsets = [32, 0], sizes = [1, 32], strides = [1, 1]} : vector<40x32xf32> to vector<1x32xf32>
    %525 = vector.broadcast %524 : vector<1x32xf32> to vector<2x32xf32>
    %526 = arith.addf %523, %525 : vector<2x32xf32>
    %527 = arith.addf %322, %526 : vector<2x32xf32>
    %cst_23 = arith.constant 0.000000e+00 : f32
    %528 = vector.broadcast %cst_23 : f32 to vector<2x32xf32>
    %529 = arith.maximumf %527, %528 : vector<2x32xf32>
    %c8 = arith.constant 8 : index
    %c0_24 = arith.constant 0 : index
    %c0_25 = arith.constant 0 : index
    %530 = vector.load %arg1[%c8, %c0_24, %c0_25] : memref<15x40x32xf32, #tpu.memory_space<vmem>>, vector<1x40x32xf32>
    %531 = vector.shape_cast %530 : vector<1x40x32xf32> to vector<40x32xf32>
    %532 = vector.extract_strided_slice %529 {offsets = [0, 0], sizes = [2, 1], strides = [1, 1]} : vector<2x32xf32> to vector<2x1xf32>
    %533 = vector.extract_strided_slice %531 {offsets = [0, 0], sizes = [1, 32], strides = [1, 1]} : vector<40x32xf32> to vector<1x32xf32>
    %534 = vector.broadcast %532 : vector<2x1xf32> to vector<2x32xf32>
    %535 = vector.broadcast %533 : vector<1x32xf32> to vector<2x32xf32>
    %536 = arith.mulf %534, %535 : vector<2x32xf32>
    %537 = vector.extract_strided_slice %529 {offsets = [0, 1], sizes = [2, 1], strides = [1, 1]} : vector<2x32xf32> to vector<2x1xf32>
    %538 = vector.extract_strided_slice %531 {offsets = [1, 0], sizes = [1, 32], strides = [1, 1]} : vector<40x32xf32> to vector<1x32xf32>
    %539 = vector.broadcast %537 : vector<2x1xf32> to vector<2x32xf32>
    %540 = vector.broadcast %538 : vector<1x32xf32> to vector<2x32xf32>
    %541 = arith.mulf %539, %540 : vector<2x32xf32>
    %542 = vector.extract_strided_slice %529 {offsets = [0, 2], sizes = [2, 1], strides = [1, 1]} : vector<2x32xf32> to vector<2x1xf32>
    %543 = vector.extract_strided_slice %531 {offsets = [2, 0], sizes = [1, 32], strides = [1, 1]} : vector<40x32xf32> to vector<1x32xf32>
    %544 = vector.broadcast %542 : vector<2x1xf32> to vector<2x32xf32>
    %545 = vector.broadcast %543 : vector<1x32xf32> to vector<2x32xf32>
    %546 = arith.mulf %544, %545 : vector<2x32xf32>
    %547 = vector.extract_strided_slice %529 {offsets = [0, 3], sizes = [2, 1], strides = [1, 1]} : vector<2x32xf32> to vector<2x1xf32>
    %548 = vector.extract_strided_slice %531 {offsets = [3, 0], sizes = [1, 32], strides = [1, 1]} : vector<40x32xf32> to vector<1x32xf32>
    %549 = vector.broadcast %547 : vector<2x1xf32> to vector<2x32xf32>
    %550 = vector.broadcast %548 : vector<1x32xf32> to vector<2x32xf32>
    %551 = arith.mulf %549, %550 : vector<2x32xf32>
    %552 = vector.extract_strided_slice %529 {offsets = [0, 4], sizes = [2, 1], strides = [1, 1]} : vector<2x32xf32> to vector<2x1xf32>
    %553 = vector.extract_strided_slice %531 {offsets = [4, 0], sizes = [1, 32], strides = [1, 1]} : vector<40x32xf32> to vector<1x32xf32>
    %554 = vector.broadcast %552 : vector<2x1xf32> to vector<2x32xf32>
    %555 = vector.broadcast %553 : vector<1x32xf32> to vector<2x32xf32>
    %556 = arith.mulf %554, %555 : vector<2x32xf32>
    %557 = arith.addf %536, %556 : vector<2x32xf32>
    %558 = vector.extract_strided_slice %529 {offsets = [0, 5], sizes = [2, 1], strides = [1, 1]} : vector<2x32xf32> to vector<2x1xf32>
    %559 = vector.extract_strided_slice %531 {offsets = [5, 0], sizes = [1, 32], strides = [1, 1]} : vector<40x32xf32> to vector<1x32xf32>
    %560 = vector.broadcast %558 : vector<2x1xf32> to vector<2x32xf32>
    %561 = vector.broadcast %559 : vector<1x32xf32> to vector<2x32xf32>
    %562 = arith.mulf %560, %561 : vector<2x32xf32>
    %563 = arith.addf %541, %562 : vector<2x32xf32>
    %564 = vector.extract_strided_slice %529 {offsets = [0, 6], sizes = [2, 1], strides = [1, 1]} : vector<2x32xf32> to vector<2x1xf32>
    %565 = vector.extract_strided_slice %531 {offsets = [6, 0], sizes = [1, 32], strides = [1, 1]} : vector<40x32xf32> to vector<1x32xf32>
    %566 = vector.broadcast %564 : vector<2x1xf32> to vector<2x32xf32>
    %567 = vector.broadcast %565 : vector<1x32xf32> to vector<2x32xf32>
    %568 = arith.mulf %566, %567 : vector<2x32xf32>
    %569 = arith.addf %546, %568 : vector<2x32xf32>
    %570 = vector.extract_strided_slice %529 {offsets = [0, 7], sizes = [2, 1], strides = [1, 1]} : vector<2x32xf32> to vector<2x1xf32>
    %571 = vector.extract_strided_slice %531 {offsets = [7, 0], sizes = [1, 32], strides = [1, 1]} : vector<40x32xf32> to vector<1x32xf32>
    %572 = vector.broadcast %570 : vector<2x1xf32> to vector<2x32xf32>
    %573 = vector.broadcast %571 : vector<1x32xf32> to vector<2x32xf32>
    %574 = arith.mulf %572, %573 : vector<2x32xf32>
    %575 = arith.addf %551, %574 : vector<2x32xf32>
    %576 = vector.extract_strided_slice %529 {offsets = [0, 8], sizes = [2, 1], strides = [1, 1]} : vector<2x32xf32> to vector<2x1xf32>
    %577 = vector.extract_strided_slice %531 {offsets = [8, 0], sizes = [1, 32], strides = [1, 1]} : vector<40x32xf32> to vector<1x32xf32>
    %578 = vector.broadcast %576 : vector<2x1xf32> to vector<2x32xf32>
    %579 = vector.broadcast %577 : vector<1x32xf32> to vector<2x32xf32>
    %580 = arith.mulf %578, %579 : vector<2x32xf32>
    %581 = arith.addf %557, %580 : vector<2x32xf32>
    %582 = vector.extract_strided_slice %529 {offsets = [0, 9], sizes = [2, 1], strides = [1, 1]} : vector<2x32xf32> to vector<2x1xf32>
    %583 = vector.extract_strided_slice %531 {offsets = [9, 0], sizes = [1, 32], strides = [1, 1]} : vector<40x32xf32> to vector<1x32xf32>
    %584 = vector.broadcast %582 : vector<2x1xf32> to vector<2x32xf32>
    %585 = vector.broadcast %583 : vector<1x32xf32> to vector<2x32xf32>
    %586 = arith.mulf %584, %585 : vector<2x32xf32>
    %587 = arith.addf %563, %586 : vector<2x32xf32>
    %588 = vector.extract_strided_slice %529 {offsets = [0, 10], sizes = [2, 1], strides = [1, 1]} : vector<2x32xf32> to vector<2x1xf32>
    %589 = vector.extract_strided_slice %531 {offsets = [10, 0], sizes = [1, 32], strides = [1, 1]} : vector<40x32xf32> to vector<1x32xf32>
    %590 = vector.broadcast %588 : vector<2x1xf32> to vector<2x32xf32>
    %591 = vector.broadcast %589 : vector<1x32xf32> to vector<2x32xf32>
    %592 = arith.mulf %590, %591 : vector<2x32xf32>
    %593 = arith.addf %569, %592 : vector<2x32xf32>
    %594 = vector.extract_strided_slice %529 {offsets = [0, 11], sizes = [2, 1], strides = [1, 1]} : vector<2x32xf32> to vector<2x1xf32>
    %595 = vector.extract_strided_slice %531 {offsets = [11, 0], sizes = [1, 32], strides = [1, 1]} : vector<40x32xf32> to vector<1x32xf32>
    %596 = vector.broadcast %594 : vector<2x1xf32> to vector<2x32xf32>
    %597 = vector.broadcast %595 : vector<1x32xf32> to vector<2x32xf32>
    %598 = arith.mulf %596, %597 : vector<2x32xf32>
    %599 = arith.addf %575, %598 : vector<2x32xf32>
    %600 = vector.extract_strided_slice %529 {offsets = [0, 12], sizes = [2, 1], strides = [1, 1]} : vector<2x32xf32> to vector<2x1xf32>
    %601 = vector.extract_strided_slice %531 {offsets = [12, 0], sizes = [1, 32], strides = [1, 1]} : vector<40x32xf32> to vector<1x32xf32>
    %602 = vector.broadcast %600 : vector<2x1xf32> to vector<2x32xf32>
    %603 = vector.broadcast %601 : vector<1x32xf32> to vector<2x32xf32>
    %604 = arith.mulf %602, %603 : vector<2x32xf32>
    %605 = arith.addf %581, %604 : vector<2x32xf32>
    %606 = vector.extract_strided_slice %529 {offsets = [0, 13], sizes = [2, 1], strides = [1, 1]} : vector<2x32xf32> to vector<2x1xf32>
    %607 = vector.extract_strided_slice %531 {offsets = [13, 0], sizes = [1, 32], strides = [1, 1]} : vector<40x32xf32> to vector<1x32xf32>
    %608 = vector.broadcast %606 : vector<2x1xf32> to vector<2x32xf32>
    %609 = vector.broadcast %607 : vector<1x32xf32> to vector<2x32xf32>
    %610 = arith.mulf %608, %609 : vector<2x32xf32>
    %611 = arith.addf %587, %610 : vector<2x32xf32>
    %612 = vector.extract_strided_slice %529 {offsets = [0, 14], sizes = [2, 1], strides = [1, 1]} : vector<2x32xf32> to vector<2x1xf32>
    %613 = vector.extract_strided_slice %531 {offsets = [14, 0], sizes = [1, 32], strides = [1, 1]} : vector<40x32xf32> to vector<1x32xf32>
    %614 = vector.broadcast %612 : vector<2x1xf32> to vector<2x32xf32>
    %615 = vector.broadcast %613 : vector<1x32xf32> to vector<2x32xf32>
    %616 = arith.mulf %614, %615 : vector<2x32xf32>
    %617 = arith.addf %593, %616 : vector<2x32xf32>
    %618 = vector.extract_strided_slice %529 {offsets = [0, 15], sizes = [2, 1], strides = [1, 1]} : vector<2x32xf32> to vector<2x1xf32>
    %619 = vector.extract_strided_slice %531 {offsets = [15, 0], sizes = [1, 32], strides = [1, 1]} : vector<40x32xf32> to vector<1x32xf32>
    %620 = vector.broadcast %618 : vector<2x1xf32> to vector<2x32xf32>
    %621 = vector.broadcast %619 : vector<1x32xf32> to vector<2x32xf32>
    %622 = arith.mulf %620, %621 : vector<2x32xf32>
    %623 = arith.addf %599, %622 : vector<2x32xf32>
    %624 = arith.addf %605, %611 : vector<2x32xf32>
    %625 = arith.addf %617, %623 : vector<2x32xf32>
    %626 = arith.addf %624, %625 : vector<2x32xf32>
    %627 = vector.extract_strided_slice %531 {offsets = [32, 0], sizes = [1, 32], strides = [1, 1]} : vector<40x32xf32> to vector<1x32xf32>
    %628 = vector.broadcast %627 : vector<1x32xf32> to vector<2x32xf32>
    %629 = arith.addf %626, %628 : vector<2x32xf32>
    %cst_26 = arith.constant 0.000000e+00 : f32
    %630 = vector.broadcast %cst_26 : f32 to vector<2x32xf32>
    %631 = arith.maximumf %629, %630 : vector<2x32xf32>
    %c9 = arith.constant 9 : index
    %c0_27 = arith.constant 0 : index
    %c0_28 = arith.constant 0 : index
    %632 = vector.load %arg1[%c9, %c0_27, %c0_28] : memref<15x40x32xf32, #tpu.memory_space<vmem>>, vector<1x40x32xf32>
    %633 = vector.shape_cast %632 : vector<1x40x32xf32> to vector<40x32xf32>
    %634 = vector.extract_strided_slice %631 {offsets = [0, 0], sizes = [2, 1], strides = [1, 1]} : vector<2x32xf32> to vector<2x1xf32>
    %635 = vector.extract_strided_slice %633 {offsets = [0, 0], sizes = [1, 32], strides = [1, 1]} : vector<40x32xf32> to vector<1x32xf32>
    %636 = vector.broadcast %634 : vector<2x1xf32> to vector<2x32xf32>
    %637 = vector.broadcast %635 : vector<1x32xf32> to vector<2x32xf32>
    %638 = arith.mulf %636, %637 : vector<2x32xf32>
    %639 = vector.extract_strided_slice %631 {offsets = [0, 1], sizes = [2, 1], strides = [1, 1]} : vector<2x32xf32> to vector<2x1xf32>
    %640 = vector.extract_strided_slice %633 {offsets = [1, 0], sizes = [1, 32], strides = [1, 1]} : vector<40x32xf32> to vector<1x32xf32>
    %641 = vector.broadcast %639 : vector<2x1xf32> to vector<2x32xf32>
    %642 = vector.broadcast %640 : vector<1x32xf32> to vector<2x32xf32>
    %643 = arith.mulf %641, %642 : vector<2x32xf32>
    %644 = vector.extract_strided_slice %631 {offsets = [0, 2], sizes = [2, 1], strides = [1, 1]} : vector<2x32xf32> to vector<2x1xf32>
    %645 = vector.extract_strided_slice %633 {offsets = [2, 0], sizes = [1, 32], strides = [1, 1]} : vector<40x32xf32> to vector<1x32xf32>
    %646 = vector.broadcast %644 : vector<2x1xf32> to vector<2x32xf32>
    %647 = vector.broadcast %645 : vector<1x32xf32> to vector<2x32xf32>
    %648 = arith.mulf %646, %647 : vector<2x32xf32>
    %649 = vector.extract_strided_slice %631 {offsets = [0, 3], sizes = [2, 1], strides = [1, 1]} : vector<2x32xf32> to vector<2x1xf32>
    %650 = vector.extract_strided_slice %633 {offsets = [3, 0], sizes = [1, 32], strides = [1, 1]} : vector<40x32xf32> to vector<1x32xf32>
    %651 = vector.broadcast %649 : vector<2x1xf32> to vector<2x32xf32>
    %652 = vector.broadcast %650 : vector<1x32xf32> to vector<2x32xf32>
    %653 = arith.mulf %651, %652 : vector<2x32xf32>
    %654 = vector.extract_strided_slice %631 {offsets = [0, 4], sizes = [2, 1], strides = [1, 1]} : vector<2x32xf32> to vector<2x1xf32>
    %655 = vector.extract_strided_slice %633 {offsets = [4, 0], sizes = [1, 32], strides = [1, 1]} : vector<40x32xf32> to vector<1x32xf32>
    %656 = vector.broadcast %654 : vector<2x1xf32> to vector<2x32xf32>
    %657 = vector.broadcast %655 : vector<1x32xf32> to vector<2x32xf32>
    %658 = arith.mulf %656, %657 : vector<2x32xf32>
    %659 = arith.addf %638, %658 : vector<2x32xf32>
    %660 = vector.extract_strided_slice %631 {offsets = [0, 5], sizes = [2, 1], strides = [1, 1]} : vector<2x32xf32> to vector<2x1xf32>
    %661 = vector.extract_strided_slice %633 {offsets = [5, 0], sizes = [1, 32], strides = [1, 1]} : vector<40x32xf32> to vector<1x32xf32>
    %662 = vector.broadcast %660 : vector<2x1xf32> to vector<2x32xf32>
    %663 = vector.broadcast %661 : vector<1x32xf32> to vector<2x32xf32>
    %664 = arith.mulf %662, %663 : vector<2x32xf32>
    %665 = arith.addf %643, %664 : vector<2x32xf32>
    %666 = vector.extract_strided_slice %631 {offsets = [0, 6], sizes = [2, 1], strides = [1, 1]} : vector<2x32xf32> to vector<2x1xf32>
    %667 = vector.extract_strided_slice %633 {offsets = [6, 0], sizes = [1, 32], strides = [1, 1]} : vector<40x32xf32> to vector<1x32xf32>
    %668 = vector.broadcast %666 : vector<2x1xf32> to vector<2x32xf32>
    %669 = vector.broadcast %667 : vector<1x32xf32> to vector<2x32xf32>
    %670 = arith.mulf %668, %669 : vector<2x32xf32>
    %671 = arith.addf %648, %670 : vector<2x32xf32>
    %672 = vector.extract_strided_slice %631 {offsets = [0, 7], sizes = [2, 1], strides = [1, 1]} : vector<2x32xf32> to vector<2x1xf32>
    %673 = vector.extract_strided_slice %633 {offsets = [7, 0], sizes = [1, 32], strides = [1, 1]} : vector<40x32xf32> to vector<1x32xf32>
    %674 = vector.broadcast %672 : vector<2x1xf32> to vector<2x32xf32>
    %675 = vector.broadcast %673 : vector<1x32xf32> to vector<2x32xf32>
    %676 = arith.mulf %674, %675 : vector<2x32xf32>
    %677 = arith.addf %653, %676 : vector<2x32xf32>
    %678 = vector.extract_strided_slice %631 {offsets = [0, 8], sizes = [2, 1], strides = [1, 1]} : vector<2x32xf32> to vector<2x1xf32>
    %679 = vector.extract_strided_slice %633 {offsets = [8, 0], sizes = [1, 32], strides = [1, 1]} : vector<40x32xf32> to vector<1x32xf32>
    %680 = vector.broadcast %678 : vector<2x1xf32> to vector<2x32xf32>
    %681 = vector.broadcast %679 : vector<1x32xf32> to vector<2x32xf32>
    %682 = arith.mulf %680, %681 : vector<2x32xf32>
    %683 = arith.addf %659, %682 : vector<2x32xf32>
    %684 = vector.extract_strided_slice %631 {offsets = [0, 9], sizes = [2, 1], strides = [1, 1]} : vector<2x32xf32> to vector<2x1xf32>
    %685 = vector.extract_strided_slice %633 {offsets = [9, 0], sizes = [1, 32], strides = [1, 1]} : vector<40x32xf32> to vector<1x32xf32>
    %686 = vector.broadcast %684 : vector<2x1xf32> to vector<2x32xf32>
    %687 = vector.broadcast %685 : vector<1x32xf32> to vector<2x32xf32>
    %688 = arith.mulf %686, %687 : vector<2x32xf32>
    %689 = arith.addf %665, %688 : vector<2x32xf32>
    %690 = vector.extract_strided_slice %631 {offsets = [0, 10], sizes = [2, 1], strides = [1, 1]} : vector<2x32xf32> to vector<2x1xf32>
    %691 = vector.extract_strided_slice %633 {offsets = [10, 0], sizes = [1, 32], strides = [1, 1]} : vector<40x32xf32> to vector<1x32xf32>
    %692 = vector.broadcast %690 : vector<2x1xf32> to vector<2x32xf32>
    %693 = vector.broadcast %691 : vector<1x32xf32> to vector<2x32xf32>
    %694 = arith.mulf %692, %693 : vector<2x32xf32>
    %695 = arith.addf %671, %694 : vector<2x32xf32>
    %696 = vector.extract_strided_slice %631 {offsets = [0, 11], sizes = [2, 1], strides = [1, 1]} : vector<2x32xf32> to vector<2x1xf32>
    %697 = vector.extract_strided_slice %633 {offsets = [11, 0], sizes = [1, 32], strides = [1, 1]} : vector<40x32xf32> to vector<1x32xf32>
    %698 = vector.broadcast %696 : vector<2x1xf32> to vector<2x32xf32>
    %699 = vector.broadcast %697 : vector<1x32xf32> to vector<2x32xf32>
    %700 = arith.mulf %698, %699 : vector<2x32xf32>
    %701 = arith.addf %677, %700 : vector<2x32xf32>
    %702 = vector.extract_strided_slice %631 {offsets = [0, 12], sizes = [2, 1], strides = [1, 1]} : vector<2x32xf32> to vector<2x1xf32>
    %703 = vector.extract_strided_slice %633 {offsets = [12, 0], sizes = [1, 32], strides = [1, 1]} : vector<40x32xf32> to vector<1x32xf32>
    %704 = vector.broadcast %702 : vector<2x1xf32> to vector<2x32xf32>
    %705 = vector.broadcast %703 : vector<1x32xf32> to vector<2x32xf32>
    %706 = arith.mulf %704, %705 : vector<2x32xf32>
    %707 = arith.addf %683, %706 : vector<2x32xf32>
    %708 = vector.extract_strided_slice %631 {offsets = [0, 13], sizes = [2, 1], strides = [1, 1]} : vector<2x32xf32> to vector<2x1xf32>
    %709 = vector.extract_strided_slice %633 {offsets = [13, 0], sizes = [1, 32], strides = [1, 1]} : vector<40x32xf32> to vector<1x32xf32>
    %710 = vector.broadcast %708 : vector<2x1xf32> to vector<2x32xf32>
    %711 = vector.broadcast %709 : vector<1x32xf32> to vector<2x32xf32>
    %712 = arith.mulf %710, %711 : vector<2x32xf32>
    %713 = arith.addf %689, %712 : vector<2x32xf32>
    %714 = vector.extract_strided_slice %631 {offsets = [0, 14], sizes = [2, 1], strides = [1, 1]} : vector<2x32xf32> to vector<2x1xf32>
    %715 = vector.extract_strided_slice %633 {offsets = [14, 0], sizes = [1, 32], strides = [1, 1]} : vector<40x32xf32> to vector<1x32xf32>
    %716 = vector.broadcast %714 : vector<2x1xf32> to vector<2x32xf32>
    %717 = vector.broadcast %715 : vector<1x32xf32> to vector<2x32xf32>
    %718 = arith.mulf %716, %717 : vector<2x32xf32>
    %719 = arith.addf %695, %718 : vector<2x32xf32>
    %720 = vector.extract_strided_slice %631 {offsets = [0, 15], sizes = [2, 1], strides = [1, 1]} : vector<2x32xf32> to vector<2x1xf32>
    %721 = vector.extract_strided_slice %633 {offsets = [15, 0], sizes = [1, 32], strides = [1, 1]} : vector<40x32xf32> to vector<1x32xf32>
    %722 = vector.broadcast %720 : vector<2x1xf32> to vector<2x32xf32>
    %723 = vector.broadcast %721 : vector<1x32xf32> to vector<2x32xf32>
    %724 = arith.mulf %722, %723 : vector<2x32xf32>
    %725 = arith.addf %701, %724 : vector<2x32xf32>
    %726 = arith.addf %707, %713 : vector<2x32xf32>
    %727 = arith.addf %719, %725 : vector<2x32xf32>
    %728 = arith.addf %726, %727 : vector<2x32xf32>
    %729 = vector.extract_strided_slice %633 {offsets = [32, 0], sizes = [1, 32], strides = [1, 1]} : vector<40x32xf32> to vector<1x32xf32>
    %730 = vector.broadcast %729 : vector<1x32xf32> to vector<2x32xf32>
    %731 = arith.addf %728, %730 : vector<2x32xf32>
    %732 = arith.addf %527, %731 : vector<2x32xf32>
    %c10 = arith.constant 10 : index
    %c0_29 = arith.constant 0 : index
    %c0_30 = arith.constant 0 : index
    %733 = vector.load %arg1[%c10, %c0_29, %c0_30] : memref<15x40x32xf32, #tpu.memory_space<vmem>>, vector<1x40x32xf32>
    %734 = vector.shape_cast %733 : vector<1x40x32xf32> to vector<40x32xf32>
    %735 = vector.extract_strided_slice %732 {offsets = [0, 0], sizes = [2, 1], strides = [1, 1]} : vector<2x32xf32> to vector<2x1xf32>
    %736 = vector.extract_strided_slice %734 {offsets = [0, 0], sizes = [1, 32], strides = [1, 1]} : vector<40x32xf32> to vector<1x32xf32>
    %737 = vector.broadcast %735 : vector<2x1xf32> to vector<2x32xf32>
    %738 = vector.broadcast %736 : vector<1x32xf32> to vector<2x32xf32>
    %739 = arith.mulf %737, %738 : vector<2x32xf32>
    %740 = vector.extract_strided_slice %732 {offsets = [0, 1], sizes = [2, 1], strides = [1, 1]} : vector<2x32xf32> to vector<2x1xf32>
    %741 = vector.extract_strided_slice %734 {offsets = [1, 0], sizes = [1, 32], strides = [1, 1]} : vector<40x32xf32> to vector<1x32xf32>
    %742 = vector.broadcast %740 : vector<2x1xf32> to vector<2x32xf32>
    %743 = vector.broadcast %741 : vector<1x32xf32> to vector<2x32xf32>
    %744 = arith.mulf %742, %743 : vector<2x32xf32>
    %745 = vector.extract_strided_slice %732 {offsets = [0, 2], sizes = [2, 1], strides = [1, 1]} : vector<2x32xf32> to vector<2x1xf32>
    %746 = vector.extract_strided_slice %734 {offsets = [2, 0], sizes = [1, 32], strides = [1, 1]} : vector<40x32xf32> to vector<1x32xf32>
    %747 = vector.broadcast %745 : vector<2x1xf32> to vector<2x32xf32>
    %748 = vector.broadcast %746 : vector<1x32xf32> to vector<2x32xf32>
    %749 = arith.mulf %747, %748 : vector<2x32xf32>
    %750 = vector.extract_strided_slice %732 {offsets = [0, 3], sizes = [2, 1], strides = [1, 1]} : vector<2x32xf32> to vector<2x1xf32>
    %751 = vector.extract_strided_slice %734 {offsets = [3, 0], sizes = [1, 32], strides = [1, 1]} : vector<40x32xf32> to vector<1x32xf32>
    %752 = vector.broadcast %750 : vector<2x1xf32> to vector<2x32xf32>
    %753 = vector.broadcast %751 : vector<1x32xf32> to vector<2x32xf32>
    %754 = arith.mulf %752, %753 : vector<2x32xf32>
    %755 = vector.extract_strided_slice %732 {offsets = [0, 4], sizes = [2, 1], strides = [1, 1]} : vector<2x32xf32> to vector<2x1xf32>
    %756 = vector.extract_strided_slice %734 {offsets = [4, 0], sizes = [1, 32], strides = [1, 1]} : vector<40x32xf32> to vector<1x32xf32>
    %757 = vector.broadcast %755 : vector<2x1xf32> to vector<2x32xf32>
    %758 = vector.broadcast %756 : vector<1x32xf32> to vector<2x32xf32>
    %759 = arith.mulf %757, %758 : vector<2x32xf32>
    %760 = arith.addf %739, %759 : vector<2x32xf32>
    %761 = vector.extract_strided_slice %732 {offsets = [0, 5], sizes = [2, 1], strides = [1, 1]} : vector<2x32xf32> to vector<2x1xf32>
    %762 = vector.extract_strided_slice %734 {offsets = [5, 0], sizes = [1, 32], strides = [1, 1]} : vector<40x32xf32> to vector<1x32xf32>
    %763 = vector.broadcast %761 : vector<2x1xf32> to vector<2x32xf32>
    %764 = vector.broadcast %762 : vector<1x32xf32> to vector<2x32xf32>
    %765 = arith.mulf %763, %764 : vector<2x32xf32>
    %766 = arith.addf %744, %765 : vector<2x32xf32>
    %767 = vector.extract_strided_slice %732 {offsets = [0, 6], sizes = [2, 1], strides = [1, 1]} : vector<2x32xf32> to vector<2x1xf32>
    %768 = vector.extract_strided_slice %734 {offsets = [6, 0], sizes = [1, 32], strides = [1, 1]} : vector<40x32xf32> to vector<1x32xf32>
    %769 = vector.broadcast %767 : vector<2x1xf32> to vector<2x32xf32>
    %770 = vector.broadcast %768 : vector<1x32xf32> to vector<2x32xf32>
    %771 = arith.mulf %769, %770 : vector<2x32xf32>
    %772 = arith.addf %749, %771 : vector<2x32xf32>
    %773 = vector.extract_strided_slice %732 {offsets = [0, 7], sizes = [2, 1], strides = [1, 1]} : vector<2x32xf32> to vector<2x1xf32>
    %774 = vector.extract_strided_slice %734 {offsets = [7, 0], sizes = [1, 32], strides = [1, 1]} : vector<40x32xf32> to vector<1x32xf32>
    %775 = vector.broadcast %773 : vector<2x1xf32> to vector<2x32xf32>
    %776 = vector.broadcast %774 : vector<1x32xf32> to vector<2x32xf32>
    %777 = arith.mulf %775, %776 : vector<2x32xf32>
    %778 = arith.addf %754, %777 : vector<2x32xf32>
    %779 = vector.extract_strided_slice %732 {offsets = [0, 8], sizes = [2, 1], strides = [1, 1]} : vector<2x32xf32> to vector<2x1xf32>
    %780 = vector.extract_strided_slice %734 {offsets = [8, 0], sizes = [1, 32], strides = [1, 1]} : vector<40x32xf32> to vector<1x32xf32>
    %781 = vector.broadcast %779 : vector<2x1xf32> to vector<2x32xf32>
    %782 = vector.broadcast %780 : vector<1x32xf32> to vector<2x32xf32>
    %783 = arith.mulf %781, %782 : vector<2x32xf32>
    %784 = arith.addf %760, %783 : vector<2x32xf32>
    %785 = vector.extract_strided_slice %732 {offsets = [0, 9], sizes = [2, 1], strides = [1, 1]} : vector<2x32xf32> to vector<2x1xf32>
    %786 = vector.extract_strided_slice %734 {offsets = [9, 0], sizes = [1, 32], strides = [1, 1]} : vector<40x32xf32> to vector<1x32xf32>
    %787 = vector.broadcast %785 : vector<2x1xf32> to vector<2x32xf32>
    %788 = vector.broadcast %786 : vector<1x32xf32> to vector<2x32xf32>
    %789 = arith.mulf %787, %788 : vector<2x32xf32>
    %790 = arith.addf %766, %789 : vector<2x32xf32>
    %791 = vector.extract_strided_slice %732 {offsets = [0, 10], sizes = [2, 1], strides = [1, 1]} : vector<2x32xf32> to vector<2x1xf32>
    %792 = vector.extract_strided_slice %734 {offsets = [10, 0], sizes = [1, 32], strides = [1, 1]} : vector<40x32xf32> to vector<1x32xf32>
    %793 = vector.broadcast %791 : vector<2x1xf32> to vector<2x32xf32>
    %794 = vector.broadcast %792 : vector<1x32xf32> to vector<2x32xf32>
    %795 = arith.mulf %793, %794 : vector<2x32xf32>
    %796 = arith.addf %772, %795 : vector<2x32xf32>
    %797 = vector.extract_strided_slice %732 {offsets = [0, 11], sizes = [2, 1], strides = [1, 1]} : vector<2x32xf32> to vector<2x1xf32>
    %798 = vector.extract_strided_slice %734 {offsets = [11, 0], sizes = [1, 32], strides = [1, 1]} : vector<40x32xf32> to vector<1x32xf32>
    %799 = vector.broadcast %797 : vector<2x1xf32> to vector<2x32xf32>
    %800 = vector.broadcast %798 : vector<1x32xf32> to vector<2x32xf32>
    %801 = arith.mulf %799, %800 : vector<2x32xf32>
    %802 = arith.addf %778, %801 : vector<2x32xf32>
    %803 = vector.extract_strided_slice %732 {offsets = [0, 12], sizes = [2, 1], strides = [1, 1]} : vector<2x32xf32> to vector<2x1xf32>
    %804 = vector.extract_strided_slice %734 {offsets = [12, 0], sizes = [1, 32], strides = [1, 1]} : vector<40x32xf32> to vector<1x32xf32>
    %805 = vector.broadcast %803 : vector<2x1xf32> to vector<2x32xf32>
    %806 = vector.broadcast %804 : vector<1x32xf32> to vector<2x32xf32>
    %807 = arith.mulf %805, %806 : vector<2x32xf32>
    %808 = arith.addf %784, %807 : vector<2x32xf32>
    %809 = vector.extract_strided_slice %732 {offsets = [0, 13], sizes = [2, 1], strides = [1, 1]} : vector<2x32xf32> to vector<2x1xf32>
    %810 = vector.extract_strided_slice %734 {offsets = [13, 0], sizes = [1, 32], strides = [1, 1]} : vector<40x32xf32> to vector<1x32xf32>
    %811 = vector.broadcast %809 : vector<2x1xf32> to vector<2x32xf32>
    %812 = vector.broadcast %810 : vector<1x32xf32> to vector<2x32xf32>
    %813 = arith.mulf %811, %812 : vector<2x32xf32>
    %814 = arith.addf %790, %813 : vector<2x32xf32>
    %815 = vector.extract_strided_slice %732 {offsets = [0, 14], sizes = [2, 1], strides = [1, 1]} : vector<2x32xf32> to vector<2x1xf32>
    %816 = vector.extract_strided_slice %734 {offsets = [14, 0], sizes = [1, 32], strides = [1, 1]} : vector<40x32xf32> to vector<1x32xf32>
    %817 = vector.broadcast %815 : vector<2x1xf32> to vector<2x32xf32>
    %818 = vector.broadcast %816 : vector<1x32xf32> to vector<2x32xf32>
    %819 = arith.mulf %817, %818 : vector<2x32xf32>
    %820 = arith.addf %796, %819 : vector<2x32xf32>
    %821 = vector.extract_strided_slice %732 {offsets = [0, 15], sizes = [2, 1], strides = [1, 1]} : vector<2x32xf32> to vector<2x1xf32>
    %822 = vector.extract_strided_slice %734 {offsets = [15, 0], sizes = [1, 32], strides = [1, 1]} : vector<40x32xf32> to vector<1x32xf32>
    %823 = vector.broadcast %821 : vector<2x1xf32> to vector<2x32xf32>
    %824 = vector.broadcast %822 : vector<1x32xf32> to vector<2x32xf32>
    %825 = arith.mulf %823, %824 : vector<2x32xf32>
    %826 = arith.addf %802, %825 : vector<2x32xf32>
    %827 = arith.addf %808, %814 : vector<2x32xf32>
    %828 = arith.addf %820, %826 : vector<2x32xf32>
    %829 = arith.addf %827, %828 : vector<2x32xf32>
    %830 = vector.extract_strided_slice %734 {offsets = [32, 0], sizes = [1, 32], strides = [1, 1]} : vector<40x32xf32> to vector<1x32xf32>
    %831 = vector.broadcast %830 : vector<1x32xf32> to vector<2x32xf32>
    %832 = arith.addf %829, %831 : vector<2x32xf32>
    %cst_31 = arith.constant 0.000000e+00 : f32
    %833 = vector.broadcast %cst_31 : f32 to vector<2x32xf32>
    %834 = arith.maximumf %832, %833 : vector<2x32xf32>
    %c11 = arith.constant 11 : index
    %c0_32 = arith.constant 0 : index
    %c0_33 = arith.constant 0 : index
    %835 = vector.load %arg1[%c11, %c0_32, %c0_33] : memref<15x40x32xf32, #tpu.memory_space<vmem>>, vector<1x40x32xf32>
    %836 = vector.shape_cast %835 : vector<1x40x32xf32> to vector<40x32xf32>
    %837 = vector.extract_strided_slice %834 {offsets = [0, 0], sizes = [2, 1], strides = [1, 1]} : vector<2x32xf32> to vector<2x1xf32>
    %838 = vector.extract_strided_slice %836 {offsets = [0, 0], sizes = [1, 32], strides = [1, 1]} : vector<40x32xf32> to vector<1x32xf32>
    %839 = vector.broadcast %837 : vector<2x1xf32> to vector<2x32xf32>
    %840 = vector.broadcast %838 : vector<1x32xf32> to vector<2x32xf32>
    %841 = arith.mulf %839, %840 : vector<2x32xf32>
    %842 = vector.extract_strided_slice %834 {offsets = [0, 1], sizes = [2, 1], strides = [1, 1]} : vector<2x32xf32> to vector<2x1xf32>
    %843 = vector.extract_strided_slice %836 {offsets = [1, 0], sizes = [1, 32], strides = [1, 1]} : vector<40x32xf32> to vector<1x32xf32>
    %844 = vector.broadcast %842 : vector<2x1xf32> to vector<2x32xf32>
    %845 = vector.broadcast %843 : vector<1x32xf32> to vector<2x32xf32>
    %846 = arith.mulf %844, %845 : vector<2x32xf32>
    %847 = vector.extract_strided_slice %834 {offsets = [0, 2], sizes = [2, 1], strides = [1, 1]} : vector<2x32xf32> to vector<2x1xf32>
    %848 = vector.extract_strided_slice %836 {offsets = [2, 0], sizes = [1, 32], strides = [1, 1]} : vector<40x32xf32> to vector<1x32xf32>
    %849 = vector.broadcast %847 : vector<2x1xf32> to vector<2x32xf32>
    %850 = vector.broadcast %848 : vector<1x32xf32> to vector<2x32xf32>
    %851 = arith.mulf %849, %850 : vector<2x32xf32>
    %852 = vector.extract_strided_slice %834 {offsets = [0, 3], sizes = [2, 1], strides = [1, 1]} : vector<2x32xf32> to vector<2x1xf32>
    %853 = vector.extract_strided_slice %836 {offsets = [3, 0], sizes = [1, 32], strides = [1, 1]} : vector<40x32xf32> to vector<1x32xf32>
    %854 = vector.broadcast %852 : vector<2x1xf32> to vector<2x32xf32>
    %855 = vector.broadcast %853 : vector<1x32xf32> to vector<2x32xf32>
    %856 = arith.mulf %854, %855 : vector<2x32xf32>
    %857 = vector.extract_strided_slice %834 {offsets = [0, 4], sizes = [2, 1], strides = [1, 1]} : vector<2x32xf32> to vector<2x1xf32>
    %858 = vector.extract_strided_slice %836 {offsets = [4, 0], sizes = [1, 32], strides = [1, 1]} : vector<40x32xf32> to vector<1x32xf32>
    %859 = vector.broadcast %857 : vector<2x1xf32> to vector<2x32xf32>
    %860 = vector.broadcast %858 : vector<1x32xf32> to vector<2x32xf32>
    %861 = arith.mulf %859, %860 : vector<2x32xf32>
    %862 = arith.addf %841, %861 : vector<2x32xf32>
    %863 = vector.extract_strided_slice %834 {offsets = [0, 5], sizes = [2, 1], strides = [1, 1]} : vector<2x32xf32> to vector<2x1xf32>
    %864 = vector.extract_strided_slice %836 {offsets = [5, 0], sizes = [1, 32], strides = [1, 1]} : vector<40x32xf32> to vector<1x32xf32>
    %865 = vector.broadcast %863 : vector<2x1xf32> to vector<2x32xf32>
    %866 = vector.broadcast %864 : vector<1x32xf32> to vector<2x32xf32>
    %867 = arith.mulf %865, %866 : vector<2x32xf32>
    %868 = arith.addf %846, %867 : vector<2x32xf32>
    %869 = vector.extract_strided_slice %834 {offsets = [0, 6], sizes = [2, 1], strides = [1, 1]} : vector<2x32xf32> to vector<2x1xf32>
    %870 = vector.extract_strided_slice %836 {offsets = [6, 0], sizes = [1, 32], strides = [1, 1]} : vector<40x32xf32> to vector<1x32xf32>
    %871 = vector.broadcast %869 : vector<2x1xf32> to vector<2x32xf32>
    %872 = vector.broadcast %870 : vector<1x32xf32> to vector<2x32xf32>
    %873 = arith.mulf %871, %872 : vector<2x32xf32>
    %874 = arith.addf %851, %873 : vector<2x32xf32>
    %875 = vector.extract_strided_slice %834 {offsets = [0, 7], sizes = [2, 1], strides = [1, 1]} : vector<2x32xf32> to vector<2x1xf32>
    %876 = vector.extract_strided_slice %836 {offsets = [7, 0], sizes = [1, 32], strides = [1, 1]} : vector<40x32xf32> to vector<1x32xf32>
    %877 = vector.broadcast %875 : vector<2x1xf32> to vector<2x32xf32>
    %878 = vector.broadcast %876 : vector<1x32xf32> to vector<2x32xf32>
    %879 = arith.mulf %877, %878 : vector<2x32xf32>
    %880 = arith.addf %856, %879 : vector<2x32xf32>
    %881 = vector.extract_strided_slice %834 {offsets = [0, 8], sizes = [2, 1], strides = [1, 1]} : vector<2x32xf32> to vector<2x1xf32>
    %882 = vector.extract_strided_slice %836 {offsets = [8, 0], sizes = [1, 32], strides = [1, 1]} : vector<40x32xf32> to vector<1x32xf32>
    %883 = vector.broadcast %881 : vector<2x1xf32> to vector<2x32xf32>
    %884 = vector.broadcast %882 : vector<1x32xf32> to vector<2x32xf32>
    %885 = arith.mulf %883, %884 : vector<2x32xf32>
    %886 = arith.addf %862, %885 : vector<2x32xf32>
    %887 = vector.extract_strided_slice %834 {offsets = [0, 9], sizes = [2, 1], strides = [1, 1]} : vector<2x32xf32> to vector<2x1xf32>
    %888 = vector.extract_strided_slice %836 {offsets = [9, 0], sizes = [1, 32], strides = [1, 1]} : vector<40x32xf32> to vector<1x32xf32>
    %889 = vector.broadcast %887 : vector<2x1xf32> to vector<2x32xf32>
    %890 = vector.broadcast %888 : vector<1x32xf32> to vector<2x32xf32>
    %891 = arith.mulf %889, %890 : vector<2x32xf32>
    %892 = arith.addf %868, %891 : vector<2x32xf32>
    %893 = vector.extract_strided_slice %834 {offsets = [0, 10], sizes = [2, 1], strides = [1, 1]} : vector<2x32xf32> to vector<2x1xf32>
    %894 = vector.extract_strided_slice %836 {offsets = [10, 0], sizes = [1, 32], strides = [1, 1]} : vector<40x32xf32> to vector<1x32xf32>
    %895 = vector.broadcast %893 : vector<2x1xf32> to vector<2x32xf32>
    %896 = vector.broadcast %894 : vector<1x32xf32> to vector<2x32xf32>
    %897 = arith.mulf %895, %896 : vector<2x32xf32>
    %898 = arith.addf %874, %897 : vector<2x32xf32>
    %899 = vector.extract_strided_slice %834 {offsets = [0, 11], sizes = [2, 1], strides = [1, 1]} : vector<2x32xf32> to vector<2x1xf32>
    %900 = vector.extract_strided_slice %836 {offsets = [11, 0], sizes = [1, 32], strides = [1, 1]} : vector<40x32xf32> to vector<1x32xf32>
    %901 = vector.broadcast %899 : vector<2x1xf32> to vector<2x32xf32>
    %902 = vector.broadcast %900 : vector<1x32xf32> to vector<2x32xf32>
    %903 = arith.mulf %901, %902 : vector<2x32xf32>
    %904 = arith.addf %880, %903 : vector<2x32xf32>
    %905 = vector.extract_strided_slice %834 {offsets = [0, 12], sizes = [2, 1], strides = [1, 1]} : vector<2x32xf32> to vector<2x1xf32>
    %906 = vector.extract_strided_slice %836 {offsets = [12, 0], sizes = [1, 32], strides = [1, 1]} : vector<40x32xf32> to vector<1x32xf32>
    %907 = vector.broadcast %905 : vector<2x1xf32> to vector<2x32xf32>
    %908 = vector.broadcast %906 : vector<1x32xf32> to vector<2x32xf32>
    %909 = arith.mulf %907, %908 : vector<2x32xf32>
    %910 = arith.addf %886, %909 : vector<2x32xf32>
    %911 = vector.extract_strided_slice %834 {offsets = [0, 13], sizes = [2, 1], strides = [1, 1]} : vector<2x32xf32> to vector<2x1xf32>
    %912 = vector.extract_strided_slice %836 {offsets = [13, 0], sizes = [1, 32], strides = [1, 1]} : vector<40x32xf32> to vector<1x32xf32>
    %913 = vector.broadcast %911 : vector<2x1xf32> to vector<2x32xf32>
    %914 = vector.broadcast %912 : vector<1x32xf32> to vector<2x32xf32>
    %915 = arith.mulf %913, %914 : vector<2x32xf32>
    %916 = arith.addf %892, %915 : vector<2x32xf32>
    %917 = vector.extract_strided_slice %834 {offsets = [0, 14], sizes = [2, 1], strides = [1, 1]} : vector<2x32xf32> to vector<2x1xf32>
    %918 = vector.extract_strided_slice %836 {offsets = [14, 0], sizes = [1, 32], strides = [1, 1]} : vector<40x32xf32> to vector<1x32xf32>
    %919 = vector.broadcast %917 : vector<2x1xf32> to vector<2x32xf32>
    %920 = vector.broadcast %918 : vector<1x32xf32> to vector<2x32xf32>
    %921 = arith.mulf %919, %920 : vector<2x32xf32>
    %922 = arith.addf %898, %921 : vector<2x32xf32>
    %923 = vector.extract_strided_slice %834 {offsets = [0, 15], sizes = [2, 1], strides = [1, 1]} : vector<2x32xf32> to vector<2x1xf32>
    %924 = vector.extract_strided_slice %836 {offsets = [15, 0], sizes = [1, 32], strides = [1, 1]} : vector<40x32xf32> to vector<1x32xf32>
    %925 = vector.broadcast %923 : vector<2x1xf32> to vector<2x32xf32>
    %926 = vector.broadcast %924 : vector<1x32xf32> to vector<2x32xf32>
    %927 = arith.mulf %925, %926 : vector<2x32xf32>
    %928 = arith.addf %904, %927 : vector<2x32xf32>
    %929 = vector.extract_strided_slice %834 {offsets = [0, 16], sizes = [2, 1], strides = [1, 1]} : vector<2x32xf32> to vector<2x1xf32>
    %930 = vector.extract_strided_slice %836 {offsets = [16, 0], sizes = [1, 32], strides = [1, 1]} : vector<40x32xf32> to vector<1x32xf32>
    %931 = vector.broadcast %929 : vector<2x1xf32> to vector<2x32xf32>
    %932 = vector.broadcast %930 : vector<1x32xf32> to vector<2x32xf32>
    %933 = arith.mulf %931, %932 : vector<2x32xf32>
    %934 = arith.addf %910, %933 : vector<2x32xf32>
    %935 = vector.extract_strided_slice %834 {offsets = [0, 17], sizes = [2, 1], strides = [1, 1]} : vector<2x32xf32> to vector<2x1xf32>
    %936 = vector.extract_strided_slice %836 {offsets = [17, 0], sizes = [1, 32], strides = [1, 1]} : vector<40x32xf32> to vector<1x32xf32>
    %937 = vector.broadcast %935 : vector<2x1xf32> to vector<2x32xf32>
    %938 = vector.broadcast %936 : vector<1x32xf32> to vector<2x32xf32>
    %939 = arith.mulf %937, %938 : vector<2x32xf32>
    %940 = arith.addf %916, %939 : vector<2x32xf32>
    %941 = vector.extract_strided_slice %834 {offsets = [0, 18], sizes = [2, 1], strides = [1, 1]} : vector<2x32xf32> to vector<2x1xf32>
    %942 = vector.extract_strided_slice %836 {offsets = [18, 0], sizes = [1, 32], strides = [1, 1]} : vector<40x32xf32> to vector<1x32xf32>
    %943 = vector.broadcast %941 : vector<2x1xf32> to vector<2x32xf32>
    %944 = vector.broadcast %942 : vector<1x32xf32> to vector<2x32xf32>
    %945 = arith.mulf %943, %944 : vector<2x32xf32>
    %946 = arith.addf %922, %945 : vector<2x32xf32>
    %947 = vector.extract_strided_slice %834 {offsets = [0, 19], sizes = [2, 1], strides = [1, 1]} : vector<2x32xf32> to vector<2x1xf32>
    %948 = vector.extract_strided_slice %836 {offsets = [19, 0], sizes = [1, 32], strides = [1, 1]} : vector<40x32xf32> to vector<1x32xf32>
    %949 = vector.broadcast %947 : vector<2x1xf32> to vector<2x32xf32>
    %950 = vector.broadcast %948 : vector<1x32xf32> to vector<2x32xf32>
    %951 = arith.mulf %949, %950 : vector<2x32xf32>
    %952 = arith.addf %928, %951 : vector<2x32xf32>
    %953 = vector.extract_strided_slice %834 {offsets = [0, 20], sizes = [2, 1], strides = [1, 1]} : vector<2x32xf32> to vector<2x1xf32>
    %954 = vector.extract_strided_slice %836 {offsets = [20, 0], sizes = [1, 32], strides = [1, 1]} : vector<40x32xf32> to vector<1x32xf32>
    %955 = vector.broadcast %953 : vector<2x1xf32> to vector<2x32xf32>
    %956 = vector.broadcast %954 : vector<1x32xf32> to vector<2x32xf32>
    %957 = arith.mulf %955, %956 : vector<2x32xf32>
    %958 = arith.addf %934, %957 : vector<2x32xf32>
    %959 = vector.extract_strided_slice %834 {offsets = [0, 21], sizes = [2, 1], strides = [1, 1]} : vector<2x32xf32> to vector<2x1xf32>
    %960 = vector.extract_strided_slice %836 {offsets = [21, 0], sizes = [1, 32], strides = [1, 1]} : vector<40x32xf32> to vector<1x32xf32>
    %961 = vector.broadcast %959 : vector<2x1xf32> to vector<2x32xf32>
    %962 = vector.broadcast %960 : vector<1x32xf32> to vector<2x32xf32>
    %963 = arith.mulf %961, %962 : vector<2x32xf32>
    %964 = arith.addf %940, %963 : vector<2x32xf32>
    %965 = vector.extract_strided_slice %834 {offsets = [0, 22], sizes = [2, 1], strides = [1, 1]} : vector<2x32xf32> to vector<2x1xf32>
    %966 = vector.extract_strided_slice %836 {offsets = [22, 0], sizes = [1, 32], strides = [1, 1]} : vector<40x32xf32> to vector<1x32xf32>
    %967 = vector.broadcast %965 : vector<2x1xf32> to vector<2x32xf32>
    %968 = vector.broadcast %966 : vector<1x32xf32> to vector<2x32xf32>
    %969 = arith.mulf %967, %968 : vector<2x32xf32>
    %970 = arith.addf %946, %969 : vector<2x32xf32>
    %971 = vector.extract_strided_slice %834 {offsets = [0, 23], sizes = [2, 1], strides = [1, 1]} : vector<2x32xf32> to vector<2x1xf32>
    %972 = vector.extract_strided_slice %836 {offsets = [23, 0], sizes = [1, 32], strides = [1, 1]} : vector<40x32xf32> to vector<1x32xf32>
    %973 = vector.broadcast %971 : vector<2x1xf32> to vector<2x32xf32>
    %974 = vector.broadcast %972 : vector<1x32xf32> to vector<2x32xf32>
    %975 = arith.mulf %973, %974 : vector<2x32xf32>
    %976 = arith.addf %952, %975 : vector<2x32xf32>
    %977 = vector.extract_strided_slice %834 {offsets = [0, 24], sizes = [2, 1], strides = [1, 1]} : vector<2x32xf32> to vector<2x1xf32>
    %978 = vector.extract_strided_slice %836 {offsets = [24, 0], sizes = [1, 32], strides = [1, 1]} : vector<40x32xf32> to vector<1x32xf32>
    %979 = vector.broadcast %977 : vector<2x1xf32> to vector<2x32xf32>
    %980 = vector.broadcast %978 : vector<1x32xf32> to vector<2x32xf32>
    %981 = arith.mulf %979, %980 : vector<2x32xf32>
    %982 = arith.addf %958, %981 : vector<2x32xf32>
    %983 = vector.extract_strided_slice %834 {offsets = [0, 25], sizes = [2, 1], strides = [1, 1]} : vector<2x32xf32> to vector<2x1xf32>
    %984 = vector.extract_strided_slice %836 {offsets = [25, 0], sizes = [1, 32], strides = [1, 1]} : vector<40x32xf32> to vector<1x32xf32>
    %985 = vector.broadcast %983 : vector<2x1xf32> to vector<2x32xf32>
    %986 = vector.broadcast %984 : vector<1x32xf32> to vector<2x32xf32>
    %987 = arith.mulf %985, %986 : vector<2x32xf32>
    %988 = arith.addf %964, %987 : vector<2x32xf32>
    %989 = vector.extract_strided_slice %834 {offsets = [0, 26], sizes = [2, 1], strides = [1, 1]} : vector<2x32xf32> to vector<2x1xf32>
    %990 = vector.extract_strided_slice %836 {offsets = [26, 0], sizes = [1, 32], strides = [1, 1]} : vector<40x32xf32> to vector<1x32xf32>
    %991 = vector.broadcast %989 : vector<2x1xf32> to vector<2x32xf32>
    %992 = vector.broadcast %990 : vector<1x32xf32> to vector<2x32xf32>
    %993 = arith.mulf %991, %992 : vector<2x32xf32>
    %994 = arith.addf %970, %993 : vector<2x32xf32>
    %995 = vector.extract_strided_slice %834 {offsets = [0, 27], sizes = [2, 1], strides = [1, 1]} : vector<2x32xf32> to vector<2x1xf32>
    %996 = vector.extract_strided_slice %836 {offsets = [27, 0], sizes = [1, 32], strides = [1, 1]} : vector<40x32xf32> to vector<1x32xf32>
    %997 = vector.broadcast %995 : vector<2x1xf32> to vector<2x32xf32>
    %998 = vector.broadcast %996 : vector<1x32xf32> to vector<2x32xf32>
    %999 = arith.mulf %997, %998 : vector<2x32xf32>
    %1000 = arith.addf %976, %999 : vector<2x32xf32>
    %1001 = vector.extract_strided_slice %834 {offsets = [0, 28], sizes = [2, 1], strides = [1, 1]} : vector<2x32xf32> to vector<2x1xf32>
    %1002 = vector.extract_strided_slice %836 {offsets = [28, 0], sizes = [1, 32], strides = [1, 1]} : vector<40x32xf32> to vector<1x32xf32>
    %1003 = vector.broadcast %1001 : vector<2x1xf32> to vector<2x32xf32>
    %1004 = vector.broadcast %1002 : vector<1x32xf32> to vector<2x32xf32>
    %1005 = arith.mulf %1003, %1004 : vector<2x32xf32>
    %1006 = arith.addf %982, %1005 : vector<2x32xf32>
    %1007 = vector.extract_strided_slice %834 {offsets = [0, 29], sizes = [2, 1], strides = [1, 1]} : vector<2x32xf32> to vector<2x1xf32>
    %1008 = vector.extract_strided_slice %836 {offsets = [29, 0], sizes = [1, 32], strides = [1, 1]} : vector<40x32xf32> to vector<1x32xf32>
    %1009 = vector.broadcast %1007 : vector<2x1xf32> to vector<2x32xf32>
    %1010 = vector.broadcast %1008 : vector<1x32xf32> to vector<2x32xf32>
    %1011 = arith.mulf %1009, %1010 : vector<2x32xf32>
    %1012 = arith.addf %988, %1011 : vector<2x32xf32>
    %1013 = vector.extract_strided_slice %834 {offsets = [0, 30], sizes = [2, 1], strides = [1, 1]} : vector<2x32xf32> to vector<2x1xf32>
    %1014 = vector.extract_strided_slice %836 {offsets = [30, 0], sizes = [1, 32], strides = [1, 1]} : vector<40x32xf32> to vector<1x32xf32>
    %1015 = vector.broadcast %1013 : vector<2x1xf32> to vector<2x32xf32>
    %1016 = vector.broadcast %1014 : vector<1x32xf32> to vector<2x32xf32>
    %1017 = arith.mulf %1015, %1016 : vector<2x32xf32>
    %1018 = arith.addf %994, %1017 : vector<2x32xf32>
    %1019 = vector.extract_strided_slice %834 {offsets = [0, 31], sizes = [2, 1], strides = [1, 1]} : vector<2x32xf32> to vector<2x1xf32>
    %1020 = vector.extract_strided_slice %836 {offsets = [31, 0], sizes = [1, 32], strides = [1, 1]} : vector<40x32xf32> to vector<1x32xf32>
    %1021 = vector.broadcast %1019 : vector<2x1xf32> to vector<2x32xf32>
    %1022 = vector.broadcast %1020 : vector<1x32xf32> to vector<2x32xf32>
    %1023 = arith.mulf %1021, %1022 : vector<2x32xf32>
    %1024 = arith.addf %1000, %1023 : vector<2x32xf32>
    %1025 = arith.addf %1006, %1012 : vector<2x32xf32>
    %1026 = arith.addf %1018, %1024 : vector<2x32xf32>
    %1027 = arith.addf %1025, %1026 : vector<2x32xf32>
    %1028 = vector.extract_strided_slice %836 {offsets = [32, 0], sizes = [1, 32], strides = [1, 1]} : vector<40x32xf32> to vector<1x32xf32>
    %1029 = vector.broadcast %1028 : vector<1x32xf32> to vector<2x32xf32>
    %1030 = arith.addf %1027, %1029 : vector<2x32xf32>
    %cst_34 = arith.constant 0.000000e+00 : f32
    %1031 = vector.broadcast %cst_34 : f32 to vector<2x32xf32>
    %1032 = arith.maximumf %1030, %1031 : vector<2x32xf32>
    %c12 = arith.constant 12 : index
    %c0_35 = arith.constant 0 : index
    %c0_36 = arith.constant 0 : index
    %1033 = vector.load %arg1[%c12, %c0_35, %c0_36] : memref<15x40x32xf32, #tpu.memory_space<vmem>>, vector<1x40x32xf32>
    %1034 = vector.shape_cast %1033 : vector<1x40x32xf32> to vector<40x32xf32>
    %1035 = vector.extract_strided_slice %1032 {offsets = [0, 0], sizes = [2, 1], strides = [1, 1]} : vector<2x32xf32> to vector<2x1xf32>
    %1036 = vector.extract_strided_slice %1034 {offsets = [0, 0], sizes = [1, 32], strides = [1, 1]} : vector<40x32xf32> to vector<1x32xf32>
    %1037 = vector.broadcast %1035 : vector<2x1xf32> to vector<2x32xf32>
    %1038 = vector.broadcast %1036 : vector<1x32xf32> to vector<2x32xf32>
    %1039 = arith.mulf %1037, %1038 : vector<2x32xf32>
    %1040 = vector.extract_strided_slice %1032 {offsets = [0, 1], sizes = [2, 1], strides = [1, 1]} : vector<2x32xf32> to vector<2x1xf32>
    %1041 = vector.extract_strided_slice %1034 {offsets = [1, 0], sizes = [1, 32], strides = [1, 1]} : vector<40x32xf32> to vector<1x32xf32>
    %1042 = vector.broadcast %1040 : vector<2x1xf32> to vector<2x32xf32>
    %1043 = vector.broadcast %1041 : vector<1x32xf32> to vector<2x32xf32>
    %1044 = arith.mulf %1042, %1043 : vector<2x32xf32>
    %1045 = vector.extract_strided_slice %1032 {offsets = [0, 2], sizes = [2, 1], strides = [1, 1]} : vector<2x32xf32> to vector<2x1xf32>
    %1046 = vector.extract_strided_slice %1034 {offsets = [2, 0], sizes = [1, 32], strides = [1, 1]} : vector<40x32xf32> to vector<1x32xf32>
    %1047 = vector.broadcast %1045 : vector<2x1xf32> to vector<2x32xf32>
    %1048 = vector.broadcast %1046 : vector<1x32xf32> to vector<2x32xf32>
    %1049 = arith.mulf %1047, %1048 : vector<2x32xf32>
    %1050 = vector.extract_strided_slice %1032 {offsets = [0, 3], sizes = [2, 1], strides = [1, 1]} : vector<2x32xf32> to vector<2x1xf32>
    %1051 = vector.extract_strided_slice %1034 {offsets = [3, 0], sizes = [1, 32], strides = [1, 1]} : vector<40x32xf32> to vector<1x32xf32>
    %1052 = vector.broadcast %1050 : vector<2x1xf32> to vector<2x32xf32>
    %1053 = vector.broadcast %1051 : vector<1x32xf32> to vector<2x32xf32>
    %1054 = arith.mulf %1052, %1053 : vector<2x32xf32>
    %1055 = vector.extract_strided_slice %1032 {offsets = [0, 4], sizes = [2, 1], strides = [1, 1]} : vector<2x32xf32> to vector<2x1xf32>
    %1056 = vector.extract_strided_slice %1034 {offsets = [4, 0], sizes = [1, 32], strides = [1, 1]} : vector<40x32xf32> to vector<1x32xf32>
    %1057 = vector.broadcast %1055 : vector<2x1xf32> to vector<2x32xf32>
    %1058 = vector.broadcast %1056 : vector<1x32xf32> to vector<2x32xf32>
    %1059 = arith.mulf %1057, %1058 : vector<2x32xf32>
    %1060 = arith.addf %1039, %1059 : vector<2x32xf32>
    %1061 = vector.extract_strided_slice %1032 {offsets = [0, 5], sizes = [2, 1], strides = [1, 1]} : vector<2x32xf32> to vector<2x1xf32>
    %1062 = vector.extract_strided_slice %1034 {offsets = [5, 0], sizes = [1, 32], strides = [1, 1]} : vector<40x32xf32> to vector<1x32xf32>
    %1063 = vector.broadcast %1061 : vector<2x1xf32> to vector<2x32xf32>
    %1064 = vector.broadcast %1062 : vector<1x32xf32> to vector<2x32xf32>
    %1065 = arith.mulf %1063, %1064 : vector<2x32xf32>
    %1066 = arith.addf %1044, %1065 : vector<2x32xf32>
    %1067 = vector.extract_strided_slice %1032 {offsets = [0, 6], sizes = [2, 1], strides = [1, 1]} : vector<2x32xf32> to vector<2x1xf32>
    %1068 = vector.extract_strided_slice %1034 {offsets = [6, 0], sizes = [1, 32], strides = [1, 1]} : vector<40x32xf32> to vector<1x32xf32>
    %1069 = vector.broadcast %1067 : vector<2x1xf32> to vector<2x32xf32>
    %1070 = vector.broadcast %1068 : vector<1x32xf32> to vector<2x32xf32>
    %1071 = arith.mulf %1069, %1070 : vector<2x32xf32>
    %1072 = arith.addf %1049, %1071 : vector<2x32xf32>
    %1073 = vector.extract_strided_slice %1032 {offsets = [0, 7], sizes = [2, 1], strides = [1, 1]} : vector<2x32xf32> to vector<2x1xf32>
    %1074 = vector.extract_strided_slice %1034 {offsets = [7, 0], sizes = [1, 32], strides = [1, 1]} : vector<40x32xf32> to vector<1x32xf32>
    %1075 = vector.broadcast %1073 : vector<2x1xf32> to vector<2x32xf32>
    %1076 = vector.broadcast %1074 : vector<1x32xf32> to vector<2x32xf32>
    %1077 = arith.mulf %1075, %1076 : vector<2x32xf32>
    %1078 = arith.addf %1054, %1077 : vector<2x32xf32>
    %1079 = vector.extract_strided_slice %1032 {offsets = [0, 8], sizes = [2, 1], strides = [1, 1]} : vector<2x32xf32> to vector<2x1xf32>
    %1080 = vector.extract_strided_slice %1034 {offsets = [8, 0], sizes = [1, 32], strides = [1, 1]} : vector<40x32xf32> to vector<1x32xf32>
    %1081 = vector.broadcast %1079 : vector<2x1xf32> to vector<2x32xf32>
    %1082 = vector.broadcast %1080 : vector<1x32xf32> to vector<2x32xf32>
    %1083 = arith.mulf %1081, %1082 : vector<2x32xf32>
    %1084 = arith.addf %1060, %1083 : vector<2x32xf32>
    %1085 = vector.extract_strided_slice %1032 {offsets = [0, 9], sizes = [2, 1], strides = [1, 1]} : vector<2x32xf32> to vector<2x1xf32>
    %1086 = vector.extract_strided_slice %1034 {offsets = [9, 0], sizes = [1, 32], strides = [1, 1]} : vector<40x32xf32> to vector<1x32xf32>
    %1087 = vector.broadcast %1085 : vector<2x1xf32> to vector<2x32xf32>
    %1088 = vector.broadcast %1086 : vector<1x32xf32> to vector<2x32xf32>
    %1089 = arith.mulf %1087, %1088 : vector<2x32xf32>
    %1090 = arith.addf %1066, %1089 : vector<2x32xf32>
    %1091 = vector.extract_strided_slice %1032 {offsets = [0, 10], sizes = [2, 1], strides = [1, 1]} : vector<2x32xf32> to vector<2x1xf32>
    %1092 = vector.extract_strided_slice %1034 {offsets = [10, 0], sizes = [1, 32], strides = [1, 1]} : vector<40x32xf32> to vector<1x32xf32>
    %1093 = vector.broadcast %1091 : vector<2x1xf32> to vector<2x32xf32>
    %1094 = vector.broadcast %1092 : vector<1x32xf32> to vector<2x32xf32>
    %1095 = arith.mulf %1093, %1094 : vector<2x32xf32>
    %1096 = arith.addf %1072, %1095 : vector<2x32xf32>
    %1097 = vector.extract_strided_slice %1032 {offsets = [0, 11], sizes = [2, 1], strides = [1, 1]} : vector<2x32xf32> to vector<2x1xf32>
    %1098 = vector.extract_strided_slice %1034 {offsets = [11, 0], sizes = [1, 32], strides = [1, 1]} : vector<40x32xf32> to vector<1x32xf32>
    %1099 = vector.broadcast %1097 : vector<2x1xf32> to vector<2x32xf32>
    %1100 = vector.broadcast %1098 : vector<1x32xf32> to vector<2x32xf32>
    %1101 = arith.mulf %1099, %1100 : vector<2x32xf32>
    %1102 = arith.addf %1078, %1101 : vector<2x32xf32>
    %1103 = vector.extract_strided_slice %1032 {offsets = [0, 12], sizes = [2, 1], strides = [1, 1]} : vector<2x32xf32> to vector<2x1xf32>
    %1104 = vector.extract_strided_slice %1034 {offsets = [12, 0], sizes = [1, 32], strides = [1, 1]} : vector<40x32xf32> to vector<1x32xf32>
    %1105 = vector.broadcast %1103 : vector<2x1xf32> to vector<2x32xf32>
    %1106 = vector.broadcast %1104 : vector<1x32xf32> to vector<2x32xf32>
    %1107 = arith.mulf %1105, %1106 : vector<2x32xf32>
    %1108 = arith.addf %1084, %1107 : vector<2x32xf32>
    %1109 = vector.extract_strided_slice %1032 {offsets = [0, 13], sizes = [2, 1], strides = [1, 1]} : vector<2x32xf32> to vector<2x1xf32>
    %1110 = vector.extract_strided_slice %1034 {offsets = [13, 0], sizes = [1, 32], strides = [1, 1]} : vector<40x32xf32> to vector<1x32xf32>
    %1111 = vector.broadcast %1109 : vector<2x1xf32> to vector<2x32xf32>
    %1112 = vector.broadcast %1110 : vector<1x32xf32> to vector<2x32xf32>
    %1113 = arith.mulf %1111, %1112 : vector<2x32xf32>
    %1114 = arith.addf %1090, %1113 : vector<2x32xf32>
    %1115 = vector.extract_strided_slice %1032 {offsets = [0, 14], sizes = [2, 1], strides = [1, 1]} : vector<2x32xf32> to vector<2x1xf32>
    %1116 = vector.extract_strided_slice %1034 {offsets = [14, 0], sizes = [1, 32], strides = [1, 1]} : vector<40x32xf32> to vector<1x32xf32>
    %1117 = vector.broadcast %1115 : vector<2x1xf32> to vector<2x32xf32>
    %1118 = vector.broadcast %1116 : vector<1x32xf32> to vector<2x32xf32>
    %1119 = arith.mulf %1117, %1118 : vector<2x32xf32>
    %1120 = arith.addf %1096, %1119 : vector<2x32xf32>
    %1121 = vector.extract_strided_slice %1032 {offsets = [0, 15], sizes = [2, 1], strides = [1, 1]} : vector<2x32xf32> to vector<2x1xf32>
    %1122 = vector.extract_strided_slice %1034 {offsets = [15, 0], sizes = [1, 32], strides = [1, 1]} : vector<40x32xf32> to vector<1x32xf32>
    %1123 = vector.broadcast %1121 : vector<2x1xf32> to vector<2x32xf32>
    %1124 = vector.broadcast %1122 : vector<1x32xf32> to vector<2x32xf32>
    %1125 = arith.mulf %1123, %1124 : vector<2x32xf32>
    %1126 = arith.addf %1102, %1125 : vector<2x32xf32>
    %1127 = vector.extract_strided_slice %1032 {offsets = [0, 16], sizes = [2, 1], strides = [1, 1]} : vector<2x32xf32> to vector<2x1xf32>
    %1128 = vector.extract_strided_slice %1034 {offsets = [16, 0], sizes = [1, 32], strides = [1, 1]} : vector<40x32xf32> to vector<1x32xf32>
    %1129 = vector.broadcast %1127 : vector<2x1xf32> to vector<2x32xf32>
    %1130 = vector.broadcast %1128 : vector<1x32xf32> to vector<2x32xf32>
    %1131 = arith.mulf %1129, %1130 : vector<2x32xf32>
    %1132 = arith.addf %1108, %1131 : vector<2x32xf32>
    %1133 = vector.extract_strided_slice %1032 {offsets = [0, 17], sizes = [2, 1], strides = [1, 1]} : vector<2x32xf32> to vector<2x1xf32>
    %1134 = vector.extract_strided_slice %1034 {offsets = [17, 0], sizes = [1, 32], strides = [1, 1]} : vector<40x32xf32> to vector<1x32xf32>
    %1135 = vector.broadcast %1133 : vector<2x1xf32> to vector<2x32xf32>
    %1136 = vector.broadcast %1134 : vector<1x32xf32> to vector<2x32xf32>
    %1137 = arith.mulf %1135, %1136 : vector<2x32xf32>
    %1138 = arith.addf %1114, %1137 : vector<2x32xf32>
    %1139 = vector.extract_strided_slice %1032 {offsets = [0, 18], sizes = [2, 1], strides = [1, 1]} : vector<2x32xf32> to vector<2x1xf32>
    %1140 = vector.extract_strided_slice %1034 {offsets = [18, 0], sizes = [1, 32], strides = [1, 1]} : vector<40x32xf32> to vector<1x32xf32>
    %1141 = vector.broadcast %1139 : vector<2x1xf32> to vector<2x32xf32>
    %1142 = vector.broadcast %1140 : vector<1x32xf32> to vector<2x32xf32>
    %1143 = arith.mulf %1141, %1142 : vector<2x32xf32>
    %1144 = arith.addf %1120, %1143 : vector<2x32xf32>
    %1145 = vector.extract_strided_slice %1032 {offsets = [0, 19], sizes = [2, 1], strides = [1, 1]} : vector<2x32xf32> to vector<2x1xf32>
    %1146 = vector.extract_strided_slice %1034 {offsets = [19, 0], sizes = [1, 32], strides = [1, 1]} : vector<40x32xf32> to vector<1x32xf32>
    %1147 = vector.broadcast %1145 : vector<2x1xf32> to vector<2x32xf32>
    %1148 = vector.broadcast %1146 : vector<1x32xf32> to vector<2x32xf32>
    %1149 = arith.mulf %1147, %1148 : vector<2x32xf32>
    %1150 = arith.addf %1126, %1149 : vector<2x32xf32>
    %1151 = vector.extract_strided_slice %1032 {offsets = [0, 20], sizes = [2, 1], strides = [1, 1]} : vector<2x32xf32> to vector<2x1xf32>
    %1152 = vector.extract_strided_slice %1034 {offsets = [20, 0], sizes = [1, 32], strides = [1, 1]} : vector<40x32xf32> to vector<1x32xf32>
    %1153 = vector.broadcast %1151 : vector<2x1xf32> to vector<2x32xf32>
    %1154 = vector.broadcast %1152 : vector<1x32xf32> to vector<2x32xf32>
    %1155 = arith.mulf %1153, %1154 : vector<2x32xf32>
    %1156 = arith.addf %1132, %1155 : vector<2x32xf32>
    %1157 = vector.extract_strided_slice %1032 {offsets = [0, 21], sizes = [2, 1], strides = [1, 1]} : vector<2x32xf32> to vector<2x1xf32>
    %1158 = vector.extract_strided_slice %1034 {offsets = [21, 0], sizes = [1, 32], strides = [1, 1]} : vector<40x32xf32> to vector<1x32xf32>
    %1159 = vector.broadcast %1157 : vector<2x1xf32> to vector<2x32xf32>
    %1160 = vector.broadcast %1158 : vector<1x32xf32> to vector<2x32xf32>
    %1161 = arith.mulf %1159, %1160 : vector<2x32xf32>
    %1162 = arith.addf %1138, %1161 : vector<2x32xf32>
    %1163 = vector.extract_strided_slice %1032 {offsets = [0, 22], sizes = [2, 1], strides = [1, 1]} : vector<2x32xf32> to vector<2x1xf32>
    %1164 = vector.extract_strided_slice %1034 {offsets = [22, 0], sizes = [1, 32], strides = [1, 1]} : vector<40x32xf32> to vector<1x32xf32>
    %1165 = vector.broadcast %1163 : vector<2x1xf32> to vector<2x32xf32>
    %1166 = vector.broadcast %1164 : vector<1x32xf32> to vector<2x32xf32>
    %1167 = arith.mulf %1165, %1166 : vector<2x32xf32>
    %1168 = arith.addf %1144, %1167 : vector<2x32xf32>
    %1169 = vector.extract_strided_slice %1032 {offsets = [0, 23], sizes = [2, 1], strides = [1, 1]} : vector<2x32xf32> to vector<2x1xf32>
    %1170 = vector.extract_strided_slice %1034 {offsets = [23, 0], sizes = [1, 32], strides = [1, 1]} : vector<40x32xf32> to vector<1x32xf32>
    %1171 = vector.broadcast %1169 : vector<2x1xf32> to vector<2x32xf32>
    %1172 = vector.broadcast %1170 : vector<1x32xf32> to vector<2x32xf32>
    %1173 = arith.mulf %1171, %1172 : vector<2x32xf32>
    %1174 = arith.addf %1150, %1173 : vector<2x32xf32>
    %1175 = vector.extract_strided_slice %1032 {offsets = [0, 24], sizes = [2, 1], strides = [1, 1]} : vector<2x32xf32> to vector<2x1xf32>
    %1176 = vector.extract_strided_slice %1034 {offsets = [24, 0], sizes = [1, 32], strides = [1, 1]} : vector<40x32xf32> to vector<1x32xf32>
    %1177 = vector.broadcast %1175 : vector<2x1xf32> to vector<2x32xf32>
    %1178 = vector.broadcast %1176 : vector<1x32xf32> to vector<2x32xf32>
    %1179 = arith.mulf %1177, %1178 : vector<2x32xf32>
    %1180 = arith.addf %1156, %1179 : vector<2x32xf32>
    %1181 = vector.extract_strided_slice %1032 {offsets = [0, 25], sizes = [2, 1], strides = [1, 1]} : vector<2x32xf32> to vector<2x1xf32>
    %1182 = vector.extract_strided_slice %1034 {offsets = [25, 0], sizes = [1, 32], strides = [1, 1]} : vector<40x32xf32> to vector<1x32xf32>
    %1183 = vector.broadcast %1181 : vector<2x1xf32> to vector<2x32xf32>
    %1184 = vector.broadcast %1182 : vector<1x32xf32> to vector<2x32xf32>
    %1185 = arith.mulf %1183, %1184 : vector<2x32xf32>
    %1186 = arith.addf %1162, %1185 : vector<2x32xf32>
    %1187 = vector.extract_strided_slice %1032 {offsets = [0, 26], sizes = [2, 1], strides = [1, 1]} : vector<2x32xf32> to vector<2x1xf32>
    %1188 = vector.extract_strided_slice %1034 {offsets = [26, 0], sizes = [1, 32], strides = [1, 1]} : vector<40x32xf32> to vector<1x32xf32>
    %1189 = vector.broadcast %1187 : vector<2x1xf32> to vector<2x32xf32>
    %1190 = vector.broadcast %1188 : vector<1x32xf32> to vector<2x32xf32>
    %1191 = arith.mulf %1189, %1190 : vector<2x32xf32>
    %1192 = arith.addf %1168, %1191 : vector<2x32xf32>
    %1193 = vector.extract_strided_slice %1032 {offsets = [0, 27], sizes = [2, 1], strides = [1, 1]} : vector<2x32xf32> to vector<2x1xf32>
    %1194 = vector.extract_strided_slice %1034 {offsets = [27, 0], sizes = [1, 32], strides = [1, 1]} : vector<40x32xf32> to vector<1x32xf32>
    %1195 = vector.broadcast %1193 : vector<2x1xf32> to vector<2x32xf32>
    %1196 = vector.broadcast %1194 : vector<1x32xf32> to vector<2x32xf32>
    %1197 = arith.mulf %1195, %1196 : vector<2x32xf32>
    %1198 = arith.addf %1174, %1197 : vector<2x32xf32>
    %1199 = vector.extract_strided_slice %1032 {offsets = [0, 28], sizes = [2, 1], strides = [1, 1]} : vector<2x32xf32> to vector<2x1xf32>
    %1200 = vector.extract_strided_slice %1034 {offsets = [28, 0], sizes = [1, 32], strides = [1, 1]} : vector<40x32xf32> to vector<1x32xf32>
    %1201 = vector.broadcast %1199 : vector<2x1xf32> to vector<2x32xf32>
    %1202 = vector.broadcast %1200 : vector<1x32xf32> to vector<2x32xf32>
    %1203 = arith.mulf %1201, %1202 : vector<2x32xf32>
    %1204 = arith.addf %1180, %1203 : vector<2x32xf32>
    %1205 = vector.extract_strided_slice %1032 {offsets = [0, 29], sizes = [2, 1], strides = [1, 1]} : vector<2x32xf32> to vector<2x1xf32>
    %1206 = vector.extract_strided_slice %1034 {offsets = [29, 0], sizes = [1, 32], strides = [1, 1]} : vector<40x32xf32> to vector<1x32xf32>
    %1207 = vector.broadcast %1205 : vector<2x1xf32> to vector<2x32xf32>
    %1208 = vector.broadcast %1206 : vector<1x32xf32> to vector<2x32xf32>
    %1209 = arith.mulf %1207, %1208 : vector<2x32xf32>
    %1210 = arith.addf %1186, %1209 : vector<2x32xf32>
    %1211 = vector.extract_strided_slice %1032 {offsets = [0, 30], sizes = [2, 1], strides = [1, 1]} : vector<2x32xf32> to vector<2x1xf32>
    %1212 = vector.extract_strided_slice %1034 {offsets = [30, 0], sizes = [1, 32], strides = [1, 1]} : vector<40x32xf32> to vector<1x32xf32>
    %1213 = vector.broadcast %1211 : vector<2x1xf32> to vector<2x32xf32>
    %1214 = vector.broadcast %1212 : vector<1x32xf32> to vector<2x32xf32>
    %1215 = arith.mulf %1213, %1214 : vector<2x32xf32>
    %1216 = arith.addf %1192, %1215 : vector<2x32xf32>
    %1217 = vector.extract_strided_slice %1032 {offsets = [0, 31], sizes = [2, 1], strides = [1, 1]} : vector<2x32xf32> to vector<2x1xf32>
    %1218 = vector.extract_strided_slice %1034 {offsets = [31, 0], sizes = [1, 32], strides = [1, 1]} : vector<40x32xf32> to vector<1x32xf32>
    %1219 = vector.broadcast %1217 : vector<2x1xf32> to vector<2x32xf32>
    %1220 = vector.broadcast %1218 : vector<1x32xf32> to vector<2x32xf32>
    %1221 = arith.mulf %1219, %1220 : vector<2x32xf32>
    %1222 = arith.addf %1198, %1221 : vector<2x32xf32>
    %1223 = arith.addf %1204, %1210 : vector<2x32xf32>
    %1224 = arith.addf %1216, %1222 : vector<2x32xf32>
    %1225 = arith.addf %1223, %1224 : vector<2x32xf32>
    %1226 = vector.extract_strided_slice %1034 {offsets = [32, 0], sizes = [1, 32], strides = [1, 1]} : vector<40x32xf32> to vector<1x32xf32>
    %1227 = vector.broadcast %1226 : vector<1x32xf32> to vector<2x32xf32>
    %1228 = arith.addf %1225, %1227 : vector<2x32xf32>
    %1229 = arith.addf %832, %1228 : vector<2x32xf32>
    %cst_37 = arith.constant 0.000000e+00 : f32
    %1230 = vector.broadcast %cst_37 : f32 to vector<2x32xf32>
    %1231 = arith.maximumf %1229, %1230 : vector<2x32xf32>
    %c13 = arith.constant 13 : index
    %c0_38 = arith.constant 0 : index
    %c0_39 = arith.constant 0 : index
    %1232 = vector.load %arg1[%c13, %c0_38, %c0_39] : memref<15x40x32xf32, #tpu.memory_space<vmem>>, vector<1x40x32xf32>
    %1233 = vector.shape_cast %1232 : vector<1x40x32xf32> to vector<40x32xf32>
    %1234 = vector.extract_strided_slice %1231 {offsets = [0, 0], sizes = [2, 1], strides = [1, 1]} : vector<2x32xf32> to vector<2x1xf32>
    %1235 = vector.extract_strided_slice %1233 {offsets = [0, 0], sizes = [1, 32], strides = [1, 1]} : vector<40x32xf32> to vector<1x32xf32>
    %1236 = vector.broadcast %1234 : vector<2x1xf32> to vector<2x32xf32>
    %1237 = vector.broadcast %1235 : vector<1x32xf32> to vector<2x32xf32>
    %1238 = arith.mulf %1236, %1237 : vector<2x32xf32>
    %1239 = vector.extract_strided_slice %1231 {offsets = [0, 1], sizes = [2, 1], strides = [1, 1]} : vector<2x32xf32> to vector<2x1xf32>
    %1240 = vector.extract_strided_slice %1233 {offsets = [1, 0], sizes = [1, 32], strides = [1, 1]} : vector<40x32xf32> to vector<1x32xf32>
    %1241 = vector.broadcast %1239 : vector<2x1xf32> to vector<2x32xf32>
    %1242 = vector.broadcast %1240 : vector<1x32xf32> to vector<2x32xf32>
    %1243 = arith.mulf %1241, %1242 : vector<2x32xf32>
    %1244 = vector.extract_strided_slice %1231 {offsets = [0, 2], sizes = [2, 1], strides = [1, 1]} : vector<2x32xf32> to vector<2x1xf32>
    %1245 = vector.extract_strided_slice %1233 {offsets = [2, 0], sizes = [1, 32], strides = [1, 1]} : vector<40x32xf32> to vector<1x32xf32>
    %1246 = vector.broadcast %1244 : vector<2x1xf32> to vector<2x32xf32>
    %1247 = vector.broadcast %1245 : vector<1x32xf32> to vector<2x32xf32>
    %1248 = arith.mulf %1246, %1247 : vector<2x32xf32>
    %1249 = vector.extract_strided_slice %1231 {offsets = [0, 3], sizes = [2, 1], strides = [1, 1]} : vector<2x32xf32> to vector<2x1xf32>
    %1250 = vector.extract_strided_slice %1233 {offsets = [3, 0], sizes = [1, 32], strides = [1, 1]} : vector<40x32xf32> to vector<1x32xf32>
    %1251 = vector.broadcast %1249 : vector<2x1xf32> to vector<2x32xf32>
    %1252 = vector.broadcast %1250 : vector<1x32xf32> to vector<2x32xf32>
    %1253 = arith.mulf %1251, %1252 : vector<2x32xf32>
    %1254 = vector.extract_strided_slice %1231 {offsets = [0, 4], sizes = [2, 1], strides = [1, 1]} : vector<2x32xf32> to vector<2x1xf32>
    %1255 = vector.extract_strided_slice %1233 {offsets = [4, 0], sizes = [1, 32], strides = [1, 1]} : vector<40x32xf32> to vector<1x32xf32>
    %1256 = vector.broadcast %1254 : vector<2x1xf32> to vector<2x32xf32>
    %1257 = vector.broadcast %1255 : vector<1x32xf32> to vector<2x32xf32>
    %1258 = arith.mulf %1256, %1257 : vector<2x32xf32>
    %1259 = arith.addf %1238, %1258 : vector<2x32xf32>
    %1260 = vector.extract_strided_slice %1231 {offsets = [0, 5], sizes = [2, 1], strides = [1, 1]} : vector<2x32xf32> to vector<2x1xf32>
    %1261 = vector.extract_strided_slice %1233 {offsets = [5, 0], sizes = [1, 32], strides = [1, 1]} : vector<40x32xf32> to vector<1x32xf32>
    %1262 = vector.broadcast %1260 : vector<2x1xf32> to vector<2x32xf32>
    %1263 = vector.broadcast %1261 : vector<1x32xf32> to vector<2x32xf32>
    %1264 = arith.mulf %1262, %1263 : vector<2x32xf32>
    %1265 = arith.addf %1243, %1264 : vector<2x32xf32>
    %1266 = vector.extract_strided_slice %1231 {offsets = [0, 6], sizes = [2, 1], strides = [1, 1]} : vector<2x32xf32> to vector<2x1xf32>
    %1267 = vector.extract_strided_slice %1233 {offsets = [6, 0], sizes = [1, 32], strides = [1, 1]} : vector<40x32xf32> to vector<1x32xf32>
    %1268 = vector.broadcast %1266 : vector<2x1xf32> to vector<2x32xf32>
    %1269 = vector.broadcast %1267 : vector<1x32xf32> to vector<2x32xf32>
    %1270 = arith.mulf %1268, %1269 : vector<2x32xf32>
    %1271 = arith.addf %1248, %1270 : vector<2x32xf32>
    %1272 = vector.extract_strided_slice %1231 {offsets = [0, 7], sizes = [2, 1], strides = [1, 1]} : vector<2x32xf32> to vector<2x1xf32>
    %1273 = vector.extract_strided_slice %1233 {offsets = [7, 0], sizes = [1, 32], strides = [1, 1]} : vector<40x32xf32> to vector<1x32xf32>
    %1274 = vector.broadcast %1272 : vector<2x1xf32> to vector<2x32xf32>
    %1275 = vector.broadcast %1273 : vector<1x32xf32> to vector<2x32xf32>
    %1276 = arith.mulf %1274, %1275 : vector<2x32xf32>
    %1277 = arith.addf %1253, %1276 : vector<2x32xf32>
    %1278 = vector.extract_strided_slice %1231 {offsets = [0, 8], sizes = [2, 1], strides = [1, 1]} : vector<2x32xf32> to vector<2x1xf32>
    %1279 = vector.extract_strided_slice %1233 {offsets = [8, 0], sizes = [1, 32], strides = [1, 1]} : vector<40x32xf32> to vector<1x32xf32>
    %1280 = vector.broadcast %1278 : vector<2x1xf32> to vector<2x32xf32>
    %1281 = vector.broadcast %1279 : vector<1x32xf32> to vector<2x32xf32>
    %1282 = arith.mulf %1280, %1281 : vector<2x32xf32>
    %1283 = arith.addf %1259, %1282 : vector<2x32xf32>
    %1284 = vector.extract_strided_slice %1231 {offsets = [0, 9], sizes = [2, 1], strides = [1, 1]} : vector<2x32xf32> to vector<2x1xf32>
    %1285 = vector.extract_strided_slice %1233 {offsets = [9, 0], sizes = [1, 32], strides = [1, 1]} : vector<40x32xf32> to vector<1x32xf32>
    %1286 = vector.broadcast %1284 : vector<2x1xf32> to vector<2x32xf32>
    %1287 = vector.broadcast %1285 : vector<1x32xf32> to vector<2x32xf32>
    %1288 = arith.mulf %1286, %1287 : vector<2x32xf32>
    %1289 = arith.addf %1265, %1288 : vector<2x32xf32>
    %1290 = vector.extract_strided_slice %1231 {offsets = [0, 10], sizes = [2, 1], strides = [1, 1]} : vector<2x32xf32> to vector<2x1xf32>
    %1291 = vector.extract_strided_slice %1233 {offsets = [10, 0], sizes = [1, 32], strides = [1, 1]} : vector<40x32xf32> to vector<1x32xf32>
    %1292 = vector.broadcast %1290 : vector<2x1xf32> to vector<2x32xf32>
    %1293 = vector.broadcast %1291 : vector<1x32xf32> to vector<2x32xf32>
    %1294 = arith.mulf %1292, %1293 : vector<2x32xf32>
    %1295 = arith.addf %1271, %1294 : vector<2x32xf32>
    %1296 = vector.extract_strided_slice %1231 {offsets = [0, 11], sizes = [2, 1], strides = [1, 1]} : vector<2x32xf32> to vector<2x1xf32>
    %1297 = vector.extract_strided_slice %1233 {offsets = [11, 0], sizes = [1, 32], strides = [1, 1]} : vector<40x32xf32> to vector<1x32xf32>
    %1298 = vector.broadcast %1296 : vector<2x1xf32> to vector<2x32xf32>
    %1299 = vector.broadcast %1297 : vector<1x32xf32> to vector<2x32xf32>
    %1300 = arith.mulf %1298, %1299 : vector<2x32xf32>
    %1301 = arith.addf %1277, %1300 : vector<2x32xf32>
    %1302 = vector.extract_strided_slice %1231 {offsets = [0, 12], sizes = [2, 1], strides = [1, 1]} : vector<2x32xf32> to vector<2x1xf32>
    %1303 = vector.extract_strided_slice %1233 {offsets = [12, 0], sizes = [1, 32], strides = [1, 1]} : vector<40x32xf32> to vector<1x32xf32>
    %1304 = vector.broadcast %1302 : vector<2x1xf32> to vector<2x32xf32>
    %1305 = vector.broadcast %1303 : vector<1x32xf32> to vector<2x32xf32>
    %1306 = arith.mulf %1304, %1305 : vector<2x32xf32>
    %1307 = arith.addf %1283, %1306 : vector<2x32xf32>
    %1308 = vector.extract_strided_slice %1231 {offsets = [0, 13], sizes = [2, 1], strides = [1, 1]} : vector<2x32xf32> to vector<2x1xf32>
    %1309 = vector.extract_strided_slice %1233 {offsets = [13, 0], sizes = [1, 32], strides = [1, 1]} : vector<40x32xf32> to vector<1x32xf32>
    %1310 = vector.broadcast %1308 : vector<2x1xf32> to vector<2x32xf32>
    %1311 = vector.broadcast %1309 : vector<1x32xf32> to vector<2x32xf32>
    %1312 = arith.mulf %1310, %1311 : vector<2x32xf32>
    %1313 = arith.addf %1289, %1312 : vector<2x32xf32>
    %1314 = vector.extract_strided_slice %1231 {offsets = [0, 14], sizes = [2, 1], strides = [1, 1]} : vector<2x32xf32> to vector<2x1xf32>
    %1315 = vector.extract_strided_slice %1233 {offsets = [14, 0], sizes = [1, 32], strides = [1, 1]} : vector<40x32xf32> to vector<1x32xf32>
    %1316 = vector.broadcast %1314 : vector<2x1xf32> to vector<2x32xf32>
    %1317 = vector.broadcast %1315 : vector<1x32xf32> to vector<2x32xf32>
    %1318 = arith.mulf %1316, %1317 : vector<2x32xf32>
    %1319 = arith.addf %1295, %1318 : vector<2x32xf32>
    %1320 = vector.extract_strided_slice %1231 {offsets = [0, 15], sizes = [2, 1], strides = [1, 1]} : vector<2x32xf32> to vector<2x1xf32>
    %1321 = vector.extract_strided_slice %1233 {offsets = [15, 0], sizes = [1, 32], strides = [1, 1]} : vector<40x32xf32> to vector<1x32xf32>
    %1322 = vector.broadcast %1320 : vector<2x1xf32> to vector<2x32xf32>
    %1323 = vector.broadcast %1321 : vector<1x32xf32> to vector<2x32xf32>
    %1324 = arith.mulf %1322, %1323 : vector<2x32xf32>
    %1325 = arith.addf %1301, %1324 : vector<2x32xf32>
    %1326 = vector.extract_strided_slice %1231 {offsets = [0, 16], sizes = [2, 1], strides = [1, 1]} : vector<2x32xf32> to vector<2x1xf32>
    %1327 = vector.extract_strided_slice %1233 {offsets = [16, 0], sizes = [1, 32], strides = [1, 1]} : vector<40x32xf32> to vector<1x32xf32>
    %1328 = vector.broadcast %1326 : vector<2x1xf32> to vector<2x32xf32>
    %1329 = vector.broadcast %1327 : vector<1x32xf32> to vector<2x32xf32>
    %1330 = arith.mulf %1328, %1329 : vector<2x32xf32>
    %1331 = arith.addf %1307, %1330 : vector<2x32xf32>
    %1332 = vector.extract_strided_slice %1231 {offsets = [0, 17], sizes = [2, 1], strides = [1, 1]} : vector<2x32xf32> to vector<2x1xf32>
    %1333 = vector.extract_strided_slice %1233 {offsets = [17, 0], sizes = [1, 32], strides = [1, 1]} : vector<40x32xf32> to vector<1x32xf32>
    %1334 = vector.broadcast %1332 : vector<2x1xf32> to vector<2x32xf32>
    %1335 = vector.broadcast %1333 : vector<1x32xf32> to vector<2x32xf32>
    %1336 = arith.mulf %1334, %1335 : vector<2x32xf32>
    %1337 = arith.addf %1313, %1336 : vector<2x32xf32>
    %1338 = vector.extract_strided_slice %1231 {offsets = [0, 18], sizes = [2, 1], strides = [1, 1]} : vector<2x32xf32> to vector<2x1xf32>
    %1339 = vector.extract_strided_slice %1233 {offsets = [18, 0], sizes = [1, 32], strides = [1, 1]} : vector<40x32xf32> to vector<1x32xf32>
    %1340 = vector.broadcast %1338 : vector<2x1xf32> to vector<2x32xf32>
    %1341 = vector.broadcast %1339 : vector<1x32xf32> to vector<2x32xf32>
    %1342 = arith.mulf %1340, %1341 : vector<2x32xf32>
    %1343 = arith.addf %1319, %1342 : vector<2x32xf32>
    %1344 = vector.extract_strided_slice %1231 {offsets = [0, 19], sizes = [2, 1], strides = [1, 1]} : vector<2x32xf32> to vector<2x1xf32>
    %1345 = vector.extract_strided_slice %1233 {offsets = [19, 0], sizes = [1, 32], strides = [1, 1]} : vector<40x32xf32> to vector<1x32xf32>
    %1346 = vector.broadcast %1344 : vector<2x1xf32> to vector<2x32xf32>
    %1347 = vector.broadcast %1345 : vector<1x32xf32> to vector<2x32xf32>
    %1348 = arith.mulf %1346, %1347 : vector<2x32xf32>
    %1349 = arith.addf %1325, %1348 : vector<2x32xf32>
    %1350 = vector.extract_strided_slice %1231 {offsets = [0, 20], sizes = [2, 1], strides = [1, 1]} : vector<2x32xf32> to vector<2x1xf32>
    %1351 = vector.extract_strided_slice %1233 {offsets = [20, 0], sizes = [1, 32], strides = [1, 1]} : vector<40x32xf32> to vector<1x32xf32>
    %1352 = vector.broadcast %1350 : vector<2x1xf32> to vector<2x32xf32>
    %1353 = vector.broadcast %1351 : vector<1x32xf32> to vector<2x32xf32>
    %1354 = arith.mulf %1352, %1353 : vector<2x32xf32>
    %1355 = arith.addf %1331, %1354 : vector<2x32xf32>
    %1356 = vector.extract_strided_slice %1231 {offsets = [0, 21], sizes = [2, 1], strides = [1, 1]} : vector<2x32xf32> to vector<2x1xf32>
    %1357 = vector.extract_strided_slice %1233 {offsets = [21, 0], sizes = [1, 32], strides = [1, 1]} : vector<40x32xf32> to vector<1x32xf32>
    %1358 = vector.broadcast %1356 : vector<2x1xf32> to vector<2x32xf32>
    %1359 = vector.broadcast %1357 : vector<1x32xf32> to vector<2x32xf32>
    %1360 = arith.mulf %1358, %1359 : vector<2x32xf32>
    %1361 = arith.addf %1337, %1360 : vector<2x32xf32>
    %1362 = vector.extract_strided_slice %1231 {offsets = [0, 22], sizes = [2, 1], strides = [1, 1]} : vector<2x32xf32> to vector<2x1xf32>
    %1363 = vector.extract_strided_slice %1233 {offsets = [22, 0], sizes = [1, 32], strides = [1, 1]} : vector<40x32xf32> to vector<1x32xf32>
    %1364 = vector.broadcast %1362 : vector<2x1xf32> to vector<2x32xf32>
    %1365 = vector.broadcast %1363 : vector<1x32xf32> to vector<2x32xf32>
    %1366 = arith.mulf %1364, %1365 : vector<2x32xf32>
    %1367 = arith.addf %1343, %1366 : vector<2x32xf32>
    %1368 = vector.extract_strided_slice %1231 {offsets = [0, 23], sizes = [2, 1], strides = [1, 1]} : vector<2x32xf32> to vector<2x1xf32>
    %1369 = vector.extract_strided_slice %1233 {offsets = [23, 0], sizes = [1, 32], strides = [1, 1]} : vector<40x32xf32> to vector<1x32xf32>
    %1370 = vector.broadcast %1368 : vector<2x1xf32> to vector<2x32xf32>
    %1371 = vector.broadcast %1369 : vector<1x32xf32> to vector<2x32xf32>
    %1372 = arith.mulf %1370, %1371 : vector<2x32xf32>
    %1373 = arith.addf %1349, %1372 : vector<2x32xf32>
    %1374 = vector.extract_strided_slice %1231 {offsets = [0, 24], sizes = [2, 1], strides = [1, 1]} : vector<2x32xf32> to vector<2x1xf32>
    %1375 = vector.extract_strided_slice %1233 {offsets = [24, 0], sizes = [1, 32], strides = [1, 1]} : vector<40x32xf32> to vector<1x32xf32>
    %1376 = vector.broadcast %1374 : vector<2x1xf32> to vector<2x32xf32>
    %1377 = vector.broadcast %1375 : vector<1x32xf32> to vector<2x32xf32>
    %1378 = arith.mulf %1376, %1377 : vector<2x32xf32>
    %1379 = arith.addf %1355, %1378 : vector<2x32xf32>
    %1380 = vector.extract_strided_slice %1231 {offsets = [0, 25], sizes = [2, 1], strides = [1, 1]} : vector<2x32xf32> to vector<2x1xf32>
    %1381 = vector.extract_strided_slice %1233 {offsets = [25, 0], sizes = [1, 32], strides = [1, 1]} : vector<40x32xf32> to vector<1x32xf32>
    %1382 = vector.broadcast %1380 : vector<2x1xf32> to vector<2x32xf32>
    %1383 = vector.broadcast %1381 : vector<1x32xf32> to vector<2x32xf32>
    %1384 = arith.mulf %1382, %1383 : vector<2x32xf32>
    %1385 = arith.addf %1361, %1384 : vector<2x32xf32>
    %1386 = vector.extract_strided_slice %1231 {offsets = [0, 26], sizes = [2, 1], strides = [1, 1]} : vector<2x32xf32> to vector<2x1xf32>
    %1387 = vector.extract_strided_slice %1233 {offsets = [26, 0], sizes = [1, 32], strides = [1, 1]} : vector<40x32xf32> to vector<1x32xf32>
    %1388 = vector.broadcast %1386 : vector<2x1xf32> to vector<2x32xf32>
    %1389 = vector.broadcast %1387 : vector<1x32xf32> to vector<2x32xf32>
    %1390 = arith.mulf %1388, %1389 : vector<2x32xf32>
    %1391 = arith.addf %1367, %1390 : vector<2x32xf32>
    %1392 = vector.extract_strided_slice %1231 {offsets = [0, 27], sizes = [2, 1], strides = [1, 1]} : vector<2x32xf32> to vector<2x1xf32>
    %1393 = vector.extract_strided_slice %1233 {offsets = [27, 0], sizes = [1, 32], strides = [1, 1]} : vector<40x32xf32> to vector<1x32xf32>
    %1394 = vector.broadcast %1392 : vector<2x1xf32> to vector<2x32xf32>
    %1395 = vector.broadcast %1393 : vector<1x32xf32> to vector<2x32xf32>
    %1396 = arith.mulf %1394, %1395 : vector<2x32xf32>
    %1397 = arith.addf %1373, %1396 : vector<2x32xf32>
    %1398 = vector.extract_strided_slice %1231 {offsets = [0, 28], sizes = [2, 1], strides = [1, 1]} : vector<2x32xf32> to vector<2x1xf32>
    %1399 = vector.extract_strided_slice %1233 {offsets = [28, 0], sizes = [1, 32], strides = [1, 1]} : vector<40x32xf32> to vector<1x32xf32>
    %1400 = vector.broadcast %1398 : vector<2x1xf32> to vector<2x32xf32>
    %1401 = vector.broadcast %1399 : vector<1x32xf32> to vector<2x32xf32>
    %1402 = arith.mulf %1400, %1401 : vector<2x32xf32>
    %1403 = arith.addf %1379, %1402 : vector<2x32xf32>
    %1404 = vector.extract_strided_slice %1231 {offsets = [0, 29], sizes = [2, 1], strides = [1, 1]} : vector<2x32xf32> to vector<2x1xf32>
    %1405 = vector.extract_strided_slice %1233 {offsets = [29, 0], sizes = [1, 32], strides = [1, 1]} : vector<40x32xf32> to vector<1x32xf32>
    %1406 = vector.broadcast %1404 : vector<2x1xf32> to vector<2x32xf32>
    %1407 = vector.broadcast %1405 : vector<1x32xf32> to vector<2x32xf32>
    %1408 = arith.mulf %1406, %1407 : vector<2x32xf32>
    %1409 = arith.addf %1385, %1408 : vector<2x32xf32>
    %1410 = vector.extract_strided_slice %1231 {offsets = [0, 30], sizes = [2, 1], strides = [1, 1]} : vector<2x32xf32> to vector<2x1xf32>
    %1411 = vector.extract_strided_slice %1233 {offsets = [30, 0], sizes = [1, 32], strides = [1, 1]} : vector<40x32xf32> to vector<1x32xf32>
    %1412 = vector.broadcast %1410 : vector<2x1xf32> to vector<2x32xf32>
    %1413 = vector.broadcast %1411 : vector<1x32xf32> to vector<2x32xf32>
    %1414 = arith.mulf %1412, %1413 : vector<2x32xf32>
    %1415 = arith.addf %1391, %1414 : vector<2x32xf32>
    %1416 = vector.extract_strided_slice %1231 {offsets = [0, 31], sizes = [2, 1], strides = [1, 1]} : vector<2x32xf32> to vector<2x1xf32>
    %1417 = vector.extract_strided_slice %1233 {offsets = [31, 0], sizes = [1, 32], strides = [1, 1]} : vector<40x32xf32> to vector<1x32xf32>
    %1418 = vector.broadcast %1416 : vector<2x1xf32> to vector<2x32xf32>
    %1419 = vector.broadcast %1417 : vector<1x32xf32> to vector<2x32xf32>
    %1420 = arith.mulf %1418, %1419 : vector<2x32xf32>
    %1421 = arith.addf %1397, %1420 : vector<2x32xf32>
    %1422 = arith.addf %1403, %1409 : vector<2x32xf32>
    %1423 = arith.addf %1415, %1421 : vector<2x32xf32>
    %1424 = arith.addf %1422, %1423 : vector<2x32xf32>
    %1425 = vector.extract_strided_slice %1233 {offsets = [32, 0], sizes = [1, 32], strides = [1, 1]} : vector<40x32xf32> to vector<1x32xf32>
    %1426 = vector.broadcast %1425 : vector<1x32xf32> to vector<2x32xf32>
    %1427 = arith.addf %1424, %1426 : vector<2x32xf32>
    %cst_40 = arith.constant 0.000000e+00 : f32
    %1428 = vector.broadcast %cst_40 : f32 to vector<2x32xf32>
    %1429 = arith.maximumf %1427, %1428 : vector<2x32xf32>
    %c14 = arith.constant 14 : index
    %c0_41 = arith.constant 0 : index
    %c0_42 = arith.constant 0 : index
    %1430 = vector.load %arg1[%c14, %c0_41, %c0_42] : memref<15x40x32xf32, #tpu.memory_space<vmem>>, vector<1x40x32xf32>
    %1431 = vector.shape_cast %1430 : vector<1x40x32xf32> to vector<40x32xf32>
    %1432 = vector.extract_strided_slice %1429 {offsets = [0, 0], sizes = [2, 1], strides = [1, 1]} : vector<2x32xf32> to vector<2x1xf32>
    %1433 = vector.extract_strided_slice %1431 {offsets = [0, 0], sizes = [1, 32], strides = [1, 1]} : vector<40x32xf32> to vector<1x32xf32>
    %1434 = vector.broadcast %1432 : vector<2x1xf32> to vector<2x32xf32>
    %1435 = vector.broadcast %1433 : vector<1x32xf32> to vector<2x32xf32>
    %1436 = arith.mulf %1434, %1435 : vector<2x32xf32>
    %1437 = vector.extract_strided_slice %1429 {offsets = [0, 1], sizes = [2, 1], strides = [1, 1]} : vector<2x32xf32> to vector<2x1xf32>
    %1438 = vector.extract_strided_slice %1431 {offsets = [1, 0], sizes = [1, 32], strides = [1, 1]} : vector<40x32xf32> to vector<1x32xf32>
    %1439 = vector.broadcast %1437 : vector<2x1xf32> to vector<2x32xf32>
    %1440 = vector.broadcast %1438 : vector<1x32xf32> to vector<2x32xf32>
    %1441 = arith.mulf %1439, %1440 : vector<2x32xf32>
    %1442 = vector.extract_strided_slice %1429 {offsets = [0, 2], sizes = [2, 1], strides = [1, 1]} : vector<2x32xf32> to vector<2x1xf32>
    %1443 = vector.extract_strided_slice %1431 {offsets = [2, 0], sizes = [1, 32], strides = [1, 1]} : vector<40x32xf32> to vector<1x32xf32>
    %1444 = vector.broadcast %1442 : vector<2x1xf32> to vector<2x32xf32>
    %1445 = vector.broadcast %1443 : vector<1x32xf32> to vector<2x32xf32>
    %1446 = arith.mulf %1444, %1445 : vector<2x32xf32>
    %1447 = vector.extract_strided_slice %1429 {offsets = [0, 3], sizes = [2, 1], strides = [1, 1]} : vector<2x32xf32> to vector<2x1xf32>
    %1448 = vector.extract_strided_slice %1431 {offsets = [3, 0], sizes = [1, 32], strides = [1, 1]} : vector<40x32xf32> to vector<1x32xf32>
    %1449 = vector.broadcast %1447 : vector<2x1xf32> to vector<2x32xf32>
    %1450 = vector.broadcast %1448 : vector<1x32xf32> to vector<2x32xf32>
    %1451 = arith.mulf %1449, %1450 : vector<2x32xf32>
    %1452 = vector.extract_strided_slice %1429 {offsets = [0, 4], sizes = [2, 1], strides = [1, 1]} : vector<2x32xf32> to vector<2x1xf32>
    %1453 = vector.extract_strided_slice %1431 {offsets = [4, 0], sizes = [1, 32], strides = [1, 1]} : vector<40x32xf32> to vector<1x32xf32>
    %1454 = vector.broadcast %1452 : vector<2x1xf32> to vector<2x32xf32>
    %1455 = vector.broadcast %1453 : vector<1x32xf32> to vector<2x32xf32>
    %1456 = arith.mulf %1454, %1455 : vector<2x32xf32>
    %1457 = arith.addf %1436, %1456 : vector<2x32xf32>
    %1458 = vector.extract_strided_slice %1429 {offsets = [0, 5], sizes = [2, 1], strides = [1, 1]} : vector<2x32xf32> to vector<2x1xf32>
    %1459 = vector.extract_strided_slice %1431 {offsets = [5, 0], sizes = [1, 32], strides = [1, 1]} : vector<40x32xf32> to vector<1x32xf32>
    %1460 = vector.broadcast %1458 : vector<2x1xf32> to vector<2x32xf32>
    %1461 = vector.broadcast %1459 : vector<1x32xf32> to vector<2x32xf32>
    %1462 = arith.mulf %1460, %1461 : vector<2x32xf32>
    %1463 = arith.addf %1441, %1462 : vector<2x32xf32>
    %1464 = vector.extract_strided_slice %1429 {offsets = [0, 6], sizes = [2, 1], strides = [1, 1]} : vector<2x32xf32> to vector<2x1xf32>
    %1465 = vector.extract_strided_slice %1431 {offsets = [6, 0], sizes = [1, 32], strides = [1, 1]} : vector<40x32xf32> to vector<1x32xf32>
    %1466 = vector.broadcast %1464 : vector<2x1xf32> to vector<2x32xf32>
    %1467 = vector.broadcast %1465 : vector<1x32xf32> to vector<2x32xf32>
    %1468 = arith.mulf %1466, %1467 : vector<2x32xf32>
    %1469 = arith.addf %1446, %1468 : vector<2x32xf32>
    %1470 = vector.extract_strided_slice %1429 {offsets = [0, 7], sizes = [2, 1], strides = [1, 1]} : vector<2x32xf32> to vector<2x1xf32>
    %1471 = vector.extract_strided_slice %1431 {offsets = [7, 0], sizes = [1, 32], strides = [1, 1]} : vector<40x32xf32> to vector<1x32xf32>
    %1472 = vector.broadcast %1470 : vector<2x1xf32> to vector<2x32xf32>
    %1473 = vector.broadcast %1471 : vector<1x32xf32> to vector<2x32xf32>
    %1474 = arith.mulf %1472, %1473 : vector<2x32xf32>
    %1475 = arith.addf %1451, %1474 : vector<2x32xf32>
    %1476 = vector.extract_strided_slice %1429 {offsets = [0, 8], sizes = [2, 1], strides = [1, 1]} : vector<2x32xf32> to vector<2x1xf32>
    %1477 = vector.extract_strided_slice %1431 {offsets = [8, 0], sizes = [1, 32], strides = [1, 1]} : vector<40x32xf32> to vector<1x32xf32>
    %1478 = vector.broadcast %1476 : vector<2x1xf32> to vector<2x32xf32>
    %1479 = vector.broadcast %1477 : vector<1x32xf32> to vector<2x32xf32>
    %1480 = arith.mulf %1478, %1479 : vector<2x32xf32>
    %1481 = arith.addf %1457, %1480 : vector<2x32xf32>
    %1482 = vector.extract_strided_slice %1429 {offsets = [0, 9], sizes = [2, 1], strides = [1, 1]} : vector<2x32xf32> to vector<2x1xf32>
    %1483 = vector.extract_strided_slice %1431 {offsets = [9, 0], sizes = [1, 32], strides = [1, 1]} : vector<40x32xf32> to vector<1x32xf32>
    %1484 = vector.broadcast %1482 : vector<2x1xf32> to vector<2x32xf32>
    %1485 = vector.broadcast %1483 : vector<1x32xf32> to vector<2x32xf32>
    %1486 = arith.mulf %1484, %1485 : vector<2x32xf32>
    %1487 = arith.addf %1463, %1486 : vector<2x32xf32>
    %1488 = vector.extract_strided_slice %1429 {offsets = [0, 10], sizes = [2, 1], strides = [1, 1]} : vector<2x32xf32> to vector<2x1xf32>
    %1489 = vector.extract_strided_slice %1431 {offsets = [10, 0], sizes = [1, 32], strides = [1, 1]} : vector<40x32xf32> to vector<1x32xf32>
    %1490 = vector.broadcast %1488 : vector<2x1xf32> to vector<2x32xf32>
    %1491 = vector.broadcast %1489 : vector<1x32xf32> to vector<2x32xf32>
    %1492 = arith.mulf %1490, %1491 : vector<2x32xf32>
    %1493 = arith.addf %1469, %1492 : vector<2x32xf32>
    %1494 = vector.extract_strided_slice %1429 {offsets = [0, 11], sizes = [2, 1], strides = [1, 1]} : vector<2x32xf32> to vector<2x1xf32>
    %1495 = vector.extract_strided_slice %1431 {offsets = [11, 0], sizes = [1, 32], strides = [1, 1]} : vector<40x32xf32> to vector<1x32xf32>
    %1496 = vector.broadcast %1494 : vector<2x1xf32> to vector<2x32xf32>
    %1497 = vector.broadcast %1495 : vector<1x32xf32> to vector<2x32xf32>
    %1498 = arith.mulf %1496, %1497 : vector<2x32xf32>
    %1499 = arith.addf %1475, %1498 : vector<2x32xf32>
    %1500 = vector.extract_strided_slice %1429 {offsets = [0, 12], sizes = [2, 1], strides = [1, 1]} : vector<2x32xf32> to vector<2x1xf32>
    %1501 = vector.extract_strided_slice %1431 {offsets = [12, 0], sizes = [1, 32], strides = [1, 1]} : vector<40x32xf32> to vector<1x32xf32>
    %1502 = vector.broadcast %1500 : vector<2x1xf32> to vector<2x32xf32>
    %1503 = vector.broadcast %1501 : vector<1x32xf32> to vector<2x32xf32>
    %1504 = arith.mulf %1502, %1503 : vector<2x32xf32>
    %1505 = arith.addf %1481, %1504 : vector<2x32xf32>
    %1506 = vector.extract_strided_slice %1429 {offsets = [0, 13], sizes = [2, 1], strides = [1, 1]} : vector<2x32xf32> to vector<2x1xf32>
    %1507 = vector.extract_strided_slice %1431 {offsets = [13, 0], sizes = [1, 32], strides = [1, 1]} : vector<40x32xf32> to vector<1x32xf32>
    %1508 = vector.broadcast %1506 : vector<2x1xf32> to vector<2x32xf32>
    %1509 = vector.broadcast %1507 : vector<1x32xf32> to vector<2x32xf32>
    %1510 = arith.mulf %1508, %1509 : vector<2x32xf32>
    %1511 = arith.addf %1487, %1510 : vector<2x32xf32>
    %1512 = vector.extract_strided_slice %1429 {offsets = [0, 14], sizes = [2, 1], strides = [1, 1]} : vector<2x32xf32> to vector<2x1xf32>
    %1513 = vector.extract_strided_slice %1431 {offsets = [14, 0], sizes = [1, 32], strides = [1, 1]} : vector<40x32xf32> to vector<1x32xf32>
    %1514 = vector.broadcast %1512 : vector<2x1xf32> to vector<2x32xf32>
    %1515 = vector.broadcast %1513 : vector<1x32xf32> to vector<2x32xf32>
    %1516 = arith.mulf %1514, %1515 : vector<2x32xf32>
    %1517 = arith.addf %1493, %1516 : vector<2x32xf32>
    %1518 = vector.extract_strided_slice %1429 {offsets = [0, 15], sizes = [2, 1], strides = [1, 1]} : vector<2x32xf32> to vector<2x1xf32>
    %1519 = vector.extract_strided_slice %1431 {offsets = [15, 0], sizes = [1, 32], strides = [1, 1]} : vector<40x32xf32> to vector<1x32xf32>
    %1520 = vector.broadcast %1518 : vector<2x1xf32> to vector<2x32xf32>
    %1521 = vector.broadcast %1519 : vector<1x32xf32> to vector<2x32xf32>
    %1522 = arith.mulf %1520, %1521 : vector<2x32xf32>
    %1523 = arith.addf %1499, %1522 : vector<2x32xf32>
    %1524 = vector.extract_strided_slice %1429 {offsets = [0, 16], sizes = [2, 1], strides = [1, 1]} : vector<2x32xf32> to vector<2x1xf32>
    %1525 = vector.extract_strided_slice %1431 {offsets = [16, 0], sizes = [1, 32], strides = [1, 1]} : vector<40x32xf32> to vector<1x32xf32>
    %1526 = vector.broadcast %1524 : vector<2x1xf32> to vector<2x32xf32>
    %1527 = vector.broadcast %1525 : vector<1x32xf32> to vector<2x32xf32>
    %1528 = arith.mulf %1526, %1527 : vector<2x32xf32>
    %1529 = arith.addf %1505, %1528 : vector<2x32xf32>
    %1530 = vector.extract_strided_slice %1429 {offsets = [0, 17], sizes = [2, 1], strides = [1, 1]} : vector<2x32xf32> to vector<2x1xf32>
    %1531 = vector.extract_strided_slice %1431 {offsets = [17, 0], sizes = [1, 32], strides = [1, 1]} : vector<40x32xf32> to vector<1x32xf32>
    %1532 = vector.broadcast %1530 : vector<2x1xf32> to vector<2x32xf32>
    %1533 = vector.broadcast %1531 : vector<1x32xf32> to vector<2x32xf32>
    %1534 = arith.mulf %1532, %1533 : vector<2x32xf32>
    %1535 = arith.addf %1511, %1534 : vector<2x32xf32>
    %1536 = vector.extract_strided_slice %1429 {offsets = [0, 18], sizes = [2, 1], strides = [1, 1]} : vector<2x32xf32> to vector<2x1xf32>
    %1537 = vector.extract_strided_slice %1431 {offsets = [18, 0], sizes = [1, 32], strides = [1, 1]} : vector<40x32xf32> to vector<1x32xf32>
    %1538 = vector.broadcast %1536 : vector<2x1xf32> to vector<2x32xf32>
    %1539 = vector.broadcast %1537 : vector<1x32xf32> to vector<2x32xf32>
    %1540 = arith.mulf %1538, %1539 : vector<2x32xf32>
    %1541 = arith.addf %1517, %1540 : vector<2x32xf32>
    %1542 = vector.extract_strided_slice %1429 {offsets = [0, 19], sizes = [2, 1], strides = [1, 1]} : vector<2x32xf32> to vector<2x1xf32>
    %1543 = vector.extract_strided_slice %1431 {offsets = [19, 0], sizes = [1, 32], strides = [1, 1]} : vector<40x32xf32> to vector<1x32xf32>
    %1544 = vector.broadcast %1542 : vector<2x1xf32> to vector<2x32xf32>
    %1545 = vector.broadcast %1543 : vector<1x32xf32> to vector<2x32xf32>
    %1546 = arith.mulf %1544, %1545 : vector<2x32xf32>
    %1547 = arith.addf %1523, %1546 : vector<2x32xf32>
    %1548 = vector.extract_strided_slice %1429 {offsets = [0, 20], sizes = [2, 1], strides = [1, 1]} : vector<2x32xf32> to vector<2x1xf32>
    %1549 = vector.extract_strided_slice %1431 {offsets = [20, 0], sizes = [1, 32], strides = [1, 1]} : vector<40x32xf32> to vector<1x32xf32>
    %1550 = vector.broadcast %1548 : vector<2x1xf32> to vector<2x32xf32>
    %1551 = vector.broadcast %1549 : vector<1x32xf32> to vector<2x32xf32>
    %1552 = arith.mulf %1550, %1551 : vector<2x32xf32>
    %1553 = arith.addf %1529, %1552 : vector<2x32xf32>
    %1554 = vector.extract_strided_slice %1429 {offsets = [0, 21], sizes = [2, 1], strides = [1, 1]} : vector<2x32xf32> to vector<2x1xf32>
    %1555 = vector.extract_strided_slice %1431 {offsets = [21, 0], sizes = [1, 32], strides = [1, 1]} : vector<40x32xf32> to vector<1x32xf32>
    %1556 = vector.broadcast %1554 : vector<2x1xf32> to vector<2x32xf32>
    %1557 = vector.broadcast %1555 : vector<1x32xf32> to vector<2x32xf32>
    %1558 = arith.mulf %1556, %1557 : vector<2x32xf32>
    %1559 = arith.addf %1535, %1558 : vector<2x32xf32>
    %1560 = vector.extract_strided_slice %1429 {offsets = [0, 22], sizes = [2, 1], strides = [1, 1]} : vector<2x32xf32> to vector<2x1xf32>
    %1561 = vector.extract_strided_slice %1431 {offsets = [22, 0], sizes = [1, 32], strides = [1, 1]} : vector<40x32xf32> to vector<1x32xf32>
    %1562 = vector.broadcast %1560 : vector<2x1xf32> to vector<2x32xf32>
    %1563 = vector.broadcast %1561 : vector<1x32xf32> to vector<2x32xf32>
    %1564 = arith.mulf %1562, %1563 : vector<2x32xf32>
    %1565 = arith.addf %1541, %1564 : vector<2x32xf32>
    %1566 = vector.extract_strided_slice %1429 {offsets = [0, 23], sizes = [2, 1], strides = [1, 1]} : vector<2x32xf32> to vector<2x1xf32>
    %1567 = vector.extract_strided_slice %1431 {offsets = [23, 0], sizes = [1, 32], strides = [1, 1]} : vector<40x32xf32> to vector<1x32xf32>
    %1568 = vector.broadcast %1566 : vector<2x1xf32> to vector<2x32xf32>
    %1569 = vector.broadcast %1567 : vector<1x32xf32> to vector<2x32xf32>
    %1570 = arith.mulf %1568, %1569 : vector<2x32xf32>
    %1571 = arith.addf %1547, %1570 : vector<2x32xf32>
    %1572 = vector.extract_strided_slice %1429 {offsets = [0, 24], sizes = [2, 1], strides = [1, 1]} : vector<2x32xf32> to vector<2x1xf32>
    %1573 = vector.extract_strided_slice %1431 {offsets = [24, 0], sizes = [1, 32], strides = [1, 1]} : vector<40x32xf32> to vector<1x32xf32>
    %1574 = vector.broadcast %1572 : vector<2x1xf32> to vector<2x32xf32>
    %1575 = vector.broadcast %1573 : vector<1x32xf32> to vector<2x32xf32>
    %1576 = arith.mulf %1574, %1575 : vector<2x32xf32>
    %1577 = arith.addf %1553, %1576 : vector<2x32xf32>
    %1578 = vector.extract_strided_slice %1429 {offsets = [0, 25], sizes = [2, 1], strides = [1, 1]} : vector<2x32xf32> to vector<2x1xf32>
    %1579 = vector.extract_strided_slice %1431 {offsets = [25, 0], sizes = [1, 32], strides = [1, 1]} : vector<40x32xf32> to vector<1x32xf32>
    %1580 = vector.broadcast %1578 : vector<2x1xf32> to vector<2x32xf32>
    %1581 = vector.broadcast %1579 : vector<1x32xf32> to vector<2x32xf32>
    %1582 = arith.mulf %1580, %1581 : vector<2x32xf32>
    %1583 = arith.addf %1559, %1582 : vector<2x32xf32>
    %1584 = vector.extract_strided_slice %1429 {offsets = [0, 26], sizes = [2, 1], strides = [1, 1]} : vector<2x32xf32> to vector<2x1xf32>
    %1585 = vector.extract_strided_slice %1431 {offsets = [26, 0], sizes = [1, 32], strides = [1, 1]} : vector<40x32xf32> to vector<1x32xf32>
    %1586 = vector.broadcast %1584 : vector<2x1xf32> to vector<2x32xf32>
    %1587 = vector.broadcast %1585 : vector<1x32xf32> to vector<2x32xf32>
    %1588 = arith.mulf %1586, %1587 : vector<2x32xf32>
    %1589 = arith.addf %1565, %1588 : vector<2x32xf32>
    %1590 = vector.extract_strided_slice %1429 {offsets = [0, 27], sizes = [2, 1], strides = [1, 1]} : vector<2x32xf32> to vector<2x1xf32>
    %1591 = vector.extract_strided_slice %1431 {offsets = [27, 0], sizes = [1, 32], strides = [1, 1]} : vector<40x32xf32> to vector<1x32xf32>
    %1592 = vector.broadcast %1590 : vector<2x1xf32> to vector<2x32xf32>
    %1593 = vector.broadcast %1591 : vector<1x32xf32> to vector<2x32xf32>
    %1594 = arith.mulf %1592, %1593 : vector<2x32xf32>
    %1595 = arith.addf %1571, %1594 : vector<2x32xf32>
    %1596 = vector.extract_strided_slice %1429 {offsets = [0, 28], sizes = [2, 1], strides = [1, 1]} : vector<2x32xf32> to vector<2x1xf32>
    %1597 = vector.extract_strided_slice %1431 {offsets = [28, 0], sizes = [1, 32], strides = [1, 1]} : vector<40x32xf32> to vector<1x32xf32>
    %1598 = vector.broadcast %1596 : vector<2x1xf32> to vector<2x32xf32>
    %1599 = vector.broadcast %1597 : vector<1x32xf32> to vector<2x32xf32>
    %1600 = arith.mulf %1598, %1599 : vector<2x32xf32>
    %1601 = arith.addf %1577, %1600 : vector<2x32xf32>
    %1602 = vector.extract_strided_slice %1429 {offsets = [0, 29], sizes = [2, 1], strides = [1, 1]} : vector<2x32xf32> to vector<2x1xf32>
    %1603 = vector.extract_strided_slice %1431 {offsets = [29, 0], sizes = [1, 32], strides = [1, 1]} : vector<40x32xf32> to vector<1x32xf32>
    %1604 = vector.broadcast %1602 : vector<2x1xf32> to vector<2x32xf32>
    %1605 = vector.broadcast %1603 : vector<1x32xf32> to vector<2x32xf32>
    %1606 = arith.mulf %1604, %1605 : vector<2x32xf32>
    %1607 = arith.addf %1583, %1606 : vector<2x32xf32>
    %1608 = vector.extract_strided_slice %1429 {offsets = [0, 30], sizes = [2, 1], strides = [1, 1]} : vector<2x32xf32> to vector<2x1xf32>
    %1609 = vector.extract_strided_slice %1431 {offsets = [30, 0], sizes = [1, 32], strides = [1, 1]} : vector<40x32xf32> to vector<1x32xf32>
    %1610 = vector.broadcast %1608 : vector<2x1xf32> to vector<2x32xf32>
    %1611 = vector.broadcast %1609 : vector<1x32xf32> to vector<2x32xf32>
    %1612 = arith.mulf %1610, %1611 : vector<2x32xf32>
    %1613 = arith.addf %1589, %1612 : vector<2x32xf32>
    %1614 = vector.extract_strided_slice %1429 {offsets = [0, 31], sizes = [2, 1], strides = [1, 1]} : vector<2x32xf32> to vector<2x1xf32>
    %1615 = vector.extract_strided_slice %1431 {offsets = [31, 0], sizes = [1, 32], strides = [1, 1]} : vector<40x32xf32> to vector<1x32xf32>
    %1616 = vector.broadcast %1614 : vector<2x1xf32> to vector<2x32xf32>
    %1617 = vector.broadcast %1615 : vector<1x32xf32> to vector<2x32xf32>
    %1618 = arith.mulf %1616, %1617 : vector<2x32xf32>
    %1619 = arith.addf %1595, %1618 : vector<2x32xf32>
    %1620 = arith.addf %1601, %1607 : vector<2x32xf32>
    %1621 = arith.addf %1613, %1619 : vector<2x32xf32>
    %1622 = arith.addf %1620, %1621 : vector<2x32xf32>
    %1623 = vector.extract_strided_slice %1431 {offsets = [32, 0], sizes = [1, 32], strides = [1, 1]} : vector<40x32xf32> to vector<1x32xf32>
    %1624 = vector.broadcast %1623 : vector<1x32xf32> to vector<2x32xf32>
    %1625 = arith.addf %1622, %1624 : vector<2x32xf32>
    %1626 = arith.addf %1229, %1625 : vector<2x32xf32>
    %c0_43 = arith.constant 0 : index
    %c0_44 = arith.constant 0 : index
    %1627 = vector.load %arg2[%c0_43, %c0_44] : memref<40x256xf32, #tpu.memory_space<vmem>>, vector<40x256xf32>
    %1628 = vector.extract_strided_slice %1626 {offsets = [0, 0], sizes = [2, 1], strides = [1, 1]} : vector<2x32xf32> to vector<2x1xf32>
    %1629 = vector.extract_strided_slice %1627 {offsets = [0, 0], sizes = [1, 256], strides = [1, 1]} : vector<40x256xf32> to vector<1x256xf32>
    %1630 = vector.broadcast %1628 : vector<2x1xf32> to vector<2x256xf32>
    %1631 = vector.broadcast %1629 : vector<1x256xf32> to vector<2x256xf32>
    %1632 = arith.mulf %1630, %1631 : vector<2x256xf32>
    %1633 = vector.extract_strided_slice %1626 {offsets = [0, 1], sizes = [2, 1], strides = [1, 1]} : vector<2x32xf32> to vector<2x1xf32>
    %1634 = vector.extract_strided_slice %1627 {offsets = [1, 0], sizes = [1, 256], strides = [1, 1]} : vector<40x256xf32> to vector<1x256xf32>
    %1635 = vector.broadcast %1633 : vector<2x1xf32> to vector<2x256xf32>
    %1636 = vector.broadcast %1634 : vector<1x256xf32> to vector<2x256xf32>
    %1637 = arith.mulf %1635, %1636 : vector<2x256xf32>
    %1638 = vector.extract_strided_slice %1626 {offsets = [0, 2], sizes = [2, 1], strides = [1, 1]} : vector<2x32xf32> to vector<2x1xf32>
    %1639 = vector.extract_strided_slice %1627 {offsets = [2, 0], sizes = [1, 256], strides = [1, 1]} : vector<40x256xf32> to vector<1x256xf32>
    %1640 = vector.broadcast %1638 : vector<2x1xf32> to vector<2x256xf32>
    %1641 = vector.broadcast %1639 : vector<1x256xf32> to vector<2x256xf32>
    %1642 = arith.mulf %1640, %1641 : vector<2x256xf32>
    %1643 = vector.extract_strided_slice %1626 {offsets = [0, 3], sizes = [2, 1], strides = [1, 1]} : vector<2x32xf32> to vector<2x1xf32>
    %1644 = vector.extract_strided_slice %1627 {offsets = [3, 0], sizes = [1, 256], strides = [1, 1]} : vector<40x256xf32> to vector<1x256xf32>
    %1645 = vector.broadcast %1643 : vector<2x1xf32> to vector<2x256xf32>
    %1646 = vector.broadcast %1644 : vector<1x256xf32> to vector<2x256xf32>
    %1647 = arith.mulf %1645, %1646 : vector<2x256xf32>
    %1648 = vector.extract_strided_slice %1626 {offsets = [0, 4], sizes = [2, 1], strides = [1, 1]} : vector<2x32xf32> to vector<2x1xf32>
    %1649 = vector.extract_strided_slice %1627 {offsets = [4, 0], sizes = [1, 256], strides = [1, 1]} : vector<40x256xf32> to vector<1x256xf32>
    %1650 = vector.broadcast %1648 : vector<2x1xf32> to vector<2x256xf32>
    %1651 = vector.broadcast %1649 : vector<1x256xf32> to vector<2x256xf32>
    %1652 = arith.mulf %1650, %1651 : vector<2x256xf32>
    %1653 = arith.addf %1632, %1652 : vector<2x256xf32>
    %1654 = vector.extract_strided_slice %1626 {offsets = [0, 5], sizes = [2, 1], strides = [1, 1]} : vector<2x32xf32> to vector<2x1xf32>
    %1655 = vector.extract_strided_slice %1627 {offsets = [5, 0], sizes = [1, 256], strides = [1, 1]} : vector<40x256xf32> to vector<1x256xf32>
    %1656 = vector.broadcast %1654 : vector<2x1xf32> to vector<2x256xf32>
    %1657 = vector.broadcast %1655 : vector<1x256xf32> to vector<2x256xf32>
    %1658 = arith.mulf %1656, %1657 : vector<2x256xf32>
    %1659 = arith.addf %1637, %1658 : vector<2x256xf32>
    %1660 = vector.extract_strided_slice %1626 {offsets = [0, 6], sizes = [2, 1], strides = [1, 1]} : vector<2x32xf32> to vector<2x1xf32>
    %1661 = vector.extract_strided_slice %1627 {offsets = [6, 0], sizes = [1, 256], strides = [1, 1]} : vector<40x256xf32> to vector<1x256xf32>
    %1662 = vector.broadcast %1660 : vector<2x1xf32> to vector<2x256xf32>
    %1663 = vector.broadcast %1661 : vector<1x256xf32> to vector<2x256xf32>
    %1664 = arith.mulf %1662, %1663 : vector<2x256xf32>
    %1665 = arith.addf %1642, %1664 : vector<2x256xf32>
    %1666 = vector.extract_strided_slice %1626 {offsets = [0, 7], sizes = [2, 1], strides = [1, 1]} : vector<2x32xf32> to vector<2x1xf32>
    %1667 = vector.extract_strided_slice %1627 {offsets = [7, 0], sizes = [1, 256], strides = [1, 1]} : vector<40x256xf32> to vector<1x256xf32>
    %1668 = vector.broadcast %1666 : vector<2x1xf32> to vector<2x256xf32>
    %1669 = vector.broadcast %1667 : vector<1x256xf32> to vector<2x256xf32>
    %1670 = arith.mulf %1668, %1669 : vector<2x256xf32>
    %1671 = arith.addf %1647, %1670 : vector<2x256xf32>
    %1672 = vector.extract_strided_slice %1626 {offsets = [0, 8], sizes = [2, 1], strides = [1, 1]} : vector<2x32xf32> to vector<2x1xf32>
    %1673 = vector.extract_strided_slice %1627 {offsets = [8, 0], sizes = [1, 256], strides = [1, 1]} : vector<40x256xf32> to vector<1x256xf32>
    %1674 = vector.broadcast %1672 : vector<2x1xf32> to vector<2x256xf32>
    %1675 = vector.broadcast %1673 : vector<1x256xf32> to vector<2x256xf32>
    %1676 = arith.mulf %1674, %1675 : vector<2x256xf32>
    %1677 = arith.addf %1653, %1676 : vector<2x256xf32>
    %1678 = vector.extract_strided_slice %1626 {offsets = [0, 9], sizes = [2, 1], strides = [1, 1]} : vector<2x32xf32> to vector<2x1xf32>
    %1679 = vector.extract_strided_slice %1627 {offsets = [9, 0], sizes = [1, 256], strides = [1, 1]} : vector<40x256xf32> to vector<1x256xf32>
    %1680 = vector.broadcast %1678 : vector<2x1xf32> to vector<2x256xf32>
    %1681 = vector.broadcast %1679 : vector<1x256xf32> to vector<2x256xf32>
    %1682 = arith.mulf %1680, %1681 : vector<2x256xf32>
    %1683 = arith.addf %1659, %1682 : vector<2x256xf32>
    %1684 = vector.extract_strided_slice %1626 {offsets = [0, 10], sizes = [2, 1], strides = [1, 1]} : vector<2x32xf32> to vector<2x1xf32>
    %1685 = vector.extract_strided_slice %1627 {offsets = [10, 0], sizes = [1, 256], strides = [1, 1]} : vector<40x256xf32> to vector<1x256xf32>
    %1686 = vector.broadcast %1684 : vector<2x1xf32> to vector<2x256xf32>
    %1687 = vector.broadcast %1685 : vector<1x256xf32> to vector<2x256xf32>
    %1688 = arith.mulf %1686, %1687 : vector<2x256xf32>
    %1689 = arith.addf %1665, %1688 : vector<2x256xf32>
    %1690 = vector.extract_strided_slice %1626 {offsets = [0, 11], sizes = [2, 1], strides = [1, 1]} : vector<2x32xf32> to vector<2x1xf32>
    %1691 = vector.extract_strided_slice %1627 {offsets = [11, 0], sizes = [1, 256], strides = [1, 1]} : vector<40x256xf32> to vector<1x256xf32>
    %1692 = vector.broadcast %1690 : vector<2x1xf32> to vector<2x256xf32>
    %1693 = vector.broadcast %1691 : vector<1x256xf32> to vector<2x256xf32>
    %1694 = arith.mulf %1692, %1693 : vector<2x256xf32>
    %1695 = arith.addf %1671, %1694 : vector<2x256xf32>
    %1696 = vector.extract_strided_slice %1626 {offsets = [0, 12], sizes = [2, 1], strides = [1, 1]} : vector<2x32xf32> to vector<2x1xf32>
    %1697 = vector.extract_strided_slice %1627 {offsets = [12, 0], sizes = [1, 256], strides = [1, 1]} : vector<40x256xf32> to vector<1x256xf32>
    %1698 = vector.broadcast %1696 : vector<2x1xf32> to vector<2x256xf32>
    %1699 = vector.broadcast %1697 : vector<1x256xf32> to vector<2x256xf32>
    %1700 = arith.mulf %1698, %1699 : vector<2x256xf32>
    %1701 = arith.addf %1677, %1700 : vector<2x256xf32>
    %1702 = vector.extract_strided_slice %1626 {offsets = [0, 13], sizes = [2, 1], strides = [1, 1]} : vector<2x32xf32> to vector<2x1xf32>
    %1703 = vector.extract_strided_slice %1627 {offsets = [13, 0], sizes = [1, 256], strides = [1, 1]} : vector<40x256xf32> to vector<1x256xf32>
    %1704 = vector.broadcast %1702 : vector<2x1xf32> to vector<2x256xf32>
    %1705 = vector.broadcast %1703 : vector<1x256xf32> to vector<2x256xf32>
    %1706 = arith.mulf %1704, %1705 : vector<2x256xf32>
    %1707 = arith.addf %1683, %1706 : vector<2x256xf32>
    %1708 = vector.extract_strided_slice %1626 {offsets = [0, 14], sizes = [2, 1], strides = [1, 1]} : vector<2x32xf32> to vector<2x1xf32>
    %1709 = vector.extract_strided_slice %1627 {offsets = [14, 0], sizes = [1, 256], strides = [1, 1]} : vector<40x256xf32> to vector<1x256xf32>
    %1710 = vector.broadcast %1708 : vector<2x1xf32> to vector<2x256xf32>
    %1711 = vector.broadcast %1709 : vector<1x256xf32> to vector<2x256xf32>
    %1712 = arith.mulf %1710, %1711 : vector<2x256xf32>
    %1713 = arith.addf %1689, %1712 : vector<2x256xf32>
    %1714 = vector.extract_strided_slice %1626 {offsets = [0, 15], sizes = [2, 1], strides = [1, 1]} : vector<2x32xf32> to vector<2x1xf32>
    %1715 = vector.extract_strided_slice %1627 {offsets = [15, 0], sizes = [1, 256], strides = [1, 1]} : vector<40x256xf32> to vector<1x256xf32>
    %1716 = vector.broadcast %1714 : vector<2x1xf32> to vector<2x256xf32>
    %1717 = vector.broadcast %1715 : vector<1x256xf32> to vector<2x256xf32>
    %1718 = arith.mulf %1716, %1717 : vector<2x256xf32>
    %1719 = arith.addf %1695, %1718 : vector<2x256xf32>
    %1720 = vector.extract_strided_slice %1626 {offsets = [0, 16], sizes = [2, 1], strides = [1, 1]} : vector<2x32xf32> to vector<2x1xf32>
    %1721 = vector.extract_strided_slice %1627 {offsets = [16, 0], sizes = [1, 256], strides = [1, 1]} : vector<40x256xf32> to vector<1x256xf32>
    %1722 = vector.broadcast %1720 : vector<2x1xf32> to vector<2x256xf32>
    %1723 = vector.broadcast %1721 : vector<1x256xf32> to vector<2x256xf32>
    %1724 = arith.mulf %1722, %1723 : vector<2x256xf32>
    %1725 = arith.addf %1701, %1724 : vector<2x256xf32>
    %1726 = vector.extract_strided_slice %1626 {offsets = [0, 17], sizes = [2, 1], strides = [1, 1]} : vector<2x32xf32> to vector<2x1xf32>
    %1727 = vector.extract_strided_slice %1627 {offsets = [17, 0], sizes = [1, 256], strides = [1, 1]} : vector<40x256xf32> to vector<1x256xf32>
    %1728 = vector.broadcast %1726 : vector<2x1xf32> to vector<2x256xf32>
    %1729 = vector.broadcast %1727 : vector<1x256xf32> to vector<2x256xf32>
    %1730 = arith.mulf %1728, %1729 : vector<2x256xf32>
    %1731 = arith.addf %1707, %1730 : vector<2x256xf32>
    %1732 = vector.extract_strided_slice %1626 {offsets = [0, 18], sizes = [2, 1], strides = [1, 1]} : vector<2x32xf32> to vector<2x1xf32>
    %1733 = vector.extract_strided_slice %1627 {offsets = [18, 0], sizes = [1, 256], strides = [1, 1]} : vector<40x256xf32> to vector<1x256xf32>
    %1734 = vector.broadcast %1732 : vector<2x1xf32> to vector<2x256xf32>
    %1735 = vector.broadcast %1733 : vector<1x256xf32> to vector<2x256xf32>
    %1736 = arith.mulf %1734, %1735 : vector<2x256xf32>
    %1737 = arith.addf %1713, %1736 : vector<2x256xf32>
    %1738 = vector.extract_strided_slice %1626 {offsets = [0, 19], sizes = [2, 1], strides = [1, 1]} : vector<2x32xf32> to vector<2x1xf32>
    %1739 = vector.extract_strided_slice %1627 {offsets = [19, 0], sizes = [1, 256], strides = [1, 1]} : vector<40x256xf32> to vector<1x256xf32>
    %1740 = vector.broadcast %1738 : vector<2x1xf32> to vector<2x256xf32>
    %1741 = vector.broadcast %1739 : vector<1x256xf32> to vector<2x256xf32>
    %1742 = arith.mulf %1740, %1741 : vector<2x256xf32>
    %1743 = arith.addf %1719, %1742 : vector<2x256xf32>
    %1744 = vector.extract_strided_slice %1626 {offsets = [0, 20], sizes = [2, 1], strides = [1, 1]} : vector<2x32xf32> to vector<2x1xf32>
    %1745 = vector.extract_strided_slice %1627 {offsets = [20, 0], sizes = [1, 256], strides = [1, 1]} : vector<40x256xf32> to vector<1x256xf32>
    %1746 = vector.broadcast %1744 : vector<2x1xf32> to vector<2x256xf32>
    %1747 = vector.broadcast %1745 : vector<1x256xf32> to vector<2x256xf32>
    %1748 = arith.mulf %1746, %1747 : vector<2x256xf32>
    %1749 = arith.addf %1725, %1748 : vector<2x256xf32>
    %1750 = vector.extract_strided_slice %1626 {offsets = [0, 21], sizes = [2, 1], strides = [1, 1]} : vector<2x32xf32> to vector<2x1xf32>
    %1751 = vector.extract_strided_slice %1627 {offsets = [21, 0], sizes = [1, 256], strides = [1, 1]} : vector<40x256xf32> to vector<1x256xf32>
    %1752 = vector.broadcast %1750 : vector<2x1xf32> to vector<2x256xf32>
    %1753 = vector.broadcast %1751 : vector<1x256xf32> to vector<2x256xf32>
    %1754 = arith.mulf %1752, %1753 : vector<2x256xf32>
    %1755 = arith.addf %1731, %1754 : vector<2x256xf32>
    %1756 = vector.extract_strided_slice %1626 {offsets = [0, 22], sizes = [2, 1], strides = [1, 1]} : vector<2x32xf32> to vector<2x1xf32>
    %1757 = vector.extract_strided_slice %1627 {offsets = [22, 0], sizes = [1, 256], strides = [1, 1]} : vector<40x256xf32> to vector<1x256xf32>
    %1758 = vector.broadcast %1756 : vector<2x1xf32> to vector<2x256xf32>
    %1759 = vector.broadcast %1757 : vector<1x256xf32> to vector<2x256xf32>
    %1760 = arith.mulf %1758, %1759 : vector<2x256xf32>
    %1761 = arith.addf %1737, %1760 : vector<2x256xf32>
    %1762 = vector.extract_strided_slice %1626 {offsets = [0, 23], sizes = [2, 1], strides = [1, 1]} : vector<2x32xf32> to vector<2x1xf32>
    %1763 = vector.extract_strided_slice %1627 {offsets = [23, 0], sizes = [1, 256], strides = [1, 1]} : vector<40x256xf32> to vector<1x256xf32>
    %1764 = vector.broadcast %1762 : vector<2x1xf32> to vector<2x256xf32>
    %1765 = vector.broadcast %1763 : vector<1x256xf32> to vector<2x256xf32>
    %1766 = arith.mulf %1764, %1765 : vector<2x256xf32>
    %1767 = arith.addf %1743, %1766 : vector<2x256xf32>
    %1768 = vector.extract_strided_slice %1626 {offsets = [0, 24], sizes = [2, 1], strides = [1, 1]} : vector<2x32xf32> to vector<2x1xf32>
    %1769 = vector.extract_strided_slice %1627 {offsets = [24, 0], sizes = [1, 256], strides = [1, 1]} : vector<40x256xf32> to vector<1x256xf32>
    %1770 = vector.broadcast %1768 : vector<2x1xf32> to vector<2x256xf32>
    %1771 = vector.broadcast %1769 : vector<1x256xf32> to vector<2x256xf32>
    %1772 = arith.mulf %1770, %1771 : vector<2x256xf32>
    %1773 = arith.addf %1749, %1772 : vector<2x256xf32>
    %1774 = vector.extract_strided_slice %1626 {offsets = [0, 25], sizes = [2, 1], strides = [1, 1]} : vector<2x32xf32> to vector<2x1xf32>
    %1775 = vector.extract_strided_slice %1627 {offsets = [25, 0], sizes = [1, 256], strides = [1, 1]} : vector<40x256xf32> to vector<1x256xf32>
    %1776 = vector.broadcast %1774 : vector<2x1xf32> to vector<2x256xf32>
    %1777 = vector.broadcast %1775 : vector<1x256xf32> to vector<2x256xf32>
    %1778 = arith.mulf %1776, %1777 : vector<2x256xf32>
    %1779 = arith.addf %1755, %1778 : vector<2x256xf32>
    %1780 = vector.extract_strided_slice %1626 {offsets = [0, 26], sizes = [2, 1], strides = [1, 1]} : vector<2x32xf32> to vector<2x1xf32>
    %1781 = vector.extract_strided_slice %1627 {offsets = [26, 0], sizes = [1, 256], strides = [1, 1]} : vector<40x256xf32> to vector<1x256xf32>
    %1782 = vector.broadcast %1780 : vector<2x1xf32> to vector<2x256xf32>
    %1783 = vector.broadcast %1781 : vector<1x256xf32> to vector<2x256xf32>
    %1784 = arith.mulf %1782, %1783 : vector<2x256xf32>
    %1785 = arith.addf %1761, %1784 : vector<2x256xf32>
    %1786 = vector.extract_strided_slice %1626 {offsets = [0, 27], sizes = [2, 1], strides = [1, 1]} : vector<2x32xf32> to vector<2x1xf32>
    %1787 = vector.extract_strided_slice %1627 {offsets = [27, 0], sizes = [1, 256], strides = [1, 1]} : vector<40x256xf32> to vector<1x256xf32>
    %1788 = vector.broadcast %1786 : vector<2x1xf32> to vector<2x256xf32>
    %1789 = vector.broadcast %1787 : vector<1x256xf32> to vector<2x256xf32>
    %1790 = arith.mulf %1788, %1789 : vector<2x256xf32>
    %1791 = arith.addf %1767, %1790 : vector<2x256xf32>
    %1792 = vector.extract_strided_slice %1626 {offsets = [0, 28], sizes = [2, 1], strides = [1, 1]} : vector<2x32xf32> to vector<2x1xf32>
    %1793 = vector.extract_strided_slice %1627 {offsets = [28, 0], sizes = [1, 256], strides = [1, 1]} : vector<40x256xf32> to vector<1x256xf32>
    %1794 = vector.broadcast %1792 : vector<2x1xf32> to vector<2x256xf32>
    %1795 = vector.broadcast %1793 : vector<1x256xf32> to vector<2x256xf32>
    %1796 = arith.mulf %1794, %1795 : vector<2x256xf32>
    %1797 = arith.addf %1773, %1796 : vector<2x256xf32>
    %1798 = vector.extract_strided_slice %1626 {offsets = [0, 29], sizes = [2, 1], strides = [1, 1]} : vector<2x32xf32> to vector<2x1xf32>
    %1799 = vector.extract_strided_slice %1627 {offsets = [29, 0], sizes = [1, 256], strides = [1, 1]} : vector<40x256xf32> to vector<1x256xf32>
    %1800 = vector.broadcast %1798 : vector<2x1xf32> to vector<2x256xf32>
    %1801 = vector.broadcast %1799 : vector<1x256xf32> to vector<2x256xf32>
    %1802 = arith.mulf %1800, %1801 : vector<2x256xf32>
    %1803 = arith.addf %1779, %1802 : vector<2x256xf32>
    %1804 = vector.extract_strided_slice %1626 {offsets = [0, 30], sizes = [2, 1], strides = [1, 1]} : vector<2x32xf32> to vector<2x1xf32>
    %1805 = vector.extract_strided_slice %1627 {offsets = [30, 0], sizes = [1, 256], strides = [1, 1]} : vector<40x256xf32> to vector<1x256xf32>
    %1806 = vector.broadcast %1804 : vector<2x1xf32> to vector<2x256xf32>
    %1807 = vector.broadcast %1805 : vector<1x256xf32> to vector<2x256xf32>
    %1808 = arith.mulf %1806, %1807 : vector<2x256xf32>
    %1809 = arith.addf %1785, %1808 : vector<2x256xf32>
    %1810 = vector.extract_strided_slice %1626 {offsets = [0, 31], sizes = [2, 1], strides = [1, 1]} : vector<2x32xf32> to vector<2x1xf32>
    %1811 = vector.extract_strided_slice %1627 {offsets = [31, 0], sizes = [1, 256], strides = [1, 1]} : vector<40x256xf32> to vector<1x256xf32>
    %1812 = vector.broadcast %1810 : vector<2x1xf32> to vector<2x256xf32>
    %1813 = vector.broadcast %1811 : vector<1x256xf32> to vector<2x256xf32>
    %1814 = arith.mulf %1812, %1813 : vector<2x256xf32>
    %1815 = arith.addf %1791, %1814 : vector<2x256xf32>
    %1816 = arith.addf %1797, %1803 : vector<2x256xf32>
    %1817 = arith.addf %1809, %1815 : vector<2x256xf32>
    %1818 = arith.addf %1816, %1817 : vector<2x256xf32>
    %1819 = vector.extract_strided_slice %1627 {offsets = [32, 0], sizes = [1, 256], strides = [1, 1]} : vector<40x256xf32> to vector<1x256xf32>
    %1820 = vector.broadcast %1819 : vector<1x256xf32> to vector<2x256xf32>
    %1821 = arith.addf %1818, %1820 : vector<2x256xf32>
    %1822 = vector.extract_strided_slice %0 {offsets = [0, 32], sizes = [2, 4], strides = [1, 1]} : vector<2x64xf32> to vector<2x4xf32>
    %1823 = vector.extract_strided_slice %1822 {offsets = [0, 0], sizes = [2, 1], strides = [1, 1]} : vector<2x4xf32> to vector<2x1xf32>
    %1824 = vector.extract_strided_slice %1822 {offsets = [0, 1], sizes = [2, 1], strides = [1, 1]} : vector<2x4xf32> to vector<2x1xf32>
    %1825 = vector.extract_strided_slice %1822 {offsets = [0, 2], sizes = [2, 1], strides = [1, 1]} : vector<2x4xf32> to vector<2x1xf32>
    %1826 = vector.extract_strided_slice %1822 {offsets = [0, 3], sizes = [2, 1], strides = [1, 1]} : vector<2x4xf32> to vector<2x1xf32>
    %1827 = vector.extract_strided_slice %1821 {offsets = [0, 64], sizes = [2, 16], strides = [1, 1]} : vector<2x256xf32> to vector<2x16xf32>
    %1828 = vector.extract_strided_slice %1821 {offsets = [0, 0], sizes = [2, 16], strides = [1, 1]} : vector<2x256xf32> to vector<2x16xf32>
    %1829 = vector.broadcast %1823 : vector<2x1xf32> to vector<2x16xf32>
    %1830 = arith.mulf %1828, %1829 : vector<2x16xf32>
    %1831 = arith.addf %1827, %1830 : vector<2x16xf32>
    %1832 = vector.extract_strided_slice %1821 {offsets = [0, 16], sizes = [2, 16], strides = [1, 1]} : vector<2x256xf32> to vector<2x16xf32>
    %1833 = vector.broadcast %1824 : vector<2x1xf32> to vector<2x16xf32>
    %1834 = arith.mulf %1832, %1833 : vector<2x16xf32>
    %1835 = vector.extract_strided_slice %1821 {offsets = [0, 32], sizes = [2, 16], strides = [1, 1]} : vector<2x256xf32> to vector<2x16xf32>
    %1836 = vector.broadcast %1825 : vector<2x1xf32> to vector<2x16xf32>
    %1837 = arith.mulf %1835, %1836 : vector<2x16xf32>
    %1838 = arith.addf %1831, %1837 : vector<2x16xf32>
    %1839 = vector.extract_strided_slice %1821 {offsets = [0, 48], sizes = [2, 16], strides = [1, 1]} : vector<2x256xf32> to vector<2x16xf32>
    %1840 = vector.broadcast %1826 : vector<2x1xf32> to vector<2x16xf32>
    %1841 = arith.mulf %1839, %1840 : vector<2x16xf32>
    %1842 = arith.addf %1834, %1841 : vector<2x16xf32>
    %1843 = arith.addf %1838, %1842 : vector<2x16xf32>
    %cst_45 = arith.constant 0.000000e+00 : f32
    %1844 = vector.broadcast %cst_45 : f32 to vector<2x16xf32>
    %1845 = arith.maximumf %1843, %1844 : vector<2x16xf32>
    %cst_46 = arith.constant 0.000000e+00 : f32
    %1846 = vector.broadcast %cst_46 : f32 to vector<2x128xf32>
    %c0_47 = arith.constant 0 : index
    %c0_48 = arith.constant 0 : index
    %1847 = vector.load %arg3[%c0_47, %c0_48] : memref<2x128xf32, #tpu.memory_space<vmem>>, vector<2x128xf32>
    tpu.vector_store %arg3[%c0_47, %c0_48], %1846 {strides = array<i32>} : memref<2x128xf32, #tpu.memory_space<vmem>>, vector<2x128xf32>,
    %c0_49 = arith.constant 0 : index
    %c0_50 = arith.constant 0 : index
    %1848 = vector.load %arg3[%c0_49, %c0_50] : memref<2x128xf32, #tpu.memory_space<vmem>>, vector<2x32xf32>
    tpu.vector_store %arg3[%c0_49, %c0_50], %1626 {strides = array<i32>} : memref<2x128xf32, #tpu.memory_space<vmem>>, vector<2x32xf32>,
    %1849 = vector.extract_strided_slice %1821 {offsets = [0, 80], sizes = [2, 16], strides = [1, 1]} : vector<2x256xf32> to vector<2x16xf32>
    %1850 = arith.mulf %1849, %1845 : vector<2x16xf32>
    %cst_51 = arith.constant dense<0.000000e+00> : vector<2xf32>
    %1851 = vector.multi_reduction <add>, %1850, %cst_51 [1] : vector<2x16xf32> to vector<2xf32>
    %1852 = vector.shape_cast %1851 : vector<2xf32> to vector<2x1xf32>
    %1853 = vector.extract_strided_slice %1821 {offsets = [0, 128], sizes = [2, 1], strides = [1, 1]} : vector<2x256xf32> to vector<2x1xf32>
    %1854 = arith.addf %1852, %1853 : vector<2x1xf32>
    %c0_52 = arith.constant 0 : index
    %c32 = arith.constant 32 : index
    %1855 = vector.load %arg3[%c0_52, %c32] : memref<2x128xf32, #tpu.memory_space<vmem>>, vector<2x1xf32>
    tpu.vector_store %arg3[%c0_52, %c32], %1854 {strides = array<i32>} : memref<2x128xf32, #tpu.memory_space<vmem>>, vector<2x1xf32>,
    %1856 = vector.extract_strided_slice %1821 {offsets = [0, 96], sizes = [2, 16], strides = [1, 1]} : vector<2x256xf32> to vector<2x16xf32>
    %1857 = arith.mulf %1856, %1845 : vector<2x16xf32>
    %cst_53 = arith.constant dense<0.000000e+00> : vector<2xf32>
    %1858 = vector.multi_reduction <add>, %1857, %cst_53 [1] : vector<2x16xf32> to vector<2xf32>
    %1859 = vector.shape_cast %1858 : vector<2xf32> to vector<2x1xf32>
    %1860 = vector.extract_strided_slice %1821 {offsets = [0, 129], sizes = [2, 1], strides = [1, 1]} : vector<2x256xf32> to vector<2x1xf32>
    %1861 = arith.addf %1859, %1860 : vector<2x1xf32>
    %c0_54 = arith.constant 0 : index
    %c33 = arith.constant 33 : index
    %1862 = vector.load %arg3[%c0_54, %c33] : memref<2x128xf32, #tpu.memory_space<vmem>>, vector<2x1xf32>
    tpu.vector_store %arg3[%c0_54, %c33], %1861 {strides = array<i32>} : memref<2x128xf32, #tpu.memory_space<vmem>>, vector<2x1xf32>,
    %1863 = vector.extract_strided_slice %1821 {offsets = [0, 112], sizes = [2, 16], strides = [1, 1]} : vector<2x256xf32> to vector<2x16xf32>
    %1864 = arith.mulf %1863, %1845 : vector<2x16xf32>
    %cst_55 = arith.constant dense<0.000000e+00> : vector<2xf32>
    %1865 = vector.multi_reduction <add>, %1864, %cst_55 [1] : vector<2x16xf32> to vector<2xf32>
    %1866 = vector.shape_cast %1865 : vector<2xf32> to vector<2x1xf32>
    %1867 = vector.extract_strided_slice %1821 {offsets = [0, 130], sizes = [2, 1], strides = [1, 1]} : vector<2x256xf32> to vector<2x1xf32>
    %1868 = arith.addf %1866, %1867 : vector<2x1xf32>
    %c0_56 = arith.constant 0 : index
    %c34 = arith.constant 34 : index
    %1869 = vector.load %arg3[%c0_56, %c34] : memref<2x128xf32, #tpu.memory_space<vmem>>, vector<2x1xf32>
    tpu.vector_store %arg3[%c0_56, %c34], %1868 {strides = array<i32>} : memref<2x128xf32, #tpu.memory_space<vmem>>, vector<2x1xf32>,
    return
  }
}

</mosaic_0001>

<bundles_post_ra>
// kernel: _fused_forward.1
= control target key start
LH: loop header
LB: loop body
LE: loop exit
PB: predicated region body
PF: predicated region fallthrough
CT: control target
= control target key end

     0   :  { %v5094_v0 = vmov 2   ;;  %v5090_v1 = vmov 0   ;;  %v5146_v3 = vmov 3   ;;  %v5088_v4 = vmov 1   ;;  %s3782_s22 = smov 96   ;;  %s3783_s23 = smov 64   ;;  %s5084_s0 = inlined_call_operand.vmem [shape: f32[2,64], index: 0, kind: input, shape index: {}]   ;;  %s5085_s1 = inlined_call_operand.vmem [shape: f32[15,40,32], index: 1, kind: input, shape index: {}]   ;;  %s5086_s3 = inlined_call_operand.vmem [shape: f32[2,128], index: 3, kind: output, shape index: {}]   ;;  %s5087_s2 = inlined_call_operand.vmem [shape: f32[40,256], index: 2, kind: input, shape index: {}]  }
   0x1   :  { %3453 = vset.pattern.permute.xlu1 %v5094_v0  ;;  %3451 = vset.pattern.permute.xlu0 %v5090_v1  ;;  %v14_v2 = vld [vmem:[%s5084_s0] sm:$0x3]  ;;  %v5150_v5 = vmov 4   ;;  %v5142_v6 = vmov 5   ;;  %v5140_v7 = vmov 6   ;;  %v5148_v8 = vmov 7  }
   0x2   :  { %37 = vperm.xlu1 %3453, %v14_v2   ;;  %19 = vperm.xlu0 %3451, %v14_v2   ;;  %v22_v11 = vlaneseq  ;;  %v15_v21 = vld [vmem:[%s5085_s1] sm:$0xff]  ;;  %v3364_v60 = vld [vmem:[%s5085_s1 + $0x28] sm:$0xff]  ;;  %vm3302_vm0 = vcmask 254976   ;;  %s3784_s24 = smov 32   ;;  %s3785_s25 = smov 48   ;;  %vm3313_vm1 = vcmask 123904  }
   0x3   :  { %v16_v46 = vld [vmem:[%s5085_s1 + $0x20] sm:$0xff]  ;;  %s3786_s26 = smov 16   ;;  %vm3322_vm2 = vcmask 263424   ;;  %vm3340_vm3 = vcmask 271624   ;;  %vm3358_vm4 = vcmask 279824  }
   0x4   :  { %v23_v13 = vshrl.u32 %v22_v11, 7 }
   0x6   :  { %3454 = vset.pattern.permute.xlu1 %v5146_v3  ;;  %3452 = vset.pattern.permute.xlu0 %v5088_v4  ;;  %v3820_v15 = vsub.s32 0, %v23_v13  ;;  %v3822_v16 = vsub.s32 1, %v23_v13  ;;  %v3824_v17 = vsub.s32 4, %v23_v13  ;;  %v3826_v18 = vsub.s32 5, %v23_v13 }
   0x7   :  { %46 = vperm.xlu1 %3454, %v14_v2   ;;  %28 = vperm.xlu0 %3452, %v14_v2   ;;  %v3828_v20 = vsub.s32 6, %v23_v13  ;;  %v3833_v22 = vsub.s32 2, %v23_v13  ;;  %v3835_v23 = vsub.s32 3, %v23_v13  ;;  %v3837_v24 = vsub.s32 7, %v23_v13 }
   0x8   :  { %5171 = vst [vmem:[#allocation2_spill] sm:$0xff] %v3822_v16  ;;  %5172 = vst [vmem:[#allocation3_spill] sm:$0xff] %v3824_v17  ;;  %v25_v25 = vrot.slane %v15_v21, %v3820_v15  ;;  %v34_v26 = vrot.slane %v15_v21, %v3822_v16  ;;  %v61_v27 = vrot.slane %v15_v21, %v3824_v17 }
   0x9   :  { %5173 = vst [vmem:[#allocation4_spill] sm:$0xff] %v3828_v20  ;;  %v71_v28 = vrot.slane %v15_v21, %v3826_v18  ;;  %v81_v30 = vrot.slane %v15_v21, %v3828_v20  ;;  %v43_v32 = vrot.slane %v15_v21, %v3833_v22  ;;  %v52_v33 = vrot.slane %v15_v21, %v3835_v23 }
   0xa   :  { %v91_v34 = vrot.slane %v15_v21, %v3837_v24  ;;  %v100_v50 = vrot.slane %v16_v46, %v3820_v15  ;;  %v160_v61 = vrot.slane %v3364_v60, %v3826_v18  ;;  %v123_v62 = vrot.slane %v3364_v60, %v3822_v16 }
   0xb   :  { %3455 = vset.pattern.permute.xlu1 %v5150_v5  ;;  %3456 = vset.pattern.permute.xlu0 %v5142_v6  ;;  %v150_v63 = vrot.slane %v3364_v60, %v3824_v17  ;;  %v141_v13 = vrot.slane %v3364_v60, %v3835_v23 }
   0xc   :  { %55 = vperm.xlu1 %3455, %v14_v2   ;;  %65 = vperm.xlu0 %3456, %v14_v2  }
  0x10   :  { %3457 = vset.pattern.permute.xlu1 %v5140_v7  ;;  %3459 = vset.pattern.permute.xlu0 %v5090_v1 }
  0x11   :  { %75 = vperm.xlu1 %3457, %v14_v2  }
  0x15   :  { %3458 = vset.pattern.permute.xlu1 %v5148_v8 }
  0x16   :  { %85 = vperm.xlu1 %3458, %v14_v2   ;;  %v170_v2 = vrot.slane %v3364_v60, %v3828_v20 }
  0x1a   :  { %3460 = vset.pattern.permute.xlu1 %v5088_v4 }
  0x7d   :  { %v38_v9 = vpop.permute.xlu1 %37  ;;  %v20_v10 = vpop.permute.xlu0 %19 }
  0x7e   :  { %v26_v35 = vmul.f32 %v25_v25, %v20_v10  ;;  %v44_v40 = vmul.f32 %v43_v32, %v38_v9  ;;  %v114_v10 = vrot.slane %v3364_v60, %v3820_v15 }
  0x82   :  { %v47_v12 = vpop.permute.xlu1 %46  ;;  %v29_v14 = vpop.permute.xlu0 %28 }
  0x83   :  { %v35_v36 = vmul.f32 %v34_v26, %v29_v14  ;;  %v53_v42 = vmul.f32 %v52_v33, %v47_v12  ;;  %v132_v12 = vrot.slane %v3364_v60, %v3833_v22  ;;  %v3365_v33 = vld [vmem:[%s5085_s1 + $0x48] sm:$0xff] }
  0x87   :  { %v56_v19 = vpop.permute.xlu1 %55  ;;  %v66_v29 = vpop.permute.xlu0 %65 }
  0x88   :  { %v62_v37 = vmul.f32 %v61_v27, %v56_v19  ;;  %v72_v38 = vmul.f32 %v71_v28, %v66_v29  ;;  %v180_v19 = vrot.slane %v3364_v60, %v3837_v24 }
  0x8a   :  { %v63_v43 = vadd.f32 %v62_v37, %v26_v35  ;;  %v73_v44 = vadd.f32 %v72_v38, %v35_v36  ;;  %v189_v38 = vrot.slane %v3365_v33, %v3820_v15 }
  0x8c   :  { %v76_v31 = vpop.permute.xlu1 %75  ;;  %v94_v49 = vadd.f32 %v73_v44, %v63_v43 }
  0x8d   :  { %v82_v39 = vmul.f32 %v81_v30, %v76_v31 }
  0x8f   :  { %v83_v47 = vadd.f32 %v82_v39, %v44_v40 }
  0x91   :  { %v86_v41 = vpop.permute.xlu1 %85 }
  0x92   :  { %v92_v45 = vmul.f32 %v91_v34, %v86_v41 }
  0x94   :  { %v93_v48 = vadd.f32 %v92_v45, %v53_v42 }
  0x96   :  { %v95_v51 = vadd.f32 %v93_v48, %v83_v47  ;;  %v3366_v48 = vld [vmem:[%s5085_s1 + $0x50] sm:$0xff] }
  0x97   :  { %v259_v60 = vrot.slane %v3366_v48, %v3828_v20 }
  0x98   :  { %v96_v52 = vadd.f32 %v95_v51, %v94_v49  ;;  %v249_v49 = vrot.slane %v3366_v48, %v3826_v18  ;;  %v239_v51 = vrot.slane %v3366_v48, %v3824_v17 }
  0x9a   :  { %v3851_v53 = vadd.f32 %v100_v50, %v96_v52  ;;  %v212_v50 = vrot.slane %v3366_v48, %v3822_v16  ;;  %v269_v52 = vrot.slane %v3366_v48, %v3837_v24 }
  0x9c   :  { %v102_v54 = vmax.f32 %v3851_v53, 0.0 }
  0x9e   :  { %117 = vperm.xlu1 %3460, %v102_v54   ;;  %108 = vperm.xlu0 %3459, %v102_v54  }
  0xa2   :  { %3461 = vset.pattern.permute.xlu1 %v5094_v0  ;;  %3462 = vset.pattern.permute.xlu0 %v5146_v3 }
  0xa3   :  { %126 = vperm.xlu1 %3461, %v102_v54   ;;  %135 = vperm.xlu0 %3462, %v102_v54  }
  0xa7   :  { %3463 = vset.pattern.permute.xlu1 %v5150_v5  ;;  %3465 = vset.pattern.permute.xlu0 %v5140_v7 }
  0xa8   :  { %144 = vperm.xlu1 %3463, %v102_v54   ;;  %164 = vperm.xlu0 %3465, %v102_v54  }
  0xac   :  { %3464 = vset.pattern.permute.xlu1 %v5142_v6  ;;  %3468 = vset.pattern.permute.xlu0 %v5088_v4 }
  0xad   :  { %154 = vperm.xlu1 %3464, %v102_v54  }
  0xb1   :  { %3466 = vset.pattern.permute.xlu1 %v5148_v8 }
  0xb2   :  { %174 = vperm.xlu1 %3466, %v102_v54   ;;  %v230_v54 = vrot.slane %v3366_v48, %v3835_v23 }
  0xb6   :  { %3467 = vset.pattern.permute.xlu1 %v5090_v1 }
 0x119   :  { %v118_v55 = vpop.permute.xlu1 %117  ;;  %v109_v56 = vpop.permute.xlu0 %108 }
 0x11a   :  { %v124_v21 = vmul.f32 %v123_v62, %v118_v55  ;;  %v115_v27 = vmul.f32 %v114_v10, %v109_v56 }
 0x11e   :  { %v127_v57 = vpop.permute.xlu1 %126  ;;  %v136_v58 = vpop.permute.xlu0 %135 }
 0x11f   :  { %v133_v29 = vmul.f32 %v132_v12, %v127_v57  ;;  %v142_v30 = vmul.f32 %v141_v13, %v136_v58  ;;  %v203_v57 = vrot.slane %v3366_v48, %v3820_v15  ;;  %v221_v58 = vrot.slane %v3366_v48, %v3833_v22 }
 0x123   :  { %v145_v59 = vpop.permute.xlu1 %144  ;;  %v165_v11 = vpop.permute.xlu0 %164 }
 0x124   :  { %v151_v25 = vmul.f32 %v150_v63, %v145_v59  ;;  %v171_v26 = vmul.f32 %v170_v2, %v165_v11 }
 0x126   :  { %v152_v34 = vadd.f32 %v151_v25, %v115_v27  ;;  %v172_v35 = vadd.f32 %v171_v26, %v133_v29 }
 0x128   :  { %v155_v9 = vpop.permute.xlu1 %154 }
 0x129   :  { %v161_v14 = vmul.f32 %v160_v61, %v155_v9 }
 0x12b   :  { %v162_v31 = vadd.f32 %v161_v14, %v124_v21  ;;  %v3367_v14 = vld [vmem:[%s5085_s1 + $0x70] sm:$0xff] }
 0x12c   :  { %v278_v27 = vrot.slane %v3367_v14, %v3820_v15 }
 0x12d   :  { %v175_v28 = vpop.permute.xlu1 %174  ;;  %v183_v37 = vadd.f32 %v162_v31, %v152_v34 }
 0x12e   :  { %v181_v32 = vmul.f32 %v180_v19, %v175_v28 }
 0x130   :  { %v182_v36 = vadd.f32 %v181_v32, %v142_v30 }
 0x132   :  { %v184_v39 = vadd.f32 %v182_v36, %v172_v35 }
 0x134   :  { %v185_v40 = vadd.f32 %v184_v39, %v183_v37  ;;  %v3368_v37 = vld [vmem:[%s5085_s1 + $0x78] sm:$0xff] }
 0x135   :  { %v293_v39 = vrot.slane %v3368_v37, %v3820_v15  ;;  %v359_v48 = vrot.slane %v3368_v37, %v3837_v24 }
 0x136   :  { %v190_v41 = vadd.f32 %v189_v38, %v185_v40  ;;  %v329_v38 = vrot.slane %v3368_v37, %v3824_v17  ;;  %v339_v40 = vrot.slane %v3368_v37, %v3826_v18 }
 0x138   :  { %v191_v42 = vmax.f32 %v190_v41, 0.0  ;;  %v302_v41 = vrot.slane %v3368_v37, %v3822_v16 }
 0x13a   :  { %206 = vperm.xlu0 %3468, %v191_v42   ;;  %197 = vperm.xlu1 %3467, %v191_v42  }
 0x13e   :  { %3471 = vset.pattern.permute.xlu0 %v5150_v5  ;;  %3469 = vset.pattern.permute.xlu1 %v5094_v0 }
 0x13f   :  { %233 = vperm.xlu0 %3471, %v191_v42   ;;  %215 = vperm.xlu1 %3469, %v191_v42  }
 0x143   :  { %3474 = vset.pattern.permute.xlu0 %v5148_v8  ;;  %3470 = vset.pattern.permute.xlu1 %v5146_v3 }
 0x144   :  { %263 = vperm.xlu0 %3474, %v191_v42   ;;  %224 = vperm.xlu1 %3470, %v191_v42  }
 0x148   :  { %3472 = vset.pattern.permute.xlu1 %v5142_v6  ;;  %3477 = vset.pattern.permute.xlu0 %v5094_v0 }
 0x149   :  { %243 = vperm.xlu1 %3472, %v191_v42  }
 0x14d   :  { %3473 = vset.pattern.permute.xlu1 %v5140_v7 }
 0x14e   :  { %253 = vperm.xlu1 %3473, %v191_v42   ;;  %v349_v42 = vrot.slane %v3368_v37, %v3828_v20 }
 0x152   :  { %3475 = vset.pattern.permute.xlu1 %v5090_v1 }
 0x1b5   :  { %v198_v43 = vpop.permute.xlu1 %197  ;;  %v207_v44 = vpop.permute.xlu0 %206 }
 0x1b6   :  { %v213_v61 = vmul.f32 %v212_v50, %v207_v44  ;;  %v204_v10 = vmul.f32 %v203_v57, %v198_v43 }
 0x1ba   :  { %v216_v45 = vpop.permute.xlu1 %215  ;;  %v234_v46 = vpop.permute.xlu0 %233 }
 0x1bb   :  { %v240_v62 = vmul.f32 %v239_v51, %v234_v46  ;;  %v222_v11 = vmul.f32 %v221_v58, %v216_v45  ;;  %v311_v45 = vrot.slane %v3368_v37, %v3833_v22  ;;  %v320_v46 = vrot.slane %v3368_v37, %v3835_v23 }
 0x1bd   :  { %v241_v19 = vadd.f32 %v240_v62, %v204_v10 }
 0x1bf   :  { %v225_v47 = vpop.permute.xlu1 %224  ;;  %v264_v56 = vpop.permute.xlu0 %263 }
 0x1c0   :  { %v270_v63 = vmul.f32 %v269_v52, %v264_v56  ;;  %v231_v2 = vmul.f32 %v230_v54, %v225_v47 }
 0x1c2   :  { %v271_v21 = vadd.f32 %v270_v63, %v231_v2 }
 0x1c4   :  { %v244_v55 = vpop.permute.xlu1 %243 }
 0x1c5   :  { %v250_v59 = vmul.f32 %v249_v49, %v244_v55 }
 0x1c7   :  { %v251_v12 = vadd.f32 %v250_v59, %v213_v61  ;;  %v3369_v59 = vld [vmem:[%s5085_s1 + $0x98] sm:$0xff] }
 0x1c8   :  { %v368_v2 = vrot.slane %v3369_v59, %v3820_v15 }
 0x1c9   :  { %v254_v9 = vpop.permute.xlu1 %253  ;;  %v272_v26 = vadd.f32 %v251_v12, %v241_v19 }
 0x1ca   :  { %v260_v13 = vmul.f32 %v259_v60, %v254_v9 }
 0x1cc   :  { %v261_v25 = vadd.f32 %v260_v13, %v222_v11 }
 0x1ce   :  { %v273_v28 = vadd.f32 %v271_v21, %v261_v25 }
 0x1d0   :  { %v274_v29 = vadd.f32 %v273_v28, %v272_v26  ;;  %v3370_v26 = vld [vmem:[%s5085_s1 + $0xa0] sm:$0xff] }
 0x1d1   :  { %v391_v28 = vrot.slane %v3370_v26, %v3822_v16  ;;  %v448_v37 = vrot.slane %v3370_v26, %v3837_v24 }
 0x1d2   :  { %v279_v30 = vadd.f32 %v278_v27, %v274_v29  ;;  %v428_v27 = vrot.slane %v3370_v26, %v3826_v18  ;;  %v418_v29 = vrot.slane %v3370_v26, %v3824_v17 }
 0x1d4   :  { %v3901_v31 = vadd.f32 %v279_v30, %v3851_v53  ;;  %v438_v30 = vrot.slane %v3370_v26, %v3828_v20 }
 0x1d6   :  { %v281_v32 = vmax.f32 %v3901_v31, 0.0 }
 0x1d8   :  { %305 = vperm.xlu0 %3477, %v281_v32   ;;  %287 = vperm.xlu1 %3475, %v281_v32  }
 0x1dc   :  { %3480 = vset.pattern.permute.xlu0 %v5142_v6  ;;  %3476 = vset.pattern.permute.xlu1 %v5088_v4 }
 0x1dd   :  { %333 = vperm.xlu0 %3480, %v281_v32   ;;  %296 = vperm.xlu1 %3476, %v281_v32  }
 0x1e1   :  { %3478 = vset.pattern.permute.xlu1 %v5146_v3  ;;  %3483 = vset.pattern.permute.xlu0 %v5090_v1 }
 0x1e2   :  { %314 = vperm.xlu1 %3478, %v281_v32  }
 0x1e6   :  { %3479 = vset.pattern.permute.xlu1 %v5150_v5 }
 0x1e7   :  { %323 = vperm.xlu1 %3479, %v281_v32  }
 0x1eb   :  { %3481 = vset.pattern.permute.xlu1 %v5140_v7 }
 0x1ec   :  { %343 = vperm.xlu1 %3481, %v281_v32  }
 0x1f0   :  { %3482 = vset.pattern.permute.xlu1 %v5148_v8 }
 0x1f1   :  { %353 = vperm.xlu1 %3482, %v281_v32  }
 0x1f5   :  { %3484 = vset.pattern.permute.xlu1 %v5088_v4 }
 0x253   :  { %v288_v53 = vpop.permute.xlu1 %287  ;;  %v306_v35 = vpop.permute.xlu0 %305 }
 0x254   :  { %v294_v49 = vmul.f32 %v293_v39, %v288_v53  ;;  %v312_v55 = vmul.f32 %v311_v45, %v306_v35  ;;  %v382_v53 = vrot.slane %v3370_v26, %v3820_v15  ;;  %v409_v35 = vrot.slane %v3370_v26, %v3835_v23 }
 0x258   :  { %v297_v33 = vpop.permute.xlu1 %296  ;;  %v334_v44 = vpop.permute.xlu0 %333 }
 0x259   :  { %v340_v50 = vmul.f32 %v339_v40, %v334_v44  ;;  %v303_v51 = vmul.f32 %v302_v41, %v297_v33 }
 0x25b   :  { %v341_v60 = vadd.f32 %v340_v50, %v303_v51 }
 0x25d   :  { %v315_v34 = vpop.permute.xlu1 %314 }
 0x25e   :  { %v321_v56 = vmul.f32 %v320_v46, %v315_v34  ;;  %v400_v34 = vrot.slane %v3370_v26, %v3833_v22 }
 0x262   :  { %v324_v36 = vpop.permute.xlu1 %323 }
 0x263   :  { %v330_v47 = vmul.f32 %v329_v38, %v324_v36 }
 0x265   :  { %v331_v57 = vadd.f32 %v330_v47, %v294_v49  ;;  %v3371_v47 = vld [vmem:[%s5085_s1 + $0xc0] sm:$0xff] }
 0x267   :  { %v344_v43 = vpop.permute.xlu1 %343  ;;  %v362_v63 = vadd.f32 %v341_v60, %v331_v57 }
 0x268   :  { %v350_v52 = vmul.f32 %v349_v42, %v344_v43 }
 0x26a   :  { %v351_v61 = vadd.f32 %v350_v52, %v312_v55  ;;  %v457_v52 = vrot.slane %v3371_v47, %v3820_v15  ;;  %v5092_v47 = vmov 14  }
 0x26c   :  { %v354_v54 = vpop.permute.xlu1 %353 }
 0x26d   :  { %v360_v58 = vmul.f32 %v359_v48, %v354_v54 }
 0x26f   :  { %v361_v62 = vadd.f32 %v360_v58, %v321_v56 }
 0x271   :  { %v363_v9 = vadd.f32 %v361_v62, %v351_v61  ;;  %v3372_v62 = vld [vmem:[%s5085_s1 + $0xc8] sm:$0xff] }
 0x273   :  { %v364_v10 = vadd.f32 %v363_v9, %v362_v63  ;;  %v517_v63 = vrot.slane %v3372_v62, %v3826_v18  ;;  %v507_v9 = vrot.slane %v3372_v62, %v3824_v17 }
 0x275   :  { %v369_v11 = vadd.f32 %v368_v2, %v364_v10  ;;  %v480_v2 = vrot.slane %v3372_v62, %v3822_v16  ;;  %v537_v10 = vrot.slane %v3372_v62, %v3837_v24 }
 0x277   :  { %v370_v12 = vmax.f32 %v369_v11, 0.0  ;;  %v498_v11 = vrot.slane %v3372_v62, %v3835_v23 }
 0x279   :  { %385 = vperm.xlu1 %3484, %v370_v12   ;;  %376 = vperm.xlu0 %3483, %v370_v12  }
 0x27d   :  { %3485 = vset.pattern.permute.xlu1 %v5094_v0  ;;  %3486 = vset.pattern.permute.xlu0 %v5146_v3 }
 0x27e   :  { %394 = vperm.xlu1 %3485, %v370_v12   ;;  %403 = vperm.xlu0 %3486, %v370_v12  }
 0x282   :  { %3487 = vset.pattern.permute.xlu1 %v5150_v5  ;;  %3489 = vset.pattern.permute.xlu0 %v5140_v7 }
 0x283   :  { %412 = vperm.xlu1 %3487, %v370_v12   ;;  %432 = vperm.xlu0 %3489, %v370_v12  }
 0x287   :  { %3488 = vset.pattern.permute.xlu1 %v5142_v6  ;;  %3492 = vset.pattern.permute.xlu0 %v5088_v4 }
 0x288   :  { %422 = vperm.xlu1 %3488, %v370_v12  }
 0x28c   :  { %3490 = vset.pattern.permute.xlu1 %v5148_v8 }
 0x28d   :  { %442 = vperm.xlu1 %3490, %v370_v12  }
 0x291   :  { %3491 = vset.pattern.permute.xlu1 %v5090_v1 }
 0x2f4   :  { %v386_v13 = vpop.permute.xlu1 %385  ;;  %v377_v14 = vpop.permute.xlu0 %376 }
 0x2f5   :  { %v392_v38 = vmul.f32 %v391_v28, %v386_v13  ;;  %v383_v41 = vmul.f32 %v382_v53, %v377_v14  ;;  %v471_v14 = vrot.slane %v3372_v62, %v3820_v15 }
 0x2f9   :  { %v395_v19 = vpop.permute.xlu1 %394  ;;  %v404_v21 = vpop.permute.xlu0 %403 }
 0x2fa   :  { %v401_v43 = vmul.f32 %v400_v34, %v395_v19  ;;  %v410_v44 = vmul.f32 %v409_v35, %v404_v21  ;;  %v489_v19 = vrot.slane %v3372_v62, %v3833_v22  ;;  %v3373_v35 = vld [vmem:[%s5085_s1 + $0xe8] sm:$0xff] }
 0x2fe   :  { %v413_v25 = vpop.permute.xlu1 %412  ;;  %v433_v33 = vpop.permute.xlu0 %432 }
 0x2ff   :  { %v419_v39 = vmul.f32 %v418_v29, %v413_v25  ;;  %v439_v40 = vmul.f32 %v438_v30, %v433_v33  ;;  %v527_v25 = vrot.slane %v3372_v62, %v3828_v20 }
 0x301   :  { %v420_v48 = vadd.f32 %v419_v39, %v383_v41  ;;  %v440_v49 = vadd.f32 %v439_v40, %v401_v43  ;;  %v546_v40 = vrot.slane %v3373_v35, %v3820_v15 }
 0x303   :  { %v423_v32 = vpop.permute.xlu1 %422 }
 0x304   :  { %v429_v36 = vmul.f32 %v428_v27, %v423_v32 }
 0x306   :  { %v430_v45 = vadd.f32 %v429_v36, %v392_v38 }
 0x308   :  { %v443_v42 = vpop.permute.xlu1 %442  ;;  %v451_v51 = vadd.f32 %v430_v45, %v420_v48  ;;  %v5136_v45 = vmov 8   ;;  %v5132_v48 = vmov 9  }
 0x309   :  { %v449_v46 = vmul.f32 %v448_v37, %v443_v42 }
 0x30b   :  { %v450_v50 = vadd.f32 %v449_v46, %v410_v44  ;;  %v5128_v46 = vmov 11  }
 0x30d   :  { %v452_v54 = vadd.f32 %v450_v50, %v440_v49  ;;  %v5144_v49 = vmov 10   ;;  %v5124_v50 = vmov 12  }
 0x30f   :  { %v453_v55 = vadd.f32 %v452_v54, %v451_v51  ;;  %v5096_v51 = vmov 13  }
 0x311   :  { %v458_v56 = vadd.f32 %v457_v52, %v453_v55  ;;  %v5118_v52 = vmov 15  }
 0x313   :  { %v459_v57 = vadd.f32 %v458_v56, %v3901_v31 }
 0x315   :  { %474 = vperm.xlu0 %3492, %v459_v57   ;;  %465 = vperm.xlu1 %3491, %v459_v57  }
 0x319   :  { %3495 = vset.pattern.permute.xlu0 %v5150_v5  ;;  %3493 = vset.pattern.permute.xlu1 %v5094_v0 }
 0x31a   :  { %501 = vperm.xlu0 %3495, %v459_v57   ;;  %483 = vperm.xlu1 %3493, %v459_v57  }
 0x31e   :  { %3498 = vset.pattern.permute.xlu0 %v5148_v8  ;;  %3494 = vset.pattern.permute.xlu1 %v5146_v3 }
 0x31f   :  { %531 = vperm.xlu0 %3498, %v459_v57   ;;  %492 = vperm.xlu1 %3494, %v459_v57  }
 0x323   :  { %3496 = vset.pattern.permute.xlu1 %v5142_v6  ;;  %3501 = vset.pattern.permute.xlu0 %v5094_v0 }
 0x324   :  { %511 = vperm.xlu1 %3496, %v459_v57  }
 0x328   :  { %3497 = vset.pattern.permute.xlu1 %v5140_v7 }
 0x329   :  { %521 = vperm.xlu1 %3497, %v459_v57  }
 0x32d   :  { %3499 = vset.pattern.permute.xlu1 %v5090_v1 }
 0x390   :  { %v466_v31 = vpop.permute.xlu1 %465  ;;  %v475_v58 = vpop.permute.xlu0 %474 }
 0x391   :  { %v481_v26 = vmul.f32 %v480_v2, %v475_v58  ;;  %v472_v32 = vmul.f32 %v471_v14, %v466_v31  ;;  %v3374_v2 = vld [vmem:[%s5085_s1 + $0xf0] sm:$0xff] }
 0x392   :  { %v561_v14 = vrot.slane %v3374_v2, %v3820_v15 }
 0x395   :  { %v484_v59 = vpop.permute.xlu1 %483  ;;  %v502_v60 = vpop.permute.xlu0 %501 }
 0x396   :  { %v508_v27 = vmul.f32 %v507_v9, %v502_v60  ;;  %v490_v53 = vmul.f32 %v489_v19, %v484_v59  ;;  %v597_v9 = vrot.slane %v3374_v2, %v3824_v17  ;;  %v3375_v19 = vld [vmem:[%s5085_s1 + $0xf8] sm:$0xff] }
 0x398   :  { %v509_v36 = vadd.f32 %v508_v27, %v472_v32  ;;  %v647_v27 = vrot.slane %v3375_v19, %v3822_v16  ;;  %v687_v32 = vrot.slane %v3375_v19, %v3826_v18 }
 0x39a   :  { %v493_v61 = vpop.permute.xlu1 %492  ;;  %v532_v13 = vpop.permute.xlu0 %531 }
 0x39b   :  { %v538_v28 = vmul.f32 %v537_v10, %v532_v13  ;;  %v499_v29 = vmul.f32 %v498_v11, %v493_v61  ;;  %v607_v10 = vrot.slane %v3374_v2, %v3826_v18  ;;  %v570_v11 = vrot.slane %v3374_v2, %v3822_v16 }
 0x39c   :  { %v627_v13 = vrot.slane %v3374_v2, %v3837_v24 }
 0x39d   :  { %v539_v37 = vadd.f32 %v538_v28, %v499_v29  ;;  %v657_v28 = vrot.slane %v3375_v19, %v3833_v22 }
 0x39f   :  { %v512_v12 = vpop.permute.xlu1 %511 }
 0x3a0   :  { %v518_v21 = vmul.f32 %v517_v63, %v512_v12  ;;  %v617_v12 = vrot.slane %v3374_v2, %v3828_v20 }
 0x3a2   :  { %v519_v33 = vadd.f32 %v518_v21, %v481_v26  ;;  %v588_v26 = vrot.slane %v3374_v2, %v3835_v23 }
 0x3a4   :  { %v522_v30 = vpop.permute.xlu1 %521  ;;  %v540_v39 = vadd.f32 %v519_v33, %v509_v36 }
 0x3a5   :  { %v528_v34 = vmul.f32 %v527_v25, %v522_v30  ;;  %v579_v25 = vrot.slane %v3374_v2, %v3833_v22 }
 0x3a7   :  { %v529_v38 = vadd.f32 %v528_v34, %v490_v53 }
 0x3a9   :  { %v541_v41 = vadd.f32 %v539_v37, %v529_v38  ;;  %v637_v37 = vrot.slane %v3375_v19, %v3820_v15  ;;  %v667_v38 = vrot.slane %v3375_v19, %v3835_v23 }
 0x3ab   :  { %v542_v42 = vadd.f32 %v541_v41, %v540_v39  ;;  %v677_v39 = vrot.slane %v3375_v19, %v3824_v17 }
 0x3ad   :  { %v3974_v43 = vadd.f32 %v546_v40, %v542_v42 }
 0x3af   :  { %v548_v44 = vmax.f32 %v3974_v43, 0.0 }
 0x3b1   :  { %573 = vperm.xlu0 %3501, %v548_v44   ;;  %555 = vperm.xlu1 %3499, %v548_v44  }
 0x3b5   :  { %3504 = vset.pattern.permute.xlu0 %v5142_v6  ;;  %3500 = vset.pattern.permute.xlu1 %v5088_v4 }
 0x3b6   :  { %601 = vperm.xlu0 %3504, %v548_v44   ;;  %564 = vperm.xlu1 %3500, %v548_v44  }
 0x3ba   :  { %3507 = vset.pattern.permute.xlu0 %v5136_v45  ;;  %3502 = vset.pattern.permute.xlu1 %v5146_v3 }
 0x3bb   :  { %631 = vperm.xlu0 %3507, %v548_v44   ;;  %582 = vperm.xlu1 %3502, %v548_v44  }
 0x3bf   :  { %3510 = vset.pattern.permute.xlu0 %v5128_v46  ;;  %3503 = vset.pattern.permute.xlu1 %v5150_v5 }
 0x3c0   :  { %661 = vperm.xlu0 %3510, %v548_v44   ;;  %591 = vperm.xlu1 %3503, %v548_v44  }
 0x3c4   :  { %3513 = vset.pattern.permute.xlu0 %v5092_v47  ;;  %3505 = vset.pattern.permute.xlu1 %v5140_v7 }
 0x3c5   :  { %691 = vperm.xlu0 %3513, %v548_v44   ;;  %611 = vperm.xlu1 %3505, %v548_v44  }
 0x3c9   :  { %3506 = vset.pattern.permute.xlu1 %v5148_v8  ;;  %3516 = vset.pattern.permute.xlu0 %v5088_v4 }
 0x3ca   :  { %621 = vperm.xlu1 %3506, %v548_v44  }
 0x3ce   :  { %3508 = vset.pattern.permute.xlu1 %v5132_v48 }
 0x3cf   :  { %641 = vperm.xlu1 %3508, %v548_v44  }
 0x3d3   :  { %3509 = vset.pattern.permute.xlu1 %v5144_v49 }
 0x3d4   :  { %651 = vperm.xlu1 %3509, %v548_v44  }
 0x3d8   :  { %3511 = vset.pattern.permute.xlu1 %v5124_v50 }
 0x3d9   :  { %671 = vperm.xlu1 %3511, %v548_v44  }
 0x3dd   :  { %3512 = vset.pattern.permute.xlu1 %v5096_v51 }
 0x3de   :  { %681 = vperm.xlu1 %3512, %v548_v44  }
 0x3e2   :  { %3514 = vset.pattern.permute.xlu1 %v5118_v52 }
 0x3e3   :  { %701 = vperm.xlu1 %3514, %v548_v44  }
 0x3e7   :  { %3515 = vset.pattern.permute.xlu1 %v5090_v1 }
 0x42c   :  { %v556_v54 = vpop.permute.xlu1 %555  ;;  %v574_v58 = vpop.permute.xlu0 %573 }
 0x42d   :  { %v562_v36 = vmul.f32 %v561_v14, %v556_v54  ;;  %v580_v40 = vmul.f32 %v579_v25, %v574_v58 }
 0x431   :  { %v565_v55 = vpop.permute.xlu1 %564  ;;  %v602_v60 = vpop.permute.xlu0 %601 }
 0x432   :  { %v608_v53 = vmul.f32 %v607_v10, %v602_v60  ;;  %v571_v33 = vmul.f32 %v570_v11, %v565_v55  ;;  %v707_v60 = vrot.slane %v3375_v19, %v3837_v24 }
 0x434   :  { %v609_v55 = vadd.f32 %v608_v53, %v571_v33 }
 0x436   :  { %v583_v56 = vpop.permute.xlu1 %582  ;;  %v632_v63 = vpop.permute.xlu0 %631 }
 0x437   :  { %v589_v41 = vmul.f32 %v588_v26, %v583_v56 }
 0x43b   :  { %v592_v57 = vpop.permute.xlu1 %591  ;;  %v662_v29 = vpop.permute.xlu0 %661 }
 0x43c   :  { %v598_v30 = vmul.f32 %v597_v9, %v592_v57  ;;  %v697_v57 = vrot.slane %v3375_v19, %v3828_v20  ;;  %v638_v9 = vmul.f32 %v637_v37, %v632_v63  ;;  %v668_v11 = vmul.f32 %v667_v38, %v662_v29  ;;  %v3376_v19 = vld [vmem:[%s5085_s1 + $0x110] sm:$0xff] }
 0x43d   :  { %v716_v63 = vrot.slane %v3376_v19, %v3820_v15 }
 0x43e   :  { %v599_v4 = vadd.f32 %v598_v30, %v562_v36 }
 0x440   :  { %v612_v31 = vpop.permute.xlu1 %611  ;;  %v692_v10 = vpop.permute.xlu0 %691  ;;  %v639_v58 = vadd.f32 %v638_v9, %v599_v4  ;;  %v5174_v4 = vmov 1  }
 0x441   :  { %v618_v34 = vmul.f32 %v617_v12, %v612_v31 }
 0x443   :  { %v619_v31 = vadd.f32 %v618_v34, %v580_v40 }
 0x445   :  { %v622_v59 = vpop.permute.xlu1 %621 }
 0x446   :  { %v628_v35 = vmul.f32 %v627_v13, %v622_v59 }
 0x448   :  { %v629_v59 = vadd.f32 %v628_v35, %v589_v41 }
 0x44a   :  { %v642_v61 = vpop.permute.xlu1 %641  ;;  %v669_v25 = vadd.f32 %v668_v11, %v629_v59 }
 0x44b   :  { %v648_v42 = vmul.f32 %v647_v27, %v642_v61  ;;  %v698_v61 = vmul.f32 %v697_v57, %v692_v10  ;;  %v3377_v57 = vld [vmem:[%s5085_s1 + $0x118] sm:$0xff] }
 0x44c   :  { %v787_v59 = vrot.slane %v3377_v57, %v3828_v20  ;;  %v797_v9 = vrot.slane %v3377_v57, %v3837_v24  ;;  %v758_v10 = vrot.slane %v3377_v57, %v3835_v23 }
 0x44d   :  { %v649_v12 = vadd.f32 %v648_v42, %v609_v55  ;;  %v3378_v55 = vld [vmem:[%s5085_s1 + $0x120] sm:$0xff] }
 0x44e   :  { %v837_v19 = vrot.slane %v3378_v55, %v3835_v23 }
 0x44f   :  { %v652_v62 = vpop.permute.xlu1 %651 }
 0x450   :  { %v658_v44 = vmul.f32 %v657_v28, %v652_v62 }
 0x452   :  { %v659_v13 = vadd.f32 %v658_v44, %v619_v31  ;;  %v777_v31 = vrot.slane %v3377_v57, %v3826_v18 }
 0x454   :  { %v672_v21 = vpop.permute.xlu1 %671  ;;  %v699_v27 = vadd.f32 %v698_v61, %v659_v13  ;;  %v749_v13 = vrot.slane %v3377_v57, %v3833_v22 }
 0x455   :  { %v678_v14 = vmul.f32 %v677_v39, %v672_v21 }
 0x457   :  { %v679_v28 = vadd.f32 %v678_v14, %v639_v58  ;;  %v807_v58 = vrot.slane %v3378_v55, %v3820_v15 }
 0x459   :  { %v682_v2 = vpop.permute.xlu1 %681 }
 0x45a   :  { %v688_v54 = vmul.f32 %v687_v32, %v682_v2 }
 0x45c   :  { %v689_v62 = vadd.f32 %v688_v54, %v649_v12  ;;  %v731_v54 = vrot.slane %v3377_v57, %v3820_v15  ;;  %v740_v12 = vrot.slane %v3377_v57, %v3822_v16 }
 0x45e   :  { %v702_v56 = vpop.permute.xlu1 %701  ;;  %v710_v32 = vadd.f32 %v689_v62, %v679_v28  ;;  %v827_v62 = vrot.slane %v3378_v55, %v3833_v22 }
 0x45f   :  { %v708_v26 = vmul.f32 %v707_v60, %v702_v56  ;;  %v767_v60 = vrot.slane %v3377_v57, %v3824_v17  ;;  %v817_v56 = vrot.slane %v3378_v55, %v3822_v16 }
 0x461   :  { %v709_v30 = vadd.f32 %v708_v26, %v669_v25 }
 0x463   :  { %v711_v29 = vadd.f32 %v709_v30, %v699_v27  ;;  %v847_v27 = vrot.slane %v3378_v55, %v3824_v17 }
 0x465   :  { %v712_v53 = vadd.f32 %v711_v29, %v710_v32 }
 0x467   :  { %v717_v33 = vadd.f32 %v716_v63, %v712_v53  ;;  %v867_v63 = vrot.slane %v3378_v55, %v3828_v20 }
 0x469   :  { %v718_v21 = vmax.f32 %v717_v33, 0.0 }
 0x46b   :  { %734 = vperm.xlu0 %3516, %v718_v21   ;;  %725 = vperm.xlu1 %3515, %v718_v21  }
 0x46f   :  { %3519 = vset.pattern.permute.xlu0 %v5150_v5  ;;  %3517 = vset.pattern.permute.xlu1 %v5094_v0 }
 0x470   :  { %761 = vperm.xlu0 %3519, %v718_v21   ;;  %743 = vperm.xlu1 %3517, %v718_v21  }
 0x474   :  { %3522 = vset.pattern.permute.xlu0 %v5148_v8  ;;  %3518 = vset.pattern.permute.xlu1 %v5146_v3 }
 0x475   :  { %791 = vperm.xlu0 %3522, %v718_v21   ;;  %752 = vperm.xlu1 %3518, %v718_v21  }
 0x479   :  { %3525 = vset.pattern.permute.xlu0 %v5144_v49  ;;  %3520 = vset.pattern.permute.xlu1 %v5142_v6 }
 0x47a   :  { %821 = vperm.xlu0 %3525, %v718_v21   ;;  %771 = vperm.xlu1 %3520, %v718_v21  }
 0x47e   :  { %3528 = vset.pattern.permute.xlu0 %v5096_v51  ;;  %3521 = vset.pattern.permute.xlu1 %v5140_v7 }
 0x47f   :  { %851 = vperm.xlu0 %3528, %v718_v21   ;;  %781 = vperm.xlu1 %3521, %v718_v21  }
 0x483   :  { %3523 = vset.pattern.permute.xlu1 %v5136_v45  ;;  %3531 = vset.pattern.permute.xlu0 %v5090_v1 }
 0x484   :  { %801 = vperm.xlu1 %3523, %v718_v21  }
 0x488   :  { %3524 = vset.pattern.permute.xlu1 %v5132_v48 }
 0x489   :  { %811 = vperm.xlu1 %3524, %v718_v21  }
 0x48d   :  { %3526 = vset.pattern.permute.xlu1 %v5128_v46 }
 0x48e   :  { %831 = vperm.xlu1 %3526, %v718_v21  }
 0x492   :  { %3527 = vset.pattern.permute.xlu1 %v5124_v50 }
 0x493   :  { %841 = vperm.xlu1 %3527, %v718_v21  }
 0x497   :  { %3529 = vset.pattern.permute.xlu1 %v5092_v47 }
 0x498   :  { %861 = vperm.xlu1 %3529, %v718_v21  }
 0x49c   :  { %3530 = vset.pattern.permute.xlu1 %v5118_v52 }
 0x49d   :  { %871 = vperm.xlu1 %3530, %v718_v21  }
 0x4a1   :  { %3532 = vset.pattern.permute.xlu1 %v5174_v4 }
 0x4e6   :  { %v726_v34 = vpop.permute.xlu1 %725  ;;  %v735_v39 = vpop.permute.xlu0 %734 }
 0x4e7   :  { %v732_v28 = vmul.f32 %v731_v54, %v726_v34  ;;  %v741_v29 = vmul.f32 %v740_v12, %v735_v39 }
 0x4eb   :  { %v744_v35 = vpop.permute.xlu1 %743  ;;  %v762_v41 = vpop.permute.xlu0 %761 }
 0x4ec   :  { %v768_v61 = vmul.f32 %v767_v60, %v762_v41  ;;  %v750_v53 = vmul.f32 %v749_v13, %v744_v35  ;;  %v857_v41 = vrot.slane %v3378_v55, %v3826_v18 }
 0x4ee   :  { %v769_v1 = vadd.f32 %v768_v61, %v732_v28 }
 0x4f0   :  { %v753_v36 = vpop.permute.xlu1 %752  ;;  %v792_v44 = vpop.permute.xlu0 %791 }
 0x4f1   :  { %v798_v30 = vmul.f32 %v797_v9, %v792_v44  ;;  %v759_v32 = vmul.f32 %v758_v10, %v753_v36 }
 0x4f3   :  { %v799_v34 = vadd.f32 %v798_v30, %v759_v32 }
 0x4f5   :  { %v772_v37 = vpop.permute.xlu1 %771  ;;  %v822_v14 = vpop.permute.xlu0 %821 }
 0x4f6   :  { %v778_v25 = vmul.f32 %v777_v31, %v772_v37  ;;  %v877_v37 = vrot.slane %v3378_v55, %v3837_v24  ;;  %v828_v44 = vmul.f32 %v827_v62, %v822_v14  ;;  %v3379_v55 = vld [vmem:[%s5085_s1 + $0x138] sm:$0xff] }
 0x4fa   :  { %v782_v38 = vpop.permute.xlu1 %781  ;;  %v852_v60 = vpop.permute.xlu0 %851 }
 0x4fb   :  { %v788_v26 = vmul.f32 %v787_v59, %v782_v38  ;;  %v779_v38 = vadd.f32 %v778_v25, %v741_v29  ;;  %v858_v39 = vmul.f32 %v857_v41, %v852_v60  ;;  %v5176_v25 = vmov 0   ;;  %v3381_v60 = vld [vmem:[%s5085_s1 + $0x148] sm:$0xff] }
 0x4fd   :  { %v789_v31 = vadd.f32 %v788_v26, %v750_v53 }
 0x4ff   :  { %v802_v40 = vpop.permute.xlu1 %801  ;;  %v829_v10 = vadd.f32 %v828_v44, %v789_v31 }
 0x500   :  { %v808_v33 = vmul.f32 %v807_v58, %v802_v40 }
 0x502   :  { %v809_v36 = vadd.f32 %v808_v33, %v769_v1 }
 0x504   :  { %v812_v42 = vpop.permute.xlu1 %811 }
 0x505   :  { %v818_v21 = vmul.f32 %v817_v56, %v812_v42 }
 0x507   :  { %v819_v54 = vadd.f32 %v818_v21, %v779_v38  ;;  %v3380_v21 = vld [vmem:[%s5085_s1 + $0x140] sm:$0xff] }
 0x508   :  { %v948_v41 = vrot.slane %v3380_v21, %v3826_v18  ;;  %v911_v38 = vrot.slane %v3380_v21, %v3822_v16  ;;  %v968_v31 = vrot.slane %v3380_v21, %v3837_v24 }
 0x509   :  { %v832_v2 = vpop.permute.xlu1 %831  ;;  %v859_v13 = vadd.f32 %v858_v39, %v819_v54  ;;  %v1008_v39 = vrot.slane %v3381_v60, %v3835_v23 }
 0x50a   :  { %v838_v59 = vmul.f32 %v837_v19, %v832_v2 }
 0x50c   :  { %v839_v40 = vadd.f32 %v838_v59, %v799_v34  ;;  %v902_v59 = vrot.slane %v3380_v21, %v3820_v15  ;;  %v929_v34 = vrot.slane %v3380_v21, %v3835_v23 }
 0x50e   :  { %v842_v11 = vpop.permute.xlu1 %841 }
 0x50f   :  { %v848_v47 = vmul.f32 %v847_v27, %v842_v11  ;;  %v886_v11 = vrot.slane %v3379_v55, %v3820_v15 }
 0x511   :  { %v849_v42 = vadd.f32 %v848_v47, %v809_v36  ;;  %v958_v36 = vrot.slane %v3380_v21, %v3828_v20 }
 0x513   :  { %v862_v57 = vpop.permute.xlu1 %861  ;;  %v880_v2 = vadd.f32 %v859_v13, %v849_v42  ;;  %v988_v42 = vrot.slane %v3381_v60, %v3822_v16  ;;  %v998_v13 = vrot.slane %v3381_v60, %v3833_v22 }
 0x514   :  { %v868_v9 = vmul.f32 %v867_v63, %v862_v57 }
 0x516   :  { %v869_v58 = vadd.f32 %v868_v9, %v829_v10  ;;  %v978_v9 = vrot.slane %v3381_v60, %v3820_v15 }
 0x518   :  { %v872_v35 = vpop.permute.xlu1 %871 }
 0x519   :  { %v878_v12 = vmul.f32 %v877_v37, %v872_v35  ;;  %v938_v37 = vrot.slane %v3380_v21, %v3824_v17  ;;  %v920_v35 = vrot.slane %v3380_v21, %v3833_v22 }
 0x51b   :  { %v879_v56 = vadd.f32 %v878_v12, %v839_v40 }
 0x51d   :  { %v881_v14 = vadd.f32 %v879_v56, %v869_v58  ;;  %v1028_v58 = vrot.slane %v3381_v60, %v3826_v18 }
 0x51f   :  { %v882_v1 = vadd.f32 %v881_v14, %v880_v2 }
 0x521   :  { %v887_v61 = vadd.f32 %v886_v11, %v882_v1  ;;  %v1018_v11 = vrot.slane %v3381_v60, %v3824_v17 }
 0x523   :  { %v4062_v62 = vadd.f32 %v887_v61, %v3974_v43  ;;  %v5175_v43 = vmov 14  }
 0x525   :  { %v889_v47 = vmax.f32 %v4062_v62, 0.0 }
 0x527   :  { %905 = vperm.xlu1 %3532, %v889_v47   ;;  %896 = vperm.xlu0 %3531, %v889_v47  }
 0x52b   :  { %3533 = vset.pattern.permute.xlu1 %v5094_v0  ;;  %3534 = vset.pattern.permute.xlu0 %v5146_v3 }
 0x52c   :  { %914 = vperm.xlu1 %3533, %v889_v47   ;;  %923 = vperm.xlu0 %3534, %v889_v47  }
 0x530   :  { %3535 = vset.pattern.permute.xlu1 %v5150_v5  ;;  %3537 = vset.pattern.permute.xlu0 %v5140_v7 }
 0x531   :  { %932 = vperm.xlu1 %3535, %v889_v47   ;;  %952 = vperm.xlu0 %3537, %v889_v47  }
 0x535   :  { %3536 = vset.pattern.permute.xlu1 %v5142_v6  ;;  %3540 = vset.pattern.permute.xlu0 %v5132_v48 }
 0x536   :  { %942 = vperm.xlu1 %3536, %v889_v47   ;;  %982 = vperm.xlu0 %3540, %v889_v47  }
 0x53a   :  { %3538 = vset.pattern.permute.xlu1 %v5148_v8  ;;  %3543 = vset.pattern.permute.xlu0 %v5124_v50 }
 0x53b   :  { %962 = vperm.xlu1 %3538, %v889_v47   ;;  %1012 = vperm.xlu0 %3543, %v889_v47  }
 0x53f   :  { %3539 = vset.pattern.permute.xlu1 %v5136_v45  ;;  %3546 = vset.pattern.permute.xlu0 %v5118_v52 }
 0x540   :  { %972 = vperm.xlu1 %3539, %v889_v47   ;;  %1042 = vperm.xlu0 %3546, %v889_v47  }
 0x544   :  { %3541 = vset.pattern.permute.xlu1 %v5144_v49  ;;  %3549 = vset.pattern.permute.xlu0 %v5094_v0 }
 0x545   :  { %992 = vperm.xlu1 %3541, %v889_v47  }
 0x549   :  { %3542 = vset.pattern.permute.xlu1 %v5128_v46 }
 0x54a   :  { %1002 = vperm.xlu1 %3542, %v889_v47  }
 0x54e   :  { %3544 = vset.pattern.permute.xlu1 %v5096_v51 }
 0x54f   :  { %1022 = vperm.xlu1 %3544, %v889_v47  }
 0x553   :  { %3545 = vset.pattern.permute.xlu1 %v5175_v43 }
 0x554   :  { %1032 = vperm.xlu1 %3545, %v889_v47  }
 0x558   :  { %3547 = vset.pattern.permute.xlu1 %v5176_v25 }
 0x5a2   :  { %v906_v26 = vpop.permute.xlu1 %905  ;;  %v897_v28 = vpop.permute.xlu0 %896 }
 0x5a3   :  { %v912_v12 = vmul.f32 %v911_v38, %v906_v26  ;;  %v903_v56 = vmul.f32 %v902_v59, %v897_v28  ;;  %v1038_v26 = vrot.slane %v3381_v60, %v3828_v20 }
 0x5a7   :  { %v915_v19 = vpop.permute.xlu1 %914  ;;  %v924_v32 = vpop.permute.xlu0 %923 }
 0x5a8   :  { %v930_v2 = vmul.f32 %v929_v34, %v924_v32  ;;  %v921_v21 = vmul.f32 %v920_v35, %v915_v19 }
 0x5ac   :  { %v933_v27 = vpop.permute.xlu1 %932  ;;  %v953_v29 = vpop.permute.xlu0 %952 }
 0x5ad   :  { %v939_v40 = vmul.f32 %v938_v37, %v933_v27  ;;  %v959_v14 = vmul.f32 %v958_v36, %v953_v29 }
 0x5af   :  { %v940_v27 = vadd.f32 %v939_v40, %v903_v56  ;;  %v960_v28 = vadd.f32 %v959_v14, %v921_v21 }
 0x5b1   :  { %v943_v30 = vpop.permute.xlu1 %942  ;;  %v983_v57 = vpop.permute.xlu0 %982 }
 0x5b2   :  { %v949_v54 = vmul.f32 %v948_v41, %v943_v30  ;;  %v1048_v41 = vrot.slane %v3381_v60, %v3837_v24 }
 0x5b4   :  { %v950_v1 = vadd.f32 %v949_v54, %v912_v12 }
 0x5b6   :  { %v963_v63 = vpop.permute.xlu1 %962  ;;  %v1013_v10 = vpop.permute.xlu0 %1012 }
 0x5b7   :  { %v969_v55 = vmul.f32 %v968_v31, %v963_v63  ;;  %v989_v63 = vmul.f32 %v988_v42, %v983_v57  ;;  %v1019_v29 = vmul.f32 %v1018_v11, %v1013_v10 }
 0x5b9   :  { %v970_v37 = vadd.f32 %v969_v55, %v930_v2  ;;  %v990_v32 = vadd.f32 %v989_v63, %v950_v1 }
 0x5bb   :  { %v973_v53 = vpop.permute.xlu1 %972  ;;  %v1043_v0 = vpop.permute.xlu0 %1042 }
 0x5bc   :  { %v979_v61 = vmul.f32 %v978_v9, %v973_v53  ;;  %v1049_v53 = vmul.f32 %v1048_v41, %v1043_v0  ;;  %v3382_v9 = vld [vmem:[%s5085_s1 + $0x160] sm:$0xff] }
 0x5bd   :  { %v1057_v35 = vrot.slane %v3382_v9, %v3820_v15 }
 0x5be   :  { %v980_v59 = vadd.f32 %v979_v61, %v940_v27 }
 0x5c0   :  { %v993_v33 = vpop.permute.xlu1 %992  ;;  %v1020_v60 = vadd.f32 %v1019_v29, %v980_v59 }
 0x5c1   :  { %v999_v38 = vmul.f32 %v998_v13, %v993_v33 }
 0x5c5   :  { %v1003_v44 = vpop.permute.xlu1 %1002 }
 0x5c6   :  { %v1009_v47 = vmul.f32 %v1008_v39, %v1003_v44  ;;  %v1000_v44 = vadd.f32 %v999_v38, %v960_v28  ;;  %v3384_v38 = vld [vmem:[%s5085_s1 + $0x170] sm:$0xff] }
 0x5c7   :  { %v1158_v59 = vrot.slane %v3384_v38, %v3822_v16 }
 0x5c8   :  { %v1010_v34 = vadd.f32 %v1009_v47, %v970_v37 }
 0x5ca   :  { %v1023_v30 = vpop.permute.xlu1 %1022  ;;  %v1050_v57 = vadd.f32 %v1049_v53, %v1010_v34  ;;  %v1168_v34 = vrot.slane %v3384_v38, %v3833_v22  ;;  %v1198_v53 = vrot.slane %v3384_v38, %v3826_v18 }
 0x5cb   :  { %v1029_v31 = vmul.f32 %v1028_v58, %v1023_v30  ;;  %v3383_v30 = vld [vmem:[%s5085_s1 + $0x168] sm:$0xff] }
 0x5cc   :  { %v1108_v21 = vrot.slane %v3383_v30, %v3824_v17  ;;  %v1118_v27 = vrot.slane %v3383_v30, %v3826_v18  ;;  %v1081_v41 = vrot.slane %v3383_v30, %v3822_v16  ;;  %v1138_v63 = vrot.slane %v3383_v30, %v3837_v24 }
 0x5cd   :  { %v1030_v54 = vadd.f32 %v1029_v31, %v990_v32  ;;  %v1072_v37 = vrot.slane %v3383_v30, %v3820_v15  ;;  %v1090_v28 = vrot.slane %v3383_v30, %v3833_v22  ;;  %v1099_v32 = vrot.slane %v3383_v30, %v3835_v23 }
 0x5cf   :  { %v1033_v36 = vpop.permute.xlu1 %1032  ;;  %v1051_v33 = vadd.f32 %v1030_v54, %v1020_v60 }
 0x5d0   :  { %v1039_v19 = vmul.f32 %v1038_v26, %v1033_v36  ;;  %v1128_v26 = vrot.slane %v3383_v30, %v3828_v20 }
 0x5d2   :  { %v1040_v39 = vadd.f32 %v1039_v19, %v1000_v44 }
 0x5d4   :  { %v1052_v40 = vadd.f32 %v1050_v57, %v1040_v39  ;;  %v1148_v57 = vrot.slane %v3384_v38, %v3820_v15  ;;  %v1178_v39 = vrot.slane %v3384_v38, %v3835_v23 }
 0x5d6   :  { %v1053_v42 = vadd.f32 %v1052_v40, %v1051_v33  ;;  %v1188_v33 = vrot.slane %v3384_v38, %v3824_v17 }
 0x5d8   :  { %v1058_v12 = vadd.f32 %v1057_v35, %v1053_v42 }
 0x5da   :  { %v1059_v55 = vmax.f32 %v1058_v12, 0.0 }
 0x5dc   :  { %1084 = vperm.xlu0 %3549, %v1059_v55   ;;  %1066 = vperm.xlu1 %3547, %v1059_v55  }
 0x5e0   :  { %3552 = vset.pattern.permute.xlu0 %v5142_v6  ;;  %3548 = vset.pattern.permute.xlu1 %v5174_v4 }
 0x5e1   :  { %1112 = vperm.xlu0 %3552, %v1059_v55   ;;  %1075 = vperm.xlu1 %3548, %v1059_v55  }
 0x5e5   :  { %3555 = vset.pattern.permute.xlu0 %v5136_v45  ;;  %3550 = vset.pattern.permute.xlu1 %v5146_v3 }
 0x5e6   :  { %1142 = vperm.xlu0 %3555, %v1059_v55   ;;  %1093 = vperm.xlu1 %3550, %v1059_v55  }
 0x5ea   :  { %3558 = vset.pattern.permute.xlu0 %v5128_v46  ;;  %3551 = vset.pattern.permute.xlu1 %v5150_v5 }
 0x5eb   :  { %1172 = vperm.xlu0 %3558, %v1059_v55   ;;  %1102 = vperm.xlu1 %3551, %v1059_v55  }
 0x5ef   :  { %3561 = vset.pattern.permute.xlu0 %v5175_v43  ;;  %3553 = vset.pattern.permute.xlu1 %v5140_v7 }
 0x5f0   :  { %1202 = vperm.xlu0 %3561, %v1059_v55   ;;  %1122 = vperm.xlu1 %3553, %v1059_v55  }
 0x5f4   :  { %3554 = vset.pattern.permute.xlu1 %v5148_v8  ;;  %3564 = vset.pattern.permute.xlu0 %v5174_v4 }
 0x5f5   :  { %1132 = vperm.xlu1 %3554, %v1059_v55  }
 0x5f9   :  { %3556 = vset.pattern.permute.xlu1 %v5132_v48 }
 0x5fa   :  { %1152 = vperm.xlu1 %3556, %v1059_v55  }
 0x5fe   :  { %3557 = vset.pattern.permute.xlu1 %v5144_v49 }
 0x5ff   :  { %1162 = vperm.xlu1 %3557, %v1059_v55  }
 0x603   :  { %3559 = vset.pattern.permute.xlu1 %v5124_v50 }
 0x604   :  { %1182 = vperm.xlu1 %3559, %v1059_v55  }
 0x608   :  { %3560 = vset.pattern.permute.xlu1 %v5096_v51 }
 0x609   :  { %1192 = vperm.xlu1 %3560, %v1059_v55  }
 0x60d   :  { %3562 = vset.pattern.permute.xlu1 %v5118_v52 }
 0x60e   :  { %1212 = vperm.xlu1 %3562, %v1059_v55  }
 0x612   :  { %3563 = vset.pattern.permute.xlu1 %v5176_v25 }
 0x657   :  { %v1067_v0 = vpop.permute.xlu1 %1066  ;;  %v1085_v2 = vpop.permute.xlu0 %1084 }
 0x658   :  { %v1073_v60 = vmul.f32 %v1072_v37, %v1067_v0  ;;  %v1091_v35 = vmul.f32 %v1090_v28, %v1085_v2 }
 0x65c   :  { %v1076_v10 = vpop.permute.xlu1 %1075  ;;  %v1113_v14 = vpop.permute.xlu0 %1112 }
 0x65d   :  { %v1119_v44 = vmul.f32 %v1118_v27, %v1113_v14  ;;  %v1082_v54 = vmul.f32 %v1081_v41, %v1076_v10  ;;  %v1218_v14 = vrot.slane %v3384_v38, %v3837_v24 }
 0x65f   :  { %v1120_v10 = vadd.f32 %v1119_v44, %v1082_v54 }
 0x661   :  { %v1094_v13 = vpop.permute.xlu1 %1093  ;;  %v1143_v47 = vpop.permute.xlu0 %1142 }
 0x662   :  { %v1100_v40 = vmul.f32 %v1099_v32, %v1094_v13 }
 0x666   :  { %v1103_v58 = vpop.permute.xlu1 %1102  ;;  %v1173_v29 = vpop.permute.xlu0 %1172 }
 0x667   :  { %v1109_v36 = vmul.f32 %v1108_v21, %v1103_v58  ;;  %v1208_v58 = vrot.slane %v3384_v38, %v3828_v20  ;;  %v1149_v21 = vmul.f32 %v1148_v57, %v1143_v47  ;;  %v1179_v41 = vmul.f32 %v1178_v39, %v1173_v29  ;;  %v3385_v38 = vld [vmem:[%s5085_s1 + $0x188] sm:$0xff] }
 0x668   :  { %v1227_v47 = vrot.slane %v3385_v38, %v3820_v15 }
 0x669   :  { %v1110_v30 = vadd.f32 %v1109_v36, %v1073_v60 }
 0x66b   :  { %v1123_v56 = vpop.permute.xlu1 %1122  ;;  %v1203_v27 = vpop.permute.xlu0 %1202  ;;  %v1150_v2 = vadd.f32 %v1149_v21, %v1110_v30  ;;  %v3386_v30 = vld [vmem:[%s5085_s1 + $0x190] sm:$0xff] }
 0x66c   :  { %v1129_v19 = vmul.f32 %v1128_v26, %v1123_v56  ;;  %v1269_v21 = vrot.slane %v3386_v30, %v3835_v23 }
 0x66e   :  { %v1130_v56 = vadd.f32 %v1129_v19, %v1091_v35  ;;  %v5177_v19 = vmov 2  }
 0x670   :  { %v1133_v11 = vpop.permute.xlu1 %1132 }
 0x671   :  { %v1139_v9 = vmul.f32 %v1138_v63, %v1133_v11 }
 0x673   :  { %v1140_v11 = vadd.f32 %v1139_v9, %v1100_v40 }
 0x675   :  { %v1153_v1 = vpop.permute.xlu1 %1152  ;;  %v1180_v28 = vadd.f32 %v1179_v41, %v1140_v11  ;;  %v1242_v11 = vrot.slane %v3386_v30, %v3820_v15  ;;  %v1251_v41 = vrot.slane %v3386_v30, %v3822_v16 }
 0x676   :  { %v1159_v42 = vmul.f32 %v1158_v59, %v1153_v1  ;;  %v1209_v1 = vmul.f32 %v1208_v58, %v1203_v27  ;;  %v1278_v58 = vrot.slane %v3386_v30, %v3824_v17 }
 0x678   :  { %v1160_v26 = vadd.f32 %v1159_v42, %v1120_v10  ;;  %v1288_v10 = vrot.slane %v3386_v30, %v3826_v18 }
 0x67a   :  { %v1163_v61 = vpop.permute.xlu1 %1162 }
 0x67b   :  { %v1169_v12 = vmul.f32 %v1168_v34, %v1163_v61 }
 0x67d   :  { %v1170_v63 = vadd.f32 %v1169_v12, %v1130_v56  ;;  %v1298_v56 = vrot.slane %v3386_v30, %v3828_v20 }
 0x67f   :  { %v1183_v31 = vpop.permute.xlu1 %1182  ;;  %v1210_v59 = vadd.f32 %v1209_v1, %v1170_v63 }
 0x680   :  { %v1189_v37 = vmul.f32 %v1188_v33, %v1183_v31 }
 0x682   :  { %v1190_v34 = vadd.f32 %v1189_v37, %v1150_v2 }
 0x684   :  { %v1193_v55 = vpop.permute.xlu1 %1192 }
 0x685   :  { %v1199_v0 = vmul.f32 %v1198_v53, %v1193_v55 }
 0x687   :  { %v1200_v61 = vadd.f32 %v1199_v0, %v1160_v26  ;;  %v1308_v0 = vrot.slane %v3386_v30, %v3837_v24  ;;  %v1260_v26 = vrot.slane %v3386_v30, %v3833_v22 }
 0x689   :  { %v1213_v13 = vpop.permute.xlu1 %1212  ;;  %v1221_v53 = vadd.f32 %v1200_v61, %v1190_v34 }
 0x68a   :  { %v1219_v32 = vmul.f32 %v1218_v14, %v1213_v13  ;;  %v3387_v14 = vld [vmem:[%s5085_s1 + $0x198] sm:$0xff] }
 0x68b   :  { %v1318_v37 = vrot.slane %v3387_v14, %v3820_v15  ;;  %v1328_v2 = vrot.slane %v3387_v14, %v3822_v16  ;;  %v1338_v1 = vrot.slane %v3387_v14, %v3833_v22  ;;  %v1358_v38 = vrot.slane %v3387_v14, %v3824_v17 }
 0x68c   :  { %v1220_v36 = vadd.f32 %v1219_v32, %v1180_v28  ;;  %v1348_v32 = vrot.slane %v3387_v14, %v3835_v23 }
 0x68e   :  { %v1222_v29 = vadd.f32 %v1220_v36, %v1210_v59 }
 0x690   :  { %v1223_v44 = vadd.f32 %v1222_v29, %v1221_v53  ;;  %v1378_v53 = vrot.slane %v3387_v14, %v3828_v20 }
 0x692   :  { %v1228_v54 = vadd.f32 %v1227_v47, %v1223_v44 }
 0x694   :  { %v1229_v31 = vadd.f32 %v1228_v54, %v4062_v62 }
 0x696   :  { %1245 = vperm.xlu0 %3564, %v1229_v31   ;;  %1236 = vperm.xlu1 %3563, %v1229_v31  }
 0x69a   :  { %3567 = vset.pattern.permute.xlu0 %v5150_v5  ;;  %3565 = vset.pattern.permute.xlu1 %v5177_v19 }
 0x69b   :  { %1272 = vperm.xlu0 %3567, %v1229_v31   ;;  %1254 = vperm.xlu1 %3565, %v1229_v31  }
 0x69f   :  { %3570 = vset.pattern.permute.xlu0 %v5148_v8  ;;  %3566 = vset.pattern.permute.xlu1 %v5146_v3 }
 0x6a0   :  { %1302 = vperm.xlu0 %3570, %v1229_v31   ;;  %1263 = vperm.xlu1 %3566, %v1229_v31  }
 0x6a4   :  { %3573 = vset.pattern.permute.xlu0 %v5144_v49  ;;  %3568 = vset.pattern.permute.xlu1 %v5142_v6 }
 0x6a5   :  { %1332 = vperm.xlu0 %3573, %v1229_v31   ;;  %1282 = vperm.xlu1 %3568, %v1229_v31  }
 0x6a9   :  { %3576 = vset.pattern.permute.xlu0 %v5096_v51  ;;  %3569 = vset.pattern.permute.xlu1 %v5140_v7 }
 0x6aa   :  { %1362 = vperm.xlu0 %3576, %v1229_v31   ;;  %1292 = vperm.xlu1 %3569, %v1229_v31  }
 0x6ae   :  { %3571 = vset.pattern.permute.xlu1 %v5136_v45  ;;  %3579 = vset.pattern.permute.xlu0 %v5176_v25 }
 0x6af   :  { %1312 = vperm.xlu1 %3571, %v1229_v31  }
 0x6b3   :  { %3572 = vset.pattern.permute.xlu1 %v5132_v48 }
 0x6b4   :  { %1322 = vperm.xlu1 %3572, %v1229_v31  }
 0x6b8   :  { %3574 = vset.pattern.permute.xlu1 %v5128_v46 }
 0x6b9   :  { %1342 = vperm.xlu1 %3574, %v1229_v31  }
 0x6bd   :  { %3575 = vset.pattern.permute.xlu1 %v5124_v50 }
 0x6be   :  { %1352 = vperm.xlu1 %3575, %v1229_v31  }
 0x6c2   :  { %3577 = vset.pattern.permute.xlu1 %v5175_v43 }
 0x6c3   :  { %1372 = vperm.xlu1 %3577, %v1229_v31  }
 0x6c7   :  { %3578 = vset.pattern.permute.xlu1 %v5118_v52 }
 0x6c8   :  { %1382 = vperm.xlu1 %3578, %v1229_v31  }
 0x6cc   :  { %3580 = vset.pattern.permute.xlu1 %v5174_v4 }
 0x711   :  { %v1237_v62 = vpop.permute.xlu1 %1236  ;;  %v1246_v33 = vpop.permute.xlu0 %1245 }
 0x712   :  { %v1243_v59 = vmul.f32 %v1242_v11, %v1237_v62  ;;  %v1252_v47 = vmul.f32 %v1251_v41, %v1246_v33 }
 0x716   :  { %v1255_v9 = vpop.permute.xlu1 %1254  ;;  %v1273_v40 = vpop.permute.xlu0 %1272 }
 0x717   :  { %v1279_v13 = vmul.f32 %v1278_v58, %v1273_v40  ;;  %v1261_v29 = vmul.f32 %v1260_v26, %v1255_v9  ;;  %v1368_v40 = vrot.slane %v3387_v14, %v3826_v18 }
 0x719   :  { %v1280_v30 = vadd.f32 %v1279_v13, %v1243_v59  ;;  %v5102_v59 = vmov 27  }
 0x71b   :  { %v1264_v60 = vpop.permute.xlu1 %1263  ;;  %v1303_v12 = vpop.permute.xlu0 %1302 }
 0x71c   :  { %v1309_v34 = vmul.f32 %v1308_v0, %v1303_v12  ;;  %v1270_v36 = vmul.f32 %v1269_v21, %v1264_v60 }
 0x71e   :  { %v1310_v62 = vadd.f32 %v1309_v34, %v1270_v36  ;;  %v5138_v34 = vmov 16   ;;  %v5098_v36 = vmov 30  }
 0x720   :  { %v1283_v57 = vpop.permute.xlu1 %1282  ;;  %v1333_v63 = vpop.permute.xlu0 %1332 }
 0x721   :  { %v1289_v61 = vmul.f32 %v1288_v10, %v1283_v57  ;;  %v1388_v57 = vrot.slane %v3387_v14, %v3837_v24  ;;  %v1339_v12 = vmul.f32 %v1338_v1, %v1333_v63  ;;  %v3388_v14 = vld [vmem:[%s5085_s1 + $0x1b0] sm:$0xff] }
 0x725   :  { %v1293_v39 = vpop.permute.xlu1 %1292  ;;  %v1363_v58 = vpop.permute.xlu0 %1362 }
 0x726   :  { %v1299_v28 = vmul.f32 %v1298_v56, %v1293_v39  ;;  %v1290_v39 = vadd.f32 %v1289_v61, %v1252_v47  ;;  %v1369_v33 = vmul.f32 %v1368_v40, %v1363_v58  ;;  %v5134_v47 = vmov 19  }
 0x727   :  { %v5122_v40 = vmov 28  }
 0x728   :  { %v1300_v10 = vadd.f32 %v1299_v28, %v1261_v29  ;;  %v5110_v28 = vmov 21   ;;  %v5112_v29 = vmov 20  }
 0x72a   :  { %v1313_v35 = vpop.permute.xlu1 %1312  ;;  %v1340_v21 = vadd.f32 %v1339_v12, %v1300_v10 }
 0x72b   :  { %v1319_v44 = vmul.f32 %v1318_v37, %v1313_v35 }
 0x72d   :  { %v1320_v60 = vadd.f32 %v1319_v44, %v1280_v30  ;;  %v5130_v44 = vmov 22   ;;  %v5104_v30 = vmov 26  }
 0x72f   :  { %v1323_v42 = vpop.permute.xlu1 %1322 }
 0x730   :  { %v1329_v54 = vmul.f32 %v1328_v2, %v1323_v42 }
 0x732   :  { %v1330_v11 = vadd.f32 %v1329_v54, %v1290_v39  ;;  %v5108_v54 = vmov 23   ;;  %v5120_v39 = vmov 31  }
 0x734   :  { %v1343_v55 = vpop.permute.xlu1 %1342  ;;  %v1370_v26 = vadd.f32 %v1369_v33, %v1330_v11 }
 0x735   :  { %v1349_v56 = vmul.f32 %v1348_v32, %v1343_v55  ;;  %v5179_v32 = vmov 13  }
 0x737   :  { %v1350_v35 = vadd.f32 %v1349_v56, %v1310_v62 }
 0x739   :  { %v1353_v27 = vpop.permute.xlu1 %1352 }
 0x73a   :  { %v1359_v51 = vmul.f32 %v1358_v38, %v1353_v27  ;;  %v1397_v27 = vrot.slane %v3388_v14, %v3820_v15  ;;  %v5106_v38 = vmov 24  }
 0x73c   :  { %v1360_v42 = vadd.f32 %v1359_v51, %v1320_v60  ;;  %v5114_v51 = vmov 18  }
 0x73e   :  { %v1373_v31 = vpop.permute.xlu1 %1372  ;;  %v1391_v55 = vadd.f32 %v1370_v26, %v1360_v42 }
 0x73f   :  { %v1379_v0 = vmul.f32 %v1378_v53, %v1373_v31  ;;  %v5116_v53 = vmov 17   ;;  %v5126_v31 = vmov 25  }
 0x741   :  { %v1380_v37 = vadd.f32 %v1379_v0, %v1340_v21 }
 0x743   :  { %v1383_v9 = vpop.permute.xlu1 %1382 }
 0x744   :  { %v1389_v41 = vmul.f32 %v1388_v57, %v1383_v9  ;;  %v5100_v57 = vmov 29  }
 0x746   :  { %v1390_v2 = vadd.f32 %v1389_v41, %v1350_v35 }
 0x748   :  { %v1392_v63 = vadd.f32 %v1390_v2, %v1380_v37 }
 0x74a   :  { %v1393_v13 = vadd.f32 %v1392_v63, %v1391_v55 }
 0x74c   :  { %v4192_v1 = vadd.f32 %v1397_v27, %v1393_v13 }
 0x74e   :  { %5178 = vst [vmem:[#allocation5_spill] sm:$0xff] %v4192_v1  ;;  %v4195_v61 = vmax.f32 %v4192_v1, 0.0  ;;  %v4309_v1 = vld [vmem:[%s5085_s1 + $0x1d0] sm:$0xff] }
 0x750   :  { %1417 = vperm.xlu1 %3580, %v4195_v61   ;;  %1408 = vperm.xlu0 %3579, %v4195_v61  }
 0x754   :  { %3581 = vset.pattern.permute.xlu1 %v5177_v19  ;;  %3582 = vset.pattern.permute.xlu0 %v5146_v3 }
 0x755   :  { %1426 = vperm.xlu1 %3581, %v4195_v61   ;;  %1435 = vperm.xlu0 %3582, %v4195_v61  }
 0x759   :  { %3583 = vset.pattern.permute.xlu1 %v5150_v5  ;;  %3585 = vset.pattern.permute.xlu0 %v5140_v7 }
 0x75a   :  { %1444 = vperm.xlu1 %3583, %v4195_v61   ;;  %1464 = vperm.xlu0 %3585, %v4195_v61  }
 0x75e   :  { %3584 = vset.pattern.permute.xlu1 %v5142_v6  ;;  %3588 = vset.pattern.permute.xlu0 %v5132_v48 }
 0x75f   :  { %1454 = vperm.xlu1 %3584, %v4195_v61   ;;  %1494 = vperm.xlu0 %3588, %v4195_v61  }
 0x763   :  { %3586 = vset.pattern.permute.xlu1 %v5148_v8  ;;  %3591 = vset.pattern.permute.xlu0 %v5124_v50 }
 0x764   :  { %1474 = vperm.xlu1 %3586, %v4195_v61   ;;  %1524 = vperm.xlu0 %3591, %v4195_v61  }
 0x768   :  { %3587 = vset.pattern.permute.xlu1 %v5136_v45  ;;  %3594 = vset.pattern.permute.xlu0 %v5118_v52 }
 0x769   :  { %1484 = vperm.xlu1 %3587, %v4195_v61   ;;  %1554 = vperm.xlu0 %3594, %v4195_v61  }
 0x76d   :  { %3589 = vset.pattern.permute.xlu1 %v5144_v49  ;;  %3597 = vset.pattern.permute.xlu0 %v5114_v51 }
 0x76e   :  { %1504 = vperm.xlu1 %3589, %v4195_v61   ;;  %1584 = vperm.xlu0 %3597, %v4195_v61  }
 0x772   :  { %3590 = vset.pattern.permute.xlu1 %v5128_v46  ;;  %3600 = vset.pattern.permute.xlu0 %v5110_v28  ;;  %v3391_v46 = vld [vmem:[%s5085_s1 + $0x1c8] sm:$0xff] }
 0x773   :  { %1514 = vperm.xlu1 %3590, %v4195_v61   ;;  %1614 = vperm.xlu0 %3600, %v4195_v61   ;;  %v1590_v3 = vrot.slane %v3391_v46, %v3833_v22  ;;  %v1580_v8 = vrot.slane %v3391_v46, %v3822_v16 }
 0x777   :  { %3592 = vset.pattern.permute.xlu1 %v5179_v32  ;;  %3603 = vset.pattern.permute.xlu0 %v5106_v38 }
 0x778   :  { %1534 = vperm.xlu1 %3592, %v4195_v61   ;;  %1644 = vperm.xlu0 %3603, %v4195_v61  }
 0x77c   :  { %3593 = vset.pattern.permute.xlu1 %v5175_v43  ;;  %3606 = vset.pattern.permute.xlu0 %v5102_v59 }
 0x77d   :  { %1544 = vperm.xlu1 %3593, %v4195_v61   ;;  %1674 = vperm.xlu0 %3606, %v4195_v61  }
 0x781   :  { %3595 = vset.pattern.permute.xlu1 %v5138_v34  ;;  %3609 = vset.pattern.permute.xlu0 %v5098_v36 }
 0x782   :  { %1564 = vperm.xlu1 %3595, %v4195_v61   ;;  %1704 = vperm.xlu0 %3609, %v4195_v61  }
 0x786   :  { %3596 = vset.pattern.permute.xlu1 %v5116_v53  ;;  %3612 = vset.pattern.permute.xlu0 %v5174_v4 }
 0x787   :  { %1574 = vperm.xlu1 %3596, %v4195_v61  }
 0x78b   :  { %3598 = vset.pattern.permute.xlu1 %v5134_v47 }
 0x78c   :  { %1594 = vperm.xlu1 %3598, %v4195_v61  }
 0x790   :  { %3599 = vset.pattern.permute.xlu1 %v5112_v29 }
 0x791   :  { %1604 = vperm.xlu1 %3599, %v4195_v61  }
 0x795   :  { %3601 = vset.pattern.permute.xlu1 %v5130_v44 }
 0x796   :  { %1624 = vperm.xlu1 %3601, %v4195_v61  }
 0x79a   :  { %3602 = vset.pattern.permute.xlu1 %v5108_v54 }
 0x79b   :  { %1634 = vperm.xlu1 %3602, %v4195_v61  }
 0x79f   :  { %3604 = vset.pattern.permute.xlu1 %v5126_v31 }
 0x7a0   :  { %1654 = vperm.xlu1 %3604, %v4195_v61  }
 0x7a4   :  { %3605 = vset.pattern.permute.xlu1 %v5104_v30  ;;  %v3390_v30 = vld [vmem:[%s5085_s1 + $0x1c0] sm:$0xff] }
 0x7a5   :  { %1664 = vperm.xlu1 %3605, %v4195_v61   ;;  %v1490_v50 = vrot.slane %v3390_v30, %v3820_v15  ;;  %v1510_v31 = vrot.slane %v3390_v30, %v3833_v22  ;;  %v1530_v47 = vrot.slane %v3390_v30, %v3824_v17  ;;  %v1520_v45 = vrot.slane %v3390_v30, %v3835_v23 }
 0x7a6   :  { %v1540_v34 = vrot.slane %v3390_v30, %v3826_v18  ;;  %v1550_v7 = vrot.slane %v3390_v30, %v3828_v20 }
 0x7a9   :  { %3607 = vset.pattern.permute.xlu1 %v5122_v40  ;;  %v1500_v40 = vrot.slane %v3390_v30, %v3822_v16 }
 0x7aa   :  { %1684 = vperm.xlu1 %3607, %v4195_v61  }
 0x7ae   :  { %3608 = vset.pattern.permute.xlu1 %v5100_v57 }
 0x7af   :  { %1694 = vperm.xlu1 %3608, %v4195_v61  }
 0x7b3   :  { %3610 = vset.pattern.permute.xlu1 %v5120_v39 }
 0x7b4   :  { %1714 = vperm.xlu1 %3610, %v4195_v61   ;;  %v3389_v61 = vld [vmem:[%s5085_s1 + $0x1b8] sm:$0xff] }
 0x7b5   :  { %v1460_v57 = vrot.slane %v3389_v61, %v3826_v18  ;;  %v1450_v59 = vrot.slane %v3389_v61, %v3824_v17  ;;  %v1423_v38 = vrot.slane %v3389_v61, %v3822_v16  ;;  %v1470_v54 = vrot.slane %v3389_v61, %v3828_v20 }
 0x7b6   :  { %v1414_v28 = vrot.slane %v3389_v61, %v3820_v15  ;;  %v1432_v29 = vrot.slane %v3389_v61, %v3833_v22  ;;  %v1441_v51 = vrot.slane %v3389_v61, %v3835_v23  ;;  %v1480_v53 = vrot.slane %v3389_v61, %v3837_v24 }
 0x7b7   :  { %v1560_v61 = vrot.slane %v3390_v30, %v3837_v24  ;;  %v1620_v30 = vrot.slane %v3391_v46, %v3826_v18 }
 0x7b8   :  { %3611 = vset.pattern.permute.xlu1 %v5176_v25 }
 0x7cb   :  { %v1418_v58 = vpop.permute.xlu1 %1417  ;;  %v1409_v33 = vpop.permute.xlu0 %1408 }
 0x7cc   :  { %v1415_v6 = vmul.f32 %v1414_v28, %v1409_v33 }
 0x7d0   :  { %v1427_v10 = vpop.permute.xlu1 %1426  ;;  %v1436_v35 = vpop.permute.xlu0 %1435 }
 0x7d1   :  { %v1433_v5 = vmul.f32 %v1432_v29, %v1427_v10 }
 0x7d5   :  { %v1445_v56 = vpop.permute.xlu1 %1444  ;;  %v1465_v21 = vpop.permute.xlu0 %1464 }
 0x7d6   :  { %v1451_v48 = vmul.f32 %v1450_v59, %v1445_v56 }
 0x7da   :  { %v1455_v62 = vpop.permute.xlu1 %1454  ;;  %v1495_v14 = vpop.permute.xlu0 %1494 }
 0x7db   :  { %v1461_v39 = vmul.f32 %v1460_v57, %v1455_v62  ;;  %v1424_v57 = vmul.f32 %v1423_v38, %v1418_v58  ;;  %v1471_v62 = vmul.f32 %v1470_v54, %v1465_v21  ;;  %v1442_v38 = vmul.f32 %v1441_v51, %v1436_v35 }
 0x7dc   :  { %v1452_v54 = vadd.f32 %v1451_v48, %v1415_v6  ;;  %v1501_v33 = vmul.f32 %v1500_v40, %v1495_v14 }
 0x7dd   :  { %v1462_v59 = vadd.f32 %v1461_v39, %v1424_v57  ;;  %v1600_v39 = vrot.slane %v3391_v46, %v3835_v23 }
 0x7df   :  { %v1475_v12 = vpop.permute.xlu1 %1474  ;;  %v1525_v2 = vpop.permute.xlu0 %1524  ;;  %v1502_v10 = vadd.f32 %v1501_v33, %v1462_v59 }
 0x7e0   :  { %v1481_v49 = vmul.f32 %v1480_v53, %v1475_v12  ;;  %v1472_v12 = vadd.f32 %v1471_v62, %v1433_v5  ;;  %v1630_v5 = vrot.slane %v3391_v46, %v3828_v20 }
 0x7e2   :  { %v1482_v29 = vadd.f32 %v1481_v49, %v1442_v38 }
 0x7e4   :  { %v1485_v60 = vpop.permute.xlu1 %1484  ;;  %v4267_v27 = vpop.permute.xlu0 %1554 }
 0x7e5   :  { %v1491_v56 = vmul.f32 %v1490_v50, %v1485_v60  ;;  %v1650_v50 = vrot.slane %v4309_v1, %v3820_v15  ;;  %v1610_v60 = vrot.slane %v3391_v46, %v3824_v17 }
 0x7e7   :  { %v1492_v51 = vadd.f32 %v1491_v56, %v1452_v54 }
 0x7e9   :  { %v1505_v11 = vpop.permute.xlu1 %1504  ;;  %v4271_v13 = vpop.permute.xlu0 %1584 }
 0x7ea   :  { %v1511_v4 = vmul.f32 %v1510_v31, %v1505_v11  ;;  %v1570_v31 = vrot.slane %v3391_v46, %v3820_v15  ;;  %v1660_v11 = vrot.slane %v4309_v1, %v3822_v16  ;;  %v1591_v14 = vmul.f32 %v1590_v3, %v4271_v13 }
 0x7eb   :  { %v1690_v3 = vrot.slane %v4309_v1, %v3824_v17 }
 0x7ec   :  { %v1512_v6 = vadd.f32 %v1511_v4, %v1472_v12 }
 0x7ee   :  { %v1515_v0 = vpop.permute.xlu1 %1514  ;;  %v4289_v52 = vpop.permute.xlu0 %1614 }
 0x7ef   :  { %v1521_v58 = vmul.f32 %v1520_v45, %v1515_v0 }
 0x7f1   :  { %v1522_v48 = vadd.f32 %v1521_v58, %v1482_v29 }
 0x7f3   :  { %v1535_v9 = vpop.permute.xlu1 %1534  ;;  %v1645_v28 = vpop.permute.xlu0 %1644 }
 0x7f4   :  { %v1541_v21 = vmul.f32 %v1540_v34, %v1535_v9  ;;  %v1640_v34 = vrot.slane %v3391_v46, %v3837_v24  ;;  %v1561_v9 = vmul.f32 %v1560_v61, %v4267_v27  ;;  %v1651_v33 = vmul.f32 %v1650_v50, %v1645_v28 }
 0x7f6   :  { %v1542_v49 = vadd.f32 %v1541_v21, %v1502_v10 }
 0x7f8   :  { %v1545_v42 = vpop.permute.xlu1 %1544  ;;  %v1675_v35 = vpop.permute.xlu0 %1674 }
 0x7f9   :  { %v1551_v25 = vmul.f32 %v1550_v7, %v1545_v42  ;;  %v1531_v7 = vmul.f32 %v1530_v47, %v1525_v2  ;;  %v1670_v42 = vrot.slane %v4309_v1, %v3833_v22 }
 0x7fb   :  { %v1552_v40 = vadd.f32 %v1551_v25, %v1512_v6  ;;  %v1532_v46 = vadd.f32 %v1531_v7, %v1492_v51  ;;  %v1700_v25 = vrot.slane %v4309_v1, %v3826_v18 }
 0x7fd   :  { %v4261_v41 = vpop.permute.xlu1 %1564  ;;  %v1592_v57 = vadd.f32 %v1591_v14, %v1552_v40  ;;  %v5187_v14 = vmov 8  }
 0x7fe   :  { %v1571_v4 = vmul.f32 %v1570_v31, %v4261_v41  ;;  %v1621_v41 = vmul.f32 %v1620_v30, %v4289_v52  ;;  %v1720_v52 = vrot.slane %v4309_v1, %v3837_v24 }
 0x800   :  { %v1572_v13 = vadd.f32 %v1571_v4, %v1532_v46  ;;  %v5184_v4 = vmov 5   ;;  %v5188_v46 = vmov 19  }
 0x802   :  { %v1575_v26 = vpop.permute.xlu1 %1574 }
 0x803   :  { %v1581_v45 = vmul.f32 %v1580_v8, %v1575_v26  ;;  %v1562_v26 = vadd.f32 %v1561_v9, %v1522_v48  ;;  %v5182_v9 = vmov 3  }
 0x805   :  { %v1582_v47 = vadd.f32 %v1581_v45, %v1542_v49 }
 0x807   :  { %v4263_v37 = vpop.permute.xlu1 %1594 }
 0x808   :  { %v1601_v8 = vmul.f32 %v1600_v39, %v4263_v37  ;;  %v1680_v37 = vrot.slane %v4309_v1, %v3835_v23 }
 0x80a   :  { %v1602_v62 = vadd.f32 %v1601_v8, %v1562_v26  ;;  %v1681_v21 = vmul.f32 %v1680_v37, %v1675_v35  ;;  %v5183_v35 = vmov 10   ;;  %v5185_v8 = vmov 6  }
 0x80b   :  { %v5191_v26 = vmov 11   ;;  %v5196_v37 = vmov 15  }
 0x80c   :  { %v4265_v55 = vpop.permute.xlu1 %1604 }
 0x80d   :  { %v1611_v2 = vmul.f32 %v1610_v60, %v4265_v55  ;;  %v1710_v55 = vrot.slane %v4309_v1, %v3828_v20  ;;  %v3393_v1 = vld [vmem:[%s5085_s1 + $0x1d8] sm:$0xff] }
 0x80e   :  { %v1729_v28 = vrot.slane %v3393_v1, %v3820_v15 }
 0x80f   :  { %v1612_v54 = vadd.f32 %v1611_v2, %v1572_v13  ;;  %v5192_v2 = vmov 25   ;;  %v5199_v13 = vmov 20  }
 0x811   :  { %v4269_v63 = vpop.permute.xlu1 %1624  ;;  %v1652_v10 = vadd.f32 %v1651_v33, %v1612_v54 }
 0x812   :  { %v1631_v27 = vmul.f32 %v1630_v5, %v4269_v63  ;;  %v1622_v63 = vadd.f32 %v1621_v41, %v1582_v47  ;;  %v5189_v47 = vmov 9   ;;  %v5195_v41 = vmov 31  }
 0x814   :  { %v1632_v58 = vadd.f32 %v1631_v27, %v1592_v57  ;;  %v5193_v27 = vmov 12   ;;  %v5197_v57 = vmov 17  }
 0x816   :  { %v4276_v36 = vpop.permute.xlu1 %1634 }
 0x817   :  { %v1641_v61 = vmul.f32 %v1640_v34, %v4276_v36  ;;  %v1705_v36 = vpop.permute.xlu0 %1704 }
 0x819   :  { %v1642_v30 = vadd.f32 %v1641_v61, %v1602_v62  ;;  %v5194_v61 = vmov 28   ;;  %v5200_v62 = vmov 21  }
 0x81b   :  { %v4297_v44 = vpop.permute.xlu1 %1654  ;;  %v1682_v6 = vadd.f32 %v1681_v21, %v1642_v30 }
 0x81c   :  { %v1661_v59 = vmul.f32 %v1660_v11, %v4297_v44  ;;  %v1711_v44 = vmul.f32 %v1710_v55, %v1705_v36  ;;  %v5180_v11 = vmov 4   ;;  %v5204_v55 = vmov 27  }
 0x81d   :  { %v5207_v36 = vmov 0  }
 0x81e   :  { %v1662_v29 = vadd.f32 %v1661_v59, %v1622_v63  ;;  %v5201_v59 = vmov 23   ;;  %v5205_v63 = vmov 29  }
 0x820   :  { %v1665_v53 = vpop.permute.xlu1 %1664 }
 0x821   :  { %v1671_v56 = vmul.f32 %v1670_v42, %v1665_v53  ;;  %v5186_v42 = vmov 16  }
 0x823   :  { %v1672_v31 = vadd.f32 %v1671_v56, %v1632_v58  ;;  %v5202_v56 = vmov 24  }
 0x825   :  { %v1685_v0 = vpop.permute.xlu1 %1684  ;;  %v1712_v48 = vadd.f32 %v1711_v44, %v1672_v31 }
 0x826   :  { %v1691_v39 = vmul.f32 %v1690_v3, %v1685_v0  ;;  %v5181_v0 = vmov 7   ;;  %v5198_v3 = vmov 18  }
 0x828   :  { %v1692_v60 = vadd.f32 %v1691_v39, %v1652_v10 }
 0x82a   :  { %v1695_v38 = vpop.permute.xlu1 %1694 }
 0x82b   :  { %v1701_v12 = vmul.f32 %v1700_v25, %v1695_v38  ;;  %v5190_v25 = vmov 22   ;;  %v5203_v38 = vmov 26  }
 0x82d   :  { %v1702_v51 = vadd.f32 %v1701_v12, %v1662_v29 }
 0x82f   :  { %v1715_v53 = vpop.permute.xlu1 %1714  ;;  %v1723_v34 = vadd.f32 %v1702_v51, %v1692_v60 }
 0x830   :  { %v1721_v45 = vmul.f32 %v1720_v52, %v1715_v53  ;;  %v5206_v52 = vmov 30  }
 0x832   :  { %v1722_v5 = vadd.f32 %v1721_v45, %v1682_v6 }
 0x834   :  { %v1724_v50 = vadd.f32 %v1722_v5, %v1712_v48 }
 0x836   :  { %v1725_v7 = vadd.f32 %v1724_v50, %v1723_v34 }
 0x838   :  { %v1730_v49 = vadd.f32 %v1729_v28, %v1725_v7  ;;  %v3394_v7 = vld [vmem:[%s5085_s1 + $0x1e0] sm:$0xff] }
 0x83a   :  { %v1731_v40 = vmax.f32 %v1730_v49, 0.0 }
 0x83c   :  { %1749 = vperm.xlu0 %3612, %v1731_v40   ;;  %1740 = vperm.xlu1 %3611, %v1731_v40  }
 0x840   :  { %3615 = vset.pattern.permute.xlu0 %v5180_v11  ;;  %3613 = vset.pattern.permute.xlu1 %v5177_v19 }
 0x841   :  { %1776 = vperm.xlu0 %3615, %v1731_v40   ;;  %1758 = vperm.xlu1 %3613, %v1731_v40  }
 0x845   :  { %3618 = vset.pattern.permute.xlu0 %v5181_v0  ;;  %3614 = vset.pattern.permute.xlu1 %v5182_v9 }
 0x846   :  { %1806 = vperm.xlu0 %3618, %v1731_v40   ;;  %1767 = vperm.xlu1 %3614, %v1731_v40  }
 0x84a   :  { %3621 = vset.pattern.permute.xlu0 %v5183_v35  ;;  %3616 = vset.pattern.permute.xlu1 %v5184_v4  ;;  %v4429_v35 = vld [vmem:[%s5085_s1 + $0x1f8] sm:$0xff] }
 0x84b   :  { %1836 = vperm.xlu0 %3621, %v1731_v40   ;;  %1786 = vperm.xlu1 %3616, %v1731_v40  }
 0x84f   :  { %3624 = vset.pattern.permute.xlu0 %v5179_v32  ;;  %3617 = vset.pattern.permute.xlu1 %v5185_v8 }
 0x850   :  { %1866 = vperm.xlu0 %3624, %v1731_v40   ;;  %1796 = vperm.xlu1 %3617, %v1731_v40  }
 0x854   :  { %3627 = vset.pattern.permute.xlu0 %v5186_v42  ;;  %3619 = vset.pattern.permute.xlu1 %v5187_v14  ;;  %v1992_v14 = vrot.slane %v4429_v35, %v3822_v16 }
 0x855   :  { %1896 = vperm.xlu0 %3627, %v1731_v40   ;;  %1816 = vperm.xlu1 %3619, %v1731_v40  }
 0x859   :  { %3630 = vset.pattern.permute.xlu0 %v5188_v46  ;;  %3620 = vset.pattern.permute.xlu1 %v5189_v47 }
 0x85a   :  { %1926 = vperm.xlu0 %3630, %v1731_v40   ;;  %1826 = vperm.xlu1 %3620, %v1731_v40  }
 0x85e   :  { %3633 = vset.pattern.permute.xlu0 %v5190_v25  ;;  %3622 = vset.pattern.permute.xlu1 %v5191_v26  ;;  %v1764_v25 = vrot.slane %v3394_v7, %v3833_v22 }
 0x85f   :  { %1956 = vperm.xlu0 %3633, %v1731_v40   ;;  %1846 = vperm.xlu1 %3622, %v1731_v40  }
 0x863   :  { %3636 = vset.pattern.permute.xlu0 %v5192_v2  ;;  %3623 = vset.pattern.permute.xlu1 %v5193_v27  ;;  %v4408_v2 = vld [vmem:[%s5085_s1 + $0x1f0] sm:$0xff] }
 0x864   :  { %1986 = vperm.xlu0 %3636, %v1731_v40   ;;  %1856 = vperm.xlu1 %3623, %v1731_v40  }
 0x868   :  { %3639 = vset.pattern.permute.xlu0 %v5194_v61  ;;  %3625 = vset.pattern.permute.xlu1 %v5175_v43  ;;  %v1812_v61 = vrot.slane %v3394_v7, %v3837_v24  ;;  %v1962_v43 = vrot.slane %v4408_v2, %v3828_v20 }
 0x869   :  { %2016 = vperm.xlu0 %3639, %v1731_v40   ;;  %1876 = vperm.xlu1 %3625, %v1731_v40  }
 0x86d   :  { %3642 = vset.pattern.permute.xlu0 %v5195_v41  ;;  %3626 = vset.pattern.permute.xlu1 %v5196_v37  ;;  %v1755_v41 = vrot.slane %v3394_v7, %v3822_v16 }
 0x86e   :  { %2046 = vperm.xlu0 %3642, %v1731_v40   ;;  %1886 = vperm.xlu1 %3626, %v1731_v40  }
 0x872   :  { %3628 = vset.pattern.permute.xlu1 %v5197_v57  ;;  %3645 = vset.pattern.permute.xlu0 %v5177_v19  ;;  %v1792_v19 = vrot.slane %v3394_v7, %v3826_v18 }
 0x873   :  { %1906 = vperm.xlu1 %3628, %v1731_v40  }
 0x877   :  { %3629 = vset.pattern.permute.xlu1 %v5198_v3 }
 0x878   :  { %1916 = vperm.xlu1 %3629, %v1731_v40  }
 0x87c   :  { %3631 = vset.pattern.permute.xlu1 %v5199_v13 }
 0x87d   :  { %1936 = vperm.xlu1 %3631, %v1731_v40  }
 0x881   :  { %3632 = vset.pattern.permute.xlu1 %v5200_v62  ;;  %v1802_v62 = vrot.slane %v3394_v7, %v3828_v20 }
 0x882   :  { %1946 = vperm.xlu1 %3632, %v1731_v40  }
 0x886   :  { %3634 = vset.pattern.permute.xlu1 %v5201_v59 }
 0x887   :  { %1966 = vperm.xlu1 %3634, %v1731_v40  }
 0x88b   :  { %3635 = vset.pattern.permute.xlu1 %v5202_v56  ;;  %v1746_v56 = vrot.slane %v3394_v7, %v3820_v15 }
 0x88c   :  { %1976 = vperm.xlu1 %3635, %v1731_v40  }
 0x890   :  { %3637 = vset.pattern.permute.xlu1 %v5203_v38  ;;  %v1902_v38 = vrot.slane %v4408_v2, %v3820_v15 }
 0x891   :  { %1996 = vperm.xlu1 %3637, %v1731_v40  }
 0x895   :  { %3638 = vset.pattern.permute.xlu1 %v5204_v55  ;;  %v1773_v55 = vrot.slane %v3394_v7, %v3835_v23 }
 0x896   :  { %2006 = vperm.xlu1 %3638, %v1731_v40  }
 0x89a   :  { %3640 = vset.pattern.permute.xlu1 %v5205_v63 }
 0x89b   :  { %2026 = vperm.xlu1 %3640, %v1731_v40  }
 0x89f   :  { %3641 = vset.pattern.permute.xlu1 %v5206_v52  ;;  %v1782_v52 = vrot.slane %v3394_v7, %v3824_v17  ;;  %v1932_v7 = vrot.slane %v4408_v2, %v3835_v23 }
 0x8a0   :  { %2036 = vperm.xlu1 %3641, %v1731_v40   ;;  %v3395_v40 = vld [vmem:[%s5085_s1 + $0x1e8] sm:$0xff] }
 0x8a1   :  { %v1832_v46 = vrot.slane %v3395_v40, %v3822_v16  ;;  %v1842_v3 = vrot.slane %v3395_v40, %v3833_v22  ;;  %v1872_v42 = vrot.slane %v3395_v40, %v3826_v18  ;;  %v1852_v32 = vrot.slane %v3395_v40, %v3835_v23 }
 0x8a2   :  { %v1862_v59 = vrot.slane %v3395_v40, %v3824_v17  ;;  %v1892_v57 = vrot.slane %v3395_v40, %v3837_v24 }
 0x8a4   :  { %3643 = vset.pattern.permute.xlu1 %v5207_v36  ;;  %v1822_v36 = vrot.slane %v3395_v40, %v3820_v15 }
 0x8b7   :  { %v1741_v54 = vpop.permute.xlu1 %1740  ;;  %v1750_v39 = vpop.permute.xlu0 %1749 }
 0x8b8   :  { %v1756_v8 = vmul.f32 %v1755_v41, %v1750_v39  ;;  %v1747_v11 = vmul.f32 %v1746_v56, %v1741_v54  ;;  %v2002_v39 = vrot.slane %v4429_v35, %v3833_v22 }
 0x8bc   :  { %v1759_v58 = vpop.permute.xlu1 %1758  ;;  %v1777_v53 = vpop.permute.xlu0 %1776 }
 0x8bd   :  { %v1783_v47 = vmul.f32 %v1782_v52, %v1777_v53  ;;  %v1765_v4 = vmul.f32 %v1764_v25, %v1759_v58  ;;  %v1882_v52 = vrot.slane %v3395_v40, %v3828_v20  ;;  %v1952_v25 = vrot.slane %v4408_v2, %v3826_v18 }
 0x8bf   :  { %v1784_v41 = vadd.f32 %v1783_v47, %v1747_v11  ;;  %v1972_v11 = vrot.slane %v4408_v2, %v3837_v24 }
 0x8c1   :  { %v1768_v30 = vpop.permute.xlu1 %1767  ;;  %v1807_v51 = vpop.permute.xlu0 %1806 }
 0x8c2   :  { %v1813_v13 = vmul.f32 %v1812_v61, %v1807_v51  ;;  %v1774_v0 = vmul.f32 %v1773_v55, %v1768_v30  ;;  %v1912_v61 = vrot.slane %v4408_v2, %v3822_v16 }
 0x8c6   :  { %v1787_v12 = vpop.permute.xlu1 %1786  ;;  %v1837_v1 = vpop.permute.xlu0 %1836 }
 0x8c7   :  { %v1793_v27 = vmul.f32 %v1792_v19, %v1787_v12 }
 0x8cb   :  { %v1797_v33 = vpop.permute.xlu1 %1796  ;;  %v1867_v60 = vpop.permute.xlu0 %1866 }
 0x8cc   :  { %v1803_v19 = vmul.f32 %v1802_v62, %v1797_v33  ;;  %v1814_v62 = vadd.f32 %v1813_v13, %v1774_v0  ;;  %v1843_v0 = vmul.f32 %v1842_v3, %v1837_v1  ;;  %v1873_v47 = vmul.f32 %v1872_v42, %v1867_v60 }
 0x8d0   :  { %v1817_v21 = vpop.permute.xlu1 %1816  ;;  %v4386_v34 = vpop.permute.xlu0 %1896 }
 0x8d1   :  { %v1823_v26 = vmul.f32 %v1822_v36, %v1817_v21  ;;  %v1942_v36 = vrot.slane %v4408_v2, %v3824_v17  ;;  %v1903_v42 = vmul.f32 %v1902_v38, %v4386_v34 }
 0x8d5   :  { %v1827_v29 = vpop.permute.xlu1 %1826  ;;  %v4390_v50 = vpop.permute.xlu0 %1926 }
 0x8d6   :  { %v1833_v12 = vmul.f32 %v1832_v46, %v1827_v29  ;;  %v1804_v29 = vadd.f32 %v1803_v19, %v1765_v4  ;;  %v1933_v3 = vmul.f32 %v1932_v7, %v4390_v50 }
 0x8d8   :  { %v1844_v54 = vadd.f32 %v1843_v0, %v1804_v29 }
 0x8da   :  { %v1847_v31 = vpop.permute.xlu1 %1846  ;;  %v4417_v37 = vpop.permute.xlu0 %1956 }
 0x8db   :  { %5208 = vst [vmem:[#allocation6_spill] sm:$0xff] %v4417_v37  ;;  %v1853_v9 = vmul.f32 %v1852_v32, %v1847_v31  ;;  %v1794_v37 = vadd.f32 %v1793_v27, %v1756_v8  ;;  %v1922_v32 = vrot.slane %v4408_v2, %v3833_v22  ;;  %v1824_v8 = vadd.f32 %v1823_v26, %v1784_v41 }
 0x8dd   :  { %v1834_v56 = vadd.f32 %v1833_v12, %v1794_v37  ;;  %v1854_v27 = vadd.f32 %v1853_v9, %v1814_v62  ;;  %v2012_v9 = vrot.slane %v4429_v35, %v3835_v23  ;;  %v2052_v12 = vrot.slane %v4429_v35, %v3837_v24 }
 0x8df   :  { %v1857_v44 = vpop.permute.xlu1 %1856  ;;  %v1987_v46 = vpop.permute.xlu0 %1986  ;;  %v1874_v58 = vadd.f32 %v1873_v47, %v1834_v56 }
 0x8e0   :  { %v1863_v30 = vmul.f32 %v1862_v59, %v1857_v44  ;;  %v1982_v59 = vrot.slane %v4429_v35, %v3820_v15  ;;  %v2032_v44 = vrot.slane %v4429_v35, %v3826_v18  ;;  %v1993_v19 = vmul.f32 %v1992_v14, %v1987_v46 }
 0x8e2   :  { %v1864_v37 = vadd.f32 %v1863_v30, %v1824_v8  ;;  %v5209_v40 = vld [vmem:[#allocation6_spill] sm:$0xff] }
 0x8e3   :  { %v1963_v7 = vmul.f32 %v1962_v43, %v5209_v40  ;;  %v3398_v8 = vld [vmem:[%s5085_s1 + $0x200] sm:$0xff]  ;;  %v5236_v40 = vmov 22  }
 0x8e4   :  { %v4378_v10 = vpop.permute.xlu1 %1876  ;;  %v2017_v31 = vpop.permute.xlu0 %2016  ;;  %v1904_v1 = vadd.f32 %v1903_v42, %v1864_v37  ;;  %v5219_v42 = vmov 6  }
 0x8e9   :  { %v1887_v6 = vpop.permute.xlu1 %1886  ;;  %v2047_v62 = vpop.permute.xlu0 %2046 }
 0x8ea   :  { %v1893_v33 = vmul.f32 %v1892_v57, %v1887_v6  ;;  %v1883_v57 = vmul.f32 %v1882_v52, %v4378_v10 }
 0x8ec   :  { %v1894_v13 = vadd.f32 %v1893_v33, %v1854_v27  ;;  %v1884_v53 = vadd.f32 %v1883_v57, %v1844_v54  ;;  %v5215_v54 = vmov 3  }
 0x8ee   :  { %v4380_v45 = vpop.permute.xlu1 %1906  ;;  %v1934_v38 = vadd.f32 %v1933_v3, %v1894_v13  ;;  %v5220_v3 = vmov 17  }
 0x8ef   :  { %v1913_v4 = vmul.f32 %v1912_v61, %v4380_v45  ;;  %v2022_v45 = vrot.slane %v4429_v35, %v3824_v17 }
 0x8f1   :  { %v1914_v10 = vadd.f32 %v1913_v4, %v1874_v58  ;;  %v2023_v56 = vmul.f32 %v2022_v45, %v2017_v31  ;;  %v5210_v4 = vld [vmem:[#allocation5_spill] sm:$0xff]  ;;  %v5216_v58 = vmov 11   ;;  %v5221_v31 = vmov 7  }
 0x8f2   :  { %v5228_v45 = vmov 29  }
 0x8f3   :  { %v4382_v48 = vpop.permute.xlu1 %1916 }
 0x8f4   :  { %v1923_v21 = vmul.f32 %v1922_v32, %v4382_v48 }
 0x8f6   :  { %v1924_v48 = vadd.f32 %v1923_v21, %v1884_v53  ;;  %v5217_v21 = vmov 4   ;;  %v5224_v53 = vmov 23  }
 0x8f8   :  { %v4384_v5 = vpop.permute.xlu1 %1936  ;;  %v1964_v33 = vadd.f32 %v1963_v7, %v1924_v48  ;;  %v5231_v48 = vmov 0   ;;  %v5237_v7 = vmov 24  }
 0x8f9   :  { %v1943_v51 = vmul.f32 %v1942_v36, %v4384_v5  ;;  %v2042_v5 = vrot.slane %v4429_v35, %v3828_v20 }
 0x8fd   :  { %v4388_v28 = vpop.permute.xlu1 %1946 }
 0x8fe   :  { %v1953_v2 = vmul.f32 %v1952_v25, %v4388_v28  ;;  %v2053_v25 = vmul.f32 %v2052_v12, %v2047_v62  ;;  %v5239_v12 = vmov 27  }
 0x900   :  { %v1954_v60 = vadd.f32 %v1953_v2, %v1914_v10  ;;  %v5218_v2 = vmov 14   ;;  %v5225_v10 = vmov 10  }
 0x902   :  { %v4395_v49 = vpop.permute.xlu1 %1966 }
 0x903   :  { %v1973_v6 = vmul.f32 %v1972_v11, %v4395_v49  ;;  %v1944_v49 = vadd.f32 %v1943_v51, %v1904_v1  ;;  %v2061_v11 = vrot.slane %v3398_v8, %v3820_v15  ;;  %v5226_v51 = vmov 26  }
 0x904   :  { %v5229_v1 = vmov 13  }
 0x905   :  { %v1974_v52 = vadd.f32 %v1973_v6, %v1934_v38  ;;  %v5227_v6 = vmov 12   ;;  %v5230_v38 = vmov 15  }
 0x907   :  { %v4420_v63 = vpop.permute.xlu1 %1976 }
 0x908   :  { %v1983_v34 = vmul.f32 %v1982_v59, %v4420_v63  ;;  %v1994_v63 = vadd.f32 %v1993_v19, %v1954_v60  ;;  %v5212_v59 = vmov 5   ;;  %v5232_v60 = vmov 16  }
 0x909   :  { %v5238_v19 = vmov 25  }
 0x90a   :  { %v1984_v30 = vadd.f32 %v1983_v34, %v1944_v49  ;;  %v5233_v34 = vmov 18   ;;  %v5241_v49 = vmov 30  }
 0x90c   :  { %v1997_v55 = vpop.permute.xlu1 %1996  ;;  %v2024_v35 = vadd.f32 %v2023_v56, %v1984_v30 }
 0x90d   :  { %v2003_v61 = vmul.f32 %v2002_v39, %v1997_v55  ;;  %v5222_v39 = vmov 20  }
 0x90f   :  { %v2004_v43 = vadd.f32 %v2003_v61, %v1964_v33 }
 0x911   :  { %v2007_v26 = vpop.permute.xlu1 %2006 }
 0x912   :  { %v2013_v28 = vmul.f32 %v2012_v9, %v2007_v26  ;;  %v5213_v9 = vmov 1   ;;  %v5214_v26 = vmov 8  }
 0x914   :  { %v2014_v29 = vadd.f32 %v2013_v28, %v1974_v52  ;;  %v5234_v28 = vmov 19   ;;  %v5242_v52 = vmov 31  }
 0x916   :  { %v2027_v50 = vpop.permute.xlu1 %2026  ;;  %v2054_v27 = vadd.f32 %v2053_v25, %v2014_v29 }
 0x917   :  { %v2033_v41 = vmul.f32 %v2032_v44, %v2027_v50  ;;  %v5223_v44 = vmov 9   ;;  %v5235_v50 = vmov 21  }
 0x919   :  { %v2034_v14 = vadd.f32 %v2033_v41, %v1994_v63 }
 0x91b   :  { %v2037_v32 = vpop.permute.xlu1 %2036  ;;  %v2055_v55 = vadd.f32 %v2034_v14, %v2024_v35 }
 0x91c   :  { %v2043_v46 = vmul.f32 %v2042_v5, %v2037_v32  ;;  %v5240_v5 = vmov 28  }
 0x91e   :  { %v2044_v36 = vadd.f32 %v2043_v46, %v2004_v43 }
 0x920   :  { %v2056_v0 = vadd.f32 %v2054_v27, %v2044_v36 }
 0x922   :  { %v2057_v47 = vadd.f32 %v2056_v0, %v2055_v55 }
 0x924   :  { %v2062_v57 = vadd.f32 %v2061_v11, %v2057_v47 }
 0x926   :  { %v4477_v37 = vadd.f32 %v2062_v57, %v5210_v4  ;;  %v3399_v4 = vld [vmem:[%s5085_s1 + $0x208] sm:$0xff] }
 0x928   :  { %5211 = vst [vmem:[#allocation6_spill] sm:$0xff] %v4477_v37  ;;  %v2064_v13 = vmax.f32 %v4477_v37, 0.0  ;;  %v2115_v37 = vrot.slane %v3399_v4, %v3824_v17 }
 0x92a   :  { %2091 = vperm.xlu0 %3645, %v2064_v13   ;;  %2073 = vperm.xlu1 %3643, %v2064_v13  }
 0x92e   :  { %3648 = vset.pattern.permute.xlu0 %v5212_v59  ;;  %3644 = vset.pattern.permute.xlu1 %v5213_v9 }
 0x92f   :  { %2119 = vperm.xlu0 %3648, %v2064_v13   ;;  %2082 = vperm.xlu1 %3644, %v2064_v13  }
 0x933   :  { %3651 = vset.pattern.permute.xlu0 %v5214_v26  ;;  %3646 = vset.pattern.permute.xlu1 %v5215_v54 }
 0x934   :  { %2149 = vperm.xlu0 %3651, %v2064_v13   ;;  %2100 = vperm.xlu1 %3646, %v2064_v13  }
 0x938   :  { %3654 = vset.pattern.permute.xlu0 %v5216_v58  ;;  %3647 = vset.pattern.permute.xlu1 %v5217_v21 }
 0x939   :  { %2179 = vperm.xlu0 %3654, %v2064_v13   ;;  %2109 = vperm.xlu1 %3647, %v2064_v13  }
 0x93d   :  { %3657 = vset.pattern.permute.xlu0 %v5218_v2  ;;  %3649 = vset.pattern.permute.xlu1 %v5219_v42 }
 0x93e   :  { %2209 = vperm.xlu0 %3657, %v2064_v13   ;;  %2129 = vperm.xlu1 %3649, %v2064_v13  }
 0x942   :  { %3660 = vset.pattern.permute.xlu0 %v5220_v3  ;;  %3650 = vset.pattern.permute.xlu1 %v5221_v31  ;;  %v4548_v3 = vld [vmem:[%s5085_s1 + $0x218] sm:$0xff] }
 0x943   :  { %2239 = vperm.xlu0 %3660, %v2064_v13   ;;  %2139 = vperm.xlu1 %3650, %v2064_v13   ;;  %v2305_v31 = vrot.slane %v4548_v3, %v3837_v24 }
 0x947   :  { %3663 = vset.pattern.permute.xlu0 %v5222_v39  ;;  %3652 = vset.pattern.permute.xlu1 %v5223_v44 }
 0x948   :  { %2269 = vperm.xlu0 %3663, %v2064_v13   ;;  %2159 = vperm.xlu1 %3652, %v2064_v13  }
 0x94c   :  { %3666 = vset.pattern.permute.xlu0 %v5224_v53  ;;  %3653 = vset.pattern.permute.xlu1 %v5225_v10  ;;  %v2145_v53 = vrot.slane %v3399_v4, %v3837_v24 }
 0x94d   :  { %2299 = vperm.xlu0 %3666, %v2064_v13   ;;  %2169 = vperm.xlu1 %3653, %v2064_v13  }
 0x951   :  { %3669 = vset.pattern.permute.xlu0 %v5226_v51  ;;  %3655 = vset.pattern.permute.xlu1 %v5227_v6  ;;  %v2097_v51 = vrot.slane %v3399_v4, %v3833_v22 }
 0x952   :  { %2329 = vperm.xlu0 %3669, %v2064_v13   ;;  %2189 = vperm.xlu1 %3655, %v2064_v13  }
 0x956   :  { %3672 = vset.pattern.permute.xlu0 %v5228_v45  ;;  %3656 = vset.pattern.permute.xlu1 %v5229_v1  ;;  %v2125_v45 = vrot.slane %v3399_v4, %v3826_v18 }
 0x957   :  { %2359 = vperm.xlu0 %3672, %v2064_v13   ;;  %2199 = vperm.xlu1 %3656, %v2064_v13  }
 0x95b   :  { %3658 = vset.pattern.permute.xlu1 %v5230_v38  ;;  %3675 = vset.pattern.permute.xlu0 %v5231_v48  ;;  %v3400_v48 = vld [vmem:[%s5085_s1 + $0x210] sm:$0xff]  ;;  %v2275_v38 = vrot.slane %v4548_v3, %v3824_v17 }
 0x95c   :  { %2219 = vperm.xlu1 %3658, %v2064_v13   ;;  %v2155_v39 = vrot.slane %v3400_v48, %v3820_v15  ;;  %v2215_v2 = vrot.slane %v3400_v48, %v3828_v20  ;;  %v2195_v1 = vrot.slane %v3400_v48, %v3824_v17 }
 0x960   :  { %3659 = vset.pattern.permute.xlu1 %v5232_v60 }
 0x961   :  { %2229 = vperm.xlu1 %3659, %v2064_v13  }
 0x965   :  { %3661 = vset.pattern.permute.xlu1 %v5233_v34  ;;  %v2245_v34 = vrot.slane %v4548_v3, %v3822_v16 }
 0x966   :  { %2249 = vperm.xlu1 %3661, %v2064_v13  }
 0x96a   :  { %3662 = vset.pattern.permute.xlu1 %v5234_v28  ;;  %v2106_v28 = vrot.slane %v3399_v4, %v3835_v23 }
 0x96b   :  { %2259 = vperm.xlu1 %3662, %v2064_v13  }
 0x96f   :  { %3664 = vset.pattern.permute.xlu1 %v5235_v50 }
 0x970   :  { %2279 = vperm.xlu1 %3664, %v2064_v13  }
 0x974   :  { %3665 = vset.pattern.permute.xlu1 %v5236_v40 }
 0x975   :  { %2289 = vperm.xlu1 %3665, %v2064_v13  }
 0x979   :  { %3667 = vset.pattern.permute.xlu1 %v5237_v7  ;;  %v2175_v7 = vrot.slane %v3400_v48, %v3833_v22 }
 0x97a   :  { %2309 = vperm.xlu1 %3667, %v2064_v13  }
 0x97e   :  { %3668 = vset.pattern.permute.xlu1 %v5238_v19  ;;  %v2135_v19 = vrot.slane %v3399_v4, %v3828_v20 }
 0x97f   :  { %2319 = vperm.xlu1 %3668, %v2064_v13  }
 0x983   :  { %3670 = vset.pattern.permute.xlu1 %v5239_v12  ;;  %v2185_v12 = vrot.slane %v3400_v48, %v3835_v23 }
 0x984   :  { %2339 = vperm.xlu1 %3670, %v2064_v13  }
 0x988   :  { %3671 = vset.pattern.permute.xlu1 %v5240_v5  ;;  %v2088_v5 = vrot.slane %v3399_v4, %v3822_v16 }
 0x989   :  { %2349 = vperm.xlu1 %3671, %v2064_v13  }
 0x98d   :  { %3673 = vset.pattern.permute.xlu1 %v5241_v49  ;;  %v2165_v49 = vrot.slane %v3400_v48, %v3822_v16 }
 0x98e   :  { %2369 = vperm.xlu1 %3673, %v2064_v13  }
 0x992   :  { %3674 = vset.pattern.permute.xlu1 %v5242_v52  ;;  %v2079_v52 = vrot.slane %v3399_v4, %v3820_v15 }
 0x993   :  { %2379 = vperm.xlu1 %3674, %v2064_v13  }
 0x997   :  { %3676 = vset.pattern.permute.xlu1 %v5213_v9 }
 0x9a5   :  { %v2074_v61 = vpop.permute.xlu1 %2073  ;;  %v2092_v43 = vpop.permute.xlu0 %2091 }
 0x9a6   :  { %v2080_v50 = vmul.f32 %v2079_v52, %v2074_v61  ;;  %v2235_v52 = vrot.slane %v4548_v3, %v3820_v15 }
 0x9aa   :  { %v2083_v41 = vpop.permute.xlu1 %2082  ;;  %v2120_v46 = vpop.permute.xlu0 %2119 }
 0x9ab   :  { %v2126_v4 = vmul.f32 %v2125_v45, %v2120_v46  ;;  %v2098_v45 = vmul.f32 %v2097_v51, %v2092_v43 }
 0x9af   :  { %v2101_v62 = vpop.permute.xlu1 %2100  ;;  %v2150_v35 = vpop.permute.xlu0 %2149 }
 0x9b4   :  { %v2110_v30 = vpop.permute.xlu1 %2109  ;;  %v2180_v55 = vpop.permute.xlu0 %2179 }
 0x9b5   :  { %v2116_v9 = vmul.f32 %v2115_v37, %v2110_v30  ;;  %v2089_v37 = vmul.f32 %v2088_v5, %v2083_v41  ;;  %v2205_v30 = vrot.slane %v3400_v48, %v3826_v18  ;;  %v2107_v5 = vmul.f32 %v2106_v28, %v2101_v62 }
 0x9b7   :  { %v2117_v26 = vadd.f32 %v2116_v9, %v2080_v50  ;;  %v2127_v46 = vadd.f32 %v2126_v4, %v2089_v37  ;;  %v2255_v50 = vrot.slane %v4548_v3, %v3833_v22 }
 0x9b9   :  { %v2130_v33 = vpop.permute.xlu1 %2129  ;;  %v4520_v0 = vpop.permute.xlu0 %2209 }
 0x9ba   :  { %v2136_v58 = vmul.f32 %v2135_v19, %v2130_v33  ;;  %v2225_v19 = vrot.slane %v3400_v48, %v3837_v24  ;;  %v2186_v48 = vmul.f32 %v2185_v12, %v2180_v55 }
 0x9bc   :  { %v2137_v59 = vadd.f32 %v2136_v58, %v2098_v45 }
 0x9be   :  { %v2140_v29 = vpop.permute.xlu1 %2139  ;;  %v4524_v57 = vpop.permute.xlu0 %2239 }
 0x9bf   :  { %v2146_v10 = vmul.f32 %v2145_v53, %v2140_v29  ;;  %v2156_v53 = vmul.f32 %v2155_v39, %v2150_v35  ;;  %v3402_v39 = vld [vmem:[%s5085_s1 + $0x220] sm:$0xff] }
 0x9c1   :  { %v2147_v9 = vadd.f32 %v2146_v10, %v2107_v5  ;;  %v2157_v51 = vadd.f32 %v2156_v53, %v2117_v26  ;;  %v2295_v10 = vrot.slane %v4548_v3, %v3828_v20  ;;  %v2325_v26 = vrot.slane %v3402_v39, %v3822_v16 }
 0x9c3   :  { %v2160_v63 = vpop.permute.xlu1 %2159  ;;  %v4541_v40 = vpop.permute.xlu0 %2269 }
 0x9c4   :  { %v2166_v6 = vmul.f32 %v2165_v49, %v2160_v63  ;;  %v2265_v49 = vrot.slane %v4548_v3, %v3835_v23 }
 0x9c6   :  { %v2167_v63 = vadd.f32 %v2166_v6, %v2127_v46  ;;  %v2315_v6 = vrot.slane %v3402_v39, %v3820_v15 }
 0x9c8   :  { %v2170_v56 = vpop.permute.xlu1 %2169  ;;  %v2300_v61 = vpop.permute.xlu0 %2299 }
 0x9c9   :  { %v2176_v41 = vmul.f32 %v2175_v7, %v2170_v56  ;;  %v2285_v7 = vrot.slane %v4548_v3, %v3826_v18  ;;  %v2345_v3 = vrot.slane %v3402_v39, %v3835_v23 }
 0x9cb   :  { %v2177_v62 = vadd.f32 %v2176_v41, %v2137_v59  ;;  %v2187_v59 = vadd.f32 %v2186_v48, %v2147_v9  ;;  %v2306_v41 = vmul.f32 %v2305_v31, %v2300_v61  ;;  %v3403_v48 = vld [vmem:[%s5085_s1 + $0x228] sm:$0xff] }
 0x9cd   :  { %v2190_v32 = vpop.permute.xlu1 %2189  ;;  %v2330_v12 = vpop.permute.xlu0 %2329 }
 0x9ce   :  { %v2196_v29 = vmul.f32 %v2195_v1, %v2190_v32 }
 0x9d0   :  { %v2197_v1 = vadd.f32 %v2196_v29, %v2157_v51 }
 0x9d2   :  { %v2200_v25 = vpop.permute.xlu1 %2199  ;;  %v2360_v46 = vpop.permute.xlu0 %2359 }
 0x9d3   :  { %v2206_v44 = vmul.f32 %v2205_v30, %v2200_v25  ;;  %v2216_v25 = vmul.f32 %v2215_v2, %v4520_v0  ;;  %v2276_v2 = vmul.f32 %v2275_v38, %v4541_v40  ;;  %v2335_v0 = vrot.slane %v3402_v39, %v3833_v22 }
 0x9d5   :  { %v2207_v56 = vadd.f32 %v2206_v44, %v2167_v63  ;;  %v2355_v44 = vrot.slane %v3402_v39, %v3824_v17  ;;  %v2217_v4 = vadd.f32 %v2216_v25, %v2177_v62  ;;  %v2336_v9 = vmul.f32 %v2335_v0, %v2330_v12 }
 0x9d6   :  { %v5244_v25 = vmov 5   ;;  %v5245_v12 = vmov 9   ;;  %v5258_v0 = vmov 16  }
 0x9d7   :  { %v4512_v14 = vpop.permute.xlu1 %2219 }
 0x9d8   :  { %v2226_v58 = vmul.f32 %v2225_v19, %v4512_v14  ;;  %v2246_v14 = vmul.f32 %v2245_v34, %v4524_v57  ;;  %v2365_v19 = vrot.slane %v3402_v39, %v3826_v18 }
 0x9da   :  { %v2227_v55 = vadd.f32 %v2226_v58, %v2187_v59  ;;  %v5246_v59 = vmov 7  }
 0x9dc   :  { %v2230_v8 = vpop.permute.xlu1 %2229 }
 0x9dd   :  { %v2236_v28 = vmul.f32 %v2235_v52, %v2230_v8 }
 0x9df   :  { %v2237_v35 = vadd.f32 %v2236_v28, %v2197_v1 }
 0x9e1   :  { %v4514_v27 = vpop.permute.xlu1 %2249 }
 0x9e2   :  { %v2256_v43 = vmul.f32 %v2255_v50, %v4514_v27  ;;  %v2247_v27 = vadd.f32 %v2246_v14, %v2207_v56  ;;  %v5249_v14 = vmov 15  }
 0x9e4   :  { %v2257_v52 = vadd.f32 %v2256_v43, %v2217_v4  ;;  %v5247_v43 = vmov 12   ;;  %v5254_v4 = vmov 13  }
 0x9e6   :  { %v4516_v36 = vpop.permute.xlu1 %2259 }
 0x9e7   :  { %v2266_v8 = vmul.f32 %v2265_v49, %v4516_v36  ;;  %v2375_v36 = vrot.slane %v3402_v39, %v3828_v20 }
 0x9e9   :  { %v2267_v34 = vadd.f32 %v2266_v8, %v2227_v55  ;;  %v5248_v8 = vmov 8   ;;  %v5253_v55 = vmov 21  }
 0x9eb   :  { %v4518_v11 = vpop.permute.xlu1 %2279  ;;  %v2307_v63 = vadd.f32 %v2306_v41, %v2267_v34  ;;  %v5262_v34 = vmov 19   ;;  %v5266_v41 = vmov 25  }
 0x9ec   :  { %v2286_v37 = vmul.f32 %v2285_v7, %v4518_v11  ;;  %v2277_v11 = vadd.f32 %v2276_v2, %v2237_v35  ;;  %v5250_v35 = vmov 10   ;;  %v5257_v2 = vmov 27  }
 0x9ee   :  { %v2287_v38 = vadd.f32 %v2286_v37, %v2247_v27  ;;  %v5255_v37 = vmov 24   ;;  %v5259_v27 = vmov 30  }
 0x9f0   :  { %v4522_v47 = vpop.permute.xlu1 %2289 }
 0x9f1   :  { %v2296_v30 = vmul.f32 %v2295_v10, %v4522_v47  ;;  %v2385_v47 = vrot.slane %v3402_v39, %v3837_v24  ;;  %v2394_v10 = vrot.slane %v3403_v48, %v3820_v15 }
 0x9f3   :  { %v2297_v40 = vadd.f32 %v2296_v30, %v2257_v52  ;;  %v5256_v30 = vmov 14   ;;  %v5261_v52 = vmov 1  }
 0x9f5   :  { %v4529_v13 = vpop.permute.xlu1 %2309  ;;  %v2337_v31 = vadd.f32 %v2336_v9, %v2297_v40  ;;  %v3777_v40 = vmov 0.0  }
 0x9f6   :  { %v2316_v57 = vmul.f32 %v2315_v6, %v4529_v13  ;;  %v2366_v13 = vmul.f32 %v2365_v19, %v2360_v46  ;;  %v5267_v19 = vmov 26   ;;  %v5270_v46 = vmov 31   ;;  %3301 = vst [vmem:[%s5086_s3] sm:$0x3] %v3777_v40 }
 0x9f8   :  { %v2317_v50 = vadd.f32 %v2316_v57, %v2277_v11  ;;  %v5263_v57 = vmov 20   ;;  %v5268_v11 = vmov 28  }
 0x9fa   :  { %v4551_v60 = vpop.permute.xlu1 %2319 }
 0x9fb   :  { %v2326_v45 = vmul.f32 %v2325_v26, %v4551_v60 }
 0x9fd   :  { %v2327_v49 = vadd.f32 %v2326_v45, %v2287_v38  ;;  %v5264_v45 = vmov 22   ;;  %v5271_v38 = vmov 0  }
 0x9ff   :  { %v2340_v33 = vpop.permute.xlu1 %2339  ;;  %v2367_v62 = vadd.f32 %v2366_v13, %v2327_v49 }
 0xa00   :  { %v2346_v53 = vmul.f32 %v2345_v3, %v2340_v33  ;;  %v5251_v3 = vmov 18  }
 0xa02   :  { %v2347_v60 = vadd.f32 %v2346_v53, %v2307_v63 }
 0xa04   :  { %v2350_v32 = vpop.permute.xlu1 %2349 }
 0xa05   :  { %v2356_v29 = vmul.f32 %v2355_v44, %v2350_v32  ;;  %v5243_v32 = vmov 2   ;;  %v5252_v44 = vmov 11  }
 0xa07   :  { %v2357_v7 = vadd.f32 %v2356_v29, %v2317_v50 }
 0xa09   :  { %v2370_v5 = vpop.permute.xlu1 %2369  ;;  %v2388_v33 = vadd.f32 %v2367_v62, %v2357_v7 }
 0xa0a   :  { %v2376_v51 = vmul.f32 %v2375_v36, %v2370_v5  ;;  %v5260_v36 = vmov 17   ;;  %v5265_v5 = vmov 23  }
 0xa0c   :  { %v2377_v39 = vadd.f32 %v2376_v51, %v2337_v31 }
 0xa0e   :  { %v2380_v28 = vpop.permute.xlu1 %2379 }
 0xa0f   :  { %v2386_v61 = vmul.f32 %v2385_v47, %v2380_v28  ;;  %v5269_v47 = vmov 29  }
 0xa11   :  { %v2387_v58 = vadd.f32 %v2386_v61, %v2347_v60 }
 0xa13   :  { %v2389_v1 = vadd.f32 %v2387_v58, %v2377_v39 }
 0xa15   :  { %v2390_v56 = vadd.f32 %v2389_v1, %v2388_v33 }
 0xa17   :  { %v2395_v6 = vadd.f32 %v2394_v10, %v2390_v56 }
 0xa19   :  { %v2396_v26 = vmax.f32 %v2395_v6, 0.0 }
 0xa1b   :  { %2414 = vperm.xlu1 %3676, %v2396_v26   ;;  %2405 = vperm.xlu0 %3675, %v2396_v26  }
 0xa1f   :  { %3677 = vset.pattern.permute.xlu1 %v5243_v32  ;;  %3678 = vset.pattern.permute.xlu0 %v5215_v54 }
 0xa20   :  { %2423 = vperm.xlu1 %3677, %v2396_v26   ;;  %2432 = vperm.xlu0 %3678, %v2396_v26  }
 0xa24   :  { %3679 = vset.pattern.permute.xlu1 %v5217_v21  ;;  %3681 = vset.pattern.permute.xlu0 %v5219_v42 }
 0xa25   :  { %2441 = vperm.xlu1 %3679, %v2396_v26   ;;  %2461 = vperm.xlu0 %3681, %v2396_v26  }
 0xa29   :  { %3680 = vset.pattern.permute.xlu1 %v5244_v25  ;;  %3684 = vset.pattern.permute.xlu0 %v5245_v12 }
 0xa2a   :  { %2451 = vperm.xlu1 %3680, %v2396_v26   ;;  %2491 = vperm.xlu0 %3684, %v2396_v26  }
 0xa2e   :  { %3682 = vset.pattern.permute.xlu1 %v5246_v59  ;;  %3687 = vset.pattern.permute.xlu0 %v5247_v43 }
 0xa2f   :  { %2471 = vperm.xlu1 %3682, %v2396_v26   ;;  %2521 = vperm.xlu0 %3687, %v2396_v26  }
 0xa33   :  { %3683 = vset.pattern.permute.xlu1 %v5248_v8  ;;  %3690 = vset.pattern.permute.xlu0 %v5249_v14 }
 0xa34   :  { %2481 = vperm.xlu1 %3683, %v2396_v26   ;;  %2551 = vperm.xlu0 %3690, %v2396_v26  }
 0xa38   :  { %3685 = vset.pattern.permute.xlu1 %v5250_v35  ;;  %3693 = vset.pattern.permute.xlu0 %v5251_v3  ;;  %v4683_v35 = vld [vmem:[%s5085_s1 + $0x248] sm:$0xff] }
 0xa39   :  { %2501 = vperm.xlu1 %3685, %v2396_v26   ;;  %2581 = vperm.xlu0 %3693, %v2396_v26  }
 0xa3d   :  { %3686 = vset.pattern.permute.xlu1 %v5252_v44  ;;  %3696 = vset.pattern.permute.xlu0 %v5253_v55 }
 0xa3e   :  { %2511 = vperm.xlu1 %3686, %v2396_v26   ;;  %2611 = vperm.xlu0 %3696, %v2396_v26  }
 0xa42   :  { %3688 = vset.pattern.permute.xlu1 %v5254_v4  ;;  %3699 = vset.pattern.permute.xlu0 %v5255_v37 }
 0xa43   :  { %2531 = vperm.xlu1 %3688, %v2396_v26   ;;  %2641 = vperm.xlu0 %3699, %v2396_v26  }
 0xa47   :  { %3689 = vset.pattern.permute.xlu1 %v5256_v30  ;;  %3702 = vset.pattern.permute.xlu0 %v5257_v2  ;;  %v3406_v30 = vld [vmem:[%s5085_s1 + $0x240] sm:$0xff] }
 0xa48   :  { %2541 = vperm.xlu1 %3689, %v2396_v26   ;;  %2671 = vperm.xlu0 %3702, %v2396_v26   ;;  %v2577_v42 = vrot.slane %v3406_v30, %v3822_v16 }
 0xa4c   :  { %3691 = vset.pattern.permute.xlu1 %v5258_v0  ;;  %3705 = vset.pattern.permute.xlu0 %v5259_v27  ;;  %v3405_v27 = vld [vmem:[%s5085_s1 + $0x238] sm:$0xff]  ;;  %v2587_v0 = vrot.slane %v3406_v30, %v3833_v22 }
 0xa4d   :  { %2561 = vperm.xlu1 %3691, %v2396_v26   ;;  %2701 = vperm.xlu0 %3705, %v2396_v26   ;;  %v2487_v14 = vrot.slane %v3405_v27, %v3820_v15  ;;  %v2517_v44 = vrot.slane %v3405_v27, %v3835_v23  ;;  %v2547_v12 = vrot.slane %v3405_v27, %v3828_v20 }
 0xa51   :  { %3692 = vset.pattern.permute.xlu1 %v5260_v36  ;;  %3708 = vset.pattern.permute.xlu0 %v5261_v52  ;;  %v2497_v36 = vrot.slane %v3405_v27, %v3822_v16 }
 0xa52   :  { %2571 = vperm.xlu1 %3692, %v2396_v26  }
 0xa56   :  { %3694 = vset.pattern.permute.xlu1 %v5262_v34 }
 0xa57   :  { %2591 = vperm.xlu1 %3694, %v2396_v26  }
 0xa5b   :  { %3695 = vset.pattern.permute.xlu1 %v5263_v57 }
 0xa5c   :  { %2601 = vperm.xlu1 %3695, %v2396_v26  }
 0xa60   :  { %3697 = vset.pattern.permute.xlu1 %v5264_v45  ;;  %v2537_v45 = vrot.slane %v3405_v27, %v3826_v18 }
 0xa61   :  { %2621 = vperm.xlu1 %3697, %v2396_v26  }
 0xa65   :  { %3698 = vset.pattern.permute.xlu1 %v5265_v5 }
 0xa66   :  { %2631 = vperm.xlu1 %3698, %v2396_v26  }
 0xa6a   :  { %3700 = vset.pattern.permute.xlu1 %v5266_v41  ;;  %v2527_v41 = vrot.slane %v3405_v27, %v3824_v17 }
 0xa6b   :  { %2651 = vperm.xlu1 %3700, %v2396_v26  }
 0xa6f   :  { %3701 = vset.pattern.permute.xlu1 %v5267_v19 }
 0xa70   :  { %2661 = vperm.xlu1 %3701, %v2396_v26  }
 0xa74   :  { %3703 = vset.pattern.permute.xlu1 %v5268_v11 }
 0xa75   :  { %2681 = vperm.xlu1 %3703, %v2396_v26  }
 0xa79   :  { %3704 = vset.pattern.permute.xlu1 %v5269_v47 }
 0xa7a   :  { %2691 = vperm.xlu1 %3704, %v2396_v26  }
 0xa7e   :  { %3706 = vset.pattern.permute.xlu1 %v5270_v46  ;;  %v2507_v46 = vrot.slane %v3405_v27, %v3833_v22 }
 0xa7f   :  { %2711 = vperm.xlu1 %3706, %v2396_v26   ;;  %v3404_v26 = vld [vmem:[%s5085_s1 + $0x230] sm:$0xff] }
 0xa80   :  { %v2447_v40 = vrot.slane %v3404_v26, %v3824_v17  ;;  %v2420_v47 = vrot.slane %v3404_v26, %v3822_v16  ;;  %v2467_v2 = vrot.slane %v3404_v26, %v3828_v20  ;;  %v2411_v19 = vrot.slane %v3404_v26, %v3820_v15 }
 0xa81   :  { %v2429_v37 = vrot.slane %v3404_v26, %v3833_v22  ;;  %v2438_v5 = vrot.slane %v3404_v26, %v3835_v23  ;;  %v2477_v55 = vrot.slane %v3404_v26, %v3837_v24 }
 0xa83   :  { %3707 = vset.pattern.permute.xlu1 %v5271_v38  ;;  %v2457_v38 = vrot.slane %v3404_v26, %v3826_v18  ;;  %v2557_v26 = vrot.slane %v3405_v27, %v3837_v24  ;;  %v2617_v27 = vrot.slane %v3406_v30, %v3826_v18 }
 0xa96   :  { %v2415_v53 = vpop.permute.xlu1 %2414  ;;  %v2406_v28 = vpop.permute.xlu0 %2405 }
 0xa97   :  { %v2412_v34 = vmul.f32 %v2411_v19, %v2406_v28 }
 0xa9b   :  { %v2424_v29 = vpop.permute.xlu1 %2423  ;;  %v2433_v7 = vpop.permute.xlu0 %2432 }
 0xa9c   :  { %v2430_v4 = vmul.f32 %v2429_v37, %v2424_v29 }
 0xaa0   :  { %v2442_v9 = vpop.permute.xlu1 %2441  ;;  %v2462_v61 = vpop.permute.xlu0 %2461 }
 0xaa1   :  { %v2448_v43 = vmul.f32 %v2447_v40, %v2442_v9 }
 0xaa5   :  { %v2452_v50 = vpop.permute.xlu1 %2451  ;;  %v2492_v62 = vpop.permute.xlu0 %2491 }
 0xaa6   :  { %v2458_v3 = vmul.f32 %v2457_v38, %v2452_v50  ;;  %v2421_v50 = vmul.f32 %v2420_v47, %v2415_v53  ;;  %v2468_v38 = vmul.f32 %v2467_v2, %v2462_v61  ;;  %v2439_v2 = vmul.f32 %v2438_v5, %v2433_v7 }
 0xaa7   :  { %v2449_v47 = vadd.f32 %v2448_v43, %v2412_v34  ;;  %v2498_v28 = vmul.f32 %v2497_v36, %v2492_v62  ;;  %v2637_v36 = vrot.slane %v3406_v30, %v3837_v24 }
 0xaa8   :  { %v2459_v9 = vadd.f32 %v2458_v3, %v2421_v50  ;;  %v2567_v3 = vrot.slane %v3406_v30, %v3820_v15 }
 0xaaa   :  { %v2472_v49 = vpop.permute.xlu1 %2471  ;;  %v2522_v33 = vpop.permute.xlu0 %2521  ;;  %v2499_v29 = vadd.f32 %v2498_v28, %v2459_v9 }
 0xaab   :  { %v2478_v8 = vmul.f32 %v2477_v55, %v2472_v49  ;;  %v2469_v49 = vadd.f32 %v2468_v38, %v2430_v4  ;;  %v2627_v4 = vrot.slane %v3406_v30, %v3828_v20 }
 0xaad   :  { %v2479_v37 = vadd.f32 %v2478_v8, %v2439_v2 }
 0xaaf   :  { %v2482_v63 = vpop.permute.xlu1 %2481  ;;  %v4641_v1 = vpop.permute.xlu0 %2551 }
 0xab0   :  { %v2488_v40 = vmul.f32 %v2487_v14, %v2482_v63  ;;  %v2647_v14 = vrot.slane %v4683_v35, %v3820_v15  ;;  %v2607_v63 = vrot.slane %v3406_v30, %v3824_v17 }
 0xab2   :  { %v2489_v5 = vadd.f32 %v2488_v40, %v2449_v47 }
 0xab4   :  { %v2502_v51 = vpop.permute.xlu1 %2501  ;;  %v4645_v6 = vpop.permute.xlu0 %2581 }
 0xab5   :  { %v2508_v25 = vmul.f32 %v2507_v46, %v2502_v51  ;;  %v2597_v46 = vrot.slane %v3406_v30, %v3835_v23  ;;  %v2657_v51 = vrot.slane %v4683_v35, %v3822_v16  ;;  %v2588_v62 = vmul.f32 %v2587_v0, %v4645_v6 }
 0xab6   :  { %v2687_v0 = vrot.slane %v4683_v35, %v3824_v17 }
 0xab7   :  { %v2509_v43 = vadd.f32 %v2508_v25, %v2469_v49 }
 0xab9   :  { %v2512_v13 = vpop.permute.xlu1 %2511  ;;  %v4663_v57 = vpop.permute.xlu0 %2611 }
 0xaba   :  { %v2518_v53 = vmul.f32 %v2517_v44, %v2512_v13 }
 0xabc   :  { %v2519_v34 = vadd.f32 %v2518_v53, %v2479_v37 }
 0xabe   :  { %v2532_v60 = vpop.permute.xlu1 %2531  ;;  %v2642_v19 = vpop.permute.xlu0 %2641 }
 0xabf   :  { %v2538_v61 = vmul.f32 %v2537_v45, %v2532_v60  ;;  %v2558_v60 = vmul.f32 %v2557_v26, %v4641_v1  ;;  %v2648_v28 = vmul.f32 %v2647_v14, %v2642_v19 }
 0xac1   :  { %v2539_v8 = vadd.f32 %v2538_v61, %v2499_v29 }
 0xac3   :  { %v2542_v31 = vpop.permute.xlu1 %2541  ;;  %v2672_v7 = vpop.permute.xlu0 %2671 }
 0xac4   :  { %v2548_v54 = vmul.f32 %v2547_v12, %v2542_v31  ;;  %v2528_v12 = vmul.f32 %v2527_v41, %v2522_v33  ;;  %v2667_v31 = vrot.slane %v4683_v35, %v3833_v22 }
 0xac6   :  { %v2549_v45 = vadd.f32 %v2548_v54, %v2509_v43  ;;  %v2529_v30 = vadd.f32 %v2528_v12, %v2489_v5  ;;  %v2697_v54 = vrot.slane %v4683_v35, %v3826_v18 }
 0xac8   :  { %v4635_v48 = vpop.permute.xlu1 %2561  ;;  %v2589_v50 = vadd.f32 %v2588_v62, %v2549_v45  ;;  %v5272_v45 = vld [vmem:[#allocation6_spill] sm:$0xff]  ;;  %v5282_v62 = vmov 22  }
 0xac9   :  { %v2568_v25 = vmul.f32 %v2567_v3, %v4635_v48  ;;  %v2618_v48 = vmul.f32 %v2617_v27, %v4663_v57  ;;  %v2717_v57 = vrot.slane %v4683_v35, %v3837_v24 }
 0xacb   :  { %v2569_v6 = vadd.f32 %v2568_v25, %v2529_v30  ;;  %v5279_v25 = vmov 8   ;;  %v5283_v30 = vmov 11  }
 0xacd   :  { %v2572_v39 = vpop.permute.xlu1 %2571 }
 0xace   :  { %v2578_v44 = vmul.f32 %v2577_v42, %v2572_v39  ;;  %v2559_v39 = vadd.f32 %v2558_v60, %v2519_v34  ;;  %v5274_v60 = vmov 10  }
 0xad0   :  { %v2579_v41 = vadd.f32 %v2578_v44, %v2539_v8 }
 0xad2   :  { %v4637_v58 = vpop.permute.xlu1 %2591 }
 0xad3   :  { %v2598_v42 = vmul.f32 %v2597_v46, %v4637_v58  ;;  %v2677_v58 = vrot.slane %v4683_v35, %v3835_v23 }
 0xad5   :  { %v2599_v38 = vadd.f32 %v2598_v42, %v2559_v39  ;;  %v2678_v61 = vmul.f32 %v2677_v58, %v2672_v7  ;;  %v5275_v7 = vmov 5   ;;  %v5280_v42 = vmov 19  }
 0xad6   :  { %v5286_v39 = vmov 28   ;;  %v3778_v58 = vmov 33  }
 0xad7   :  { %v4639_v10 = vpop.permute.xlu1 %2601 }
 0xad8   :  { %v2608_v33 = vmul.f32 %v2607_v63, %v4639_v10  ;;  %v2707_v10 = vrot.slane %v4683_v35, %v3828_v20  ;;  %v3408_v35 = vld [vmem:[%s5085_s1 + $0x250] sm:$0xff] }
 0xad9   :  { %v2726_v19 = vrot.slane %v3408_v35, %v3820_v15 }
 0xada   :  { %v2609_v47 = vadd.f32 %v2608_v33, %v2569_v6  ;;  %v5287_v33 = vmov 14   ;;  %v3779_v6 = vmov 35  }
 0xadc   :  { %v4643_v56 = vpop.permute.xlu1 %2621  ;;  %v2649_v29 = vadd.f32 %v2648_v28, %v2609_v47  ;;  %v3780_v47 = vmov 32  }
 0xadd   :  { %v2628_v1 = vmul.f32 %v2627_v4, %v4643_v56  ;;  %v2619_v56 = vadd.f32 %v2618_v48, %v2579_v41  ;;  %v5284_v41 = vmov 25   ;;  %v5290_v48 = vmov 17  }
 0xadf   :  { %v2629_v53 = vadd.f32 %v2628_v1, %v2589_v50  ;;  %v5288_v1 = vmov 31   ;;  %v3744_v50 = vld [vmem:[%s5084_s0] sm:$0x3] }
 0xae1   :  { %v4650_v52 = vpop.permute.xlu1 %2631 }
 0xae2   :  { %v2638_v26 = vmul.f32 %v2637_v36, %v4650_v52  ;;  %v2702_v52 = vpop.permute.xlu0 %2701 }
 0xae4   :  { %v2639_v27 = vadd.f32 %v2638_v26, %v2599_v38  ;;  %v5289_v26 = vmov 15   ;;  %v5292_v38 = vmov 20  }
 0xae6   :  { %v4671_v11 = vpop.permute.xlu1 %2651  ;;  %v2679_v43 = vadd.f32 %v2678_v61, %v2639_v27  ;;  %v2730_v27 = vld [vmem:[%s5087_s2 + $0x8] sm:$0xff] }
 0xae7   :  { %v2658_v9 = vmul.f32 %v2657_v51, %v4671_v11  ;;  %v2708_v11 = vmul.f32 %v2707_v10, %v2702_v52  ;;  %v5296_v10 = vmov 26   ;;  %v5299_v52 = vmov 30  }
 0xae8   :  { %v2751_v61 = vrot.slane %v2730_v27, %v3820_v15 }
 0xae9   :  { %v2659_v37 = vadd.f32 %v2658_v9, %v2619_v56  ;;  %v5293_v9 = vmov 21   ;;  %v5297_v56 = vmov 27  }
 0xaeb   :  { %v2662_v55 = vpop.permute.xlu1 %2661 }
 0xaec   :  { %v2668_v40 = vmul.f32 %v2667_v31, %v2662_v55  ;;  %v5281_v31 = vmov 9  }
 0xaee   :  { %v2669_v3 = vadd.f32 %v2668_v40, %v2629_v53  ;;  %v5294_v40 = vmov 23   ;;  %v3781_v53 = vmov 34  }
 0xaf0   :  { %v2682_v13 = vpop.permute.xlu1 %2681  ;;  %v2709_v34 = vadd.f32 %v2708_v11, %v2669_v3 }
 0xaf1   :  { %v2688_v46 = vmul.f32 %v2687_v0, %v2682_v13  ;;  %v5273_v13 = vmov 3   ;;  %v5291_v0 = vmov 18  }
 0xaf3   :  { %v2689_v63 = vadd.f32 %v2688_v46, %v2649_v29  ;;  %v2855_v29 = vrot.slane %v2730_v27, %v3837_v24 }
 0xaf5   :  { %v2692_v2 = vpop.permute.xlu1 %2691 }
 0xaf6   :  { %v2698_v49 = vmul.f32 %v2697_v54, %v2692_v2  ;;  %v5285_v54 = vmov 12   ;;  %v5295_v2 = vmov 24  }
 0xaf8   :  { %v2699_v5 = vadd.f32 %v2698_v49, %v2659_v37  ;;  %v2807_v37 = vrot.slane %v2730_v27, %v3824_v17 }
 0xafa   :  { %v2712_v55 = vpop.permute.xlu1 %2711  ;;  %v2720_v36 = vadd.f32 %v2699_v5, %v2689_v63  ;;  %v2793_v5 = vrot.slane %v2730_v27, %v3835_v23 }
 0xafb   :  { %v2718_v44 = vmul.f32 %v2717_v57, %v2712_v55  ;;  %v5298_v57 = vmov 29  }
 0xafd   :  { %v2719_v4 = vadd.f32 %v2718_v44, %v2679_v43 }
 0xaff   :  { %v2721_v14 = vadd.f32 %v2719_v4, %v2709_v34  ;;  %v2765_v4 = vrot.slane %v2730_v27, %v3822_v16 }
 0xb01   :  { %v2722_v12 = vadd.f32 %v2721_v14, %v2720_v36  ;;  %v2823_v36 = vrot.slane %v2730_v27, %v3826_v18 }
 0xb03   :  { %v2727_v8 = vadd.f32 %v2726_v19, %v2722_v12 }
 0xb05   :  { %v4721_v51 = vadd.f32 %v2727_v8, %v5272_v45  ;;  %v2732_v8 = vld [vmem:[%s5087_s2 + $0x18] sm:$0xff] }
 0xb07   :  { %2755 = vperm.xlu0 %3708, %v4721_v51   ;;  %2741 = vperm.xlu1 %3707, %v4721_v51   ;;  %3303 = vst.msk [vmem:[%s5086_s3] sm:$0x3] %vm3302_vm0, %v4721_v51 }
 0xb0b   :  { %3711 = vset.pattern.permute.xlu0 %v5217_v21  ;;  %3709 = vset.pattern.permute.xlu1 %v5243_v32  ;;  %v5276_v21 = vmov 13   ;;  %v5277_v32 = vmov 6  }
 0xb0c   :  { %2797 = vperm.xlu0 %3711, %v4721_v51   ;;  %2769 = vperm.xlu1 %3709, %v4721_v51  }
 0xb10   :  { %3714 = vset.pattern.permute.xlu0 %v5246_v59  ;;  %3710 = vset.pattern.permute.xlu1 %v5273_v13  ;;  %v5278_v59 = vmov 16   ;;  %v2839_v13 = vrot.slane %v2730_v27, %v3828_v20 }
 0xb11   :  { %2845 = vperm.xlu0 %3714, %v4721_v51   ;;  %2783 = vperm.xlu1 %3710, %v4721_v51  }
 0xb15   :  { %3717 = vset.pattern.permute.xlu0 %v5274_v60  ;;  %3712 = vset.pattern.permute.xlu1 %v5275_v7  ;;  %v2903_v7 = vrot.slane %v2732_v8, %v3833_v22 }
 0xb16   :  { %2893 = vperm.xlu0 %3717, %v4721_v51   ;;  %2813 = vperm.xlu1 %3712, %v4721_v51  }
 0xb1a   :  { %3720 = vset.pattern.permute.xlu0 %v5276_v21  ;;  %3713 = vset.pattern.permute.xlu1 %v5277_v32 }
 0xb1b   :  { %2941 = vperm.xlu0 %3720, %v4721_v51   ;;  %2829 = vperm.xlu1 %3713, %v4721_v51  }
 0xb1f   :  { %3723 = vset.pattern.permute.xlu0 %v5278_v59  ;;  %3715 = vset.pattern.permute.xlu1 %v5279_v25 }
 0xb20   :  { %2989 = vperm.xlu0 %3723, %v4721_v51   ;;  %2861 = vperm.xlu1 %3715, %v4721_v51  }
 0xb24   :  { %3726 = vset.pattern.permute.xlu0 %v5280_v42  ;;  %3716 = vset.pattern.permute.xlu1 %v5281_v31  ;;  %v2871_v42 = vrot.slane %v2732_v8, %v3820_v15 }
 0xb25   :  { %3037 = vperm.xlu0 %3726, %v4721_v51   ;;  %2877 = vperm.xlu1 %3716, %v4721_v51  }
 0xb29   :  { %3729 = vset.pattern.permute.xlu0 %v5282_v62  ;;  %3718 = vset.pattern.permute.xlu1 %v5283_v30 }
 0xb2a   :  { %3085 = vperm.xlu0 %3729, %v4721_v51   ;;  %2909 = vperm.xlu1 %3718, %v4721_v51  }
 0xb2e   :  { %3732 = vset.pattern.permute.xlu0 %v5284_v41  ;;  %3719 = vset.pattern.permute.xlu1 %v5285_v54 }
 0xb2f   :  { %3133 = vperm.xlu0 %3732, %v4721_v51   ;;  %2925 = vperm.xlu1 %3719, %v4721_v51  }
 0xb33   :  { %3735 = vset.pattern.permute.xlu0 %v5286_v39  ;;  %3721 = vset.pattern.permute.xlu1 %v5287_v33  ;;  %v2887_v39 = vrot.slane %v2732_v8, %v3822_v16 }
 0xb34   :  { %3181 = vperm.xlu0 %3735, %v4721_v51   ;;  %2957 = vperm.xlu1 %3721, %v4721_v51  }
 0xb38   :  { %3738 = vset.pattern.permute.xlu0 %v5288_v1  ;;  %3722 = vset.pattern.permute.xlu1 %v5289_v26  ;;  %v2951_v1 = vrot.slane %v2732_v8, %v3826_v18 }
 0xb39   :  { %3229 = vperm.xlu0 %3738, %v4721_v51   ;;  %2973 = vperm.xlu1 %3722, %v4721_v51  }
 0xb3d   :  { %3724 = vset.pattern.permute.xlu1 %v5290_v48  ;;  %3741 = vset.pattern.permute.xlu0 %v3778_v58 }
 0xb3e   :  { %3005 = vperm.xlu1 %3724, %v4721_v51   ;;  %3271 = vperm.xlu0 %3741, %v3744_v50  }
 0xb42   :  { %3725 = vset.pattern.permute.xlu1 %v5291_v0  ;;  %3743 = vset.pattern.permute.xlu0 %v3779_v6 }
 0xb43   :  { %3021 = vperm.xlu1 %3725, %v4721_v51  }
 0xb47   :  { %3727 = vset.pattern.permute.xlu1 %v5292_v38 }
 0xb48   :  { %3053 = vperm.xlu1 %3727, %v4721_v51  }
 0xb4c   :  { %3728 = vset.pattern.permute.xlu1 %v5293_v9 }
 0xb4d   :  { %3069 = vperm.xlu1 %3728, %v4721_v51  }
 0xb51   :  { %3730 = vset.pattern.permute.xlu1 %v5294_v40  ;;  %v4852_v40 = vld [vmem:[%s5087_s2 + $0x28] sm:$0xff] }
 0xb52   :  { %3101 = vperm.xlu1 %3730, %v4721_v51  }
 0xb56   :  { %3731 = vset.pattern.permute.xlu1 %v5295_v2 }
 0xb57   :  { %3117 = vperm.xlu1 %3731, %v4721_v51  }
 0xb5b   :  { %3733 = vset.pattern.permute.xlu1 %v5296_v10  ;;  %v2935_v10 = vrot.slane %v2732_v8, %v3824_v17 }
 0xb5c   :  { %3149 = vperm.xlu1 %3733, %v4721_v51  }
 0xb60   :  { %3734 = vset.pattern.permute.xlu1 %v5297_v56 }
 0xb61   :  { %3165 = vperm.xlu1 %3734, %v4721_v51  }
 0xb65   :  { %3736 = vset.pattern.permute.xlu1 %v5298_v57  ;;  %v2999_v57 = vrot.slane %v4852_v40, %v3820_v15 }
 0xb66   :  { %3197 = vperm.xlu1 %3736, %v4721_v51  }
 0xb6a   :  { %3737 = vset.pattern.permute.xlu1 %v5299_v52 }
 0xb6b   :  { %3213 = vperm.xlu1 %3737, %v4721_v51   ;;  %v2779_v51 = vrot.slane %v2730_v27, %v3833_v22  ;;  %v2967_v27 = vrot.slane %v2732_v8, %v3828_v20 }
 0xb6f   :  { %3739 = vset.pattern.permute.xlu1 %v3779_v6 }
 0xb70   :  { %3286 = vperm.xlu1 %3739, %v3744_v50  }
 0xb74   :  { %3740 = vset.pattern.permute.xlu1 %v3780_v47 }
 0xb75   :  { %3261 = vperm.xlu1 %3740, %v3744_v50  }
 0xb79   :  { %3742 = vset.pattern.permute.xlu1 %v3781_v53 }
 0xb7a   :  { %3276 = vperm.xlu1 %3742, %v3744_v50   ;;  %v2919_v50 = vrot.slane %v2732_v8, %v3835_v23 }
 0xb82   :  { %v4795_v49 = vpop.permute.xlu0 %2755  ;;  %v4797_v28 = vpop.permute.xlu1 %2741 }
 0xb83   :  { %v2753_v11 = vmul.f32 %v2751_v61, %v4797_v28  ;;  %v2767_v12 = vmul.f32 %v2765_v4, %v4795_v49 }
 0xb87   :  { %v4801_v3 = vpop.permute.xlu0 %2797  ;;  %v4803_v46 = vpop.permute.xlu1 %2769 }
 0xb88   :  { %v2809_v55 = vmul.f32 %v2807_v37, %v4801_v3  ;;  %v2781_v59 = vmul.f32 %v2779_v51, %v4803_v46 }
 0xb8a   :  { %v2811_v43 = vadd.f32 %v2809_v55, %v2753_v11 }
 0xb8c   :  { %v4809_v44 = vpop.permute.xlu0 %2845  ;;  %v4811_v35 = vpop.permute.xlu1 %2783 }
 0xb8d   :  { %v2857_v34 = vmul.f32 %v2855_v29, %v4809_v44  ;;  %v2795_v63 = vmul.f32 %v2793_v5, %v4811_v35  ;;  %v2983_v5 = vrot.slane %v2732_v8, %v3837_v24 }
 0xb8f   :  { %v2859_v19 = vadd.f32 %v2857_v34, %v2795_v63  ;;  %v3047_v34 = vrot.slane %v4852_v40, %v3835_v23 }
 0xb91   :  { %v4817_v14 = vpop.permute.xlu1 %2813  ;;  %v4827_v21 = vpop.permute.xlu0 %2893 }
 0xb92   :  { %v2825_v45 = vmul.f32 %v2823_v36, %v4817_v14  ;;  %v2905_v31 = vmul.f32 %v2903_v7, %v4827_v21 }
 0xb94   :  { %v2827_v60 = vadd.f32 %v2825_v45, %v2767_v12 }
 0xb96   :  { %v4829_v32 = vpop.permute.xlu1 %2829  ;;  %v4840_v26 = vpop.permute.xlu0 %2941 }
 0xb97   :  { %v2841_v25 = vmul.f32 %v2839_v13, %v4829_v32  ;;  %v2953_v0 = vmul.f32 %v2951_v1, %v4840_v26  ;;  %v4901_v1 = vld [vmem:[%s5087_s2 + $0x38] sm:$0xff] }
 0xb99   :  { %v2843_v62 = vadd.f32 %v2841_v25, %v2781_v59  ;;  %v3095_v59 = vrot.slane %v4852_v40, %v3828_v20 }
 0xb9b   :  { %v4835_v30 = vpop.permute.xlu1 %2861  ;;  %v2907_v41 = vadd.f32 %v2905_v31, %v2843_v62  ;;  %v4858_v52 = vpop.permute.xlu0 %2989  ;;  %v3063_v62 = vrot.slane %v4852_v40, %v3824_v17 }
 0xb9c   :  { %v2873_v54 = vmul.f32 %v2871_v42, %v4835_v30  ;;  %v3001_v61 = vmul.f32 %v2999_v57, %v4858_v52 }
 0xb9e   :  { %v2875_v33 = vadd.f32 %v2873_v54, %v2811_v43 }
 0xba0   :  { %v4842_v48 = vpop.permute.xlu1 %2877  ;;  %v4871_v63 = vpop.permute.xlu0 %3037 }
 0xba1   :  { %v2889_v58 = vmul.f32 %v2887_v39, %v4842_v48  ;;  %5300 = vst [vmem:[#allocation5_spill] sm:$0xff] %v4871_v63  ;;  %v3049_v12 = vmul.f32 %v3047_v34, %v4871_v63 }
 0xba3   :  { %v2891_v6 = vadd.f32 %v2889_v58, %v2827_v60  ;;  %v3031_v60 = vrot.slane %v4852_v40, %v3833_v22 }
 0xba5   :  { %v4847_v38 = vpop.permute.xlu1 %2909  ;;  %v2955_v9 = vadd.f32 %v2953_v0, %v2891_v6  ;;  %v4886_v25 = vpop.permute.xlu0 %3085  ;;  %v2729_v6 = vld [vmem:[%s5087_s2] sm:$0xff] }
 0xba6   :  { %v2921_v2 = vmul.f32 %v2919_v50, %v4847_v38  ;;  %5301 = vst [vmem:[#allocation6_spill] sm:$0xff] %v4886_v25  ;;  %v3079_v50 = vrot.slane %v4852_v40, %v3826_v18 }
 0xba8   :  { %v2923_v56 = vadd.f32 %v2921_v2, %v2859_v19  ;;  %v3015_v19 = vrot.slane %v4852_v40, %v3822_v16 }
 0xbaa   :  { %v4860_v47 = vpop.permute.xlu1 %2925  ;;  %v4911_v2 = vpop.permute.xlu0 %3133 }
 0xbab   :  { %v2937_v53 = vmul.f32 %v2935_v10, %v4860_v47  ;;  %5303 = vst [vmem:[#allocation8_spill] sm:$0xff] %v4911_v2 }
 0xbad   :  { %v2939_v37 = vadd.f32 %v2937_v53, %v2875_v33  ;;  %v2761_v53 = vrot.slane %v2729_v6, %v3822_v16 }
 0xbaf   :  { %v4865_v11 = vpop.permute.xlu1 %2957  ;;  %v3003_v55 = vadd.f32 %v3001_v61, %v2939_v37  ;;  %v2803_v61 = vrot.slane %v2729_v6, %v3824_v17  ;;  %v4927_v37 = vld [vmem:[%s5087_s2 + $0x20] sm:$0xff] }
 0xbb0   :  { %v2969_v29 = vmul.f32 %v2967_v27, %v4865_v11  ;;  %v2747_v27 = vrot.slane %v2729_v6, %v3820_v15 }
 0xbb2   :  { %v2971_v43 = vadd.f32 %v2969_v29, %v2907_v41  ;;  %v3097_v41 = vmul.f32 %v3095_v59, %v4886_v25  ;;  %v2775_v29 = vrot.slane %v2729_v6, %v3833_v22 }
 0xbb4   :  { %v4873_v4 = vpop.permute.xlu1 %2973 }
 0xbb5   :  { %v2985_v36 = vmul.f32 %v2983_v5, %v4873_v4  ;;  %v2851_v5 = vrot.slane %v2729_v6, %v3837_v24 }
 0xbb7   :  { %v2987_v45 = vadd.f32 %v2985_v36, %v2923_v56  ;;  %v4918_v56 = vld [vmem:[%s5087_s2 + $0x10] sm:$0xff]  ;;  %v2789_v36 = vrot.slane %v2729_v6, %v3835_v23 }
 0xbb9   :  { %v4879_v51 = vpop.permute.xlu1 %3005  ;;  %v3051_v13 = vadd.f32 %v3049_v12, %v2987_v45  ;;  %v2819_v12 = vrot.slane %v2729_v6, %v3826_v18  ;;  %v2947_v45 = vrot.slane %v4918_v56, %v3826_v18 }
 0xbba   :  { %v3017_v8 = vmul.f32 %v3015_v19, %v4879_v51  ;;  %v2899_v19 = vrot.slane %v4918_v56, %v3833_v22 }
 0xbbc   :  { %v3019_v7 = vadd.f32 %v3017_v8, %v2955_v9  ;;  %v3143_v9 = vrot.slane %v4901_v1, %v3822_v16  ;;  %v2835_v8 = vrot.slane %v2729_v6, %v3828_v20  ;;  %v3075_v6 = vrot.slane %v4927_v37, %v3826_v18 }
 0xbbe   :  { %v4888_v42 = vpop.permute.xlu1 %3021 }
 0xbbf   :  { %v3033_v31 = vmul.f32 %v3031_v60, %v4888_v42  ;;  %v2979_v60 = vrot.slane %v4918_v56, %v3837_v24 }
 0xbc1   :  { %v3035_v54 = vadd.f32 %v3033_v31, %v2971_v43  ;;  %v3145_v43 = vmul.f32 %v3143_v9, %v4911_v2  ;;  %v2931_v9 = vrot.slane %v4918_v56, %v3824_v17  ;;  %v4986_v2 = vpop.permute.xlu0 %3181 }
 0xbc3   :  { %v4894_v39 = vpop.permute.xlu1 %3053  ;;  %v4896_v33 = vadd.f32 %v3097_v41, %v3035_v54  ;;  %v2883_v41 = vrot.slane %v4918_v56, %v3822_v16 }
 0xbc4   :  { %5302 = vst [vmem:[#allocation7_spill] sm:$0xff] %v4894_v39  ;;  %v3065_v58 = vmul.f32 %v3063_v62, %v4894_v39  ;;  %v3239_v62 = vrot.slane %v4901_v1, %v3837_v24  ;;  %v2752_v39 = vmul.f32 %v2747_v27, %v4797_v28  ;;  %v2984_v27 = vmul.f32 %v2979_v60, %v4873_v4 }
 0xbc5   :  { %v2888_v63 = vmul.f32 %v2883_v41, %v4842_v48  ;;  %v2936_v48 = vmul.f32 %v2931_v9, %v4860_v47  ;;  %v2952_v47 = vmul.f32 %v2947_v45, %v4840_v26  ;;  %v3207_v26 = vrot.slane %v4901_v1, %v3826_v18 }
 0xbc6   :  { %v3067_v0 = vadd.f32 %v3065_v58, %v3003_v55  ;;  %v3111_v55 = vrot.slane %v4852_v40, %v3837_v24  ;;  %v4943_v40 = vld [vmem:[%s5087_s2 + $0x30] sm:$0xff]  ;;  %v5309_v9 = vrot.slane %v4927_v37, %v3835_v23 }
 0xbc8   :  { %v4913_v10 = vpop.permute.xlu1 %3069 }
 0xbc9   :  { %v3081_v57 = vmul.f32 %v3079_v50, %v4913_v10  ;;  %v2915_v50 = vrot.slane %v4918_v56, %v3835_v23 }
 0xbcb   :  { %v3083_v34 = vadd.f32 %v3081_v57, %v3019_v7  ;;  %v2867_v7 = vrot.slane %v4918_v56, %v3820_v15  ;;  %v3127_v57 = vrot.slane %v4901_v1, %v3820_v15 }
 0xbcd   :  { %v4950_v59 = vpop.permute.xlu1 %3101  ;;  %v4952_v31 = vadd.f32 %v3145_v43, %v3083_v34  ;;  %v3191_v34 = vrot.slane %v4901_v1, %v3824_v17  ;;  %v3011_v43 = vrot.slane %v4927_v37, %v3822_v16  ;;  %v2824_v16 = vmul.f32 %v2819_v12, %v4817_v14 }
 0xbce   :  { %5304 = vst [vmem:[#allocation9_spill] sm:$0xff] %v4950_v59  ;;  %v3113_v58 = vmul.f32 %v3111_v55, %v4950_v59  ;;  %v2963_v55 = vrot.slane %v4918_v56, %v3828_v20  ;;  %v2856_v20 = vmul.f32 %v2851_v5, %v4809_v44  ;;  %v2794_v56 = vmul.f32 %v2789_v36, %v4811_v35 }
 0xbcf   :  { %5305 = vst [vmem:[#allocation10_spill] sm:$0xff] %v4952_v31  ;;  %v2808_v31 = vmul.f32 %v2803_v61, %v4801_v3  ;;  %v2766_v3 = vmul.f32 %v2761_v53, %v4795_v49  ;;  %v2840_v61 = vmul.f32 %v2835_v8, %v4829_v32  ;;  %v3107_v59 = vrot.slane %v4927_v37, %v3837_v24 }
 0xbd0   :  { %v4975_v54 = vadd.f32 %v3113_v58, %v3051_v13  ;;  %v3027_v13 = vrot.slane %v4927_v37, %v3833_v22  ;;  %v3059_v58 = vrot.slane %v4927_v37, %v3824_v17  ;;  %v3159_v17 = vrot.slane %v4901_v1, %v3833_v22 }
 0xbd1   :  { %v3193_v44 = vmul.f32 %v3191_v34, %v4986_v2  ;;  %v2780_v14 = vmul.f32 %v2775_v29, %v4803_v46  ;;  %v2872_v5 = vmul.f32 %v2867_v7, %v4835_v30  ;;  %v2920_v49 = vmul.f32 %v2915_v50, %v4847_v38  ;;  %v5308_v50 = vld [vmem:[#allocation5_spill] sm:$0xff] }
 0xbd2   :  { %5306 = vst [vmem:[#allocation11_spill] sm:$0xff] %v4975_v54  ;;  %v3118_v25 = vpop.permute.xlu1 %3117  ;;  %v3123_v32 = vrot.slane %v4943_v40, %v3820_v15  ;;  %v2810_v53 = vadd.f32 %v2808_v31, %v2752_v39  ;;  %v2858_v36 = vadd.f32 %v2856_v20, %v2794_v56  ;;  %v2826_v12 = vadd.f32 %v2824_v16, %v2766_v3  ;;  %v3230_v31 = vpop.permute.xlu0 %3229 }
 0xbd3   :  { %v3129_v54 = vmul.f32 %v3127_v57, %v3118_v25  ;;  %v2842_v28 = vadd.f32 %v2840_v61, %v2780_v14  ;;  %v2904_v46 = vmul.f32 %v2899_v19, %v4827_v21  ;;  %v3155_v30 = vrot.slane %v4943_v40, %v3833_v22  ;;  %v5313_v14 = vld [vmem:[#allocation4_spill] sm:$0xff] }
 0xbd4   :  { %v2890_v29 = vadd.f32 %v2888_v63, %v2826_v12  ;;  %v3175_v38 = vrot.slane %v4901_v1, %v3835_v23  ;;  %v2874_v39 = vadd.f32 %v2872_v5, %v2810_v53  ;;  %v2922_v20 = vadd.f32 %v2920_v49, %v2858_v36  ;;  %v5314_v12 = vld [vmem:[#allocation6_spill] sm:$0xff] }
 0xbd5   :  { %v3131_v35 = vadd.f32 %v3129_v54, %v3067_v0  ;;  %v2968_v16 = vmul.f32 %v2963_v55, %v4865_v11  ;;  %v3171_v21 = vrot.slane %v4943_v40, %v3835_v23  ;;  %v3203_v22 = vrot.slane %v4943_v40, %v3826_v18 }
 0xbd6   :  { %v2938_v63 = vadd.f32 %v2936_v48, %v2874_v39  ;;  %v2906_v4 = vadd.f32 %v2904_v46, %v2842_v28  ;;  %v2986_v19 = vadd.f32 %v2984_v27, %v2922_v20  ;;  %v3032_v60 = vmul.f32 %v3027_v13, %v4888_v42  ;;  %v5310_v13 = vld [vmem:[#allocation7_spill] sm:$0xff]  ;;  %v5316_v28 = vld [vmem:[#allocation8_spill] sm:$0xff]  ;;  %v5319_v39 = vld [vmem:[#allocation10_spill] sm:$0xff] }
 0xbd7   :  { %v3195_v8 = vadd.f32 %v3193_v44, %v3131_v35  ;;  %v3150_v57 = vpop.permute.xlu1 %3149  ;;  %v2954_v11 = vadd.f32 %v2952_v47, %v2890_v29  ;;  %v3241_v42 = vmul.f32 %v3239_v62, %v3230_v31  ;;  %v3064_v56 = vmul.f32 %v3059_v58, %v5310_v13 }
 0xbd8   :  { %v3161_v0 = vmul.f32 %v3159_v17, %v3150_v57  ;;  %v3016_v17 = vmul.f32 %v3011_v43, %v4879_v51  ;;  %v5307_v51 = vrot.slane %v4927_v37, %v3820_v15  ;;  %v3048_v43 = vmul.f32 %v5309_v9, %v5308_v50 }
 0xbd9   :  { %v2970_v34 = vadd.f32 %v2968_v16, %v2906_v4  ;;  %v5312_v3 = vld [vmem:[#allocation11_spill] sm:$0xff]  ;;  %v3128_v49 = vmul.f32 %v3123_v32, %v3118_v25  ;;  %v5315_v62 = vrot.slane %v4927_v37, %v5313_v14  ;;  %v3223_v46 = vrot.slane %v4901_v1, %v5313_v14 }
 0xbda   :  { %v3163_v7 = vadd.f32 %v3161_v0, %v4896_v33  ;;  %v3080_v33 = vmul.f32 %v3075_v6, %v4913_v10  ;;  %v3000_v45 = vmul.f32 %v5307_v51, %v4858_v52  ;;  %v3018_v55 = vadd.f32 %v3016_v17, %v2954_v11  ;;  %v5311_v10 = vld [vmem:[#allocation9_spill] sm:$0xff] }
 0xbdb   :  { %v3112_v6 = vmul.f32 %v3107_v59, %v5311_v10  ;;  %v3034_v18 = vadd.f32 %v3032_v60, %v2970_v34  ;;  %v3050_v35 = vadd.f32 %v3048_v43, %v2986_v19  ;;  %v3219_v52 = vrot.slane %v4943_v40, %v5313_v14  ;;  %v5317_v59 = vld [vmem:[#allocation2_spill] sm:$0xff] }
 0xbdc   :  { %v3166_v41 = vpop.permute.xlu1 %3165  ;;  %v3002_v44 = vadd.f32 %v3000_v45, %v2938_v63  ;;  %v3082_v5 = vadd.f32 %v3080_v33, %v3018_v55  ;;  %v3096_v58 = vmul.f32 %v5315_v62, %v5314_v12  ;;  %v5318_v48 = vrot.slane %v4943_v40, %v5317_v59  ;;  %v2737_v33 = vld [vmem:[%s5087_s2 + $0x40] sm:$0xff] }
 0xbdd   :  { %v3177_v54 = vmul.f32 %v3175_v38, %v3166_v41  ;;  %v3176_v53 = vmul.f32 %v3171_v21, %v3166_v41  ;;  %v3114_v38 = vadd.f32 %v3112_v6, %v3050_v35  ;;  %v3160_v25 = vmul.f32 %v3155_v30, %v3150_v57  ;;  %v5320_v21 = vld [vmem:[#allocation3_spill] sm:$0xff] }
 0xbde   :  { %v3144_v27 = vmul.f32 %v5318_v48, %v5316_v28  ;;  %v3066_v29 = vadd.f32 %v3064_v56, %v3002_v44  ;;  %v3098_v47 = vadd.f32 %v3096_v58, %v3034_v18  ;;  %v5321_v63 = vrot.slane %v4943_v40, %v5320_v21 }
 0xbdf   :  { %v3179_v61 = vadd.f32 %v3177_v54, %v5312_v3  ;;  %v3178_v17 = vadd.f32 %v3176_v53, %v3114_v38  ;;  %v5322_v19 = vrot.slane %v4943_v40, %v3837_v24 }
 0xbe0   :  { %v3130_v16 = vadd.f32 %v3128_v49, %v3066_v29  ;;  %v3146_v37 = vadd.f32 %v3144_v27, %v3082_v5  ;;  %v3192_v4 = vmul.f32 %v5321_v63, %v4986_v2  ;;  %v3162_v11 = vadd.f32 %v3160_v25, %v3098_v47 }
 0xbe1   :  { %v3243_v23 = vadd.f32 %v3241_v42, %v3179_v61  ;;  %v3198_v36 = vpop.permute.xlu1 %3197  ;;  %v3240_v60 = vmul.f32 %v5322_v19, %v3230_v31  ;;  %v3253_v2 = vrot.slane %v2737_v33, %v3820_v15 }
 0xbe2   :  { %v3209_v0 = vmul.f32 %v3207_v26, %v3198_v36  ;;  %v3208_v32 = vmul.f32 %v3203_v22, %v3198_v36  ;;  %v3194_v54 = vadd.f32 %v3192_v4, %v3130_v16 }
 0xbe3   :  { %v3242_v26 = vadd.f32 %v3240_v60, %v3178_v17 }
 0xbe4   :  { %v3211_v20 = vadd.f32 %v3209_v0, %v5319_v39  ;;  %v3210_v57 = vadd.f32 %v3208_v32, %v3146_v37 }
 0xbe6   :  { %v3245_v1 = vadd.f32 %v3211_v20, %v3195_v8  ;;  %v3214_v41 = vpop.permute.xlu1 %3213  ;;  %v3244_v50 = vadd.f32 %v3210_v57, %v3194_v54 }
 0xbe7   :  { %v3224_v30 = vmul.f32 %v3219_v52, %v3214_v41  ;;  %v3225_v22 = vmul.f32 %v3223_v46, %v3214_v41  ;;  %v2738_v46 = vld [vmem:[%s5087_s2 + $0x48] sm:$0xff] }
 0xbe8   :  { %v3257_v29 = vrot.slane %v2738_v46, %v3820_v15 }
 0xbe9   :  { %v3226_v51 = vadd.f32 %v3224_v30, %v3162_v11  ;;  %v3227_v45 = vadd.f32 %v3225_v22, %v3163_v7  ;;  %v3272_v7 = vpop.permute.xlu0 %3271 }
 0xbeb   :  { %v3246_v9 = vadd.f32 %v3242_v26, %v3226_v51  ;;  %v3247_v24 = vadd.f32 %v3243_v23, %v3227_v45  ;;  %v3287_v40 = vpop.permute.xlu1 %3286 }
 0xbed   :  { %v3248_v8 = vadd.f32 %v3246_v9, %v3244_v50  ;;  %v3249_v31 = vadd.f32 %v3247_v24, %v3245_v1 }
 0xbef   :  { %v3258_v43 = vadd.f32 %v3253_v2, %v3248_v8  ;;  %v3259_v38 = vadd.f32 %v3257_v29, %v3249_v31 }
 0xbf0   :  { %v3262_v34 = vpop.permute.xlu1 %3261 }
 0xbf1   :  { %v3289_v42 = vmul.f32 %v3287_v40, %v3258_v43  ;;  %v3264_v55 = vmul.f32 %v3262_v34, %v3258_v43  ;;  %v3274_v10 = vmul.f32 %v3272_v7, %v3258_v43 }
 0xbf3   :  { %3291 = vrot.lane.b32.xlu1 %v3289_v42, %s3782_s22  ;;  %3266 = vrot.lane.b32.xlu0 %v3264_v55, %s3783_s23 }
 0xbf5   :  { %v3277_v13 = vpop.permute.xlu1 %3276 }
 0xbf6   :  { %v3279_v56 = vmul.f32 %v3277_v13, %v3258_v43 }
 0xbf8   :  { %3281 = vrot.lane.b32.xlu1 %v3279_v56, %s3784_s24 }
 0xc65   :  { %v3292_v6 = vpop.permute.xlu1 %3291  ;;  %v3267_v61 = vpop.permute.xlu0 %3266 }
 0xc66   :  { %v3294_v3 = vadd.f32 %v3292_v6, %v3274_v10  ;;  %v3269_v44 = vadd.f32 %v3267_v61, %v3258_v43 }
 0xc68   :  { %3296 = vrot.lane.b32.xlu0 %v3294_v3, %s3785_s25 }
 0xc6a   :  { %v3282_v18 = vpop.permute.xlu1 %3281 }
 0xc6b   :  { %v3284_v35 = vadd.f32 %v3282_v18, %v3269_v44 }
 0xcda   :  { %v3297_v14 = vpop.permute.xlu0 %3296 }
 0xcdb   :  { %v3299_v52 = vadd.f32 %v3297_v14, %v3284_v35 }
 0xcdd   :  { %v3300_v5 = vmax.f32 %v3299_v52, 0.0 }
 0xcdf   :  { %3324 = vrot.lane.b32.xlu0 %v3300_v5, %s3784_s24  ;;  %3305 = vrot.lane.b32.xlu1 %v3300_v5, %s3786_s26 }
 0xce3   :  { %3342 = vrot.lane.b32.xlu1 %v3300_v5, %s3785_s25 }
 0xd51   :  { %v3325_v49 = vpop.permute.xlu0 %3324  ;;  %v3306_v53 = vpop.permute.xlu1 %3305 }
 0xd52   :  { %v3327_v23 = vmul.f32 %v3325_v49, %v3258_v43  ;;  %v3308_v36 = vmul.f32 %v3306_v53, %v3258_v43 }
 0xd54   :  { %3329 = vrot.lane.b32.xlu1 %v3327_v23, %s3784_s24  ;;  %3310 = vrot.lane.b32.xlu0 %v3308_v36, %s3785_s25 }
 0xd55   :  { %v3343_v12 = vpop.permute.xlu1 %3342 }
 0xd56   :  { %v3345_v62 = vmul.f32 %v3343_v12, %v3258_v43 }
 0xd58   :  { %3347 = vrot.lane.b32.xlu0 %v3345_v62, %s3786_s26 }
 0xdc6   :  { %v3311_v58 = vpop.permute.xlu0 %3310  ;;  %v3330_v28 = vpop.permute.xlu1 %3329 }
 0xdc7   :  { %v3314_v59 = vsel %vm3313_vm1, %v3311_v58, 0.0  ;;  %v3332_v48 = vsel %vm3313_vm1, %v3330_v28, 0.0 }
 0xdc8   :  { %3315 = vadd.xlane.f32.xlu1 %v3314_v59  ;;  %3333 = vadd.xlane.f32.xlu0 %v3332_v48 }
 0xdca   :  { %v3348_v27 = vpop.permute.xlu0 %3347 }
 0xdcb   :  { %v3350_v0 = vsel %vm3313_vm1, %v3348_v27, 0.0 }
 0xdcc   :  { %3351 = vadd.xlane.f32.xlu0 %v3350_v0 }
 0xe51   :  { %v3334_v25 = vpop.xlane.xlu0 %3333  ;;  %v3316_v32 = vpop.xlane.xlu1 %3315 }
 0xe52   :  { %v3335_v39 = vadd.f32 %v3334_v25, %v3259_v38  ;;  %v3317_v20 = vadd.f32 %v3316_v32, %v3259_v38 }
 0xe54   :  { %3337 = vrot.lane.b32.xlu0 %v3335_v39, %s3784_s24  ;;  %3319 = vrot.lane.b32.xlu1 %v3317_v20, %s3784_s24 }
 0xe55   :  { %v3352_v16 = vpop.xlane.xlu0 %3351 }
 0xe56   :  { %v3353_v47 = vadd.f32 %v3352_v16, %v3259_v38 }
 0xe58   :  { %3355 = vrot.lane.b32.xlu1 %v3353_v47, %s3784_s24 }
 0xec6   :  { %v3338_v17 = vpop.permute.xlu0 %3337  ;;  %v3320_v37 = vpop.permute.xlu1 %3319 }
 0xec7   :  { %3323 = vst.msk [vmem:[%s5086_s3] sm:$0x3] %vm3322_vm2, %v3320_v37 }
 0xec8   :  { %3341 = vst.msk [vmem:[%s5086_s3] sm:$0x3] %vm3340_vm3, %v3338_v17 }
 0xeca   :  { %v3356_v15 = vpop.permute.xlu1 %3355 }
 0xecb   :  { %3359 = vst.msk [vmem:[%s5086_s3] sm:$0x3] %vm3358_vm4, %v3356_v15 }

</bundles_post_ra>
